<compile_context>
chip_gen: v7x
topology: tpu7x:2x2x1
jax: 0.10.0
libtpu: 0.0.40
codegen_flags: <defaults>
</compile_context>

<pallas_src>
import functools

import jax
import jax.numpy as jnp
from jax import lax
from jax.experimental import pallas as pl
from jax.experimental.pallas import tpu as pltpu

H = 128          # LSTM hidden size
ENC_OUT = 64     # real encoder channels
C_IN = 126       # 42 landmarks * 3 coords
C_PAD = 128      # lane-padded input features
ENC_PAD = 128    # lane-padded encoder channels
NCLS_PAD = 128   # lane-padded classifier output


# ----------------------------- fused kernel ---------------------------------
def _fused_kernel(x_ref, enc_w_ref, enc_b_ref, wih_ref, gbias_ref,
                  whh_hbm, w1_hbm, w2_hbm, b1_ref, b2_ref,
                  o_ref,
                  g_ref, whh_ref, w1_ref, w2_ref, sem,
                  *, T, Bp):
    bf16 = jnp.bfloat16
    f32 = jnp.float32
    H4 = 4 * H

    # --- overlap the big weight DMAs with the up-front batched matmuls ------
    whh_cp = pltpu.make_async_copy(whh_hbm, whh_ref, sem.at[0]); whh_cp.start()
    w1_cp = pltpu.make_async_copy(w1_hbm, w1_ref, sem.at[1]); w1_cp.start()
    w2_cp = pltpu.make_async_copy(w2_hbm, w2_ref, sem.at[2]); w2_cp.start()

    # --- encoder: Conv1d(126->64, k=1) + folded BatchNorm + ReLU (Dropout = eval no-op)
    enc = jnp.dot(x_ref[...], enc_w_ref[...],
                  preferred_element_type=f32) + enc_b_ref[...]
    enc = jnp.maximum(enc, 0.0)                                    # (T*Bp, 128)

    # --- hoisted input->hidden projection for BOTH directions (one big matmul)
    g_ref[...] = jnp.dot(enc.astype(bf16), wih_ref[...],
                         preferred_element_type=f32) + gbias_ref[...]   # (T*Bp, 1024)

    whh_cp.wait()   # block-diag whh needed from the first recurrence step on

    # --- bidirectional LSTM recurrence, ONE block-diagonal matmul per step --
    # TODO(synk): on v7x the fwd/bwd directions could instead be split across the two
    # TensorCores (pl.core_map over pltpu.create_tensorcore_mesh); block-diag fusion here.
    # TODO(synk): whh could be kept MXU weight-stationary across the 8 steps via
    # pltpu.matmul_push_rhs / matmul_acc_lhs / matmul_pop; jnp.dot kept for portability.
    def step(t, carry):
        h_cat, c_cat, acc = carry
        tb = T - 1 - t
        hh = jnp.dot(h_cat.astype(bf16), whh_ref[...],
                     preferred_element_type=f32)                   # (Bp, 8H) f32
        gf = g_ref[pl.ds(pl.multiple_of(t * Bp, 8), Bp), pl.ds(0, H4)] + hh[:, :H4]
        gb = g_ref[pl.ds(pl.multiple_of(tb * Bp, 8), Bp), pl.ds(H4, H4)] + hh[:, H4:]

        def lstm_gates(gates, c):
            # TODO(synk): on v6e/v7x these nonlinearities could run in bf16 (bf16 EUP/VPU);
            # kept f32 so the same kernel stays optimal on v5e.
            i = jax.nn.sigmoid(gates[:, 0:H])
            f = jax.nn.sigmoid(gates[:, H:2 * H])
            g = jnp.tanh(gates[:, 2 * H:3 * H])
            o = jax.nn.sigmoid(gates[:, 3 * H:4 * H])
            c_new = f * c + i * g
            return o * jnp.tanh(c_new), c_new

        hf, cf = lstm_gates(gf, c_cat[:, :H])
        hb, cb = lstm_gates(gb, c_cat[:, H:])
        h_new = jnp.concatenate([hf, hb], axis=1)                  # (Bp, 2H)
        c_new = jnp.concatenate([cf, cb], axis=1)
        return h_new, c_new, acc + h_new

    zeros = jnp.zeros((Bp, 2 * H), f32)
    _, _, acc = lax.fori_loop(0, T, step, (zeros, zeros, zeros), unroll=True)
    feat = acc * (1.0 / T)                                         # time mean, (Bp, 2H)

    # --- classifier: Linear(256->128) + ReLU + Linear(128->num_classes) (Dropout no-op)
    w1_cp.wait()
    w2_cp.wait()
    h1 = jnp.dot(feat.astype(bf16), w1_ref[...],
                 preferred_element_type=f32) + b1_ref[...]
    h1 = jnp.maximum(h1, 0.0)
    o_ref[...] = jnp.dot(h1.astype(bf16), w2_ref[...],
                         preferred_element_type=f32) + b2_ref[...]


# ----------------------------- param preparation ----------------------------
def prepare_params(p, num_classes=28):
    """Fold BN, build block-diag whh, transpose, lane-pad and bf16-cast once."""
    assert num_classes <= NCLS_PAD
    eps = 1e-5
    f32 = jnp.float32
    bf16 = jnp.bfloat16
    H4 = 4 * H

    # fold eval-mode BatchNorm into the k=1 conv
    scale = p['bn_gamma'] / jnp.sqrt(p['bn_var'] + eps)
    enc_w = (p['conv_w'] * scale[:, None]).T                       # (126, 64)
    enc_b = (p['conv_b'] - p['bn_mean']) * scale + p['bn_beta']    # (64,)
    enc_w_pad = jnp.zeros((C_PAD, ENC_PAD), f32).at[:C_IN, :ENC_OUT].set(enc_w)
    enc_b_pad = jnp.zeros((1, ENC_PAD), f32).at[0, :ENC_OUT].set(enc_b)

    def pad_wih(w):                     # (4H, 64) -> (128, 4H), zero rows for padded chans
        return jnp.zeros((ENC_PAD, H4), f32).at[:ENC_OUT, :].set(w.T)

    wih = jnp.concatenate([pad_wih(p['wih_f']), pad_wih(p['wih_b'])], axis=1)  # (128, 1024)
    gbias = jnp.concatenate([p['bih_f'] + p['bhh_f'],
                             p['bih_b'] + p['bhh_b']])[None, :].astype(f32)    # (1, 1024)

    # block-diagonal hidden->hidden: [hf|hb] @ whh gives [gates_f(512) | gates_b(512)]
    whh = jnp.zeros((2 * H, 8 * H), f32)
    whh = whh.at[:H, :H4].set(p['whh_f'].T)
    whh = whh.at[H:, H4:].set(p['whh_b'].T)

    w2_pad = jnp.zeros((H, NCLS_PAD), f32).at[:, :num_classes].set(p['w2'].T)
    b2_pad = jnp.zeros((1, NCLS_PAD), f32).at[0, :num_classes].set(p['b2'])

    return dict(
        enc_w=enc_w_pad.astype(bf16), enc_b=enc_b_pad,
        wih=wih.astype(bf16), gbias=gbias,
        whh=whh.astype(bf16),
        w1=p['w1'].T.astype(bf16), b1=p['b1'][None, :].astype(f32),
        w2=w2_pad.astype(bf16), b2=b2_pad,
    )


# ----------------------------- wrapper --------------------------------------
def kannada_sign_forward(x, w, num_classes=28):
    B, T = x.shape[0], x.shape[1]
    Bp = max(8, ((B + 7) // 8) * 8)                       # sublane-aligned batch
    x2 = x.reshape(B, T, -1).astype(jnp.float32)          # (B, T, 126)
    x2 = jnp.pad(x2, ((0, Bp - B), (0, 0), (0, C_PAD - x2.shape[-1])))  # (Bp, T, 128)
    # time-major (T*Bp, 128), bf16 so the only activation DMA is half size
    x_tm = x2.transpose(1, 0, 2).reshape(T * Bp, C_PAD).astype(jnp.bfloat16)

    vmem = pl.BlockSpec(memory_space=pltpu.MemorySpace.VMEM)
    hbm = pl.BlockSpec(memory_space=pl.ANY)               # DMA'd manually inside the kernel
    kernel = functools.partial(_fused_kernel, T=T, Bp=Bp)
    # TODO(synk): if Bp is scaled up for serving, tile the batch with a "parallel" grid axis
    # and store g in bf16 so the scratch stays inside v7x's smaller VMEM.
    out = pl.pallas_call(
        kernel,
        out_shape=jax.ShapeDtypeStruct((Bp, NCLS_PAD), jnp.float32),
        in_specs=[vmem, vmem, vmem, vmem, vmem, hbm, hbm, hbm, vmem, vmem],
        out_specs=vmem,
        scratch_shapes=[
            pltpu.VMEM((T * Bp, 8 * H), jnp.float32),     # hoisted gate pre-activations
            pltpu.VMEM((2 * H, 8 * H), jnp.bfloat16),     # whh (block-diag), DMA target
            pltpu.VMEM((2 * H, H), jnp.bfloat16),         # w1, DMA target
            pltpu.VMEM((H, NCLS_PAD), jnp.bfloat16),      # w2, DMA target
            pltpu.SemaphoreType.DMA((3,)),
        ],
    )(x_tm, w['enc_w'], w['enc_b'], w['wih'], w['gbias'],
      w['whh'], w['w1'], w['w2'], w['b1'], w['b2'])
    return out[:B, :num_classes]


# ----------------------------- reference (pure JAX, f32) ---------------------
def reference_forward(x, p, num_classes=28):
    B, T = x.shape[0], x.shape[1]
    x2 = x.reshape(B, T, -1).astype(jnp.float32)
    eps = 1e-5
    y = jnp.einsum('btc,oc->bto', x2, p['conv_w']) + p['conv_b']
    scale = p['bn_gamma'] / jnp.sqrt(p['bn_var'] + eps)
    y = jnp.maximum((y - p['bn_mean']) * scale + p['bn_beta'], 0.0)

    def make_step(wih, whh, b):
        def step(carry, x_t):
            h, c = carry
            gates = x_t @ wih.T + h @ whh.T + b
            i, f, g, o = jnp.split(gates, 4, axis=-1)
            i, f, o = jax.nn.sigmoid(i), jax.nn.sigmoid(f), jax.nn.sigmoid(o)
            g = jnp.tanh(g)
            c = f * c + i * g
            h = o * jnp.tanh(c)
            return (h, c), h
        return step

    h0 = jnp.zeros((B, H), jnp.float32)
    c0 = jnp.zeros((B, H), jnp.float32)
    xs = y.transpose(1, 0, 2)
    _, hf = lax.scan(make_step(p['wih_f'], p['whh_f'], p['bih_f'] + p['bhh_f']), (h0, c0), xs)
    _, hb = lax.scan(make_step(p['wih_b'], p['whh_b'], p['bih_b'] + p['bhh_b']), (h0, c0), xs[::-1])
    out = jnp.concatenate([hf, hb[::-1]], axis=-1)      # (T, B, 256)
    feat = out.mean(axis=0)                             # (B, 256)
    h = jnp.maximum(feat @ p['w1'].T + p['b1'], 0.0)
    return h @ p['w2'].T + p['b2']


# ----------------------------- params ---------------------------------------
def init_params(key, num_classes=28):
    ks = jax.random.split(key, 18)
    n = lambda k, s, sc: (sc * jax.random.normal(k, s)).astype(jnp.float32)
    return {
        'conv_w': n(ks[0], (ENC_OUT, C_IN), 0.08),
        'conv_b': n(ks[1], (ENC_OUT,), 0.05),
        'bn_gamma': (1.0 + 0.1 * jax.random.normal(ks[2], (ENC_OUT,))).astype(jnp.float32),
        'bn_beta': n(ks[3], (ENC_OUT,), 0.05),
        'bn_mean': n(ks[4], (ENC_OUT,), 0.05),
        'bn_var': jnp.abs(1.0 + 0.1 * jax.random.normal(ks[5], (ENC_OUT,))).astype(jnp.float32),
        'wih_f': n(ks[6], (4 * H, ENC_OUT), 0.05),
        'whh_f': n(ks[7], (4 * H, H), 0.05),
        'bih_f': n(ks[8], (4 * H,), 0.05),
        'bhh_f': n(ks[9], (4 * H,), 0.05),
        'wih_b': n(ks[10], (4 * H, ENC_OUT), 0.05),
        'whh_b': n(ks[11], (4 * H, H), 0.05),
        'bih_b': n(ks[12], (4 * H,), 0.05),
        'bhh_b': n(ks[13], (4 * H,), 0.05),
        'w1': n(ks[14], (128, 2 * H), 0.05),
        'b1': n(ks[15], (128,), 0.05),
        'w2': n(ks[16], (num_classes, 128), 0.05),
        'b2': n(ks[17], (num_classes,), 0.05),
    }


if __name__ == "__main__":
    key = jax.random.PRNGKey(0)
    k_param, k_x = jax.random.split(key)
    num_classes = 28
    B, T = 2, 8
    x = jax.random.normal(k_x, (B, T, 42, 3), dtype=jnp.float32)   # 42*3 = 126 features
    params = init_params(k_param, num_classes)
    prepped = prepare_params(params, num_classes)

    logits = kannada_sign_forward(x, prepped, num_classes)
    logits = jax.block_until_ready(logits)

    ref = reference_forward(x, params, num_classes)
    assert logits.shape == (B, num_classes)
    # bf16 matmul operands / bf16 input (f32 accumulation) => modest tolerance vs f32 ref
    assert jnp.allclose(logits, ref, atol=2e-2, rtol=2e-2), (
        f"max abs diff {jnp.max(jnp.abs(logits - ref))}")
    print("KERNEL_OK")
</pallas_src>

<mosaic_0001>
module attributes {stable_mosaic.version = 11 : i64} {
  func.func @_fused_kernel(%arg0: memref<64x128xbf16, #tpu.memory_space<vmem>>, %arg1: memref<128x128xbf16, #tpu.memory_space<vmem>>, %arg2: memref<1x128xf32, #tpu.memory_space<vmem>>, %arg3: memref<128x1024xbf16, #tpu.memory_space<vmem>>, %arg4: memref<1x1024xf32, #tpu.memory_space<vmem>>, %arg5: memref<256x1024xbf16, #tpu.memory_space<any>>, %arg6: memref<256x128xbf16, #tpu.memory_space<any>>, %arg7: memref<128x128xbf16, #tpu.memory_space<any>>, %arg8: memref<1x128xf32, #tpu.memory_space<vmem>>, %arg9: memref<1x128xf32, #tpu.memory_space<vmem>>, %arg10: memref<8x128xf32, #tpu.memory_space<vmem>>, %arg11: memref<64x1024xf32, #tpu.memory_space<vmem>>, %arg12: memref<256x1024xbf16, #tpu.memory_space<vmem>>, %arg13: memref<256x128xbf16, #tpu.memory_space<vmem>>, %arg14: memref<128x128xbf16, #tpu.memory_space<vmem>>, %arg15: memref<3x!tpu.dma_semaphore, #tpu.memory_space<semaphore_mem>>) attributes {dimension_semantics = [], scalar_prefetch = 0 : i64, scratch_operands = 5 : i64, tpu.core_type = #tpu.core_type<tc>} {
    %c0_i32 = arith.constant 0 : i32
    %0 = tpu.memref_slice %arg15[%c0_i32] : memref<3x!tpu.dma_semaphore, #tpu.memory_space<semaphore_mem>> -> memref<1x!tpu.dma_semaphore, #tpu.memory_space<semaphore_mem>>
    %1 = tpu.memref_squeeze %0 : memref<1x!tpu.dma_semaphore, #tpu.memory_space<semaphore_mem>> -> memref<!tpu.dma_semaphore, #tpu.memory_space<semaphore_mem>>
    tpu.enqueue_dma source(%arg5 : memref<256x1024xbf16, #tpu.memory_space<any>>) target(%arg12 : memref<256x1024xbf16, #tpu.memory_space<vmem>>) target_semaphore(%1 : memref<!tpu.dma_semaphore, #tpu.memory_space<semaphore_mem>>)
    %c1_i32 = arith.constant 1 : i32
    %2 = tpu.memref_slice %arg15[%c1_i32] : memref<3x!tpu.dma_semaphore, #tpu.memory_space<semaphore_mem>> -> memref<1x!tpu.dma_semaphore, #tpu.memory_space<semaphore_mem>>
    %3 = tpu.memref_squeeze %2 : memref<1x!tpu.dma_semaphore, #tpu.memory_space<semaphore_mem>> -> memref<!tpu.dma_semaphore, #tpu.memory_space<semaphore_mem>>
    tpu.enqueue_dma source(%arg6 : memref<256x128xbf16, #tpu.memory_space<any>>) target(%arg13 : memref<256x128xbf16, #tpu.memory_space<vmem>>) target_semaphore(%3 : memref<!tpu.dma_semaphore, #tpu.memory_space<semaphore_mem>>)
    %c2_i32 = arith.constant 2 : i32
    %4 = tpu.memref_slice %arg15[%c2_i32] : memref<3x!tpu.dma_semaphore, #tpu.memory_space<semaphore_mem>> -> memref<1x!tpu.dma_semaphore, #tpu.memory_space<semaphore_mem>>
    %5 = tpu.memref_squeeze %4 : memref<1x!tpu.dma_semaphore, #tpu.memory_space<semaphore_mem>> -> memref<!tpu.dma_semaphore, #tpu.memory_space<semaphore_mem>>
    tpu.enqueue_dma source(%arg7 : memref<128x128xbf16, #tpu.memory_space<any>>) target(%arg14 : memref<128x128xbf16, #tpu.memory_space<vmem>>) target_semaphore(%5 : memref<!tpu.dma_semaphore, #tpu.memory_space<semaphore_mem>>)
    %c0 = arith.constant 0 : index
    %c0_0 = arith.constant 0 : index
    %6 = vector.load %arg0[%c0, %c0_0] : memref<64x128xbf16, #tpu.memory_space<vmem>>, vector<64x128xbf16>
    %c0_1 = arith.constant 0 : index
    %c0_2 = arith.constant 0 : index
    %7 = vector.load %arg1[%c0_1, %c0_2] : memref<128x128xbf16, #tpu.memory_space<vmem>>, vector<128x128xbf16>
    %cst = arith.constant dense<0.000000e+00> : vector<64x128xf32>
    %8 = tpu.matmul %6, %7, %cst {dimension_numbers = #tpu.dot_dimension_numbers<[1], [0], [0], [1], [0, 0, 1, 1], [], []>} : vector<64x128xbf16>, vector<128x128xbf16>, vector<64x128xf32> -> vector<64x128xf32>
    %c0_3 = arith.constant 0 : index
    %c0_4 = arith.constant 0 : index
    %9 = vector.load %arg2[%c0_3, %c0_4] : memref<1x128xf32, #tpu.memory_space<vmem>>, vector<1x128xf32>
    %10 = vector.broadcast %9 : vector<1x128xf32> to vector<64x128xf32>
    %11 = arith.addf %8, %10 : vector<64x128xf32>
    %cst_5 = arith.constant 0.000000e+00 : f32
    %12 = vector.broadcast %cst_5 : f32 to vector<64x128xf32>
    %13 = arith.maximumf %11, %12 : vector<64x128xf32>
    %14 = arith.truncf %13 : vector<64x128xf32> to vector<64x128xbf16>
    %c0_6 = arith.constant 0 : index
    %c0_7 = arith.constant 0 : index
    %15 = vector.load %arg3[%c0_6, %c0_7] : memref<128x1024xbf16, #tpu.memory_space<vmem>>, vector<128x1024xbf16>
    %cst_8 = arith.constant dense<0.000000e+00> : vector<64x1024xf32>
    %16 = tpu.matmul %14, %15, %cst_8 {dimension_numbers = #tpu.dot_dimension_numbers<[1], [0], [0], [1], [0, 0, 1, 1], [], []>} : vector<64x128xbf16>, vector<128x1024xbf16>, vector<64x1024xf32> -> vector<64x1024xf32>
    %c0_9 = arith.constant 0 : index
    %c0_10 = arith.constant 0 : index
    %17 = vector.load %arg4[%c0_9, %c0_10] : memref<1x1024xf32, #tpu.memory_space<vmem>>, vector<1x1024xf32>
    %18 = vector.broadcast %17 : vector<1x1024xf32> to vector<64x1024xf32>
    %19 = arith.addf %16, %18 : vector<64x1024xf32>
    %c0_11 = arith.constant 0 : index
    %c0_12 = arith.constant 0 : index
    %20 = vector.load %arg11[%c0_11, %c0_12] : memref<64x1024xf32, #tpu.memory_space<vmem>>, vector<64x1024xf32>
    tpu.vector_store %arg11[%c0_11, %c0_12], %19 {strides = array<i32>} : memref<64x1024xf32, #tpu.memory_space<vmem>>, vector<64x1024xf32>,
    %c0_i32_13 = arith.constant 0 : i32
    %21 = tpu.memref_slice %arg15[%c0_i32_13] : memref<3x!tpu.dma_semaphore, #tpu.memory_space<semaphore_mem>> -> memref<1x!tpu.dma_semaphore, #tpu.memory_space<semaphore_mem>>
    %22 = tpu.memref_squeeze %21 : memref<1x!tpu.dma_semaphore, #tpu.memory_space<semaphore_mem>> -> memref<!tpu.dma_semaphore, #tpu.memory_space<semaphore_mem>>
    tpu.wait_dma2 semaphore(%22 : memref<!tpu.dma_semaphore, #tpu.memory_space<semaphore_mem>>) src(%arg5 : memref<256x1024xbf16, #tpu.memory_space<any>>) dst(%arg12 : memref<256x1024xbf16, #tpu.memory_space<vmem>>)
    %cst_14 = arith.constant 0.000000e+00 : f32
    %23 = vector.broadcast %cst_14 : f32 to vector<8x256xf32>
    %c0_i32_15 = arith.constant 0 : i32
    %c7_i32 = arith.constant 7 : i32
    %24 = arith.subi %c7_i32, %c0_i32_15 : i32
    %25 = arith.truncf %23 : vector<8x256xf32> to vector<8x256xbf16>
    %c0_16 = arith.constant 0 : index
    %c0_17 = arith.constant 0 : index
    %26 = vector.load %arg12[%c0_16, %c0_17] : memref<256x1024xbf16, #tpu.memory_space<vmem>>, vector<256x1024xbf16>
    %cst_18 = arith.constant dense<0.000000e+00> : vector<8x1024xf32>
    %27 = tpu.matmul %25, %26, %cst_18 {dimension_numbers = #tpu.dot_dimension_numbers<[1], [0], [0], [1], [0, 0, 1, 1], [], []>} : vector<8x256xbf16>, vector<256x1024xbf16>, vector<8x1024xf32> -> vector<8x1024xf32>
    %c8_i32 = arith.constant 8 : i32
    %28 = arith.muli %c0_i32_15, %c8_i32 : i32
    %29 = tpu.assume_multiple %28, 8 : i32
    %30 = arith.index_cast %29 : i32 to index
    %c0_19 = arith.constant 0 : index
    %31 = vector.load %arg11[%30, %c0_19] : memref<64x1024xf32, #tpu.memory_space<vmem>>, vector<8x512xf32>
    %32 = vector.extract_strided_slice %27 {offsets = [0, 0], sizes = [8, 512], strides = [1, 1]} : vector<8x1024xf32> to vector<8x512xf32>
    %33 = arith.addf %31, %32 : vector<8x512xf32>
    %c8_i32_20 = arith.constant 8 : i32
    %34 = arith.muli %24, %c8_i32_20 : i32
    %35 = tpu.assume_multiple %34, 8 : i32
    %36 = arith.index_cast %35 : i32 to index
    %c512 = arith.constant 512 : index
    %37 = vector.load %arg11[%36, %c512] : memref<64x1024xf32, #tpu.memory_space<vmem>>, vector<8x512xf32>
    %38 = vector.extract_strided_slice %27 {offsets = [0, 512], sizes = [8, 512], strides = [1, 1]} : vector<8x1024xf32> to vector<8x512xf32>
    %39 = arith.addf %37, %38 : vector<8x512xf32>
    %40 = vector.extract_strided_slice %23 {offsets = [0, 0], sizes = [8, 128], strides = [1, 1]} : vector<8x256xf32> to vector<8x128xf32>
    %41 = vector.extract_strided_slice %33 {offsets = [0, 0], sizes = [8, 128], strides = [1, 1]} : vector<8x512xf32> to vector<8x128xf32>
    %42 = arith.negf %41 : vector<8x128xf32>
    %43 = math.exp %42 : vector<8x128xf32>
    %cst_21 = arith.constant 1.000000e+00 : f32
    %44 = vector.broadcast %cst_21 : f32 to vector<8x128xf32>
    %45 = arith.addf %44, %43 : vector<8x128xf32>
    %46 = arith.divf %44, %45 : vector<8x128xf32>
    %47 = vector.extract_strided_slice %33 {offsets = [0, 128], sizes = [8, 128], strides = [1, 1]} : vector<8x512xf32> to vector<8x128xf32>
    %48 = arith.negf %47 : vector<8x128xf32>
    %49 = math.exp %48 : vector<8x128xf32>
    %cst_22 = arith.constant 1.000000e+00 : f32
    %50 = vector.broadcast %cst_22 : f32 to vector<8x128xf32>
    %51 = arith.addf %50, %49 : vector<8x128xf32>
    %52 = arith.divf %50, %51 : vector<8x128xf32>
    %53 = vector.extract_strided_slice %33 {offsets = [0, 256], sizes = [8, 128], strides = [1, 1]} : vector<8x512xf32> to vector<8x128xf32>
    %54 = math.tanh %53 : vector<8x128xf32>
    %55 = vector.extract_strided_slice %33 {offsets = [0, 384], sizes = [8, 128], strides = [1, 1]} : vector<8x512xf32> to vector<8x128xf32>
    %56 = arith.negf %55 : vector<8x128xf32>
    %57 = math.exp %56 : vector<8x128xf32>
    %cst_23 = arith.constant 1.000000e+00 : f32
    %58 = vector.broadcast %cst_23 : f32 to vector<8x128xf32>
    %59 = arith.addf %58, %57 : vector<8x128xf32>
    %60 = arith.divf %58, %59 : vector<8x128xf32>
    %61 = arith.mulf %52, %40 : vector<8x128xf32>
    %62 = arith.mulf %46, %54 : vector<8x128xf32>
    %63 = arith.addf %61, %62 : vector<8x128xf32>
    %64 = math.tanh %63 : vector<8x128xf32>
    %65 = arith.mulf %60, %64 : vector<8x128xf32>
    %66 = vector.extract_strided_slice %23 {offsets = [0, 128], sizes = [8, 128], strides = [1, 1]} : vector<8x256xf32> to vector<8x128xf32>
    %67 = vector.extract_strided_slice %39 {offsets = [0, 0], sizes = [8, 128], strides = [1, 1]} : vector<8x512xf32> to vector<8x128xf32>
    %68 = arith.negf %67 : vector<8x128xf32>
    %69 = math.exp %68 : vector<8x128xf32>
    %cst_24 = arith.constant 1.000000e+00 : f32
    %70 = vector.broadcast %cst_24 : f32 to vector<8x128xf32>
    %71 = arith.addf %70, %69 : vector<8x128xf32>
    %72 = arith.divf %70, %71 : vector<8x128xf32>
    %73 = vector.extract_strided_slice %39 {offsets = [0, 128], sizes = [8, 128], strides = [1, 1]} : vector<8x512xf32> to vector<8x128xf32>
    %74 = arith.negf %73 : vector<8x128xf32>
    %75 = math.exp %74 : vector<8x128xf32>
    %cst_25 = arith.constant 1.000000e+00 : f32
    %76 = vector.broadcast %cst_25 : f32 to vector<8x128xf32>
    %77 = arith.addf %76, %75 : vector<8x128xf32>
    %78 = arith.divf %76, %77 : vector<8x128xf32>
    %79 = vector.extract_strided_slice %39 {offsets = [0, 256], sizes = [8, 128], strides = [1, 1]} : vector<8x512xf32> to vector<8x128xf32>
    %80 = math.tanh %79 : vector<8x128xf32>
    %81 = vector.extract_strided_slice %39 {offsets = [0, 384], sizes = [8, 128], strides = [1, 1]} : vector<8x512xf32> to vector<8x128xf32>
    %82 = arith.negf %81 : vector<8x128xf32>
    %83 = math.exp %82 : vector<8x128xf32>
    %cst_26 = arith.constant 1.000000e+00 : f32
    %84 = vector.broadcast %cst_26 : f32 to vector<8x128xf32>
    %85 = arith.addf %84, %83 : vector<8x128xf32>
    %86 = arith.divf %84, %85 : vector<8x128xf32>
    %87 = arith.mulf %78, %66 : vector<8x128xf32>
    %88 = arith.mulf %72, %80 : vector<8x128xf32>
    %89 = arith.addf %87, %88 : vector<8x128xf32>
    %90 = math.tanh %89 : vector<8x128xf32>
    %91 = arith.mulf %86, %90 : vector<8x128xf32>
    %92 = tpu.concatenate %65, %91 in 1 : vector<8x128xf32>, vector<8x128xf32> -> vector<8x256xf32>
    %93 = tpu.concatenate %63, %89 in 1 : vector<8x128xf32>, vector<8x128xf32> -> vector<8x256xf32>
    %94 = arith.addf %23, %92 : vector<8x256xf32>
    %c1_i32_27 = arith.constant 1 : i32
    %c7_i32_28 = arith.constant 7 : i32
    %95 = arith.subi %c7_i32_28, %c1_i32_27 : i32
    %96 = arith.truncf %92 : vector<8x256xf32> to vector<8x256xbf16>
    %c0_29 = arith.constant 0 : index
    %c0_30 = arith.constant 0 : index
    %97 = vector.load %arg12[%c0_29, %c0_30] : memref<256x1024xbf16, #tpu.memory_space<vmem>>, vector<256x1024xbf16>
    %cst_31 = arith.constant dense<0.000000e+00> : vector<8x1024xf32>
    %98 = tpu.matmul %96, %97, %cst_31 {dimension_numbers = #tpu.dot_dimension_numbers<[1], [0], [0], [1], [0, 0, 1, 1], [], []>} : vector<8x256xbf16>, vector<256x1024xbf16>, vector<8x1024xf32> -> vector<8x1024xf32>
    %c8_i32_32 = arith.constant 8 : i32
    %99 = arith.muli %c1_i32_27, %c8_i32_32 : i32
    %100 = tpu.assume_multiple %99, 8 : i32
    %101 = arith.index_cast %100 : i32 to index
    %c0_33 = arith.constant 0 : index
    %102 = vector.load %arg11[%101, %c0_33] : memref<64x1024xf32, #tpu.memory_space<vmem>>, vector<8x512xf32>
    %103 = vector.extract_strided_slice %98 {offsets = [0, 0], sizes = [8, 512], strides = [1, 1]} : vector<8x1024xf32> to vector<8x512xf32>
    %104 = arith.addf %102, %103 : vector<8x512xf32>
    %c8_i32_34 = arith.constant 8 : i32
    %105 = arith.muli %95, %c8_i32_34 : i32
    %106 = tpu.assume_multiple %105, 8 : i32
    %107 = arith.index_cast %106 : i32 to index
    %c512_35 = arith.constant 512 : index
    %108 = vector.load %arg11[%107, %c512_35] : memref<64x1024xf32, #tpu.memory_space<vmem>>, vector<8x512xf32>
    %109 = vector.extract_strided_slice %98 {offsets = [0, 512], sizes = [8, 512], strides = [1, 1]} : vector<8x1024xf32> to vector<8x512xf32>
    %110 = arith.addf %108, %109 : vector<8x512xf32>
    %111 = vector.extract_strided_slice %93 {offsets = [0, 0], sizes = [8, 128], strides = [1, 1]} : vector<8x256xf32> to vector<8x128xf32>
    %112 = vector.extract_strided_slice %104 {offsets = [0, 0], sizes = [8, 128], strides = [1, 1]} : vector<8x512xf32> to vector<8x128xf32>
    %113 = arith.negf %112 : vector<8x128xf32>
    %114 = math.exp %113 : vector<8x128xf32>
    %cst_36 = arith.constant 1.000000e+00 : f32
    %115 = vector.broadcast %cst_36 : f32 to vector<8x128xf32>
    %116 = arith.addf %115, %114 : vector<8x128xf32>
    %117 = arith.divf %115, %116 : vector<8x128xf32>
    %118 = vector.extract_strided_slice %104 {offsets = [0, 128], sizes = [8, 128], strides = [1, 1]} : vector<8x512xf32> to vector<8x128xf32>
    %119 = arith.negf %118 : vector<8x128xf32>
    %120 = math.exp %119 : vector<8x128xf32>
    %cst_37 = arith.constant 1.000000e+00 : f32
    %121 = vector.broadcast %cst_37 : f32 to vector<8x128xf32>
    %122 = arith.addf %121, %120 : vector<8x128xf32>
    %123 = arith.divf %121, %122 : vector<8x128xf32>
    %124 = vector.extract_strided_slice %104 {offsets = [0, 256], sizes = [8, 128], strides = [1, 1]} : vector<8x512xf32> to vector<8x128xf32>
    %125 = math.tanh %124 : vector<8x128xf32>
    %126 = vector.extract_strided_slice %104 {offsets = [0, 384], sizes = [8, 128], strides = [1, 1]} : vector<8x512xf32> to vector<8x128xf32>
    %127 = arith.negf %126 : vector<8x128xf32>
    %128 = math.exp %127 : vector<8x128xf32>
    %cst_38 = arith.constant 1.000000e+00 : f32
    %129 = vector.broadcast %cst_38 : f32 to vector<8x128xf32>
    %130 = arith.addf %129, %128 : vector<8x128xf32>
    %131 = arith.divf %129, %130 : vector<8x128xf32>
    %132 = arith.mulf %123, %111 : vector<8x128xf32>
    %133 = arith.mulf %117, %125 : vector<8x128xf32>
    %134 = arith.addf %132, %133 : vector<8x128xf32>
    %135 = math.tanh %134 : vector<8x128xf32>
    %136 = arith.mulf %131, %135 : vector<8x128xf32>
    %137 = vector.extract_strided_slice %93 {offsets = [0, 128], sizes = [8, 128], strides = [1, 1]} : vector<8x256xf32> to vector<8x128xf32>
    %138 = vector.extract_strided_slice %110 {offsets = [0, 0], sizes = [8, 128], strides = [1, 1]} : vector<8x512xf32> to vector<8x128xf32>
    %139 = arith.negf %138 : vector<8x128xf32>
    %140 = math.exp %139 : vector<8x128xf32>
    %cst_39 = arith.constant 1.000000e+00 : f32
    %141 = vector.broadcast %cst_39 : f32 to vector<8x128xf32>
    %142 = arith.addf %141, %140 : vector<8x128xf32>
    %143 = arith.divf %141, %142 : vector<8x128xf32>
    %144 = vector.extract_strided_slice %110 {offsets = [0, 128], sizes = [8, 128], strides = [1, 1]} : vector<8x512xf32> to vector<8x128xf32>
    %145 = arith.negf %144 : vector<8x128xf32>
    %146 = math.exp %145 : vector<8x128xf32>
    %cst_40 = arith.constant 1.000000e+00 : f32
    %147 = vector.broadcast %cst_40 : f32 to vector<8x128xf32>
    %148 = arith.addf %147, %146 : vector<8x128xf32>
    %149 = arith.divf %147, %148 : vector<8x128xf32>
    %150 = vector.extract_strided_slice %110 {offsets = [0, 256], sizes = [8, 128], strides = [1, 1]} : vector<8x512xf32> to vector<8x128xf32>
    %151 = math.tanh %150 : vector<8x128xf32>
    %152 = vector.extract_strided_slice %110 {offsets = [0, 384], sizes = [8, 128], strides = [1, 1]} : vector<8x512xf32> to vector<8x128xf32>
    %153 = arith.negf %152 : vector<8x128xf32>
    %154 = math.exp %153 : vector<8x128xf32>
    %cst_41 = arith.constant 1.000000e+00 : f32
    %155 = vector.broadcast %cst_41 : f32 to vector<8x128xf32>
    %156 = arith.addf %155, %154 : vector<8x128xf32>
    %157 = arith.divf %155, %156 : vector<8x128xf32>
    %158 = arith.mulf %149, %137 : vector<8x128xf32>
    %159 = arith.mulf %143, %151 : vector<8x128xf32>
    %160 = arith.addf %158, %159 : vector<8x128xf32>
    %161 = math.tanh %160 : vector<8x128xf32>
    %162 = arith.mulf %157, %161 : vector<8x128xf32>
    %163 = tpu.concatenate %136, %162 in 1 : vector<8x128xf32>, vector<8x128xf32> -> vector<8x256xf32>
    %164 = tpu.concatenate %134, %160 in 1 : vector<8x128xf32>, vector<8x128xf32> -> vector<8x256xf32>
    %165 = arith.addf %94, %163 : vector<8x256xf32>
    %c2_i32_42 = arith.constant 2 : i32
    %c7_i32_43 = arith.constant 7 : i32
    %166 = arith.subi %c7_i32_43, %c2_i32_42 : i32
    %167 = arith.truncf %163 : vector<8x256xf32> to vector<8x256xbf16>
    %c0_44 = arith.constant 0 : index
    %c0_45 = arith.constant 0 : index
    %168 = vector.load %arg12[%c0_44, %c0_45] : memref<256x1024xbf16, #tpu.memory_space<vmem>>, vector<256x1024xbf16>
    %cst_46 = arith.constant dense<0.000000e+00> : vector<8x1024xf32>
    %169 = tpu.matmul %167, %168, %cst_46 {dimension_numbers = #tpu.dot_dimension_numbers<[1], [0], [0], [1], [0, 0, 1, 1], [], []>} : vector<8x256xbf16>, vector<256x1024xbf16>, vector<8x1024xf32> -> vector<8x1024xf32>
    %c8_i32_47 = arith.constant 8 : i32
    %170 = arith.muli %c2_i32_42, %c8_i32_47 : i32
    %171 = tpu.assume_multiple %170, 8 : i32
    %172 = arith.index_cast %171 : i32 to index
    %c0_48 = arith.constant 0 : index
    %173 = vector.load %arg11[%172, %c0_48] : memref<64x1024xf32, #tpu.memory_space<vmem>>, vector<8x512xf32>
    %174 = vector.extract_strided_slice %169 {offsets = [0, 0], sizes = [8, 512], strides = [1, 1]} : vector<8x1024xf32> to vector<8x512xf32>
    %175 = arith.addf %173, %174 : vector<8x512xf32>
    %c8_i32_49 = arith.constant 8 : i32
    %176 = arith.muli %166, %c8_i32_49 : i32
    %177 = tpu.assume_multiple %176, 8 : i32
    %178 = arith.index_cast %177 : i32 to index
    %c512_50 = arith.constant 512 : index
    %179 = vector.load %arg11[%178, %c512_50] : memref<64x1024xf32, #tpu.memory_space<vmem>>, vector<8x512xf32>
    %180 = vector.extract_strided_slice %169 {offsets = [0, 512], sizes = [8, 512], strides = [1, 1]} : vector<8x1024xf32> to vector<8x512xf32>
    %181 = arith.addf %179, %180 : vector<8x512xf32>
    %182 = vector.extract_strided_slice %164 {offsets = [0, 0], sizes = [8, 128], strides = [1, 1]} : vector<8x256xf32> to vector<8x128xf32>
    %183 = vector.extract_strided_slice %175 {offsets = [0, 0], sizes = [8, 128], strides = [1, 1]} : vector<8x512xf32> to vector<8x128xf32>
    %184 = arith.negf %183 : vector<8x128xf32>
    %185 = math.exp %184 : vector<8x128xf32>
    %cst_51 = arith.constant 1.000000e+00 : f32
    %186 = vector.broadcast %cst_51 : f32 to vector<8x128xf32>
    %187 = arith.addf %186, %185 : vector<8x128xf32>
    %188 = arith.divf %186, %187 : vector<8x128xf32>
    %189 = vector.extract_strided_slice %175 {offsets = [0, 128], sizes = [8, 128], strides = [1, 1]} : vector<8x512xf32> to vector<8x128xf32>
    %190 = arith.negf %189 : vector<8x128xf32>
    %191 = math.exp %190 : vector<8x128xf32>
    %cst_52 = arith.constant 1.000000e+00 : f32
    %192 = vector.broadcast %cst_52 : f32 to vector<8x128xf32>
    %193 = arith.addf %192, %191 : vector<8x128xf32>
    %194 = arith.divf %192, %193 : vector<8x128xf32>
    %195 = vector.extract_strided_slice %175 {offsets = [0, 256], sizes = [8, 128], strides = [1, 1]} : vector<8x512xf32> to vector<8x128xf32>
    %196 = math.tanh %195 : vector<8x128xf32>
    %197 = vector.extract_strided_slice %175 {offsets = [0, 384], sizes = [8, 128], strides = [1, 1]} : vector<8x512xf32> to vector<8x128xf32>
    %198 = arith.negf %197 : vector<8x128xf32>
    %199 = math.exp %198 : vector<8x128xf32>
    %cst_53 = arith.constant 1.000000e+00 : f32
    %200 = vector.broadcast %cst_53 : f32 to vector<8x128xf32>
    %201 = arith.addf %200, %199 : vector<8x128xf32>
    %202 = arith.divf %200, %201 : vector<8x128xf32>
    %203 = arith.mulf %194, %182 : vector<8x128xf32>
    %204 = arith.mulf %188, %196 : vector<8x128xf32>
    %205 = arith.addf %203, %204 : vector<8x128xf32>
    %206 = math.tanh %205 : vector<8x128xf32>
    %207 = arith.mulf %202, %206 : vector<8x128xf32>
    %208 = vector.extract_strided_slice %164 {offsets = [0, 128], sizes = [8, 128], strides = [1, 1]} : vector<8x256xf32> to vector<8x128xf32>
    %209 = vector.extract_strided_slice %181 {offsets = [0, 0], sizes = [8, 128], strides = [1, 1]} : vector<8x512xf32> to vector<8x128xf32>
    %210 = arith.negf %209 : vector<8x128xf32>
    %211 = math.exp %210 : vector<8x128xf32>
    %cst_54 = arith.constant 1.000000e+00 : f32
    %212 = vector.broadcast %cst_54 : f32 to vector<8x128xf32>
    %213 = arith.addf %212, %211 : vector<8x128xf32>
    %214 = arith.divf %212, %213 : vector<8x128xf32>
    %215 = vector.extract_strided_slice %181 {offsets = [0, 128], sizes = [8, 128], strides = [1, 1]} : vector<8x512xf32> to vector<8x128xf32>
    %216 = arith.negf %215 : vector<8x128xf32>
    %217 = math.exp %216 : vector<8x128xf32>
    %cst_55 = arith.constant 1.000000e+00 : f32
    %218 = vector.broadcast %cst_55 : f32 to vector<8x128xf32>
    %219 = arith.addf %218, %217 : vector<8x128xf32>
    %220 = arith.divf %218, %219 : vector<8x128xf32>
    %221 = vector.extract_strided_slice %181 {offsets = [0, 256], sizes = [8, 128], strides = [1, 1]} : vector<8x512xf32> to vector<8x128xf32>
    %222 = math.tanh %221 : vector<8x128xf32>
    %223 = vector.extract_strided_slice %181 {offsets = [0, 384], sizes = [8, 128], strides = [1, 1]} : vector<8x512xf32> to vector<8x128xf32>
    %224 = arith.negf %223 : vector<8x128xf32>
    %225 = math.exp %224 : vector<8x128xf32>
    %cst_56 = arith.constant 1.000000e+00 : f32
    %226 = vector.broadcast %cst_56 : f32 to vector<8x128xf32>
    %227 = arith.addf %226, %225 : vector<8x128xf32>
    %228 = arith.divf %226, %227 : vector<8x128xf32>
    %229 = arith.mulf %220, %208 : vector<8x128xf32>
    %230 = arith.mulf %214, %222 : vector<8x128xf32>
    %231 = arith.addf %229, %230 : vector<8x128xf32>
    %232 = math.tanh %231 : vector<8x128xf32>
    %233 = arith.mulf %228, %232 : vector<8x128xf32>
    %234 = tpu.concatenate %207, %233 in 1 : vector<8x128xf32>, vector<8x128xf32> -> vector<8x256xf32>
    %235 = tpu.concatenate %205, %231 in 1 : vector<8x128xf32>, vector<8x128xf32> -> vector<8x256xf32>
    %236 = arith.addf %165, %234 : vector<8x256xf32>
    %c3_i32 = arith.constant 3 : i32
    %c7_i32_57 = arith.constant 7 : i32
    %237 = arith.subi %c7_i32_57, %c3_i32 : i32
    %238 = arith.truncf %234 : vector<8x256xf32> to vector<8x256xbf16>
    %c0_58 = arith.constant 0 : index
    %c0_59 = arith.constant 0 : index
    %239 = vector.load %arg12[%c0_58, %c0_59] : memref<256x1024xbf16, #tpu.memory_space<vmem>>, vector<256x1024xbf16>
    %cst_60 = arith.constant dense<0.000000e+00> : vector<8x1024xf32>
    %240 = tpu.matmul %238, %239, %cst_60 {dimension_numbers = #tpu.dot_dimension_numbers<[1], [0], [0], [1], [0, 0, 1, 1], [], []>} : vector<8x256xbf16>, vector<256x1024xbf16>, vector<8x1024xf32> -> vector<8x1024xf32>
    %c8_i32_61 = arith.constant 8 : i32
    %241 = arith.muli %c3_i32, %c8_i32_61 : i32
    %242 = tpu.assume_multiple %241, 8 : i32
    %243 = arith.index_cast %242 : i32 to index
    %c0_62 = arith.constant 0 : index
    %244 = vector.load %arg11[%243, %c0_62] : memref<64x1024xf32, #tpu.memory_space<vmem>>, vector<8x512xf32>
    %245 = vector.extract_strided_slice %240 {offsets = [0, 0], sizes = [8, 512], strides = [1, 1]} : vector<8x1024xf32> to vector<8x512xf32>
    %246 = arith.addf %244, %245 : vector<8x512xf32>
    %c8_i32_63 = arith.constant 8 : i32
    %247 = arith.muli %237, %c8_i32_63 : i32
    %248 = tpu.assume_multiple %247, 8 : i32
    %249 = arith.index_cast %248 : i32 to index
    %c512_64 = arith.constant 512 : index
    %250 = vector.load %arg11[%249, %c512_64] : memref<64x1024xf32, #tpu.memory_space<vmem>>, vector<8x512xf32>
    %251 = vector.extract_strided_slice %240 {offsets = [0, 512], sizes = [8, 512], strides = [1, 1]} : vector<8x1024xf32> to vector<8x512xf32>
    %252 = arith.addf %250, %251 : vector<8x512xf32>
    %253 = vector.extract_strided_slice %235 {offsets = [0, 0], sizes = [8, 128], strides = [1, 1]} : vector<8x256xf32> to vector<8x128xf32>
    %254 = vector.extract_strided_slice %246 {offsets = [0, 0], sizes = [8, 128], strides = [1, 1]} : vector<8x512xf32> to vector<8x128xf32>
    %255 = arith.negf %254 : vector<8x128xf32>
    %256 = math.exp %255 : vector<8x128xf32>
    %cst_65 = arith.constant 1.000000e+00 : f32
    %257 = vector.broadcast %cst_65 : f32 to vector<8x128xf32>
    %258 = arith.addf %257, %256 : vector<8x128xf32>
    %259 = arith.divf %257, %258 : vector<8x128xf32>
    %260 = vector.extract_strided_slice %246 {offsets = [0, 128], sizes = [8, 128], strides = [1, 1]} : vector<8x512xf32> to vector<8x128xf32>
    %261 = arith.negf %260 : vector<8x128xf32>
    %262 = math.exp %261 : vector<8x128xf32>
    %cst_66 = arith.constant 1.000000e+00 : f32
    %263 = vector.broadcast %cst_66 : f32 to vector<8x128xf32>
    %264 = arith.addf %263, %262 : vector<8x128xf32>
    %265 = arith.divf %263, %264 : vector<8x128xf32>
    %266 = vector.extract_strided_slice %246 {offsets = [0, 256], sizes = [8, 128], strides = [1, 1]} : vector<8x512xf32> to vector<8x128xf32>
    %267 = math.tanh %266 : vector<8x128xf32>
    %268 = vector.extract_strided_slice %246 {offsets = [0, 384], sizes = [8, 128], strides = [1, 1]} : vector<8x512xf32> to vector<8x128xf32>
    %269 = arith.negf %268 : vector<8x128xf32>
    %270 = math.exp %269 : vector<8x128xf32>
    %cst_67 = arith.constant 1.000000e+00 : f32
    %271 = vector.broadcast %cst_67 : f32 to vector<8x128xf32>
    %272 = arith.addf %271, %270 : vector<8x128xf32>
    %273 = arith.divf %271, %272 : vector<8x128xf32>
    %274 = arith.mulf %265, %253 : vector<8x128xf32>
    %275 = arith.mulf %259, %267 : vector<8x128xf32>
    %276 = arith.addf %274, %275 : vector<8x128xf32>
    %277 = math.tanh %276 : vector<8x128xf32>
    %278 = arith.mulf %273, %277 : vector<8x128xf32>
    %279 = vector.extract_strided_slice %235 {offsets = [0, 128], sizes = [8, 128], strides = [1, 1]} : vector<8x256xf32> to vector<8x128xf32>
    %280 = vector.extract_strided_slice %252 {offsets = [0, 0], sizes = [8, 128], strides = [1, 1]} : vector<8x512xf32> to vector<8x128xf32>
    %281 = arith.negf %280 : vector<8x128xf32>
    %282 = math.exp %281 : vector<8x128xf32>
    %cst_68 = arith.constant 1.000000e+00 : f32
    %283 = vector.broadcast %cst_68 : f32 to vector<8x128xf32>
    %284 = arith.addf %283, %282 : vector<8x128xf32>
    %285 = arith.divf %283, %284 : vector<8x128xf32>
    %286 = vector.extract_strided_slice %252 {offsets = [0, 128], sizes = [8, 128], strides = [1, 1]} : vector<8x512xf32> to vector<8x128xf32>
    %287 = arith.negf %286 : vector<8x128xf32>
    %288 = math.exp %287 : vector<8x128xf32>
    %cst_69 = arith.constant 1.000000e+00 : f32
    %289 = vector.broadcast %cst_69 : f32 to vector<8x128xf32>
    %290 = arith.addf %289, %288 : vector<8x128xf32>
    %291 = arith.divf %289, %290 : vector<8x128xf32>
    %292 = vector.extract_strided_slice %252 {offsets = [0, 256], sizes = [8, 128], strides = [1, 1]} : vector<8x512xf32> to vector<8x128xf32>
    %293 = math.tanh %292 : vector<8x128xf32>
    %294 = vector.extract_strided_slice %252 {offsets = [0, 384], sizes = [8, 128], strides = [1, 1]} : vector<8x512xf32> to vector<8x128xf32>
    %295 = arith.negf %294 : vector<8x128xf32>
    %296 = math.exp %295 : vector<8x128xf32>
    %cst_70 = arith.constant 1.000000e+00 : f32
    %297 = vector.broadcast %cst_70 : f32 to vector<8x128xf32>
    %298 = arith.addf %297, %296 : vector<8x128xf32>
    %299 = arith.divf %297, %298 : vector<8x128xf32>
    %300 = arith.mulf %291, %279 : vector<8x128xf32>
    %301 = arith.mulf %285, %293 : vector<8x128xf32>
    %302 = arith.addf %300, %301 : vector<8x128xf32>
    %303 = math.tanh %302 : vector<8x128xf32>
    %304 = arith.mulf %299, %303 : vector<8x128xf32>
    %305 = tpu.concatenate %278, %304 in 1 : vector<8x128xf32>, vector<8x128xf32> -> vector<8x256xf32>
    %306 = tpu.concatenate %276, %302 in 1 : vector<8x128xf32>, vector<8x128xf32> -> vector<8x256xf32>
    %307 = arith.addf %236, %305 : vector<8x256xf32>
    %c4_i32 = arith.constant 4 : i32
    %c7_i32_71 = arith.constant 7 : i32
    %308 = arith.subi %c7_i32_71, %c4_i32 : i32
    %309 = arith.truncf %305 : vector<8x256xf32> to vector<8x256xbf16>
    %c0_72 = arith.constant 0 : index
    %c0_73 = arith.constant 0 : index
    %310 = vector.load %arg12[%c0_72, %c0_73] : memref<256x1024xbf16, #tpu.memory_space<vmem>>, vector<256x1024xbf16>
    %cst_74 = arith.constant dense<0.000000e+00> : vector<8x1024xf32>
    %311 = tpu.matmul %309, %310, %cst_74 {dimension_numbers = #tpu.dot_dimension_numbers<[1], [0], [0], [1], [0, 0, 1, 1], [], []>} : vector<8x256xbf16>, vector<256x1024xbf16>, vector<8x1024xf32> -> vector<8x1024xf32>
    %c8_i32_75 = arith.constant 8 : i32
    %312 = arith.muli %c4_i32, %c8_i32_75 : i32
    %313 = tpu.assume_multiple %312, 8 : i32
    %314 = arith.index_cast %313 : i32 to index
    %c0_76 = arith.constant 0 : index
    %315 = vector.load %arg11[%314, %c0_76] : memref<64x1024xf32, #tpu.memory_space<vmem>>, vector<8x512xf32>
    %316 = vector.extract_strided_slice %311 {offsets = [0, 0], sizes = [8, 512], strides = [1, 1]} : vector<8x1024xf32> to vector<8x512xf32>
    %317 = arith.addf %315, %316 : vector<8x512xf32>
    %c8_i32_77 = arith.constant 8 : i32
    %318 = arith.muli %308, %c8_i32_77 : i32
    %319 = tpu.assume_multiple %318, 8 : i32
    %320 = arith.index_cast %319 : i32 to index
    %c512_78 = arith.constant 512 : index
    %321 = vector.load %arg11[%320, %c512_78] : memref<64x1024xf32, #tpu.memory_space<vmem>>, vector<8x512xf32>
    %322 = vector.extract_strided_slice %311 {offsets = [0, 512], sizes = [8, 512], strides = [1, 1]} : vector<8x1024xf32> to vector<8x512xf32>
    %323 = arith.addf %321, %322 : vector<8x512xf32>
    %324 = vector.extract_strided_slice %306 {offsets = [0, 0], sizes = [8, 128], strides = [1, 1]} : vector<8x256xf32> to vector<8x128xf32>
    %325 = vector.extract_strided_slice %317 {offsets = [0, 0], sizes = [8, 128], strides = [1, 1]} : vector<8x512xf32> to vector<8x128xf32>
    %326 = arith.negf %325 : vector<8x128xf32>
    %327 = math.exp %326 : vector<8x128xf32>
    %cst_79 = arith.constant 1.000000e+00 : f32
    %328 = vector.broadcast %cst_79 : f32 to vector<8x128xf32>
    %329 = arith.addf %328, %327 : vector<8x128xf32>
    %330 = arith.divf %328, %329 : vector<8x128xf32>
    %331 = vector.extract_strided_slice %317 {offsets = [0, 128], sizes = [8, 128], strides = [1, 1]} : vector<8x512xf32> to vector<8x128xf32>
    %332 = arith.negf %331 : vector<8x128xf32>
    %333 = math.exp %332 : vector<8x128xf32>
    %cst_80 = arith.constant 1.000000e+00 : f32
    %334 = vector.broadcast %cst_80 : f32 to vector<8x128xf32>
    %335 = arith.addf %334, %333 : vector<8x128xf32>
    %336 = arith.divf %334, %335 : vector<8x128xf32>
    %337 = vector.extract_strided_slice %317 {offsets = [0, 256], sizes = [8, 128], strides = [1, 1]} : vector<8x512xf32> to vector<8x128xf32>
    %338 = math.tanh %337 : vector<8x128xf32>
    %339 = vector.extract_strided_slice %317 {offsets = [0, 384], sizes = [8, 128], strides = [1, 1]} : vector<8x512xf32> to vector<8x128xf32>
    %340 = arith.negf %339 : vector<8x128xf32>
    %341 = math.exp %340 : vector<8x128xf32>
    %cst_81 = arith.constant 1.000000e+00 : f32
    %342 = vector.broadcast %cst_81 : f32 to vector<8x128xf32>
    %343 = arith.addf %342, %341 : vector<8x128xf32>
    %344 = arith.divf %342, %343 : vector<8x128xf32>
    %345 = arith.mulf %336, %324 : vector<8x128xf32>
    %346 = arith.mulf %330, %338 : vector<8x128xf32>
    %347 = arith.addf %345, %346 : vector<8x128xf32>
    %348 = math.tanh %347 : vector<8x128xf32>
    %349 = arith.mulf %344, %348 : vector<8x128xf32>
    %350 = vector.extract_strided_slice %306 {offsets = [0, 128], sizes = [8, 128], strides = [1, 1]} : vector<8x256xf32> to vector<8x128xf32>
    %351 = vector.extract_strided_slice %323 {offsets = [0, 0], sizes = [8, 128], strides = [1, 1]} : vector<8x512xf32> to vector<8x128xf32>
    %352 = arith.negf %351 : vector<8x128xf32>
    %353 = math.exp %352 : vector<8x128xf32>
    %cst_82 = arith.constant 1.000000e+00 : f32
    %354 = vector.broadcast %cst_82 : f32 to vector<8x128xf32>
    %355 = arith.addf %354, %353 : vector<8x128xf32>
    %356 = arith.divf %354, %355 : vector<8x128xf32>
    %357 = vector.extract_strided_slice %323 {offsets = [0, 128], sizes = [8, 128], strides = [1, 1]} : vector<8x512xf32> to vector<8x128xf32>
    %358 = arith.negf %357 : vector<8x128xf32>
    %359 = math.exp %358 : vector<8x128xf32>
    %cst_83 = arith.constant 1.000000e+00 : f32
    %360 = vector.broadcast %cst_83 : f32 to vector<8x128xf32>
    %361 = arith.addf %360, %359 : vector<8x128xf32>
    %362 = arith.divf %360, %361 : vector<8x128xf32>
    %363 = vector.extract_strided_slice %323 {offsets = [0, 256], sizes = [8, 128], strides = [1, 1]} : vector<8x512xf32> to vector<8x128xf32>
    %364 = math.tanh %363 : vector<8x128xf32>
    %365 = vector.extract_strided_slice %323 {offsets = [0, 384], sizes = [8, 128], strides = [1, 1]} : vector<8x512xf32> to vector<8x128xf32>
    %366 = arith.negf %365 : vector<8x128xf32>
    %367 = math.exp %366 : vector<8x128xf32>
    %cst_84 = arith.constant 1.000000e+00 : f32
    %368 = vector.broadcast %cst_84 : f32 to vector<8x128xf32>
    %369 = arith.addf %368, %367 : vector<8x128xf32>
    %370 = arith.divf %368, %369 : vector<8x128xf32>
    %371 = arith.mulf %362, %350 : vector<8x128xf32>
    %372 = arith.mulf %356, %364 : vector<8x128xf32>
    %373 = arith.addf %371, %372 : vector<8x128xf32>
    %374 = math.tanh %373 : vector<8x128xf32>
    %375 = arith.mulf %370, %374 : vector<8x128xf32>
    %376 = tpu.concatenate %349, %375 in 1 : vector<8x128xf32>, vector<8x128xf32> -> vector<8x256xf32>
    %377 = tpu.concatenate %347, %373 in 1 : vector<8x128xf32>, vector<8x128xf32> -> vector<8x256xf32>
    %378 = arith.addf %307, %376 : vector<8x256xf32>
    %c5_i32 = arith.constant 5 : i32
    %c7_i32_85 = arith.constant 7 : i32
    %379 = arith.subi %c7_i32_85, %c5_i32 : i32
    %380 = arith.truncf %376 : vector<8x256xf32> to vector<8x256xbf16>
    %c0_86 = arith.constant 0 : index
    %c0_87 = arith.constant 0 : index
    %381 = vector.load %arg12[%c0_86, %c0_87] : memref<256x1024xbf16, #tpu.memory_space<vmem>>, vector<256x1024xbf16>
    %cst_88 = arith.constant dense<0.000000e+00> : vector<8x1024xf32>
    %382 = tpu.matmul %380, %381, %cst_88 {dimension_numbers = #tpu.dot_dimension_numbers<[1], [0], [0], [1], [0, 0, 1, 1], [], []>} : vector<8x256xbf16>, vector<256x1024xbf16>, vector<8x1024xf32> -> vector<8x1024xf32>
    %c8_i32_89 = arith.constant 8 : i32
    %383 = arith.muli %c5_i32, %c8_i32_89 : i32
    %384 = tpu.assume_multiple %383, 8 : i32
    %385 = arith.index_cast %384 : i32 to index
    %c0_90 = arith.constant 0 : index
    %386 = vector.load %arg11[%385, %c0_90] : memref<64x1024xf32, #tpu.memory_space<vmem>>, vector<8x512xf32>
    %387 = vector.extract_strided_slice %382 {offsets = [0, 0], sizes = [8, 512], strides = [1, 1]} : vector<8x1024xf32> to vector<8x512xf32>
    %388 = arith.addf %386, %387 : vector<8x512xf32>
    %c8_i32_91 = arith.constant 8 : i32
    %389 = arith.muli %379, %c8_i32_91 : i32
    %390 = tpu.assume_multiple %389, 8 : i32
    %391 = arith.index_cast %390 : i32 to index
    %c512_92 = arith.constant 512 : index
    %392 = vector.load %arg11[%391, %c512_92] : memref<64x1024xf32, #tpu.memory_space<vmem>>, vector<8x512xf32>
    %393 = vector.extract_strided_slice %382 {offsets = [0, 512], sizes = [8, 512], strides = [1, 1]} : vector<8x1024xf32> to vector<8x512xf32>
    %394 = arith.addf %392, %393 : vector<8x512xf32>
    %395 = vector.extract_strided_slice %377 {offsets = [0, 0], sizes = [8, 128], strides = [1, 1]} : vector<8x256xf32> to vector<8x128xf32>
    %396 = vector.extract_strided_slice %388 {offsets = [0, 0], sizes = [8, 128], strides = [1, 1]} : vector<8x512xf32> to vector<8x128xf32>
    %397 = arith.negf %396 : vector<8x128xf32>
    %398 = math.exp %397 : vector<8x128xf32>
    %cst_93 = arith.constant 1.000000e+00 : f32
    %399 = vector.broadcast %cst_93 : f32 to vector<8x128xf32>
    %400 = arith.addf %399, %398 : vector<8x128xf32>
    %401 = arith.divf %399, %400 : vector<8x128xf32>
    %402 = vector.extract_strided_slice %388 {offsets = [0, 128], sizes = [8, 128], strides = [1, 1]} : vector<8x512xf32> to vector<8x128xf32>
    %403 = arith.negf %402 : vector<8x128xf32>
    %404 = math.exp %403 : vector<8x128xf32>
    %cst_94 = arith.constant 1.000000e+00 : f32
    %405 = vector.broadcast %cst_94 : f32 to vector<8x128xf32>
    %406 = arith.addf %405, %404 : vector<8x128xf32>
    %407 = arith.divf %405, %406 : vector<8x128xf32>
    %408 = vector.extract_strided_slice %388 {offsets = [0, 256], sizes = [8, 128], strides = [1, 1]} : vector<8x512xf32> to vector<8x128xf32>
    %409 = math.tanh %408 : vector<8x128xf32>
    %410 = vector.extract_strided_slice %388 {offsets = [0, 384], sizes = [8, 128], strides = [1, 1]} : vector<8x512xf32> to vector<8x128xf32>
    %411 = arith.negf %410 : vector<8x128xf32>
    %412 = math.exp %411 : vector<8x128xf32>
    %cst_95 = arith.constant 1.000000e+00 : f32
    %413 = vector.broadcast %cst_95 : f32 to vector<8x128xf32>
    %414 = arith.addf %413, %412 : vector<8x128xf32>
    %415 = arith.divf %413, %414 : vector<8x128xf32>
    %416 = arith.mulf %407, %395 : vector<8x128xf32>
    %417 = arith.mulf %401, %409 : vector<8x128xf32>
    %418 = arith.addf %416, %417 : vector<8x128xf32>
    %419 = math.tanh %418 : vector<8x128xf32>
    %420 = arith.mulf %415, %419 : vector<8x128xf32>
    %421 = vector.extract_strided_slice %377 {offsets = [0, 128], sizes = [8, 128], strides = [1, 1]} : vector<8x256xf32> to vector<8x128xf32>
    %422 = vector.extract_strided_slice %394 {offsets = [0, 0], sizes = [8, 128], strides = [1, 1]} : vector<8x512xf32> to vector<8x128xf32>
    %423 = arith.negf %422 : vector<8x128xf32>
    %424 = math.exp %423 : vector<8x128xf32>
    %cst_96 = arith.constant 1.000000e+00 : f32
    %425 = vector.broadcast %cst_96 : f32 to vector<8x128xf32>
    %426 = arith.addf %425, %424 : vector<8x128xf32>
    %427 = arith.divf %425, %426 : vector<8x128xf32>
    %428 = vector.extract_strided_slice %394 {offsets = [0, 128], sizes = [8, 128], strides = [1, 1]} : vector<8x512xf32> to vector<8x128xf32>
    %429 = arith.negf %428 : vector<8x128xf32>
    %430 = math.exp %429 : vector<8x128xf32>
    %cst_97 = arith.constant 1.000000e+00 : f32
    %431 = vector.broadcast %cst_97 : f32 to vector<8x128xf32>
    %432 = arith.addf %431, %430 : vector<8x128xf32>
    %433 = arith.divf %431, %432 : vector<8x128xf32>
    %434 = vector.extract_strided_slice %394 {offsets = [0, 256], sizes = [8, 128], strides = [1, 1]} : vector<8x512xf32> to vector<8x128xf32>
    %435 = math.tanh %434 : vector<8x128xf32>
    %436 = vector.extract_strided_slice %394 {offsets = [0, 384], sizes = [8, 128], strides = [1, 1]} : vector<8x512xf32> to vector<8x128xf32>
    %437 = arith.negf %436 : vector<8x128xf32>
    %438 = math.exp %437 : vector<8x128xf32>
    %cst_98 = arith.constant 1.000000e+00 : f32
    %439 = vector.broadcast %cst_98 : f32 to vector<8x128xf32>
    %440 = arith.addf %439, %438 : vector<8x128xf32>
    %441 = arith.divf %439, %440 : vector<8x128xf32>
    %442 = arith.mulf %433, %421 : vector<8x128xf32>
    %443 = arith.mulf %427, %435 : vector<8x128xf32>
    %444 = arith.addf %442, %443 : vector<8x128xf32>
    %445 = math.tanh %444 : vector<8x128xf32>
    %446 = arith.mulf %441, %445 : vector<8x128xf32>
    %447 = tpu.concatenate %420, %446 in 1 : vector<8x128xf32>, vector<8x128xf32> -> vector<8x256xf32>
    %448 = tpu.concatenate %418, %444 in 1 : vector<8x128xf32>, vector<8x128xf32> -> vector<8x256xf32>
    %449 = arith.addf %378, %447 : vector<8x256xf32>
    %c6_i32 = arith.constant 6 : i32
    %c7_i32_99 = arith.constant 7 : i32
    %450 = arith.subi %c7_i32_99, %c6_i32 : i32
    %451 = arith.truncf %447 : vector<8x256xf32> to vector<8x256xbf16>
    %c0_100 = arith.constant 0 : index
    %c0_101 = arith.constant 0 : index
    %452 = vector.load %arg12[%c0_100, %c0_101] : memref<256x1024xbf16, #tpu.memory_space<vmem>>, vector<256x1024xbf16>
    %cst_102 = arith.constant dense<0.000000e+00> : vector<8x1024xf32>
    %453 = tpu.matmul %451, %452, %cst_102 {dimension_numbers = #tpu.dot_dimension_numbers<[1], [0], [0], [1], [0, 0, 1, 1], [], []>} : vector<8x256xbf16>, vector<256x1024xbf16>, vector<8x1024xf32> -> vector<8x1024xf32>
    %c8_i32_103 = arith.constant 8 : i32
    %454 = arith.muli %c6_i32, %c8_i32_103 : i32
    %455 = tpu.assume_multiple %454, 8 : i32
    %456 = arith.index_cast %455 : i32 to index
    %c0_104 = arith.constant 0 : index
    %457 = vector.load %arg11[%456, %c0_104] : memref<64x1024xf32, #tpu.memory_space<vmem>>, vector<8x512xf32>
    %458 = vector.extract_strided_slice %453 {offsets = [0, 0], sizes = [8, 512], strides = [1, 1]} : vector<8x1024xf32> to vector<8x512xf32>
    %459 = arith.addf %457, %458 : vector<8x512xf32>
    %c8_i32_105 = arith.constant 8 : i32
    %460 = arith.muli %450, %c8_i32_105 : i32
    %461 = tpu.assume_multiple %460, 8 : i32
    %462 = arith.index_cast %461 : i32 to index
    %c512_106 = arith.constant 512 : index
    %463 = vector.load %arg11[%462, %c512_106] : memref<64x1024xf32, #tpu.memory_space<vmem>>, vector<8x512xf32>
    %464 = vector.extract_strided_slice %453 {offsets = [0, 512], sizes = [8, 512], strides = [1, 1]} : vector<8x1024xf32> to vector<8x512xf32>
    %465 = arith.addf %463, %464 : vector<8x512xf32>
    %466 = vector.extract_strided_slice %448 {offsets = [0, 0], sizes = [8, 128], strides = [1, 1]} : vector<8x256xf32> to vector<8x128xf32>
    %467 = vector.extract_strided_slice %459 {offsets = [0, 0], sizes = [8, 128], strides = [1, 1]} : vector<8x512xf32> to vector<8x128xf32>
    %468 = arith.negf %467 : vector<8x128xf32>
    %469 = math.exp %468 : vector<8x128xf32>
    %cst_107 = arith.constant 1.000000e+00 : f32
    %470 = vector.broadcast %cst_107 : f32 to vector<8x128xf32>
    %471 = arith.addf %470, %469 : vector<8x128xf32>
    %472 = arith.divf %470, %471 : vector<8x128xf32>
    %473 = vector.extract_strided_slice %459 {offsets = [0, 128], sizes = [8, 128], strides = [1, 1]} : vector<8x512xf32> to vector<8x128xf32>
    %474 = arith.negf %473 : vector<8x128xf32>
    %475 = math.exp %474 : vector<8x128xf32>
    %cst_108 = arith.constant 1.000000e+00 : f32
    %476 = vector.broadcast %cst_108 : f32 to vector<8x128xf32>
    %477 = arith.addf %476, %475 : vector<8x128xf32>
    %478 = arith.divf %476, %477 : vector<8x128xf32>
    %479 = vector.extract_strided_slice %459 {offsets = [0, 256], sizes = [8, 128], strides = [1, 1]} : vector<8x512xf32> to vector<8x128xf32>
    %480 = math.tanh %479 : vector<8x128xf32>
    %481 = vector.extract_strided_slice %459 {offsets = [0, 384], sizes = [8, 128], strides = [1, 1]} : vector<8x512xf32> to vector<8x128xf32>
    %482 = arith.negf %481 : vector<8x128xf32>
    %483 = math.exp %482 : vector<8x128xf32>
    %cst_109 = arith.constant 1.000000e+00 : f32
    %484 = vector.broadcast %cst_109 : f32 to vector<8x128xf32>
    %485 = arith.addf %484, %483 : vector<8x128xf32>
    %486 = arith.divf %484, %485 : vector<8x128xf32>
    %487 = arith.mulf %478, %466 : vector<8x128xf32>
    %488 = arith.mulf %472, %480 : vector<8x128xf32>
    %489 = arith.addf %487, %488 : vector<8x128xf32>
    %490 = math.tanh %489 : vector<8x128xf32>
    %491 = arith.mulf %486, %490 : vector<8x128xf32>
    %492 = vector.extract_strided_slice %448 {offsets = [0, 128], sizes = [8, 128], strides = [1, 1]} : vector<8x256xf32> to vector<8x128xf32>
    %493 = vector.extract_strided_slice %465 {offsets = [0, 0], sizes = [8, 128], strides = [1, 1]} : vector<8x512xf32> to vector<8x128xf32>
    %494 = arith.negf %493 : vector<8x128xf32>
    %495 = math.exp %494 : vector<8x128xf32>
    %cst_110 = arith.constant 1.000000e+00 : f32
    %496 = vector.broadcast %cst_110 : f32 to vector<8x128xf32>
    %497 = arith.addf %496, %495 : vector<8x128xf32>
    %498 = arith.divf %496, %497 : vector<8x128xf32>
    %499 = vector.extract_strided_slice %465 {offsets = [0, 128], sizes = [8, 128], strides = [1, 1]} : vector<8x512xf32> to vector<8x128xf32>
    %500 = arith.negf %499 : vector<8x128xf32>
    %501 = math.exp %500 : vector<8x128xf32>
    %cst_111 = arith.constant 1.000000e+00 : f32
    %502 = vector.broadcast %cst_111 : f32 to vector<8x128xf32>
    %503 = arith.addf %502, %501 : vector<8x128xf32>
    %504 = arith.divf %502, %503 : vector<8x128xf32>
    %505 = vector.extract_strided_slice %465 {offsets = [0, 256], sizes = [8, 128], strides = [1, 1]} : vector<8x512xf32> to vector<8x128xf32>
    %506 = math.tanh %505 : vector<8x128xf32>
    %507 = vector.extract_strided_slice %465 {offsets = [0, 384], sizes = [8, 128], strides = [1, 1]} : vector<8x512xf32> to vector<8x128xf32>
    %508 = arith.negf %507 : vector<8x128xf32>
    %509 = math.exp %508 : vector<8x128xf32>
    %cst_112 = arith.constant 1.000000e+00 : f32
    %510 = vector.broadcast %cst_112 : f32 to vector<8x128xf32>
    %511 = arith.addf %510, %509 : vector<8x128xf32>
    %512 = arith.divf %510, %511 : vector<8x128xf32>
    %513 = arith.mulf %504, %492 : vector<8x128xf32>
    %514 = arith.mulf %498, %506 : vector<8x128xf32>
    %515 = arith.addf %513, %514 : vector<8x128xf32>
    %516 = math.tanh %515 : vector<8x128xf32>
    %517 = arith.mulf %512, %516 : vector<8x128xf32>
    %518 = tpu.concatenate %491, %517 in 1 : vector<8x128xf32>, vector<8x128xf32> -> vector<8x256xf32>
    %519 = tpu.concatenate %489, %515 in 1 : vector<8x128xf32>, vector<8x128xf32> -> vector<8x256xf32>
    %520 = arith.addf %449, %518 : vector<8x256xf32>
    %c7_i32_113 = arith.constant 7 : i32
    %c7_i32_114 = arith.constant 7 : i32
    %521 = arith.subi %c7_i32_114, %c7_i32_113 : i32
    %522 = arith.truncf %518 : vector<8x256xf32> to vector<8x256xbf16>
    %c0_115 = arith.constant 0 : index
    %c0_116 = arith.constant 0 : index
    %523 = vector.load %arg12[%c0_115, %c0_116] : memref<256x1024xbf16, #tpu.memory_space<vmem>>, vector<256x1024xbf16>
    %cst_117 = arith.constant dense<0.000000e+00> : vector<8x1024xf32>
    %524 = tpu.matmul %522, %523, %cst_117 {dimension_numbers = #tpu.dot_dimension_numbers<[1], [0], [0], [1], [0, 0, 1, 1], [], []>} : vector<8x256xbf16>, vector<256x1024xbf16>, vector<8x1024xf32> -> vector<8x1024xf32>
    %c8_i32_118 = arith.constant 8 : i32
    %525 = arith.muli %c7_i32_113, %c8_i32_118 : i32
    %526 = tpu.assume_multiple %525, 8 : i32
    %527 = arith.index_cast %526 : i32 to index
    %c0_119 = arith.constant 0 : index
    %528 = vector.load %arg11[%527, %c0_119] : memref<64x1024xf32, #tpu.memory_space<vmem>>, vector<8x512xf32>
    %529 = vector.extract_strided_slice %524 {offsets = [0, 0], sizes = [8, 512], strides = [1, 1]} : vector<8x1024xf32> to vector<8x512xf32>
    %530 = arith.addf %528, %529 : vector<8x512xf32>
    %c8_i32_120 = arith.constant 8 : i32
    %531 = arith.muli %521, %c8_i32_120 : i32
    %532 = tpu.assume_multiple %531, 8 : i32
    %533 = arith.index_cast %532 : i32 to index
    %c512_121 = arith.constant 512 : index
    %534 = vector.load %arg11[%533, %c512_121] : memref<64x1024xf32, #tpu.memory_space<vmem>>, vector<8x512xf32>
    %535 = vector.extract_strided_slice %524 {offsets = [0, 512], sizes = [8, 512], strides = [1, 1]} : vector<8x1024xf32> to vector<8x512xf32>
    %536 = arith.addf %534, %535 : vector<8x512xf32>
    %537 = vector.extract_strided_slice %519 {offsets = [0, 0], sizes = [8, 128], strides = [1, 1]} : vector<8x256xf32> to vector<8x128xf32>
    %538 = vector.extract_strided_slice %530 {offsets = [0, 0], sizes = [8, 128], strides = [1, 1]} : vector<8x512xf32> to vector<8x128xf32>
    %539 = arith.negf %538 : vector<8x128xf32>
    %540 = math.exp %539 : vector<8x128xf32>
    %cst_122 = arith.constant 1.000000e+00 : f32
    %541 = vector.broadcast %cst_122 : f32 to vector<8x128xf32>
    %542 = arith.addf %541, %540 : vector<8x128xf32>
    %543 = arith.divf %541, %542 : vector<8x128xf32>
    %544 = vector.extract_strided_slice %530 {offsets = [0, 128], sizes = [8, 128], strides = [1, 1]} : vector<8x512xf32> to vector<8x128xf32>
    %545 = arith.negf %544 : vector<8x128xf32>
    %546 = math.exp %545 : vector<8x128xf32>
    %cst_123 = arith.constant 1.000000e+00 : f32
    %547 = vector.broadcast %cst_123 : f32 to vector<8x128xf32>
    %548 = arith.addf %547, %546 : vector<8x128xf32>
    %549 = arith.divf %547, %548 : vector<8x128xf32>
    %550 = vector.extract_strided_slice %530 {offsets = [0, 256], sizes = [8, 128], strides = [1, 1]} : vector<8x512xf32> to vector<8x128xf32>
    %551 = math.tanh %550 : vector<8x128xf32>
    %552 = vector.extract_strided_slice %530 {offsets = [0, 384], sizes = [8, 128], strides = [1, 1]} : vector<8x512xf32> to vector<8x128xf32>
    %553 = arith.negf %552 : vector<8x128xf32>
    %554 = math.exp %553 : vector<8x128xf32>
    %cst_124 = arith.constant 1.000000e+00 : f32
    %555 = vector.broadcast %cst_124 : f32 to vector<8x128xf32>
    %556 = arith.addf %555, %554 : vector<8x128xf32>
    %557 = arith.divf %555, %556 : vector<8x128xf32>
    %558 = arith.mulf %549, %537 : vector<8x128xf32>
    %559 = arith.mulf %543, %551 : vector<8x128xf32>
    %560 = arith.addf %558, %559 : vector<8x128xf32>
    %561 = math.tanh %560 : vector<8x128xf32>
    %562 = arith.mulf %557, %561 : vector<8x128xf32>
    %563 = vector.extract_strided_slice %519 {offsets = [0, 128], sizes = [8, 128], strides = [1, 1]} : vector<8x256xf32> to vector<8x128xf32>
    %564 = vector.extract_strided_slice %536 {offsets = [0, 0], sizes = [8, 128], strides = [1, 1]} : vector<8x512xf32> to vector<8x128xf32>
    %565 = arith.negf %564 : vector<8x128xf32>
    %566 = math.exp %565 : vector<8x128xf32>
    %cst_125 = arith.constant 1.000000e+00 : f32
    %567 = vector.broadcast %cst_125 : f32 to vector<8x128xf32>
    %568 = arith.addf %567, %566 : vector<8x128xf32>
    %569 = arith.divf %567, %568 : vector<8x128xf32>
    %570 = vector.extract_strided_slice %536 {offsets = [0, 128], sizes = [8, 128], strides = [1, 1]} : vector<8x512xf32> to vector<8x128xf32>
    %571 = arith.negf %570 : vector<8x128xf32>
    %572 = math.exp %571 : vector<8x128xf32>
    %cst_126 = arith.constant 1.000000e+00 : f32
    %573 = vector.broadcast %cst_126 : f32 to vector<8x128xf32>
    %574 = arith.addf %573, %572 : vector<8x128xf32>
    %575 = arith.divf %573, %574 : vector<8x128xf32>
    %576 = vector.extract_strided_slice %536 {offsets = [0, 256], sizes = [8, 128], strides = [1, 1]} : vector<8x512xf32> to vector<8x128xf32>
    %577 = math.tanh %576 : vector<8x128xf32>
    %578 = vector.extract_strided_slice %536 {offsets = [0, 384], sizes = [8, 128], strides = [1, 1]} : vector<8x512xf32> to vector<8x128xf32>
    %579 = arith.negf %578 : vector<8x128xf32>
    %580 = math.exp %579 : vector<8x128xf32>
    %cst_127 = arith.constant 1.000000e+00 : f32
    %581 = vector.broadcast %cst_127 : f32 to vector<8x128xf32>
    %582 = arith.addf %581, %580 : vector<8x128xf32>
    %583 = arith.divf %581, %582 : vector<8x128xf32>
    %584 = arith.mulf %575, %563 : vector<8x128xf32>
    %585 = arith.mulf %569, %577 : vector<8x128xf32>
    %586 = arith.addf %584, %585 : vector<8x128xf32>
    %587 = math.tanh %586 : vector<8x128xf32>
    %588 = arith.mulf %583, %587 : vector<8x128xf32>
    %589 = tpu.concatenate %562, %588 in 1 : vector<8x128xf32>, vector<8x128xf32> -> vector<8x256xf32>
    %590 = tpu.concatenate %560, %586 in 1 : vector<8x128xf32>, vector<8x128xf32> -> vector<8x256xf32>
    %591 = arith.addf %520, %589 : vector<8x256xf32>
    %c8_i32_128 = arith.constant 8 : i32
    %cst_129 = arith.constant 1.250000e-01 : f32
    %592 = vector.broadcast %cst_129 : f32 to vector<8x256xf32>
    %593 = arith.mulf %591, %592 : vector<8x256xf32>
    %c1_i32_130 = arith.constant 1 : i32
    %594 = tpu.memref_slice %arg15[%c1_i32_130] : memref<3x!tpu.dma_semaphore, #tpu.memory_space<semaphore_mem>> -> memref<1x!tpu.dma_semaphore, #tpu.memory_space<semaphore_mem>>
    %595 = tpu.memref_squeeze %594 : memref<1x!tpu.dma_semaphore, #tpu.memory_space<semaphore_mem>> -> memref<!tpu.dma_semaphore, #tpu.memory_space<semaphore_mem>>
    tpu.wait_dma2 semaphore(%595 : memref<!tpu.dma_semaphore, #tpu.memory_space<semaphore_mem>>) src(%arg6 : memref<256x128xbf16, #tpu.memory_space<any>>) dst(%arg13 : memref<256x128xbf16, #tpu.memory_space<vmem>>)
    %c2_i32_131 = arith.constant 2 : i32
    %596 = tpu.memref_slice %arg15[%c2_i32_131] : memref<3x!tpu.dma_semaphore, #tpu.memory_space<semaphore_mem>> -> memref<1x!tpu.dma_semaphore, #tpu.memory_space<semaphore_mem>>
    %597 = tpu.memref_squeeze %596 : memref<1x!tpu.dma_semaphore, #tpu.memory_space<semaphore_mem>> -> memref<!tpu.dma_semaphore, #tpu.memory_space<semaphore_mem>>
    tpu.wait_dma2 semaphore(%597 : memref<!tpu.dma_semaphore, #tpu.memory_space<semaphore_mem>>) src(%arg7 : memref<128x128xbf16, #tpu.memory_space<any>>) dst(%arg14 : memref<128x128xbf16, #tpu.memory_space<vmem>>)
    %598 = arith.truncf %593 : vector<8x256xf32> to vector<8x256xbf16>
    %c0_132 = arith.constant 0 : index
    %c0_133 = arith.constant 0 : index
    %599 = vector.load %arg13[%c0_132, %c0_133] : memref<256x128xbf16, #tpu.memory_space<vmem>>, vector<256x128xbf16>
    %cst_134 = arith.constant dense<0.000000e+00> : vector<8x128xf32>
    %600 = tpu.matmul %598, %599, %cst_134 {dimension_numbers = #tpu.dot_dimension_numbers<[1], [0], [0], [1], [0, 0, 1, 1], [], []>} : vector<8x256xbf16>, vector<256x128xbf16>, vector<8x128xf32> -> vector<8x128xf32>
    %c0_135 = arith.constant 0 : index
    %c0_136 = arith.constant 0 : index
    %601 = vector.load %arg8[%c0_135, %c0_136] : memref<1x128xf32, #tpu.memory_space<vmem>>, vector<1x128xf32>
    %602 = vector.broadcast %601 : vector<1x128xf32> to vector<8x128xf32>
    %603 = arith.addf %600, %602 : vector<8x128xf32>
    %cst_137 = arith.constant 0.000000e+00 : f32
    %604 = vector.broadcast %cst_137 : f32 to vector<8x128xf32>
    %605 = arith.maximumf %603, %604 : vector<8x128xf32>
    %606 = arith.truncf %605 : vector<8x128xf32> to vector<8x128xbf16>
    %c0_138 = arith.constant 0 : index
    %c0_139 = arith.constant 0 : index
    %607 = vector.load %arg14[%c0_138, %c0_139] : memref<128x128xbf16, #tpu.memory_space<vmem>>, vector<128x128xbf16>
    %cst_140 = arith.constant dense<0.000000e+00> : vector<8x128xf32>
    %608 = tpu.matmul %606, %607, %cst_140 {dimension_numbers = #tpu.dot_dimension_numbers<[1], [0], [0], [1], [0, 0, 1, 1], [], []>} : vector<8x128xbf16>, vector<128x128xbf16>, vector<8x128xf32> -> vector<8x128xf32>
    %c0_141 = arith.constant 0 : index
    %c0_142 = arith.constant 0 : index
    %609 = vector.load %arg9[%c0_141, %c0_142] : memref<1x128xf32, #tpu.memory_space<vmem>>, vector<1x128xf32>
    %610 = vector.broadcast %609 : vector<1x128xf32> to vector<8x128xf32>
    %611 = arith.addf %608, %610 : vector<8x128xf32>
    %c0_143 = arith.constant 0 : index
    %c0_144 = arith.constant 0 : index
    %612 = vector.load %arg10[%c0_143, %c0_144] : memref<8x128xf32, #tpu.memory_space<vmem>>, vector<8x128xf32>
    tpu.vector_store %arg10[%c0_143, %c0_144], %611 {strides = array<i32>} : memref<8x128xf32, #tpu.memory_space<vmem>>, vector<8x128xf32>,
    return
  }
}

</mosaic_0001>

<bundles_post_ra>
// kernel: tpu_custom_call.1
= control target key start
LH: loop header
LB: loop body
LE: loop exit
PB: predicated region body
PF: predicated region fallthrough
CT: control target
= control target key end

     0   :  { %15 = vsyncpa [#allocation8], 0  ;;  %s6627_s0 = inlined_call_operand.hbm [shape: bf16[64,128], index: 0, kind: input, shape index: {}]   ;;  %s6628_s1 = inlined_call_operand.hbm [shape: bf16[128,128], index: 1, kind: input, shape index: {}]   ;;  %s6629_s2 = inlined_call_operand.vmem [shape: f32[1,128], index: 2, kind: input, shape index: {}]   ;;  %s6630_s3 = inlined_call_operand.hbm [shape: bf16[128,1024], index: 3, kind: input, shape index: {}]   ;;  %s6631_s4 = inlined_call_operand.vmem [shape: f32[1,1024], index: 4, kind: input, shape index: {}]   ;;  %s6632_s5 = inlined_call_operand.hbm [shape: bf16[256,1024], index: 5, kind: input, shape index: {}]   ;;  %s6633_s6 = inlined_call_operand.hbm [shape: bf16[256,128], index: 6, kind: input, shape index: {}]   ;;  %s6634_s7 = inlined_call_operand.hbm [shape: bf16[128,128], index: 7, kind: input, shape index: {}]   ;;  %s6635_s8 = inlined_call_operand.vmem [shape: f32[1,128], index: 8, kind: input, shape index: {}]   ;;  %s6636_s9 = inlined_call_operand.vmem [shape: f32[1,128], index: 9, kind: input, shape index: {}]   ;;  %s6637_s10 = inlined_call_operand.hbm [shape: f32[8,128], index: 10, kind: output, shape index: {}]  }
   0x1   :  { %16 = vsyncpa [#allocation11], 0 }
   0x2   :  { %17 = vsyncpa [#allocation9], 0  ;;  %s4185_s13 = smov [#allocation10]   ;;  %s4186_s15 = smov [#allocation7]  }
   0x3   :  { %s35_s14 = sshll.u32 %s4185_s13, 4  ;;  %s23_s16 = sshll.u32 %s4186_s15, 4  ;;  %s36_s14 = int_to_ptr.vmem [resolvable:$true] %s35_s14  ;;  %s4260_s16 = int_to_ptr.vmem [resolvable:$true] %s23_s16 }
   0x4   :  { %s4041_s19 = scalar_lea.hbm %s6628_s1, 1024 }
   0x5   :  { %p4042_p0 = scmp.ne.s32.totalorder %s6628_s1, %s4041_s19  ;;  %p4045_p1 = scmp.lt.u32.totalorder %s4041_s19, %s6628_s1 }
   0x7   :  { %p4047_p2 = pnand %p4045_p1, %p4042_p0 }
   0x9   :  { %4050 = shalt.err (!%p4047_p2)
}
   0xa   :  { %s4051_s24 = scalar_lea.vmem %s36_s14, 1024  ;;  %p4056_p4 = scmp.lt.s32.totalorder %s36_s14, %s36_s14 }
   0xb   :  { %p4052_p3 = scmp.ne.s32.totalorder %s36_s14, %s4051_s24  ;;  %p4057_p5 = scmp.lt.s32.totalorder %s4051_s24, %s4051_s24 }
   0xd   :  { %p4058_p6 = por %p4057_p5, %p4056_p4 }
   0xf   :  { %p4059_p7 = pnand %p4058_p6, %p4052_p3 }
  0x11   :  { %4062 = shalt.err (!%p4059_p7)
}
  0x12   :  { %s4187_s25 = smov 64   ;;  %s4188_s26 = smov 4  }
  0x13   :  { %41 = dma.hbm_to_vmem [thread:$0]  %s6628_s1, 1024, %s36_s14, [#allocation11], %s4187_s25, %s4187_s25, %s4188_s26  }
  0x14   :  { %s4063_s11 = scalar_lea.hbm %s6627_s0, 512 }
  0x15   :  { %p4064_p8 = scmp.ne.s32.totalorder %s6627_s0, %s4063_s11  ;;  %p4067_p9 = scmp.lt.u32.totalorder %s4063_s11, %s6627_s0 }
  0x17   :  { %p4069_p10 = pnand %p4067_p9, %p4064_p8 }
  0x19   :  { %4072 = shalt.err (!%p4069_p10)
}
  0x1a   :  { %s4073_s18 = scalar_lea.vmem %s4260_s16, 512  ;;  %p4078_p12 = scmp.lt.s32.totalorder %s4260_s16, %s4260_s16 }
  0x1b   :  { %p4074_p11 = scmp.ne.s32.totalorder %s4260_s16, %s4073_s18  ;;  %p4079_p13 = scmp.lt.s32.totalorder %s4073_s18, %s4073_s18 }
  0x1d   :  { %p4080_p0 = por %p4079_p13, %p4078_p12 }
  0x1f   :  { %p4081_p1 = pnand %p4080_p0, %p4074_p11 }
  0x21   :  { %4084 = shalt.err (!%p4081_p1)
}
  0x22   :  { %29 = dma.hbm_to_vmem [thread:$0]  %s6627_s0, 512, %s4260_s16, [#allocation8], %s4187_s25, %s4187_s25, %s4188_s26  }
  0x23   :  { %s4189_s19 = smov [#allocation12]   ;;  %s4085_s23 = scalar_lea.hbm %s6630_s3, 8192 }
  0x24   :  { %s49_s20 = sshll.u32 %s4189_s19, 4  ;;  %p4086_p2 = scmp.ne.s32.totalorder %s6630_s3, %s4085_s23  ;;  %s50_s20 = int_to_ptr.vmem [resolvable:$true] %s49_s20 }
  0x25   :  { %p4089_p3 = scmp.lt.u32.totalorder %s4085_s23, %s6630_s3 }
  0x27   :  { %p4091_p4 = pnand %p4089_p3, %p4086_p2 }
  0x29   :  { %4094 = shalt.err (!%p4091_p4)
}
  0x2a   :  { %s4095_s30 = scalar_lea.vmem %s50_s20, 8192  ;;  %p4100_p6 = scmp.lt.s32.totalorder %s50_s20, %s50_s20 }
  0x2b   :  { %p4096_p5 = scmp.ne.s32.totalorder %s50_s20, %s4095_s30  ;;  %p4101_p7 = scmp.lt.s32.totalorder %s4095_s30, %s4095_s30 }
  0x2d   :  { %p4102_p8 = por %p4101_p7, %p4100_p6 }
  0x2f   :  { %p4103_p9 = pnand %p4102_p8, %p4096_p5 }
  0x31   :  { %4106 = shalt.err (!%p4103_p9)
}
  0x32   :  { %s4190_s0 = smov 512   ;;  %s4191_s16 = smov 32  }
  0x33   :  { %55 = dma.hbm_to_vmem [thread:$0]  %s6630_s3, 8192, %s50_s20, [#allocation11], %s4190_s0, %s4190_s0, %s4191_s16  }
  0x34   :  { %4173 = dma.done.wait [#allocation8], 512  }
  0x35   :  { %4174 = vsyncadd [#allocation8], 4294966784 }
  0x36   :  { %4175 = dma.done.wait [#allocation11], 9216  }
  0x37   :  { %4176 = vsyncadd [#allocation11], 4294958080  ;;  %s76_s13 = sld [smem:[#allocation0]]   ;;  %s4192_s15 = smov 1024  }
  0x38   :  { %88 = sst [smem:[#allocation15]] %s4192_s15  ;;  %s4193_s17 = smov 8  }
  0x39   :  { %90 = sst [smem:[#allocation15 + $0x1]] %s4192_s15  ;;  %s4194_s18 = smov 128  }
  0x3a   :  { %92 = sst [smem:[#allocation15 + $0x2]] %s4193_s17  ;;  %s4195_s1 = smov [#allocation3]  }
  0x3b   :  { %94 = sst [smem:[#allocation15 + $0x3]] %s4187_s25  ;;  %s84_s14 = sshll.u32 %s4195_s1, 4  ;;  %s85_s14 = int_to_ptr.vmem [resolvable:$true] %s84_s14 }
  0x3c   :  { %96 = sst [smem:[#allocation15 + $0x4]] %s4194_s18  ;;  %s4196_s19 = smov 2  }
  0x3d   :  { %98 = sst [smem:[#allocation15 + $0x5]] %s4196_s19  ;;  %s3278_s3 = sshll.u32 %s76_s13, 26 }
  0x3e   :  { %100 = sst [smem:[#allocation15 + $0x6]] %s4190_s0  ;;  %s3279_s20 = sadd.s32 134217728, %s3278_s3 }
  0x3f   :  { %102 = sst [smem:[#allocation15 + $0x7]] %s4187_s25  ;;  %s4197_s21 = smov [#allocation6]  }
  0x40   :  { %104 = sst [smem:[#allocation15 + $0x8]] %s4188_s26  ;;  %s4198_s22 = smov [#allocation14]  }
  0x41   :  { %106 = dma.general %s6632_s5, 16384, %s85_s14, %s4197_s21, %s4198_s22, [#allocation15], %s3279_s20, 0  }
  0x42   :  { %v3517_v0 = vld [vmem:[#allocation10] sm:$0xff]   ;;  %v3518_v1 = vld [vmem:[#allocation10 + $0x8] sm:$0xff]   ;;  %v3519_v2 = vld [vmem:[#allocation10 + $0x10] sm:$0xff]   ;;  %s4201_s27 = smov [#allocation5]   ;;  %s4107_s0 = scalar_lea.hbm %s6633_s6, 2048 }
  0x43   :  { %3453 = vmatprep.subr.bf16.mxu0 %v3517_v0  ;;  %v3520_v3 = vld [vmem:[#allocation10 + $0x18] sm:$0xff]   ;;  %v3525_v4 = vld [vmem:[#allocation7] sm:$0xff]   ;;  %v3522_v15 = vld [vmem:[#allocation10 + $0x28] sm:$0xff]   ;;  %s127_s28 = sshll.u32 %s4201_s27, 4  ;;  %p4108_p10 = scmp.ne.s32.totalorder %s6633_s6, %s4107_s0  ;;  %s128_s28 = int_to_ptr.vmem [resolvable:$true] %s127_s28 }
  0x44   :  { %3454 = vmatpush3.bf16.msra.mxu0 %v3517_v0  ;;  %3469 = vmatprep.mubr.bf16.mxu0 %v3525_v4  ;;  %v3521_v5 = vld [vmem:[#allocation10 + $0x20] sm:$0xff]   ;;  %v3523_v20 = vld [vmem:[#allocation10 + $0x30] sm:$0xff]   ;;  %v3524_v25 = vld [vmem:[#allocation10 + $0x38] sm:$0xff]   ;;  %p4111_p11 = scmp.lt.u32.totalorder %s4107_s0, %s6633_s6 }
  0x45   :  { %3455 = vmatprep.subr.bf16.mxu0 %v3518_v1  ;;  %v311_v6 = vld [vmem:[#allocation12] sm:$0xff]  ;;  %v312_v27 = vld [vmem:[#allocation12 + $0x8] sm:$0xff]  ;;  %v3527_v38 = vld [vmem:[#allocation7 + $0x10] sm:$0xff]  }
  0x46   :  { %v315_v7 = vld [vmem:[#allocation12 + $0x20] sm:$0xff]  ;;  %v316_v28 = vld [vmem:[#allocation12 + $0x28] sm:$0xff]  ;;  %v3528_v48 = vld [vmem:[#allocation7 + $0x18] sm:$0xff]   ;;  %p4113_p12 = pnand %p4111_p11, %p4108_p10 }
  0x47   :  { %v3294_v8 = vcombine.high %v311_v6, %v315_v7  ;;  %v3293_v9 = vcombine.low %v311_v6, %v315_v7  ;;  %v319_v10 = vld [vmem:[#allocation12 + $0x40] sm:$0xff]  ;;  %v3296_v32 = vcombine.high %v312_v27, %v316_v28  ;;  %v320_v34 = vld [vmem:[#allocation12 + $0x48] sm:$0xff]  ;;  %v3295_v39 = vcombine.low %v312_v27, %v316_v28 }
  0x48   :  { %3456 = vmatpush3.bf16.msra.mxu0 %v3518_v1  ;;  %v323_v11 = vld [vmem:[#allocation12 + $0x60] sm:$0xff]  ;;  %v324_v35 = vld [vmem:[#allocation12 + $0x68] sm:$0xff] }
  0x49   :  { %3457 = vmatprep.subr.bf16.mxu0 %v3519_v2  ;;  %v3302_v12 = vcombine.high %v319_v10, %v323_v11  ;;  %v327_v13 = vld [vmem:[#allocation12 + $0x80] sm:$0xff]  ;;  %737 = vmatprep.subr.bf16.mxu1 %v3294_v8  ;;  %v3301_v16 = vcombine.low %v319_v10, %v323_v11  ;;  %v3526_v37 = vld [vmem:[#allocation7 + $0x8] sm:$0xff]   ;;  %v3304_v40 = vcombine.high %v320_v34, %v324_v35 }
  0x4a   :  { %v331_v14 = vld [vmem:[#allocation12 + $0xa0] sm:$0xff]  ;;  %738 = vmatpush1.bf16.msra.mxu1 %v3293_v9  ;;  %v328_v42 = vld [vmem:[#allocation12 + $0x88] sm:$0xff]  ;;  %v3303_v44 = vcombine.low %v320_v34, %v324_v35  ;;  %v322_v34 = vld [vmem:[#allocation12 + $0x58] sm:$0xff] }
  0x4b   :  { %739 = vmatprep.subr.bf16.mxu1 %v3302_v12  ;;  %v3310_v17 = vcombine.high %v327_v13, %v331_v14  ;;  %v335_v18 = vld [vmem:[#allocation12 + $0xc0] sm:$0xff]  ;;  %v3309_v21 = vcombine.low %v327_v13, %v331_v14  ;;  %v332_v43 = vld [vmem:[#allocation12 + $0xa8] sm:$0xff]  ;;  %v313_v12 = vld [vmem:[#allocation12 + $0x10] sm:$0xff] }
  0x4c   :  { %3458 = vmatpush3.bf16.msra.mxu0 %v3519_v2  ;;  %v339_v19 = vld [vmem:[#allocation12 + $0xe0] sm:$0xff]  ;;  %v3312_v45 = vcombine.high %v328_v42, %v332_v43  ;;  %v336_v46 = vld [vmem:[#allocation12 + $0xc8] sm:$0xff]  ;;  %v3311_v49 = vcombine.low %v328_v42, %v332_v43  ;;  %v317_v13 = vld [vmem:[#allocation12 + $0x30] sm:$0xff] }
  0x4d   :  { %3459 = vmatprep.subr.bf16.mxu0 %v3520_v3  ;;  %v3318_v22 = vcombine.high %v335_v18, %v339_v19  ;;  %v343_v23 = vld [vmem:[#allocation12 + $0x100] sm:$0xff]  ;;  %v3317_v26 = vcombine.low %v335_v18, %v339_v19  ;;  %v340_v47 = vld [vmem:[#allocation12 + $0xe8] sm:$0xff]  ;;  %v314_v14 = vld [vmem:[#allocation12 + $0x18] sm:$0xff]  ;;  %v6638_v18 = vmov 0  }
  0x4e   :  { %740 = vmatpush1.bf16.msra.mxu1 %v3301_v16  ;;  %v347_v24 = vld [vmem:[#allocation12 + $0x120] sm:$0xff]  ;;  %v3320_v50 = vcombine.high %v336_v46, %v340_v47  ;;  %v344_v51 = vld [vmem:[#allocation12 + $0x108] sm:$0xff]  ;;  %v3319_v53 = vcombine.low %v336_v46, %v340_v47  ;;  %v3298_v16 = vcombine.high %v313_v12, %v317_v13  ;;  %769 = vmatprep.mubr.bf16.mxu1 %v6638_v18  ;;  %v326_v35 = vld [vmem:[#allocation12 + $0x78] sm:$0xff] }
  0x4f   :  { %741 = vmatprep.subr.bf16.mxu1 %v3310_v17  ;;  %v3326_v29 = vcombine.high %v343_v23, %v347_v24  ;;  %v351_v30 = vld [vmem:[#allocation12 + $0x140] sm:$0xff]  ;;  %v3325_v33 = vcombine.low %v343_v23, %v347_v24  ;;  %v348_v52 = vld [vmem:[#allocation12 + $0x128] sm:$0xff]  ;;  %v318_v17 = vld [vmem:[#allocation12 + $0x38] sm:$0xff]  ;;  %v3308_v42 = vcombine.high %v322_v34, %v326_v35 }
  0x50   :  { %3460 = vmatpush3.bf16.msra.mxu0 %v3520_v3  ;;  %v355_v31 = vld [vmem:[#allocation12 + $0x160] sm:$0xff]  ;;  %v3328_v54 = vcombine.high %v344_v51, %v348_v52  ;;  %v352_v55 = vld [vmem:[#allocation12 + $0x148] sm:$0xff]  ;;  %v3327_v57 = vcombine.low %v344_v51, %v348_v52  ;;  %v3299_v19 = vcombine.low %v314_v14, %v318_v17  ;;  %v329_v43 = vld [vmem:[#allocation12 + $0x90] sm:$0xff] }
  0x51   :  { %3461 = vmatprep.subr.bf16.mxu0 %v3521_v5  ;;  %v3334_v36 = vcombine.high %v351_v30, %v355_v31  ;;  %v3333_v41 = vcombine.low %v351_v30, %v355_v31  ;;  %v356_v56 = vld [vmem:[#allocation12 + $0x168] sm:$0xff]  ;;  %v359_v60 = vld [vmem:[#allocation12 + $0x180] sm:$0xff]  ;;  %v321_v30 = vld [vmem:[#allocation12 + $0x50] sm:$0xff] }
  0x52   :  { %742 = vmatpush1.bf16.msra.mxu1 %v3309_v21  ;;  %v3336_v58 = vcombine.high %v352_v55, %v356_v56  ;;  %v3335_v59 = vcombine.low %v352_v55, %v356_v56  ;;  %v363_v61 = vld [vmem:[#allocation12 + $0x1a0] sm:$0xff]  ;;  %v360_v62 = vld [vmem:[#allocation12 + $0x188] sm:$0xff]  ;;  %v333_v46 = vld [vmem:[#allocation12 + $0xb0] sm:$0xff] }
  0x53   :  { %743 = vmatprep.subr.bf16.mxu1 %v3318_v22  ;;  %v3342_v63 = vcombine.high %v359_v60, %v363_v61  ;;  %v364_v0 = vld [vmem:[#allocation12 + $0x1a8] sm:$0xff]  ;;  %v3341_v3 = vcombine.low %v359_v60, %v363_v61  ;;  %v367_v4 = vld [vmem:[#allocation12 + $0x1c0] sm:$0xff]  ;;  %v330_v47 = vld [vmem:[#allocation12 + $0x98] sm:$0xff] }
  0x54   :  { %3462 = vmatpush3.bf16.msra.mxu0 %v3521_v5  ;;  %v3343_v1 = vcombine.low %v360_v62, %v364_v0  ;;  %v3344_v2 = vcombine.high %v360_v62, %v364_v0  ;;  %v371_v5 = vld [vmem:[#allocation12 + $0x1e0] sm:$0xff]  ;;  %v368_v6 = vld [vmem:[#allocation12 + $0x1c8] sm:$0xff]  ;;  %v337_v60 = vld [vmem:[#allocation12 + $0xd0] sm:$0xff] }
  0x55   :  { %3463 = vmatprep.subr.bf16.mxu0 %v3522_v15  ;;  %v3350_v7 = vcombine.high %v367_v4, %v371_v5  ;;  %v372_v8 = vld [vmem:[#allocation12 + $0x1e8] sm:$0xff]  ;;  %v3349_v11 = vcombine.low %v367_v4, %v371_v5  ;;  %v3280_v21 = vld [vmem:[%s6629_s2] ss:$0 sm:$0xff]  ;;  %v341_v62 = vld [vmem:[#allocation12 + $0xf0] sm:$0xff]  ;;  %s4200_s2 = smov [#allocation4]  }
  0x56   :  { %744 = vmatpush1.bf16.msra.mxu1 %v3317_v26  ;;  %v3351_v9 = vcombine.low %v368_v6, %v372_v8  ;;  %v3352_v10 = vcombine.high %v368_v6, %v372_v8  ;;  %v342_v0 = vld [vmem:[#allocation12 + $0xf8] sm:$0xff]  ;;  %v3322_v6 = vcombine.high %v337_v60, %v341_v62  ;;  %v345_v8 = vld [vmem:[#allocation12 + $0x110] sm:$0xff]  ;;  %s115_s26 = sshll.u32 %s4200_s2, 4  ;;  %s116_s26 = int_to_ptr.vmem [resolvable:$true] %s115_s26 }
  0x57   :  { %745 = vmatprep.subr.bf16.mxu1 %v3326_v29 }
  0x58   :  { %3464 = vmatpush3.bf16.msra.mxu0 %v3522_v15  ;;  %v3297_v15 = vcombine.low %v313_v12, %v317_v13  ;;  %v3321_v12 = vcombine.low %v337_v60, %v341_v62 }
  0x59   :  { %3465 = vmatprep.subr.bf16.mxu0 %v3523_v20 }
  0x5a   :  { %746 = vmatpush1.bf16.msra.mxu1 %v3325_v33  ;;  %v325_v33 = vld [vmem:[#allocation12 + $0x70] sm:$0xff] }
  0x5b   :  { %747 = vmatprep.subr.bf16.mxu1 %v3334_v36  ;;  %v3305_v52 = vcombine.low %v321_v30, %v325_v33 }
  0x5c   :  { %3466 = vmatpush3.bf16.msra.mxu0 %v3523_v20  ;;  %v3300_v20 = vcombine.high %v314_v14, %v318_v17  ;;  %v357_v17 = vld [vmem:[#allocation12 + $0x170] sm:$0xff] }
  0x5d   :  { %3467 = vmatprep.subr.bf16.mxu0 %v3524_v25 }
  0x5e   :  { %748 = vmatpush1.bf16.msra.mxu1 %v3333_v41  ;;  %v3306_v41 = vcombine.high %v321_v30, %v325_v33  ;;  %v369_v33 = vld [vmem:[#allocation12 + $0x1d0] sm:$0xff] }
  0x5f   :  { %749 = vmatprep.subr.bf16.mxu1 %v3342_v63  ;;  %v338_v63 = vld [vmem:[#allocation12 + $0xd8] sm:$0xff] }
  0x60   :  { %3468 = vmatpush3.bf16.msra.mxu0 %v3524_v25  ;;  %v3323_v13 = vcombine.low %v338_v63, %v342_v0 }
  0x61   :  { %810 = vmatprep.subr.bf16.mxu0 %v3296_v32 }
  0x62   :  { %750 = vmatpush1.bf16.msra.mxu1 %v3341_v3  ;;  %v3313_v3 = vcombine.low %v329_v43, %v333_v46 }
  0x63   :  { %3470 = vmatmul.mubr.bf16.vlgmr.msra.gmra.mrb[0].mxu0 %v3526_v37  ;;  %751 = vmatprep.subr.bf16.mxu1 %v3350_v7  ;;  %v3324_v7 = vcombine.high %v338_v63, %v342_v0 }
  0x64   :  { %3473 = vmatprep.mubr.bf16.mxu0 %v3527_v38  ;;  %811 = vmatpush1.bf16.msra.mxu0 %v3295_v39 }
  0x65   :  { %812 = vmatprep.subr.bf16.mxu0 %v3304_v40 }
  0x66   :  { %752 = vmatpush1.bf16.msra.mxu1 %v3349_v11  ;;  %v350_v11 = vld [vmem:[#allocation12 + $0x138] sm:$0xff] }
  0x67   :  { %883 = vmatprep.subr.bf16.mxu1 %v3298_v16  ;;  %v353_v16 = vld [vmem:[#allocation12 + $0x150] sm:$0xff] }
  0x68   :  { %813 = vmatpush1.bf16.msra.mxu0 %v3303_v44 }
  0x69   :  { %814 = vmatprep.subr.bf16.mxu0 %v3312_v45 }
  0x6b   :  { %3474 = vmatmul.mubr.bf16.gmra.mrb[4].mxu0 %v3528_v48  ;;  %v334_v48 = vld [vmem:[#allocation12 + $0xb8] sm:$0xff] }
  0x6c   :  { %815 = vmatpush1.bf16.msra.mxu0 %v3311_v49  ;;  %842 = vmatprep.mubr.bf16.mxu0 %v6638_v18  ;;  %v3315_v4 = vcombine.low %v330_v47, %v334_v48 }
  0x6d   :  { %816 = vmatprep.subr.bf16.mxu0 %v3320_v50 }
  0x70   :  { %817 = vmatpush1.bf16.msra.mxu0 %v3319_v53  ;;  %v3307_v53 = vcombine.low %v322_v34, %v326_v35  ;;  %v373_v34 = vld [vmem:[#allocation12 + $0x1f0] sm:$0xff]  ;;  %v370_v35 = vld [vmem:[#allocation12 + $0x1d8] sm:$0xff] }
  0x71   :  { %818 = vmatprep.subr.bf16.mxu0 %v3328_v54 }
  0x74   :  { %819 = vmatpush1.bf16.msra.mxu0 %v3327_v57 }
  0x75   :  { %820 = vmatprep.subr.bf16.mxu0 %v3336_v58  ;;  %v3314_v58 = vcombine.high %v329_v43, %v333_v46  ;;  %v3353_v43 = vcombine.low %v369_v33, %v373_v34 }
  0x78   :  { %821 = vmatpush1.bf16.msra.mxu0 %v3335_v59  ;;  %v3316_v59 = vcombine.high %v330_v47, %v334_v48 }
  0x79   :  { %822 = vmatprep.subr.bf16.mxu0 %v3344_v2 }
  0x7c   :  { %823 = vmatpush1.bf16.msra.mxu0 %v3343_v1 }
  0x7d   :  { %824 = vmatprep.subr.bf16.mxu0 %v3352_v10  ;;  %v346_v10 = vld [vmem:[#allocation12 + $0x118] sm:$0xff] }
  0x80   :  { %825 = vmatpush1.bf16.msra.mxu0 %v3351_v9  ;;  %v349_v9 = vld [vmem:[#allocation12 + $0x130] sm:$0xff] }
  0x81   :  { %956 = vmatprep.subr.bf16.mxu0 %v3300_v20  ;;  %v3330_v14 = vcombine.high %v345_v8, %v349_v9  ;;  %v358_v20 = vld [vmem:[#allocation12 + $0x178] sm:$0xff] }
 0x136   :  { %v3471_v22 = vpop.f32.mrb[0].mxu0 }
 0x137   :  { %v277_v23 = vadd.f32 %v3471_v22, %v3280_v21  ;;  %v268_v24 = vpop.f32.mrb[1].mxu0  ;;  %v3331_v22 = vcombine.low %v346_v10, %v350_v11 }
 0x138   :  { %v269_v25 = vadd.f32 %v3280_v21, %v268_v24  ;;  %v3472_v26 = vpop.f32.mrb[2].mxu0 }
 0x139   :  { %v280_v27 = vadd.f32 %v3472_v26, %v3280_v21  ;;  %v271_v28 = vpop.f32.mrb[3].mxu0  ;;  %v301_v31 = vmax.f32 %v277_v23, 0.0  ;;  %v3338_v23 = vcombine.high %v353_v16, %v357_v17  ;;  %v365_v26 = vld [vmem:[#allocation12 + $0x1b0] sm:$0xff] }
 0x13a   :  { %v272_v29 = vadd.f32 %v3280_v21, %v271_v28  ;;  %v299_v36 = vmax.f32 %v269_v25, 0.0  ;;  %v361_v25 = vld [vmem:[#allocation12 + $0x190] sm:$0xff]  ;;  %v366_v28 = vld [vmem:[#allocation12 + $0x1b8] sm:$0xff] }
 0x13b   :  { %v302_v32 = vmax.f32 %v280_v27, 0.0  ;;  %v362_v27 = vld [vmem:[#allocation12 + $0x198] sm:$0xff] }
 0x13c   :  { %v300_v37 = vmax.f32 %v272_v29, 0.0  ;;  %v3337_v29 = vcombine.low %v353_v16, %v357_v17 }
 0x13d   :  { %v4320_v38 = vpack.c.bf16 %v302_v32, %v301_v31  ;;  %v3346_v31 = vcombine.high %v361_v25, %v365_v26  ;;  %v3348_v32 = vcombine.high %v362_v27, %v366_v28 }
 0x13e   :  { %v4322_v39 = vpack.c.bf16 %v300_v37, %v299_v36  ;;  %v3475_v40 = vpop.f32.mrb[4].mxu0  ;;  %v374_v36 = vld [vmem:[#allocation12 + $0x1f8] sm:$0xff]  ;;  %v3345_v37 = vcombine.low %v361_v25, %v365_v26 }
 0x13f   :  { %v293_v44 = vadd.f32 %v3475_v40, %v3280_v21  ;;  %v284_v45 = vpop.f32.mrb[5].mxu0  ;;  %v3347_v40 = vcombine.low %v362_v27, %v366_v28 }
 0x140   :  { %770 = vmatmul.mubr.bf16.vlgmr.msra.gmra.mrb[0].mxu1 %v4322_v39  ;;  %843 = vmatmul.mubr.bf16.vlgmr.msra.gmra.mrb[8].mxu0 %v4322_v39  ;;  %v285_v49 = vadd.f32 %v3280_v21, %v284_v45  ;;  %v3476_v50 = vpop.f32.mrb[6].mxu0 }
 0x141   :  { %884 = vmatpush1.bf16.msra.mxu1 %v3297_v15  ;;  %957 = vmatpush1.bf16.msra.mxu0 %v3299_v19  ;;  %v305_v51 = vmax.f32 %v293_v44, 0.0  ;;  %v296_v54 = vadd.f32 %v3476_v50, %v3280_v21  ;;  %v287_v55 = vpop.f32.mrb[7].mxu0  ;;  %v3332_v15 = vcombine.high %v346_v10, %v350_v11  ;;  %v354_v19 = vld [vmem:[#allocation12 + $0x158] sm:$0xff]  ;;  %v3355_v44 = vcombine.low %v370_v35, %v374_v36 }
 0x142   :  { %885 = vmatprep.subr.bf16.mxu1 %v3306_v41  ;;  %958 = vmatprep.subr.bf16.mxu0 %v3308_v42  ;;  %v303_v56 = vmax.f32 %v285_v49, 0.0  ;;  %v288_v57 = vadd.f32 %v3280_v21, %v287_v55  ;;  %v3329_v21 = vcombine.low %v345_v8, %v349_v9  ;;  %v3340_v24 = vcombine.high %v354_v19, %v358_v20 }
 0x143   :  { %v306_v61 = vmax.f32 %v296_v54, 0.0  ;;  %779 = vmatprep.mubr.bf16.mxu1 %v6638_v18  ;;  %852 = vmatprep.mubr.bf16.mxu0 %v6638_v18  ;;  %v3339_v30 = vcombine.low %v354_v19, %v358_v20  ;;  %v3354_v41 = vcombine.high %v369_v33, %v373_v34  ;;  %v3356_v42 = vcombine.high %v370_v35, %v374_v36 }
 0x144   :  { %v304_v1 = vmax.f32 %v288_v57, 0.0 }
 0x145   :  { %886 = vmatpush1.bf16.msra.mxu1 %v3305_v52  ;;  %959 = vmatpush1.bf16.msra.mxu0 %v3307_v53  ;;  %v4328_v2 = vpack.c.bf16 %v306_v61, %v305_v51 }
 0x146   :  { %v4330_v5 = vpack.c.bf16 %v304_v1, %v303_v56  ;;  %887 = vmatprep.subr.bf16.mxu1 %v3314_v58  ;;  %960 = vmatprep.subr.bf16.mxu0 %v3316_v59 }
 0x148   :  { %780 = vmatmul.mubr.bf16.gmra.mrb[4].mxu1 %v4320_v38  ;;  %853 = vmatmul.mubr.bf16.gmra.mrb[12].mxu0 %v4320_v38 }
 0x149   :  { %888 = vmatpush1.bf16.msra.mxu1 %v3313_v3  ;;  %961 = vmatpush1.bf16.msra.mxu0 %v3315_v4 }
 0x14a   :  { %889 = vmatprep.subr.bf16.mxu1 %v3322_v6  ;;  %962 = vmatprep.subr.bf16.mxu0 %v3324_v7 }
 0x14b   :  { %789 = vmatprep.mubr.bf16.mxu1 %v6638_v18  ;;  %862 = vmatprep.mubr.bf16.mxu0 %v6638_v18 }
 0x14d   :  { %890 = vmatpush1.bf16.msra.mxu1 %v3321_v12  ;;  %963 = vmatpush1.bf16.msra.mxu0 %v3323_v13 }
 0x14e   :  { %891 = vmatprep.subr.bf16.mxu1 %v3330_v14  ;;  %964 = vmatprep.subr.bf16.mxu0 %v3332_v15 }
 0x150   :  { %790 = vmatmul.mubr.bf16.gmra.mrb[8].mxu1 %v4330_v5  ;;  %863 = vmatmul.mubr.bf16.gmra.mrb[16].mxu0 %v4330_v5 }
 0x151   :  { %892 = vmatpush1.bf16.msra.mxu1 %v3329_v21  ;;  %965 = vmatpush1.bf16.msra.mxu0 %v3331_v22 }
 0x152   :  { %893 = vmatprep.subr.bf16.mxu1 %v3338_v23  ;;  %966 = vmatprep.subr.bf16.mxu0 %v3340_v24 }
 0x153   :  { %799 = vmatprep.mubr.bf16.mxu1 %v6638_v18  ;;  %872 = vmatprep.mubr.bf16.mxu0 %v6638_v18 }
 0x155   :  { %894 = vmatpush1.bf16.msra.mxu1 %v3337_v29  ;;  %967 = vmatpush1.bf16.msra.mxu0 %v3339_v30 }
 0x156   :  { %895 = vmatprep.subr.bf16.mxu1 %v3346_v31  ;;  %968 = vmatprep.subr.bf16.mxu0 %v3348_v32 }
 0x158   :  { %800 = vmatmul.mubr.bf16.gmra.mrb[12].mxu1 %v4328_v2  ;;  %873 = vmatmul.mubr.bf16.gmra.mrb[20].mxu0 %v4328_v2 }
 0x159   :  { %896 = vmatpush1.bf16.msra.mxu1 %v3345_v37  ;;  %969 = vmatpush1.bf16.msra.mxu0 %v3347_v40 }
 0x15a   :  { %897 = vmatprep.subr.bf16.mxu1 %v3354_v41  ;;  %970 = vmatprep.subr.bf16.mxu0 %v3356_v42 }
 0x15b   :  { %915 = vmatprep.mubr.bf16.mxu1 %v6638_v18  ;;  %988 = vmatprep.mubr.bf16.mxu0 %v6638_v18 }
 0x15d   :  { %898 = vmatpush1.bf16.msra.mxu1 %v3353_v43  ;;  %971 = vmatpush1.bf16.msra.mxu0 %v3355_v44 }
 0x160   :  { %916 = vmatmul.mubr.bf16.vlgmr.msra.gmra.mrb[16].mxu1 %v4322_v39  ;;  %989 = vmatmul.mubr.bf16.vlgmr.msra.gmra.mrb[24].mxu0 %v4322_v39 }
 0x161   :  { %925 = vmatprep.mubr.bf16.mxu1 %v6638_v18  ;;  %998 = vmatprep.mubr.bf16.mxu0 %v6638_v18 }
 0x168   :  { %926 = vmatmul.mubr.bf16.gmra.mrb[20].mxu1 %v4320_v38  ;;  %999 = vmatmul.mubr.bf16.gmra.mrb[28].mxu0 %v4320_v38 }
 0x169   :  { %935 = vmatprep.mubr.bf16.mxu1 %v6638_v18  ;;  %1008 = vmatprep.mubr.bf16.mxu0 %v6638_v18 }
 0x170   :  { %936 = vmatmul.mubr.bf16.gmra.mrb[24].mxu1 %v4330_v5  ;;  %1009 = vmatmul.mubr.bf16.gmra.mrb[32].mxu0 %v4330_v5 }
 0x171   :  { %945 = vmatprep.mubr.bf16.mxu1 %v6638_v18  ;;  %1018 = vmatprep.mubr.bf16.mxu0 %v6638_v18 }
 0x178   :  { %946 = vmatmul.mubr.bf16.gmra.mrb[28].mxu1 %v4328_v2  ;;  %1019 = vmatmul.mubr.bf16.gmra.mrb[36].mxu0 %v4328_v2 }
 0x179   :  { %4116 = shalt.err (!%p4113_p12)  }
 0x17a   :  { %s4117_s15 = scalar_lea.vmem %s116_s26, 2048  ;;  %p4122_p0 = scmp.lt.s32.totalorder %s116_s26, %s116_s26 }
 0x17b   :  { %p4118_p13 = scmp.ne.s32.totalorder %s116_s26, %s4117_s15  ;;  %p4123_p1 = scmp.lt.s32.totalorder %s4117_s15, %s4117_s15 }
 0x17d   :  { %p4124_p2 = por %p4123_p1, %p4122_p0 }
 0x17f   :  { %p4125_p3 = pnand %p4124_p2, %p4118_p13 }
 0x181   :  { %4128 = shalt.err (!%p4125_p3)  }
 0x182   :  { %118 = dma.hbm_to_vmem [thread:$0]  %s6633_s6, 2048, %s116_s26, [#allocation6 + $0x1] }
 0x183   :  { %s4129_s19 = scalar_lea.hbm %s6634_s7, 1024 }
 0x184   :  { %p4130_p4 = scmp.ne.s32.totalorder %s6634_s7, %s4129_s19  ;;  %p4133_p5 = scmp.lt.u32.totalorder %s4129_s19, %s6634_s7 }
 0x186   :  { %p4135_p6 = pnand %p4133_p5, %p4130_p4 }
 0x188   :  { %4138 = shalt.err (!%p4135_p6)  }
 0x189   :  { %s4139_s23 = scalar_lea.vmem %s128_s28, 1024  ;;  %p4144_p8 = scmp.lt.s32.totalorder %s128_s28, %s128_s28 }
 0x18a   :  { %p4140_p7 = scmp.ne.s32.totalorder %s128_s28, %s4139_s23  ;;  %p4145_p9 = scmp.lt.s32.totalorder %s4139_s23, %s4139_s23 }
 0x18c   :  { %p4146_p10 = por %p4145_p9, %p4144_p8 }
 0x18e   :  { %p4147_p11 = pnand %p4146_p10, %p4140_p7 }
 0x190   :  { %4150 = shalt.err (!%p4147_p11)  }
 0x191   :  { %130 = dma.hbm_to_vmem [thread:$0]  %s6634_s7, 1024, %s128_s28, [#allocation6 + $0x2]  ;;  %v377_v38 = vlaneseq  ;;  %v4389_v47 = vld [vmem:[%s6631_s4] sm:$0xff] }
 0x193   :  { %v4382_v39 = vshrl.u32 %v377_v38, 7 }
 0x195   :  { %v379_v45 = vsub.s32 0, %v4382_v39  ;;  %v387_v46 = vsub.s32 2, %v4382_v39  ;;  %v383_v48 = vsub.s32 1, %v4382_v39  ;;  %v391_v49 = vsub.s32 3, %v4382_v39 }
 0x197   :  { %v4394_v50 = vrot.slane %v4389_v47, %v379_v45  ;;  %v4397_v51 = vrot.slane %v4389_v47, %v387_v46  ;;  %v4400_v52 = vrot.slane %v4389_v47, %v383_v48  ;;  %v4403_v53 = vrot.slane %v4389_v47, %v391_v49 }
 0x198   :  { %v395_v46 = vsub.s32 4, %v4382_v39  ;;  %v403_v48 = vsub.s32 6, %v4382_v39 }
 0x213   :  { %v771_v54 = vpop.f32.mrb[0].mxu1  ;;  %v844_v55 = vpop.f32.mrb[8].mxu0 }
 0x214   :  { %v4406_v56 = vadd.f32 %v771_v54, %v4394_v50  ;;  %v4409_v57 = vadd.f32 %v844_v55, %v4397_v51  ;;  %v773_v58 = vpop.f32.mrb[1].mxu1  ;;  %v846_v59 = vpop.f32.mrb[9].mxu0 }
 0x215   :  { %v4412_v60 = vadd.f32 %v773_v58, %v4400_v52  ;;  %v4415_v61 = vadd.f32 %v846_v59, %v4403_v53  ;;  %v775_v62 = vpop.f32.mrb[2].mxu1  ;;  %v848_v63 = vpop.f32.mrb[10].mxu0  ;;  %v399_v59 = vsub.s32 5, %v4382_v39 }
 0x216   :  { %7021 = vst [vmem:[#allocation28_spill] sm:$0xff] %v4406_v56  ;;  %7022 = vst [vmem:[#allocation29_spill] sm:$0xff] %v4409_v57  ;;  %v4418_v0 = vadd.f32 %v775_v62, %v4394_v50  ;;  %v4421_v1 = vadd.f32 %v848_v63, %v4397_v51  ;;  %v777_v2 = vpop.f32.mrb[3].mxu1  ;;  %v850_v3 = vpop.f32.mrb[11].mxu0  ;;  %v407_v62 = vsub.s32 7, %v4382_v39 }
 0x217   :  { %7023 = vst [vmem:[#allocation30_spill] sm:$0xff] %v4412_v60  ;;  %7024 = vst [vmem:[#allocation31_spill] sm:$0xff] %v4415_v61  ;;  %v4424_v4 = vadd.f32 %v777_v2, %v4400_v52  ;;  %v4427_v5 = vadd.f32 %v850_v3, %v4403_v53  ;;  %v4508_v39 = vrot.slane %v4389_v47, %v399_v59 }
 0x218   :  { %7025 = vst [vmem:[#allocation32_spill] sm:$0xff] %v4418_v0  ;;  %7026 = vst [vmem:[#allocation33_spill] sm:$0xff] %v4421_v1 }
 0x219   :  { %7027 = vst [vmem:[#allocation34_spill] sm:$0xff] %v4424_v4  ;;  %7028 = vst [vmem:[#allocation35_spill] sm:$0xff] %v4427_v5 }
 0x21b   :  { %v781_v6 = vpop.f32.mrb[4].mxu1  ;;  %v854_v7 = vpop.f32.mrb[12].mxu0 }
 0x21c   :  { %v4430_v8 = vadd.f32 %v781_v6, %v4394_v50  ;;  %v4433_v9 = vadd.f32 %v854_v7, %v4397_v51  ;;  %v783_v10 = vpop.f32.mrb[5].mxu1  ;;  %v856_v11 = vpop.f32.mrb[13].mxu0 }
 0x21d   :  { %v4436_v12 = vadd.f32 %v783_v10, %v4400_v52  ;;  %v4439_v13 = vadd.f32 %v856_v11, %v4403_v53  ;;  %v785_v14 = vpop.f32.mrb[6].mxu1  ;;  %v858_v15 = vpop.f32.mrb[14].mxu0  ;;  %v396_v11 = vrot.slane %v4389_v47, %v395_v46 }
 0x21e   :  { %7029 = vst [vmem:[#allocation36_spill] sm:$0xff] %v4430_v8  ;;  %7030 = vst [vmem:[#allocation37_spill] sm:$0xff] %v4433_v9  ;;  %v4442_v16 = vadd.f32 %v785_v14, %v4394_v50  ;;  %v4445_v17 = vadd.f32 %v858_v15, %v4397_v51  ;;  %v787_v19 = vpop.f32.mrb[7].mxu1  ;;  %v860_v20 = vpop.f32.mrb[15].mxu0  ;;  %v404_v14 = vrot.slane %v4389_v47, %v403_v48 }
 0x21f   :  { %7031 = vst [vmem:[#allocation38_spill] sm:$0xff] %v4436_v12  ;;  %7032 = vst [vmem:[#allocation39_spill] sm:$0xff] %v4439_v13  ;;  %v4448_v21 = vadd.f32 %v787_v19, %v4400_v52  ;;  %v4451_v22 = vadd.f32 %v860_v20, %v4403_v53 }
 0x220   :  { %7033 = vst [vmem:[#allocation40_spill] sm:$0xff] %v4442_v16  ;;  %7034 = vst [vmem:[#allocation41_spill] sm:$0xff] %v4445_v17 }
 0x221   :  { %7035 = vst [vmem:[#allocation42_spill] sm:$0xff] %v4448_v21  ;;  %7036 = vst [vmem:[#allocation43_spill] sm:$0xff] %v4451_v22 }
 0x223   :  { %v791_v23 = vpop.f32.mrb[8].mxu1  ;;  %v864_v24 = vpop.f32.mrb[16].mxu0 }
 0x224   :  { %v4454_v25 = vadd.f32 %v791_v23, %v4394_v50  ;;  %v4457_v26 = vadd.f32 %v864_v24, %v4397_v51  ;;  %v793_v27 = vpop.f32.mrb[9].mxu1  ;;  %v866_v28 = vpop.f32.mrb[17].mxu0 }
 0x225   :  { %v4460_v29 = vadd.f32 %v793_v27, %v4400_v52  ;;  %v4463_v30 = vadd.f32 %v866_v28, %v4403_v53  ;;  %v795_v31 = vpop.f32.mrb[10].mxu1  ;;  %v868_v32 = vpop.f32.mrb[18].mxu0 }
 0x226   :  { %7037 = vst [vmem:[#allocation44_spill] sm:$0xff] %v4454_v25  ;;  %7038 = vst [vmem:[#allocation45_spill] sm:$0xff] %v4457_v26  ;;  %v4466_v33 = vadd.f32 %v795_v31, %v4394_v50  ;;  %v4469_v34 = vadd.f32 %v868_v32, %v4397_v51  ;;  %v797_v35 = vpop.f32.mrb[11].mxu1  ;;  %v870_v36 = vpop.f32.mrb[19].mxu0 }
 0x227   :  { %7039 = vst [vmem:[#allocation46_spill] sm:$0xff] %v4460_v29  ;;  %7040 = vst [vmem:[#allocation47_spill] sm:$0xff] %v4463_v30  ;;  %v4472_v37 = vadd.f32 %v797_v35, %v4400_v52  ;;  %v4475_v40 = vadd.f32 %v870_v36, %v4403_v53 }
 0x228   :  { %7041 = vst [vmem:[#allocation48_spill] sm:$0xff] %v4466_v33  ;;  %7042 = vst [vmem:[#allocation49_spill] sm:$0xff] %v4469_v34 }
 0x229   :  { %7043 = vst [vmem:[#allocation50_spill] sm:$0xff] %v4472_v37  ;;  %7044 = vst [vmem:[#allocation51_spill] sm:$0xff] %v4475_v40 }
 0x22b   :  { %v801_v41 = vpop.f32.mrb[12].mxu1  ;;  %v874_v42 = vpop.f32.mrb[20].mxu0 }
 0x22c   :  { %v4478_v43 = vadd.f32 %v801_v41, %v4394_v50  ;;  %v4481_v44 = vadd.f32 %v874_v42, %v4397_v51  ;;  %v803_v38 = vpop.f32.mrb[13].mxu1  ;;  %v876_v45 = vpop.f32.mrb[21].mxu0 }
 0x22d   :  { %v4486_v49 = vadd.f32 %v803_v38, %v4400_v52  ;;  %v4489_v54 = vadd.f32 %v876_v45, %v4403_v53  ;;  %v805_v55 = vpop.f32.mrb[14].mxu1  ;;  %v878_v58 = vpop.f32.mrb[22].mxu0 }
 0x22e   :  { %7045 = vst [vmem:[#allocation52_spill] sm:$0xff] %v4478_v43  ;;  %7046 = vst [vmem:[#allocation53_spill] sm:$0xff] %v4481_v44  ;;  %v4494_v63 = vadd.f32 %v805_v55, %v4394_v50  ;;  %v4497_v2 = vadd.f32 %v878_v58, %v4397_v51  ;;  %v807_v3 = vpop.f32.mrb[15].mxu1  ;;  %v880_v6 = vpop.f32.mrb[23].mxu0  ;;  %v4511_v50 = vrot.slane %v4389_v47, %v407_v62 }
 0x22f   :  { %7047 = vst [vmem:[#allocation54_spill] sm:$0xff] %v4486_v49  ;;  %7048 = vst [vmem:[#allocation55_spill] sm:$0xff] %v4489_v54  ;;  %v4500_v7 = vadd.f32 %v807_v3, %v4400_v52  ;;  %v4503_v10 = vadd.f32 %v880_v6, %v4403_v53 }
 0x230   :  { %7049 = vst [vmem:[#allocation56_spill] sm:$0xff] %v4494_v63  ;;  %7050 = vst [vmem:[#allocation57_spill] sm:$0xff] %v4497_v2 }
 0x231   :  { %7051 = vst [vmem:[#allocation58_spill] sm:$0xff] %v4500_v7  ;;  %7052 = vst [vmem:[#allocation59_spill] sm:$0xff] %v4503_v10 }
 0x233   :  { %v917_v51 = vpop.f32.mrb[16].mxu1  ;;  %v990_v15 = vpop.f32.mrb[24].mxu0 }
 0x234   :  { %v4513_v19 = vadd.f32 %v917_v51, %v396_v11  ;;  %v4515_v20 = vadd.f32 %v990_v15, %v404_v14  ;;  %v919_v52 = vpop.f32.mrb[17].mxu1  ;;  %v992_v23 = vpop.f32.mrb[25].mxu0 }
 0x235   :  { %v4518_v53 = vadd.f32 %v919_v52, %v4508_v39  ;;  %v4521_v24 = vadd.f32 %v992_v23, %v4511_v50  ;;  %v921_v27 = vpop.f32.mrb[18].mxu1  ;;  %v994_v28 = vpop.f32.mrb[26].mxu0 }
 0x236   :  { %7053 = vst [vmem:[#allocation60_spill] sm:$0xff] %v4513_v19  ;;  %7054 = vst [vmem:[#allocation61_spill] sm:$0xff] %v4515_v20  ;;  %v4523_v31 = vadd.f32 %v921_v27, %v396_v11  ;;  %v4525_v47 = vadd.f32 %v994_v28, %v404_v14  ;;  %v923_v32 = vpop.f32.mrb[19].mxu1  ;;  %v996_v35 = vpop.f32.mrb[27].mxu0 }
 0x237   :  { %7055 = vst [vmem:[#allocation62_spill] sm:$0xff] %v4518_v53  ;;  %7056 = vst [vmem:[#allocation63_spill] sm:$0xff] %v4521_v24  ;;  %v4528_v36 = vadd.f32 %v923_v32, %v4508_v39  ;;  %v4531_v41 = vadd.f32 %v996_v35, %v4511_v50 }
 0x238   :  { %7057 = vst [vmem:[#allocation64_spill] sm:$0xff] %v4523_v31  ;;  %7058 = vst [vmem:[#allocation65_spill] sm:$0xff] %v4525_v47 }
 0x239   :  { %7059 = vst [vmem:[#allocation66_spill] sm:$0xff] %v4528_v36  ;;  %7060 = vst [vmem:[#allocation67_spill] sm:$0xff] %v4531_v41 }
 0x23b   :  { %v927_v42 = vpop.f32.mrb[20].mxu1  ;;  %v1000_v38 = vpop.f32.mrb[28].mxu0 }
 0x23c   :  { %v4533_v45 = vadd.f32 %v927_v42, %v396_v11  ;;  %v4535_v46 = vadd.f32 %v1000_v38, %v404_v14  ;;  %v929_v48 = vpop.f32.mrb[21].mxu1  ;;  %v1002_v55 = vpop.f32.mrb[29].mxu0 }
 0x23d   :  { %v4538_v58 = vadd.f32 %v929_v48, %v4508_v39  ;;  %v4541_v59 = vadd.f32 %v1002_v55, %v4511_v50  ;;  %v931_v62 = vpop.f32.mrb[22].mxu1  ;;  %v1004_v3 = vpop.f32.mrb[30].mxu0 }
 0x23e   :  { %7061 = vst [vmem:[#allocation68_spill] sm:$0xff] %v4533_v45  ;;  %7062 = vst [vmem:[#allocation69_spill] sm:$0xff] %v4535_v46  ;;  %v4543_v6 = vadd.f32 %v931_v62, %v396_v11  ;;  %v4545_v51 = vadd.f32 %v1004_v3, %v404_v14  ;;  %v933_v15 = vpop.f32.mrb[23].mxu1  ;;  %v1006_v52 = vpop.f32.mrb[31].mxu0 }
 0x23f   :  { %7063 = vst [vmem:[#allocation70_spill] sm:$0xff] %v4538_v58  ;;  %7064 = vst [vmem:[#allocation71_spill] sm:$0xff] %v4541_v59  ;;  %v4548_v23 = vadd.f32 %v933_v15, %v4508_v39  ;;  %v4551_v27 = vadd.f32 %v1006_v52, %v4511_v50 }
 0x240   :  { %7065 = vst [vmem:[#allocation72_spill] sm:$0xff] %v4543_v6  ;;  %7066 = vst [vmem:[#allocation73_spill] sm:$0xff] %v4545_v51 }
 0x241   :  { %7067 = vst [vmem:[#allocation74_spill] sm:$0xff] %v4548_v23  ;;  %7068 = vst [vmem:[#allocation75_spill] sm:$0xff] %v4551_v27 }
 0x243   :  { %v937_v28 = vpop.f32.mrb[24].mxu1  ;;  %v1010_v32 = vpop.f32.mrb[32].mxu0 }
 0x244   :  { %v4553_v35 = vadd.f32 %v937_v28, %v396_v11  ;;  %v4555_v42 = vadd.f32 %v1010_v32, %v404_v14  ;;  %v939_v38 = vpop.f32.mrb[25].mxu1  ;;  %v1012_v48 = vpop.f32.mrb[33].mxu0 }
 0x245   :  { %v4558_v55 = vadd.f32 %v939_v38, %v4508_v39  ;;  %v4561_v62 = vadd.f32 %v1012_v48, %v4511_v50  ;;  %v941_v3 = vpop.f32.mrb[26].mxu1  ;;  %v1014_v15 = vpop.f32.mrb[34].mxu0 }
 0x246   :  { %7069 = vst [vmem:[#allocation76_spill] sm:$0xff] %v4553_v35  ;;  %7070 = vst [vmem:[#allocation77_spill] sm:$0xff] %v4555_v42  ;;  %v4563_v18 = vadd.f32 %v941_v3, %v396_v11  ;;  %v4565_v52 = vadd.f32 %v1014_v15, %v404_v14  ;;  %v943_v20 = vpop.f32.mrb[27].mxu1  ;;  %v1016_v24 = vpop.f32.mrb[35].mxu0 }
 0x247   :  { %7071 = vst [vmem:[#allocation78_spill] sm:$0xff] %v4558_v55  ;;  %7072 = vst [vmem:[#allocation79_spill] sm:$0xff] %v4561_v62  ;;  %v4568_v28 = vadd.f32 %v943_v20, %v4508_v39  ;;  %v4571_v32 = vadd.f32 %v1016_v24, %v4511_v50 }
 0x248   :  { %7073 = vst [vmem:[#allocation80_spill] sm:$0xff] %v4563_v18  ;;  %7074 = vst [vmem:[#allocation81_spill] sm:$0xff] %v4565_v52 }
 0x249   :  { %7075 = vst [vmem:[#allocation82_spill] sm:$0xff] %v4568_v28  ;;  %7076 = vst [vmem:[#allocation83_spill] sm:$0xff] %v4571_v32 }
 0x24b   :  { %v947_v53 = vpop.f32.mrb[28].mxu1  ;;  %v1020_v38 = vpop.f32.mrb[36].mxu0 }
 0x24c   :  { %v4573_v19 = vadd.f32 %v947_v53, %v396_v11  ;;  %v4575_v48 = vadd.f32 %v1020_v38, %v404_v14  ;;  %v949_v2 = vpop.f32.mrb[29].mxu1  ;;  %v1022_v10 = vpop.f32.mrb[37].mxu0 }
 0x24d   :  { %v4578_v3 = vadd.f32 %v949_v2, %v4508_v39  ;;  %v4581_v15 = vadd.f32 %v1022_v10, %v4511_v50  ;;  %v951_v7 = vpop.f32.mrb[30].mxu1  ;;  %v1024_v20 = vpop.f32.mrb[38].mxu0 }
 0x24e   :  { %7077 = vst [vmem:[#allocation84_spill] sm:$0xff] %v4573_v19  ;;  %7078 = vst [vmem:[#allocation85_spill] sm:$0xff] %v4575_v48  ;;  %v4583_v63 = vadd.f32 %v951_v7, %v396_v11  ;;  %v4585_v24 = vadd.f32 %v1024_v20, %v404_v14  ;;  %v953_v47 = vpop.f32.mrb[31].mxu1  ;;  %v1026_v41 = vpop.f32.mrb[39].mxu0 }
 0x24f   :  { %7079 = vst [vmem:[#allocation86_spill] sm:$0xff] %v4578_v3  ;;  %7080 = vst [vmem:[#allocation87_spill] sm:$0xff] %v4581_v15  ;;  %v4588_v53 = vadd.f32 %v953_v47, %v4508_v39  ;;  %v4591_v38 = vadd.f32 %v1026_v41, %v4511_v50 }
 0x250   :  { %7081 = vst [vmem:[#allocation88_spill] sm:$0xff] %v4583_v63  ;;  %7082 = vst [vmem:[#allocation89_spill] sm:$0xff] %v4585_v24 }
 0x251   :  { %7083 = vst [vmem:[#allocation90_spill] sm:$0xff] %v4588_v53  ;;  %7084 = vst [vmem:[#allocation91_spill] sm:$0xff] %v4591_v38 }
 0x252   :  { %4177 = dma.done.wait [#allocation6], 16384 }
 0x253   :  { %4178 = vsyncadd [#allocation6], 4294950912  ;;  %v7085_v2 = vmov 0   ;;  %v4595_v10 = vld [vmem:[#allocation3 + $0x8] sm:$0xff]  ;;  %v4597_v7 = vld [vmem:[#allocation3] sm:$0xff] }
 0x254   :  { %1257 = vmatprep.mubr.bf16.mxu1 %v7085_v2  ;;  %1298 = vmatprep.mubr.bf16.mxu0 %v7085_v2  ;;  %v4599_v11 = vld [vmem:[#allocation3 + $0x48] sm:$0xff]  ;;  %v4603_v14 = vld [vmem:[#allocation3 + $0x18] sm:$0xff]  ;;  %v4606_v39 = vld [vmem:[#allocation3 + $0x40] sm:$0xff] }
 0x255   :  { %1225 = vmatprep.subr.bf16.mxu1 %v4595_v10  ;;  %1266 = vmatprep.subr.bf16.mxu0 %v4603_v14  ;;  %v4609_v50 = vld [vmem:[#allocation3 + $0x10] sm:$0xff]  ;;  %v4611_v47 = vld [vmem:[#allocation3 + $0x58] sm:$0xff]  ;;  %v4613_v41 = vld [vmem:[#allocation3 + $0x88] sm:$0xff] }
 0x256   :  { %1226 = vmatpush1.bf16.msra.mxu1 %v4597_v7  ;;  %1267 = vmatpush1.bf16.msra.mxu0 %v4609_v50  ;;  %v4617_v20 = vld [vmem:[#allocation3 + $0x50] sm:$0xff]  ;;  %v4620_v36 = vld [vmem:[#allocation3 + $0x98] sm:$0xff]  ;;  %v4623_v31 = vld [vmem:[#allocation3 + $0x80] sm:$0xff] }
 0x257   :  { %1227 = vmatprep.subr.bf16.mxu1 %v4599_v11  ;;  %1268 = vmatprep.subr.bf16.mxu0 %v4611_v47  ;;  %v4625_v44 = vld [vmem:[#allocation3 + $0xc8] sm:$0xff]  ;;  %v4629_v54 = vld [vmem:[#allocation3 + $0x90] sm:$0xff]  ;;  %v4632_v49 = vld [vmem:[#allocation3 + $0xd8] sm:$0xff] }
 0x258   :  { %v4635_v43 = vld [vmem:[#allocation3 + $0xc0] sm:$0xff]  ;;  %v4637_v46 = vld [vmem:[#allocation3 + $0x108] sm:$0xff]  ;;  %v4641_v59 = vld [vmem:[#allocation3 + $0xd0] sm:$0xff] }
 0x259   :  { %v4644_v58 = vld [vmem:[#allocation3 + $0x118] sm:$0xff]  ;;  %v4647_v45 = vld [vmem:[#allocation3 + $0x100] sm:$0xff]  ;;  %v4649_v34 = vld [vmem:[#allocation3 + $0x148] sm:$0xff] }
 0x25a   :  { %1228 = vmatpush1.bf16.msra.mxu1 %v4606_v39  ;;  %1269 = vmatpush1.bf16.msra.mxu0 %v4617_v20  ;;  %v4653_v40 = vld [vmem:[#allocation3 + $0x110] sm:$0xff]  ;;  %v4656_v37 = vld [vmem:[#allocation3 + $0x158] sm:$0xff]  ;;  %v4659_v33 = vld [vmem:[#allocation3 + $0x140] sm:$0xff] }
 0x25b   :  { %1229 = vmatprep.subr.bf16.mxu1 %v4613_v41  ;;  %1270 = vmatprep.subr.bf16.mxu0 %v4620_v36  ;;  %v4661_v51 = vld [vmem:[#allocation3 + $0x188] sm:$0xff]  ;;  %v4665_v27 = vld [vmem:[#allocation3 + $0x150] sm:$0xff]  ;;  %v4668_v23 = vld [vmem:[#allocation3 + $0x198] sm:$0xff] }
 0x25c   :  { %v4671_v6 = vld [vmem:[#allocation3 + $0x180] sm:$0xff]  ;;  %v4673_v26 = vld [vmem:[#allocation3 + $0x1c8] sm:$0xff]  ;;  %v4677_v30 = vld [vmem:[#allocation3 + $0x190] sm:$0xff] }
 0x25d   :  { %v4680_v29 = vld [vmem:[#allocation3 + $0x1d8] sm:$0xff]  ;;  %v4683_v25 = vld [vmem:[#allocation3 + $0x1c0] sm:$0xff]  ;;  %v4685_v42 = vld [vmem:[#allocation3 + $0x208] sm:$0xff] }
 0x25e   :  { %1230 = vmatpush1.bf16.msra.mxu1 %v4623_v31  ;;  %1271 = vmatpush1.bf16.msra.mxu0 %v4629_v54  ;;  %v4689_v62 = vld [vmem:[#allocation3 + $0x1d0] sm:$0xff]  ;;  %v4692_v55 = vld [vmem:[#allocation3 + $0x218] sm:$0xff]  ;;  %v4695_v35 = vld [vmem:[#allocation3 + $0x200] sm:$0xff] }
 0x25f   :  { %1231 = vmatprep.subr.bf16.mxu1 %v4625_v44  ;;  %1272 = vmatprep.subr.bf16.mxu0 %v4632_v49  ;;  %7086 = vst [vmem:[#allocation92_spill] sm:$0xff] %v4692_v55  ;;  %7087 = vst [vmem:[#allocation93_spill] sm:$0xff] %v4695_v35  ;;  %v4697_v17 = vld [vmem:[#allocation3 + $0x248] sm:$0xff]  ;;  %v4701_v22 = vld [vmem:[#allocation3 + $0x210] sm:$0xff] }
 0x260   :  { %7088 = vst [vmem:[#allocation94_spill] sm:$0xff] %v4697_v17  ;;  %7089 = vst [vmem:[#allocation95_spill] sm:$0xff] %v4701_v22  ;;  %v4704_v21 = vld [vmem:[#allocation3 + $0x258] sm:$0xff]  ;;  %v4707_v16 = vld [vmem:[#allocation3 + $0x240] sm:$0xff] }
 0x261   :  { %7090 = vst [vmem:[#allocation96_spill] sm:$0xff] %v4704_v21  ;;  %7091 = vst [vmem:[#allocation97_spill] sm:$0xff] %v4707_v16  ;;  %v4709_v52 = vld [vmem:[#allocation3 + $0x288] sm:$0xff]  ;;  %v4713_v32 = vld [vmem:[#allocation3 + $0x250] sm:$0xff] }
 0x262   :  { %1232 = vmatpush1.bf16.msra.mxu1 %v4635_v43  ;;  %1273 = vmatpush1.bf16.msra.mxu0 %v4641_v59  ;;  %7092 = vst [vmem:[#allocation98_spill] sm:$0xff] %v4709_v52  ;;  %7093 = vst [vmem:[#allocation99_spill] sm:$0xff] %v4713_v32  ;;  %v4716_v28 = vld [vmem:[#allocation3 + $0x298] sm:$0xff]  ;;  %v4719_v18 = vld [vmem:[#allocation3 + $0x280] sm:$0xff] }
 0x263   :  { %1233 = vmatprep.subr.bf16.mxu1 %v4637_v46  ;;  %1274 = vmatprep.subr.bf16.mxu0 %v4644_v58  ;;  %7094 = vst [vmem:[#allocation100_spill] sm:$0xff] %v4716_v28  ;;  %7095 = vst [vmem:[#allocation101_spill] sm:$0xff] %v4719_v18  ;;  %v4721_v9 = vld [vmem:[#allocation3 + $0x2c8] sm:$0xff]  ;;  %v4725_v13 = vld [vmem:[#allocation3 + $0x290] sm:$0xff] }
 0x264   :  { %7096 = vst [vmem:[#allocation102_spill] sm:$0xff] %v4721_v9  ;;  %7097 = vst [vmem:[#allocation103_spill] sm:$0xff] %v4725_v13  ;;  %v4728_v12 = vld [vmem:[#allocation3 + $0x2d8] sm:$0xff]  ;;  %v4731_v8 = vld [vmem:[#allocation3 + $0x2c0] sm:$0xff] }
 0x265   :  { %7098 = vst [vmem:[#allocation104_spill] sm:$0xff] %v4728_v12  ;;  %7099 = vst [vmem:[#allocation105_spill] sm:$0xff] %v4731_v8  ;;  %v4733_v48 = vld [vmem:[#allocation3 + $0x308] sm:$0xff]  ;;  %v4737_v15 = vld [vmem:[#allocation3 + $0x2d0] sm:$0xff] }
 0x266   :  { %1234 = vmatpush1.bf16.msra.mxu1 %v4647_v45  ;;  %1275 = vmatpush1.bf16.msra.mxu0 %v4653_v40  ;;  %7100 = vst [vmem:[#allocation106_spill] sm:$0xff] %v4733_v48  ;;  %7101 = vst [vmem:[#allocation107_spill] sm:$0xff] %v4737_v15  ;;  %v4740_v5 = vld [vmem:[#allocation3 + $0x318] sm:$0xff]  ;;  %v4743_v3 = vld [vmem:[#allocation3 + $0x300] sm:$0xff] }
 0x267   :  { %1235 = vmatprep.subr.bf16.mxu1 %v4649_v34  ;;  %1276 = vmatprep.subr.bf16.mxu0 %v4656_v37  ;;  %7102 = vst [vmem:[#allocation108_spill] sm:$0xff] %v4740_v5  ;;  %7103 = vst [vmem:[#allocation109_spill] sm:$0xff] %v4743_v3  ;;  %v4745_v19 = vld [vmem:[#allocation3 + $0x348] sm:$0xff]  ;;  %v4749_v1 = vld [vmem:[#allocation3 + $0x310] sm:$0xff] }
 0x268   :  { %7104 = vst [vmem:[#allocation110_spill] sm:$0xff] %v4745_v19  ;;  %7105 = vst [vmem:[#allocation111_spill] sm:$0xff] %v4749_v1  ;;  %v4752_v4 = vld [vmem:[#allocation3 + $0x358] sm:$0xff]  ;;  %v4755_v0 = vld [vmem:[#allocation3 + $0x340] sm:$0xff] }
 0x269   :  { %7106 = vst [vmem:[#allocation112_spill] sm:$0xff] %v4752_v4  ;;  %7107 = vst [vmem:[#allocation113_spill] sm:$0xff] %v4755_v0  ;;  %v4757_v24 = vld [vmem:[#allocation3 + $0x388] sm:$0xff]  ;;  %v4761_v38 = vld [vmem:[#allocation3 + $0x350] sm:$0xff] }
 0x26a   :  { %1236 = vmatpush1.bf16.msra.mxu1 %v4659_v33  ;;  %1277 = vmatpush1.bf16.msra.mxu0 %v4665_v27  ;;  %7108 = vst [vmem:[#allocation114_spill] sm:$0xff] %v4757_v24  ;;  %7109 = vst [vmem:[#allocation115_spill] sm:$0xff] %v4761_v38  ;;  %v4764_v61 = vld [vmem:[#allocation3 + $0x398] sm:$0xff]  ;;  %v4767_v53 = vld [vmem:[#allocation3 + $0x380] sm:$0xff] }
 0x26b   :  { %1237 = vmatprep.subr.bf16.mxu1 %v4661_v51  ;;  %1278 = vmatprep.subr.bf16.mxu0 %v4668_v23  ;;  %7110 = vst [vmem:[#allocation116_spill] sm:$0xff] %v4764_v61  ;;  %7111 = vst [vmem:[#allocation117_spill] sm:$0xff] %v4767_v53  ;;  %v4769_v63 = vld [vmem:[#allocation3 + $0x3c8] sm:$0xff]  ;;  %v4773_v57 = vld [vmem:[#allocation3 + $0x390] sm:$0xff] }
 0x26c   :  { %7112 = vst [vmem:[#allocation118_spill] sm:$0xff] %v4769_v63  ;;  %7113 = vst [vmem:[#allocation119_spill] sm:$0xff] %v4773_v57  ;;  %v4776_v60 = vld [vmem:[#allocation3 + $0x3d8] sm:$0xff]  ;;  %v4779_v56 = vld [vmem:[#allocation3 + $0x3c0] sm:$0xff] }
 0x26d   :  { %7114 = vst [vmem:[#allocation120_spill] sm:$0xff] %v4776_v60  ;;  %7115 = vst [vmem:[#allocation121_spill] sm:$0xff] %v4779_v56 }
 0x26e   :  { %1238 = vmatpush1.bf16.msra.mxu1 %v4671_v6  ;;  %1279 = vmatpush1.bf16.msra.mxu0 %v4677_v30 }
 0x26f   :  { %1239 = vmatprep.subr.bf16.mxu1 %v4673_v26  ;;  %1280 = vmatprep.subr.bf16.mxu0 %v4680_v29 }
 0x272   :  { %1240 = vmatpush1.bf16.msra.mxu1 %v4683_v25  ;;  %1281 = vmatpush1.bf16.msra.mxu0 %v4689_v62 }
 0x273   :  { %1241 = vmatprep.subr.bf16.mxu1 %v4685_v42  ;;  %1282 = vmatprep.subr.bf16.mxu0 %v4692_v55 }
 0x276   :  { %1242 = vmatpush1.bf16.msra.mxu1 %v4695_v35  ;;  %1283 = vmatpush1.bf16.msra.mxu0 %v4701_v22 }
 0x277   :  { %1243 = vmatprep.subr.bf16.mxu1 %v4697_v17  ;;  %1284 = vmatprep.subr.bf16.mxu0 %v4704_v21 }
 0x27a   :  { %1244 = vmatpush1.bf16.msra.mxu1 %v4707_v16  ;;  %1285 = vmatpush1.bf16.msra.mxu0 %v4713_v32 }
 0x27b   :  { %1245 = vmatprep.subr.bf16.mxu1 %v4709_v52  ;;  %1286 = vmatprep.subr.bf16.mxu0 %v4716_v28 }
 0x27e   :  { %1246 = vmatpush1.bf16.msra.mxu1 %v4719_v18  ;;  %1287 = vmatpush1.bf16.msra.mxu0 %v4725_v13 }
 0x27f   :  { %1247 = vmatprep.subr.bf16.mxu1 %v4721_v9  ;;  %1288 = vmatprep.subr.bf16.mxu0 %v4728_v12 }
 0x282   :  { %1248 = vmatpush1.bf16.msra.mxu1 %v4731_v8  ;;  %1289 = vmatpush1.bf16.msra.mxu0 %v4737_v15 }
 0x283   :  { %1249 = vmatprep.subr.bf16.mxu1 %v4733_v48  ;;  %1290 = vmatprep.subr.bf16.mxu0 %v4740_v5 }
 0x286   :  { %1250 = vmatpush1.bf16.msra.mxu1 %v4743_v3  ;;  %1291 = vmatpush1.bf16.msra.mxu0 %v4749_v1 }
 0x287   :  { %1251 = vmatprep.subr.bf16.mxu1 %v4745_v19  ;;  %1292 = vmatprep.subr.bf16.mxu0 %v4752_v4 }
 0x28a   :  { %1252 = vmatpush1.bf16.msra.mxu1 %v4755_v0  ;;  %1293 = vmatpush1.bf16.msra.mxu0 %v4761_v38  ;;  %v4781_v0 = vld [vmem:[#allocation3 + $0x28] sm:$0xff] }
 0x28b   :  { %1253 = vmatprep.subr.bf16.mxu1 %v4757_v24  ;;  %1294 = vmatprep.subr.bf16.mxu0 %v4764_v61  ;;  %7116 = vst [vmem:[#allocation122_spill] sm:$0xff] %v4781_v0  ;;  %v4785_v24 = vld [vmem:[#allocation3 + $0x3d0] sm:$0xff]  ;;  %v4788_v61 = vld [vmem:[#allocation3 + $0x38] sm:$0xff]  ;;  %v4793_v38 = vld [vmem:[#allocation3 + $0x68] sm:$0xff] }
 0x28c   :  { %7117 = vst [vmem:[#allocation123_spill] sm:$0xff] %v4785_v24  ;;  %7118 = vst [vmem:[#allocation124_spill] sm:$0xff] %v4788_v61 }
 0x28d   :  { %7120 = vst [vmem:[#allocation126_spill] sm:$0xff] %v4793_v38 }
 0x28e   :  { %1254 = vmatpush1.bf16.msra.mxu1 %v4767_v53  ;;  %1295 = vmatpush1.bf16.msra.mxu0 %v4773_v57  ;;  %v4791_v53 = vld [vmem:[#allocation3 + $0x20] sm:$0xff]  ;;  %v4798_v57 = vld [vmem:[#allocation3 + $0x30] sm:$0xff] }
 0x28f   :  { %1255 = vmatprep.subr.bf16.mxu1 %v4769_v63  ;;  %1296 = vmatprep.subr.bf16.mxu0 %v4776_v60  ;;  %7119 = vst [vmem:[#allocation125_spill] sm:$0xff] %v4791_v53  ;;  %7121 = vst [vmem:[#allocation127_spill] sm:$0xff] %v4798_v57  ;;  %v4801_v60 = vld [vmem:[#allocation3 + $0x78] sm:$0xff]  ;;  %v4833_v63 = vld [vmem:[#allocation3 + $0x128] sm:$0xff] }
 0x290   :  { %7122 = vst [vmem:[#allocation128_spill] sm:$0xff] %v4801_v60  ;;  %7132 = vst [vmem:[#allocation138_spill] sm:$0xff] %v4833_v63 }
 0x292   :  { %1256 = vmatpush1.bf16.msra.mxu1 %v4779_v56  ;;  %1297 = vmatpush1.bf16.msra.mxu0 %v4785_v24  ;;  %v4808_v56 = vld [vmem:[#allocation3 + $0xa8] sm:$0xff] }
 0x293   :  { %1307 = vmatprep.subr.bf16.mxu1 %v4781_v0  ;;  %1348 = vmatprep.subr.bf16.mxu0 %v4788_v61  ;;  %v4805_v0 = vld [vmem:[#allocation3 + $0x60] sm:$0xff]  ;;  %7124 = vst [vmem:[#allocation130_spill] sm:$0xff] %v4808_v56  ;;  %v4813_v61 = vld [vmem:[#allocation3 + $0x70] sm:$0xff]  ;;  %v4821_v24 = vld [vmem:[#allocation3 + $0xe8] sm:$0xff] }
 0x294   :  { %7123 = vst [vmem:[#allocation129_spill] sm:$0xff] %v4805_v0  ;;  %7125 = vst [vmem:[#allocation131_spill] sm:$0xff] %v4813_v61 }
 0x295   :  { %1258 = vmatmul.mubr.bf16.vlgmr.msra.gmra.mrb[32].mxu1 %v7085_v2  ;;  %1299 = vmatmul.mubr.bf16.vlgmr.msra.gmra.mrb[40].mxu0 %v7085_v2  ;;  %7128 = vst [vmem:[#allocation134_spill] sm:$0xff] %v4821_v24 }
 0x296   :  { %1308 = vmatpush1.bf16.msra.mxu1 %v4791_v53  ;;  %1339 = vmatprep.mubr.bf16.mxu1 %v7085_v2  ;;  %v4816_v53 = vld [vmem:[#allocation3 + $0xb8] sm:$0xff] }
 0x297   :  { %1309 = vmatprep.subr.bf16.mxu1 %v4793_v38  ;;  %1349 = vmatpush1.bf16.msra.mxu0 %v4798_v57  ;;  %7126 = vst [vmem:[#allocation132_spill] sm:$0xff] %v4816_v53  ;;  %v4819_v38 = vld [vmem:[#allocation3 + $0xa0] sm:$0xff]  ;;  %v4825_v57 = vld [vmem:[#allocation3 + $0xb0] sm:$0xff] }
 0x298   :  { %1380 = vmatprep.mubr.bf16.mxu0 %v7085_v2  ;;  %1350 = vmatprep.subr.bf16.mxu0 %v4801_v60  ;;  %7127 = vst [vmem:[#allocation133_spill] sm:$0xff] %v4819_v38  ;;  %7129 = vst [vmem:[#allocation135_spill] sm:$0xff] %v4825_v57  ;;  %v4828_v60 = vld [vmem:[#allocation3 + $0xf8] sm:$0xff] }
 0x299   :  { %7130 = vst [vmem:[#allocation136_spill] sm:$0xff] %v4828_v60 }
 0x29a   :  { %1310 = vmatpush1.bf16.msra.mxu1 %v4805_v0  ;;  %v4831_v0 = vld [vmem:[#allocation3 + $0xe0] sm:$0xff] }
 0x29b   :  { %1311 = vmatprep.subr.bf16.mxu1 %v4808_v56  ;;  %1351 = vmatpush1.bf16.msra.mxu0 %v4813_v61  ;;  %7131 = vst [vmem:[#allocation137_spill] sm:$0xff] %v4831_v0  ;;  %v4837_v56 = vld [vmem:[#allocation3 + $0xf0] sm:$0xff]  ;;  %v4845_v61 = vld [vmem:[#allocation3 + $0x168] sm:$0xff] }
 0x29c   :  { %1352 = vmatprep.subr.bf16.mxu0 %v4816_v53  ;;  %7133 = vst [vmem:[#allocation139_spill] sm:$0xff] %v4837_v56  ;;  %v4840_v53 = vld [vmem:[#allocation3 + $0x138] sm:$0xff]  ;;  %7136 = vst [vmem:[#allocation142_spill] sm:$0xff] %v4845_v61 }
 0x29d   :  { %7134 = vst [vmem:[#allocation140_spill] sm:$0xff] %v4840_v53 }
 0x29e   :  { %1312 = vmatpush1.bf16.msra.mxu1 %v4819_v38  ;;  %v4843_v38 = vld [vmem:[#allocation3 + $0x120] sm:$0xff] }
 0x29f   :  { %1313 = vmatprep.subr.bf16.mxu1 %v4821_v24  ;;  %1353 = vmatpush1.bf16.msra.mxu0 %v4825_v57  ;;  %7135 = vst [vmem:[#allocation141_spill] sm:$0xff] %v4843_v38  ;;  %v4849_v24 = vld [vmem:[#allocation3 + $0x130] sm:$0xff]  ;;  %v4857_v57 = vld [vmem:[#allocation3 + $0x1a8] sm:$0xff] }
 0x2a0   :  { %1354 = vmatprep.subr.bf16.mxu0 %v4828_v60  ;;  %7137 = vst [vmem:[#allocation143_spill] sm:$0xff] %v4849_v24  ;;  %v4852_v60 = vld [vmem:[#allocation3 + $0x178] sm:$0xff]  ;;  %7140 = vst [vmem:[#allocation146_spill] sm:$0xff] %v4857_v57 }
 0x2a1   :  { %7138 = vst [vmem:[#allocation144_spill] sm:$0xff] %v4852_v60 }
 0x2a2   :  { %1314 = vmatpush1.bf16.msra.mxu1 %v4831_v0  ;;  %v4855_v0 = vld [vmem:[#allocation3 + $0x160] sm:$0xff] }
 0x2a3   :  { %1315 = vmatprep.subr.bf16.mxu1 %v4833_v63  ;;  %1355 = vmatpush1.bf16.msra.mxu0 %v4837_v56  ;;  %7139 = vst [vmem:[#allocation145_spill] sm:$0xff] %v4855_v0  ;;  %v4861_v63 = vld [vmem:[#allocation3 + $0x170] sm:$0xff]  ;;  %v4869_v56 = vld [vmem:[#allocation3 + $0x1e8] sm:$0xff] }
 0x2a4   :  { %1356 = vmatprep.subr.bf16.mxu0 %v4840_v53  ;;  %7141 = vst [vmem:[#allocation147_spill] sm:$0xff] %v4861_v63  ;;  %v4864_v53 = vld [vmem:[#allocation3 + $0x1b8] sm:$0xff]  ;;  %7144 = vst [vmem:[#allocation150_spill] sm:$0xff] %v4869_v56 }
 0x2a5   :  { %7142 = vst [vmem:[#allocation148_spill] sm:$0xff] %v4864_v53 }
 0x2a6   :  { %1316 = vmatpush1.bf16.msra.mxu1 %v4843_v38  ;;  %v4867_v38 = vld [vmem:[#allocation3 + $0x1a0] sm:$0xff] }
 0x2a7   :  { %1317 = vmatprep.subr.bf16.mxu1 %v4845_v61  ;;  %1357 = vmatpush1.bf16.msra.mxu0 %v4849_v24  ;;  %7143 = vst [vmem:[#allocation149_spill] sm:$0xff] %v4867_v38  ;;  %v4873_v61 = vld [vmem:[#allocation3 + $0x1b0] sm:$0xff]  ;;  %v4881_v24 = vld [vmem:[#allocation3 + $0x228] sm:$0xff] }
 0x2a8   :  { %1358 = vmatprep.subr.bf16.mxu0 %v4852_v60  ;;  %7145 = vst [vmem:[#allocation151_spill] sm:$0xff] %v4873_v61  ;;  %v4876_v60 = vld [vmem:[#allocation3 + $0x1f8] sm:$0xff]  ;;  %7148 = vst [vmem:[#allocation154_spill] sm:$0xff] %v4881_v24 }
 0x2a9   :  { %7146 = vst [vmem:[#allocation152_spill] sm:$0xff] %v4876_v60 }
 0x2aa   :  { %1318 = vmatpush1.bf16.msra.mxu1 %v4855_v0  ;;  %v4879_v0 = vld [vmem:[#allocation3 + $0x1e0] sm:$0xff] }
 0x2ab   :  { %1319 = vmatprep.subr.bf16.mxu1 %v4857_v57  ;;  %1359 = vmatpush1.bf16.msra.mxu0 %v4861_v63  ;;  %7147 = vst [vmem:[#allocation153_spill] sm:$0xff] %v4879_v0  ;;  %v4885_v57 = vld [vmem:[#allocation3 + $0x1f0] sm:$0xff]  ;;  %v4893_v63 = vld [vmem:[#allocation3 + $0x268] sm:$0xff] }
 0x2ac   :  { %1360 = vmatprep.subr.bf16.mxu0 %v4864_v53  ;;  %7149 = vst [vmem:[#allocation155_spill] sm:$0xff] %v4885_v57  ;;  %v4888_v53 = vld [vmem:[#allocation3 + $0x238] sm:$0xff]  ;;  %7152 = vst [vmem:[#allocation158_spill] sm:$0xff] %v4893_v63 }
 0x2ad   :  { %7150 = vst [vmem:[#allocation156_spill] sm:$0xff] %v4888_v53 }
 0x2ae   :  { %1320 = vmatpush1.bf16.msra.mxu1 %v4867_v38  ;;  %v4891_v38 = vld [vmem:[#allocation3 + $0x220] sm:$0xff] }
 0x2af   :  { %1321 = vmatprep.subr.bf16.mxu1 %v4869_v56  ;;  %1361 = vmatpush1.bf16.msra.mxu0 %v4873_v61  ;;  %7151 = vst [vmem:[#allocation157_spill] sm:$0xff] %v4891_v38  ;;  %v4897_v56 = vld [vmem:[#allocation3 + $0x230] sm:$0xff]  ;;  %v4905_v61 = vld [vmem:[#allocation3 + $0x2a8] sm:$0xff] }
 0x2b0   :  { %1362 = vmatprep.subr.bf16.mxu0 %v4876_v60  ;;  %7153 = vst [vmem:[#allocation159_spill] sm:$0xff] %v4897_v56  ;;  %v4900_v60 = vld [vmem:[#allocation3 + $0x278] sm:$0xff]  ;;  %7156 = vst [vmem:[#allocation162_spill] sm:$0xff] %v4905_v61 }
 0x2b1   :  { %7154 = vst [vmem:[#allocation160_spill] sm:$0xff] %v4900_v60 }
 0x2b2   :  { %1322 = vmatpush1.bf16.msra.mxu1 %v4879_v0  ;;  %v4903_v0 = vld [vmem:[#allocation3 + $0x260] sm:$0xff] }
 0x2b3   :  { %1323 = vmatprep.subr.bf16.mxu1 %v4881_v24  ;;  %1363 = vmatpush1.bf16.msra.mxu0 %v4885_v57  ;;  %7155 = vst [vmem:[#allocation161_spill] sm:$0xff] %v4903_v0  ;;  %v4909_v24 = vld [vmem:[#allocation3 + $0x270] sm:$0xff]  ;;  %v4917_v57 = vld [vmem:[#allocation3 + $0x2e8] sm:$0xff] }
 0x2b4   :  { %1364 = vmatprep.subr.bf16.mxu0 %v4888_v53  ;;  %7157 = vst [vmem:[#allocation163_spill] sm:$0xff] %v4909_v24  ;;  %v4912_v53 = vld [vmem:[#allocation3 + $0x2b8] sm:$0xff]  ;;  %7160 = vst [vmem:[#allocation166_spill] sm:$0xff] %v4917_v57 }
 0x2b5   :  { %7158 = vst [vmem:[#allocation164_spill] sm:$0xff] %v4912_v53 }
 0x2b6   :  { %1324 = vmatpush1.bf16.msra.mxu1 %v4891_v38  ;;  %v4915_v38 = vld [vmem:[#allocation3 + $0x2a0] sm:$0xff] }
 0x2b7   :  { %1325 = vmatprep.subr.bf16.mxu1 %v4893_v63  ;;  %1365 = vmatpush1.bf16.msra.mxu0 %v4897_v56  ;;  %7159 = vst [vmem:[#allocation165_spill] sm:$0xff] %v4915_v38  ;;  %v4921_v63 = vld [vmem:[#allocation3 + $0x2b0] sm:$0xff]  ;;  %v4929_v56 = vld [vmem:[#allocation3 + $0x328] sm:$0xff] }
 0x2b8   :  { %1366 = vmatprep.subr.bf16.mxu0 %v4900_v60  ;;  %7161 = vst [vmem:[#allocation167_spill] sm:$0xff] %v4921_v63  ;;  %v4924_v60 = vld [vmem:[#allocation3 + $0x2f8] sm:$0xff]  ;;  %7164 = vst [vmem:[#allocation170_spill] sm:$0xff] %v4929_v56 }
 0x2b9   :  { %7162 = vst [vmem:[#allocation168_spill] sm:$0xff] %v4924_v60 }
 0x2ba   :  { %1326 = vmatpush1.bf16.msra.mxu1 %v4903_v0  ;;  %v4927_v0 = vld [vmem:[#allocation3 + $0x2e0] sm:$0xff] }
 0x2bb   :  { %1327 = vmatprep.subr.bf16.mxu1 %v4905_v61  ;;  %1367 = vmatpush1.bf16.msra.mxu0 %v4909_v24  ;;  %7163 = vst [vmem:[#allocation169_spill] sm:$0xff] %v4927_v0  ;;  %v4933_v61 = vld [vmem:[#allocation3 + $0x2f0] sm:$0xff]  ;;  %v4941_v24 = vld [vmem:[#allocation3 + $0x368] sm:$0xff] }
 0x2bc   :  { %1368 = vmatprep.subr.bf16.mxu0 %v4912_v53  ;;  %7165 = vst [vmem:[#allocation171_spill] sm:$0xff] %v4933_v61  ;;  %v4936_v53 = vld [vmem:[#allocation3 + $0x338] sm:$0xff]  ;;  %7168 = vst [vmem:[#allocation174_spill] sm:$0xff] %v4941_v24 }
 0x2bd   :  { %7166 = vst [vmem:[#allocation172_spill] sm:$0xff] %v4936_v53 }
 0x2be   :  { %1328 = vmatpush1.bf16.msra.mxu1 %v4915_v38  ;;  %v4939_v38 = vld [vmem:[#allocation3 + $0x320] sm:$0xff] }
 0x2bf   :  { %1329 = vmatprep.subr.bf16.mxu1 %v4917_v57  ;;  %1369 = vmatpush1.bf16.msra.mxu0 %v4921_v63  ;;  %7167 = vst [vmem:[#allocation173_spill] sm:$0xff] %v4939_v38  ;;  %v4945_v57 = vld [vmem:[#allocation3 + $0x330] sm:$0xff]  ;;  %v4953_v63 = vld [vmem:[#allocation3 + $0x3a8] sm:$0xff] }
 0x2c0   :  { %1370 = vmatprep.subr.bf16.mxu0 %v4924_v60  ;;  %v4948_v60 = vld [vmem:[#allocation3 + $0x378] sm:$0xff]  ;;  %7171 = vst [vmem:[#allocation177_spill] sm:$0xff] %v4953_v63 }
 0x2c1   :  { %7169 = vst [vmem:[#allocation175_spill] sm:$0xff] %v4948_v60 }
 0x2c2   :  { %1330 = vmatpush1.bf16.msra.mxu1 %v4927_v0  ;;  %v4951_v0 = vld [vmem:[#allocation3 + $0x360] sm:$0xff] }
 0x2c3   :  { %1331 = vmatprep.subr.bf16.mxu1 %v4929_v56  ;;  %1371 = vmatpush1.bf16.msra.mxu0 %v4933_v61  ;;  %7170 = vst [vmem:[#allocation176_spill] sm:$0xff] %v4951_v0  ;;  %v4957_v56 = vld [vmem:[#allocation3 + $0x370] sm:$0xff]  ;;  %v4965_v61 = vld [vmem:[#allocation3 + $0x3e8] sm:$0xff] }
 0x2c4   :  { %1372 = vmatprep.subr.bf16.mxu0 %v4936_v53  ;;  %v4960_v53 = vld [vmem:[#allocation3 + $0x3b8] sm:$0xff] }
 0x2c6   :  { %1332 = vmatpush1.bf16.msra.mxu1 %v4939_v38  ;;  %v4963_v38 = vld [vmem:[#allocation3 + $0x3a0] sm:$0xff] }
 0x2c7   :  { %1333 = vmatprep.subr.bf16.mxu1 %v4941_v24  ;;  %1373 = vmatpush1.bf16.msra.mxu0 %v4945_v57  ;;  %v4969_v24 = vld [vmem:[#allocation3 + $0x3b0] sm:$0xff] }
 0x2c8   :  { %1374 = vmatprep.subr.bf16.mxu0 %v4948_v60  ;;  %v4972_v60 = vld [vmem:[#allocation3 + $0x3f8] sm:$0xff] }
 0x2ca   :  { %1334 = vmatpush1.bf16.msra.mxu1 %v4951_v0  ;;  %v4975_v0 = vld [vmem:[#allocation3 + $0x3e0] sm:$0xff] }
 0x2cb   :  { %1335 = vmatprep.subr.bf16.mxu1 %v4953_v63  ;;  %1375 = vmatpush1.bf16.msra.mxu0 %v4957_v56  ;;  %v4979_v63 = vld [vmem:[#allocation3 + $0x3f0] sm:$0xff] }
 0x2cc   :  { %1376 = vmatprep.subr.bf16.mxu0 %v4960_v53 }
 0x2ce   :  { %1336 = vmatpush1.bf16.msra.mxu1 %v4963_v38 }
 0x2cf   :  { %1337 = vmatprep.subr.bf16.mxu1 %v4965_v61  ;;  %1377 = vmatpush1.bf16.msra.mxu0 %v4969_v24 }
 0x2d0   :  { %1378 = vmatprep.subr.bf16.mxu0 %v4972_v60 }
 0x2d2   :  { %1338 = vmatpush1.bf16.msra.mxu1 %v4975_v0 }
 0x2d3   :  { %1463 = vmatprep.subr.bf16.mxu1 %v4595_v10  ;;  %1379 = vmatpush1.bf16.msra.mxu0 %v4979_v63 }
 0x2d4   :  { %1504 = vmatprep.subr.bf16.mxu0 %v4603_v14 }
 0x2d5   :  { %1340 = vmatmul.mubr.bf16.vlgmr.msra.gmra.mrb[36].mxu1 %v7085_v2 }
 0x2d6   :  { %1464 = vmatpush1.bf16.msra.mxu1 %v4597_v7  ;;  %1381 = vmatmul.mubr.bf16.vlgmr.msra.gmra.mrb[44].mxu0 %v7085_v2  ;;  %v7172_v2 = vld [vmem:[#allocation113_spill] sm:$0xff] }
 0x2d7   :  { %1465 = vmatprep.subr.bf16.mxu1 %v4599_v11  ;;  %1505 = vmatpush1.bf16.msra.mxu0 %v4609_v50 }
 0x2d8   :  { %1506 = vmatprep.subr.bf16.mxu0 %v4611_v47 }
 0x2da   :  { %1466 = vmatpush1.bf16.msra.mxu1 %v4606_v39 }
 0x2db   :  { %1467 = vmatprep.subr.bf16.mxu1 %v4613_v41  ;;  %1507 = vmatpush1.bf16.msra.mxu0 %v4617_v20 }
 0x2dc   :  { %1508 = vmatprep.subr.bf16.mxu0 %v4620_v36 }
 0x2de   :  { %1468 = vmatpush1.bf16.msra.mxu1 %v4623_v31 }
 0x2df   :  { %1469 = vmatprep.subr.bf16.mxu1 %v4625_v44  ;;  %1509 = vmatpush1.bf16.msra.mxu0 %v4629_v54 }
 0x2e0   :  { %1510 = vmatprep.subr.bf16.mxu0 %v4632_v49 }
 0x2e2   :  { %1470 = vmatpush1.bf16.msra.mxu1 %v4635_v43 }
 0x2e3   :  { %1471 = vmatprep.subr.bf16.mxu1 %v4637_v46  ;;  %1511 = vmatpush1.bf16.msra.mxu0 %v4641_v59 }
 0x2e4   :  { %1512 = vmatprep.subr.bf16.mxu0 %v4644_v58 }
 0x2e6   :  { %1472 = vmatpush1.bf16.msra.mxu1 %v4647_v45 }
 0x2e7   :  { %1473 = vmatprep.subr.bf16.mxu1 %v4649_v34  ;;  %1513 = vmatpush1.bf16.msra.mxu0 %v4653_v40 }
 0x2e8   :  { %1514 = vmatprep.subr.bf16.mxu0 %v4656_v37 }
 0x2ea   :  { %1474 = vmatpush1.bf16.msra.mxu1 %v4659_v33 }
 0x2eb   :  { %1475 = vmatprep.subr.bf16.mxu1 %v4661_v51  ;;  %1515 = vmatpush1.bf16.msra.mxu0 %v4665_v27 }
 0x2ec   :  { %1516 = vmatprep.subr.bf16.mxu0 %v4668_v23 }
 0x2ee   :  { %1476 = vmatpush1.bf16.msra.mxu1 %v4671_v6 }
 0x2ef   :  { %1477 = vmatprep.subr.bf16.mxu1 %v4673_v26  ;;  %1517 = vmatpush1.bf16.msra.mxu0 %v4677_v30 }
 0x2f0   :  { %1518 = vmatprep.subr.bf16.mxu0 %v4680_v29 }
 0x2f2   :  { %1478 = vmatpush1.bf16.msra.mxu1 %v4683_v25 }
 0x2f3   :  { %1479 = vmatprep.subr.bf16.mxu1 %v4685_v42  ;;  %1519 = vmatpush1.bf16.msra.mxu0 %v4689_v62 }
 0x2f4   :  { %1520 = vmatprep.subr.bf16.mxu0 %v4692_v55 }
 0x2f6   :  { %1480 = vmatpush1.bf16.msra.mxu1 %v4695_v35  ;;  %v7189_v35 = vld [vmem:[#allocation31_spill] sm:$0xff] }
 0x2f7   :  { %1481 = vmatprep.subr.bf16.mxu1 %v4697_v17  ;;  %1521 = vmatpush1.bf16.msra.mxu0 %v4701_v22 }
 0x2f8   :  { %1522 = vmatprep.subr.bf16.mxu0 %v4704_v21 }
 0x2fa   :  { %1482 = vmatpush1.bf16.msra.mxu1 %v4707_v16 }
 0x2fb   :  { %1483 = vmatprep.subr.bf16.mxu1 %v4709_v52  ;;  %1523 = vmatpush1.bf16.msra.mxu0 %v4713_v32 }
 0x2fc   :  { %1524 = vmatprep.subr.bf16.mxu0 %v4716_v28 }
 0x2fe   :  { %1484 = vmatpush1.bf16.msra.mxu1 %v4719_v18  ;;  %v7185_v18 = vld [vmem:[#allocation30_spill] sm:$0xff] }
 0x2ff   :  { %1485 = vmatprep.subr.bf16.mxu1 %v4721_v9  ;;  %1525 = vmatpush1.bf16.msra.mxu0 %v4725_v13  ;;  %v7173_v9 = vld [vmem:[#allocation114_spill] sm:$0xff] }
 0x300   :  { %1526 = vmatprep.subr.bf16.mxu0 %v4728_v12  ;;  %v7174_v12 = vld [vmem:[#allocation115_spill] sm:$0xff] }
 0x302   :  { %1486 = vmatpush1.bf16.msra.mxu1 %v4731_v8  ;;  %v7175_v8 = vld [vmem:[#allocation116_spill] sm:$0xff] }
 0x303   :  { %1487 = vmatprep.subr.bf16.mxu1 %v4733_v48  ;;  %1527 = vmatpush1.bf16.msra.mxu0 %v4737_v15  ;;  %v7176_v48 = vld [vmem:[#allocation117_spill] sm:$0xff]  ;;  %v7177_v15 = vld [vmem:[#allocation118_spill] sm:$0xff] }
 0x304   :  { %1528 = vmatprep.subr.bf16.mxu0 %v4740_v5  ;;  %v7178_v5 = vld [vmem:[#allocation119_spill] sm:$0xff] }
 0x306   :  { %1488 = vmatpush1.bf16.msra.mxu1 %v4743_v3  ;;  %v7179_v3 = vld [vmem:[#allocation120_spill] sm:$0xff] }
 0x307   :  { %1489 = vmatprep.subr.bf16.mxu1 %v4745_v19  ;;  %1529 = vmatpush1.bf16.msra.mxu0 %v4749_v1  ;;  %v7180_v19 = vld [vmem:[#allocation121_spill] sm:$0xff]  ;;  %v7181_v1 = vld [vmem:[#allocation122_spill] sm:$0xff] }
 0x308   :  { %1530 = vmatprep.subr.bf16.mxu0 %v4752_v4  ;;  %v7182_v4 = vld [vmem:[#allocation123_spill] sm:$0xff] }
 0x30a   :  { %1490 = vmatpush1.bf16.msra.mxu1 %v7172_v2  ;;  %v7183_v2 = vld [vmem:[#allocation124_spill] sm:$0xff] }
 0x30b   :  { %1491 = vmatprep.subr.bf16.mxu1 %v7173_v9  ;;  %1531 = vmatpush1.bf16.msra.mxu0 %v7174_v12  ;;  %v7184_v12 = vld [vmem:[#allocation28_spill] sm:$0xff] }
 0x30c   :  { %1532 = vmatprep.subr.bf16.mxu0 %v7175_v8 }
 0x30e   :  { %1492 = vmatpush1.bf16.msra.mxu1 %v7176_v48 }
 0x30f   :  { %1493 = vmatprep.subr.bf16.mxu1 %v7177_v15  ;;  %1533 = vmatpush1.bf16.msra.mxu0 %v7178_v5 }
 0x310   :  { %1534 = vmatprep.subr.bf16.mxu0 %v7179_v3 }
 0x312   :  { %1494 = vmatpush1.bf16.msra.mxu1 %v7180_v19 }
 0x313   :  { %1545 = vmatprep.subr.bf16.mxu1 %v7181_v1  ;;  %1535 = vmatpush1.bf16.msra.mxu0 %v7182_v4  ;;  %v7186_v1 = vld [vmem:[#allocation29_spill] sm:$0xff] }
 0x314   :  { %1586 = vmatprep.subr.bf16.mxu0 %v7183_v2 }
 0x368   :  { %v1259_v9 = vpop.f32.mrb[32].mxu1  ;;  %v1300_v15 = vpop.f32.mrb[40].mxu0 }
 0x369   :  { %v1396_v13 = vadd.f32 %v1259_v9, %v7184_v12  ;;  %v1261_v8 = vpop.f32.mrb[33].mxu1  ;;  %v1302_v32 = vpop.f32.mrb[41].mxu0  ;;  %v1398_v4 = vadd.f32 %v1300_v15, %v7186_v1 }
 0x36a   :  { %v1397_v48 = vadd.f32 %v1261_v8, %v7185_v18  ;;  %v1263_v28 = vpop.f32.mrb[34].mxu1  ;;  %v1304_v16 = vpop.f32.mrb[42].mxu0  ;;  %v1399_v55 = vadd.f32 %v1302_v32, %v7189_v35 }
 0x36b   :  { %v3357_v52 = vmul.f32 -1.442695, %v1396_v13  ;;  %v1264_v5 = vpop.f32.mrb[35].mxu1  ;;  %v1305_v19 = vpop.f32.mrb[43].mxu0 }
 0x36c   :  { %v3358_v3 = vmul.f32 -1.442695, %v1397_v48 }
 0x36d   :  { %3529 = vpow2.f32 %v3357_v52  ;;  %v7187_v52 = vld [vmem:[#allocation88_spill] sm:$0xff] }
 0x36e   :  { %3531 = vpow2.f32 %v3358_v3  ;;  %v7188_v3 = vld [vmem:[#allocation90_spill] sm:$0xff] }
 0x36f   :  { %3533 = vtanh.f32 %v1398_v4 }
 0x377   :  { %v3530_v21 = vpop.eup %3529 }
 0x378   :  { %v3532_v2 = vpop.eup %3531  ;;  %v1414_v17 = vadd.f32 1.0, %v3530_v21 }
 0x379   :  { %v1420_v9 = vadd.f32 1.0, %v3532_v2  ;;  %v3534_v18 = vpop.eup %3533 }
 0x37a   :  { %3535 = vrcp.f32 %v1414_v17 }
 0x37b   :  { %3537 = vrcp.f32 %v1420_v9 }
 0x384   :  { %v3536_v8 = vpop.eup %3535 }
 0x385   :  { %v3538_v12 = vpop.eup %3537  ;;  %v1431_v13 = vmul.f32 %v3536_v8, %v3534_v18  ;;  %v7190_v8 = vld [vmem:[#allocation91_spill] sm:$0xff] }
 0x386   :  { %v1430_v5 = vmul.f32 0.0, %v3538_v12 }
 0x388   :  { %v5054_v28 = vadd.f32 %v1431_v13, %v1430_v5  ;;  %v3359_v13 = vmul.f32 -1.442695, %v1399_v55 }
 0x3a8   :  { %v1341_v16 = vpop.f32.mrb[36].mxu1 }
 0x3a9   :  { %v1407_v19 = vadd.f32 %v1341_v16, %v7187_v52  ;;  %v1343_v48 = vpop.f32.mrb[37].mxu1  ;;  %v1382_v22 = vpop.f32.mrb[44].mxu0  ;;  %v7191_v16 = vld [vmem:[#allocation89_spill] sm:$0xff] }
 0x3aa   :  { %v1408_v1 = vadd.f32 %v1343_v48, %v7188_v3  ;;  %v1345_v15 = vpop.f32.mrb[38].mxu1  ;;  %v1384_v2 = vpop.f32.mrb[45].mxu0  ;;  %v1409_v52 = vadd.f32 %v1382_v22, %v7191_v16 }
 0x3ab   :  { %v3360_v21 = vmul.f32 -1.442695, %v1407_v19  ;;  %v1346_v4 = vpop.f32.mrb[39].mxu1  ;;  %v1386_v9 = vpop.f32.mrb[46].mxu0  ;;  %v1410_v12 = vadd.f32 %v1384_v2, %v7190_v8 }
 0x3ac   :  { %v3361_v17 = vmul.f32 -1.442695, %v1408_v1  ;;  %v1387_v18 = vpop.f32.mrb[47].mxu0 }
 0x3ad   :  { %3539 = vpow2.f32 %v3360_v21  ;;  %v3362_v5 = vmul.f32 -1.442695, %v1410_v12 }
 0x3ae   :  { %3541 = vpow2.f32 %v3361_v17 }
 0x3af   :  { %3543 = vpow2.f32 %v3359_v13 }
 0x3b0   :  { %3545 = vpow2.f32 %v3362_v5 }
 0x3b1   :  { %3547 = vtanh.f32 %v1409_v52 }
 0x3b7   :  { %v3540_v48 = vpop.eup %3539 }
 0x3b8   :  { %v3542_v3 = vpop.eup %3541  ;;  %v1438_v19 = vadd.f32 1.0, %v3540_v48 }
 0x3b9   :  { %v1444_v15 = vadd.f32 1.0, %v3542_v3  ;;  %v3544_v1 = vpop.eup %3543  ;;  %v7194_v3 = vld [vmem:[#allocation125_spill] sm:$0xff] }
 0x3ba   :  { %3549 = vrcp.f32 %v1438_v19  ;;  %v3546_v35 = vpop.eup %3545  ;;  %v1427_v21 = vadd.f32 1.0, %v3544_v1  ;;  %v7195_v19 = vld [vmem:[#allocation127_spill] sm:$0xff]  ;;  %v7197_v1 = vld [vmem:[#allocation128_spill] sm:$0xff] }
 0x3bb   :  { %3551 = vrcp.f32 %v1444_v15  ;;  %v3548_v32 = vpop.eup %3547  ;;  %v1451_v17 = vadd.f32 1.0, %v3546_v35  ;;  %v7196_v15 = vld [vmem:[#allocation126_spill] sm:$0xff]  ;;  %v7198_v35 = vld [vmem:[#allocation129_spill] sm:$0xff] }
 0x3bc   :  { %3553 = vrcp.f32 %v1427_v21  ;;  %v7200_v21 = vld [vmem:[#allocation130_spill] sm:$0xff] }
 0x3bd   :  { %3555 = vtanh.f32 %v5054_v28 }
 0x3be   :  { %3557 = vrcp.f32 %v1451_v17  ;;  %v7202_v17 = vld [vmem:[#allocation133_spill] sm:$0xff] }
 0x3c4   :  { %v3550_v4 = vpop.eup %3549 }
 0x3c5   :  { %v3552_v2 = vpop.eup %3551  ;;  %v1455_v55 = vmul.f32 %v3550_v4, %v3548_v32  ;;  %v7199_v32 = vld [vmem:[#allocation131_spill] sm:$0xff]  ;;  %v7201_v4 = vld [vmem:[#allocation132_spill] sm:$0xff] }
 0x3c6   :  { %v1454_v9 = vmul.f32 0.0, %v3552_v2  ;;  %v3554_v18 = vpop.eup %3553  ;;  %v7203_v2 = vld [vmem:[#allocation135_spill] sm:$0xff] }
 0x3c7   :  { %v3556_v8 = vpop.eup %3555 }
 0x3c8   :  { %v5062_v22 = vadd.f32 %v1455_v55, %v1454_v9  ;;  %v3558_v12 = vpop.eup %3557  ;;  %v5065_v5 = vmul.f32 %v3556_v8, %v3554_v18  ;;  %v7204_v55 = vld [vmem:[#allocation134_spill] sm:$0xff]  ;;  %v7205_v9 = vld [vmem:[#allocation136_spill] sm:$0xff]  ;;  %v7206_v18 = vld [vmem:[#allocation137_spill] sm:$0xff] }
 0x3c9   :  { %v7207_v8 = vld [vmem:[#allocation139_spill] sm:$0xff] }
 0x3ca   :  { %3559 = vtanh.f32 %v5062_v22  ;;  %7192 = vst [vmem:[#allocation28_spill] sm:$0xff] %v5065_v5  ;;  %v5073_v48 = vpack.c.bf16 %v5065_v5, %v5065_v5  ;;  %v7212_v5 = vld [vmem:[#allocation142_spill] sm:$0xff] }
 0x3d4   :  { %v3560_v13 = vpop.eup %3559 }
 0x3d5   :  { %v5067_v16 = vmul.f32 %v3560_v13, %v3558_v12  ;;  %v7208_v12 = vld [vmem:[#allocation138_spill] sm:$0xff]  ;;  %v7209_v13 = vld [vmem:[#allocation140_spill] sm:$0xff] }
 0x3d7   :  { %7193 = vst [vmem:[#allocation30_spill] sm:$0xff] %v5067_v16  ;;  %v1462_v52 = vpack.c.bf16 %v5067_v16, %v5067_v16  ;;  %v7211_v16 = vld [vmem:[#allocation143_spill] sm:$0xff] }
 0x3d9   :  { %1495 = vmatprep.mubr.bf16.mxu1 %v1462_v52  ;;  %1536 = vmatprep.mubr.bf16.mxu0 %v1462_v52 }
 0x3da   :  { %1496 = vmatmul.mubr.bf16.vlgmr.msra.gmra.mrb[40].mxu1 %v5073_v48  ;;  %1537 = vmatmul.mubr.bf16.vlgmr.msra.gmra.mrb[48].mxu0 %v5073_v48 }
 0x3db   :  { %1546 = vmatpush1.bf16.msra.mxu1 %v7194_v3  ;;  %1587 = vmatpush1.bf16.msra.mxu0 %v7195_v19 }
 0x3dc   :  { %1577 = vmatprep.mubr.bf16.mxu1 %v1462_v52  ;;  %1618 = vmatprep.mubr.bf16.mxu0 %v1462_v52  ;;  %v7210_v52 = vld [vmem:[#allocation141_spill] sm:$0xff] }
 0x3dd   :  { %1547 = vmatprep.subr.bf16.mxu1 %v7196_v15  ;;  %1588 = vmatprep.subr.bf16.mxu0 %v7197_v1 }
 0x3df   :  { %1548 = vmatpush1.bf16.msra.mxu1 %v7198_v35  ;;  %1589 = vmatpush1.bf16.msra.mxu0 %v7199_v32 }
 0x3e0   :  { %1549 = vmatprep.subr.bf16.mxu1 %v7200_v21  ;;  %1590 = vmatprep.subr.bf16.mxu0 %v7201_v4 }
 0x3e3   :  { %1550 = vmatpush1.bf16.msra.mxu1 %v7202_v17  ;;  %1591 = vmatpush1.bf16.msra.mxu0 %v7203_v2  ;;  %v7213_v17 = vld [vmem:[#allocation144_spill] sm:$0xff]  ;;  %v7214_v2 = vld [vmem:[#allocation145_spill] sm:$0xff] }
 0x3e4   :  { %1551 = vmatprep.subr.bf16.mxu1 %v7204_v55  ;;  %1592 = vmatprep.subr.bf16.mxu0 %v7205_v9  ;;  %v7215_v55 = vld [vmem:[#allocation147_spill] sm:$0xff]  ;;  %v7216_v9 = vld [vmem:[#allocation146_spill] sm:$0xff] }
 0x3e7   :  { %1552 = vmatpush1.bf16.msra.mxu1 %v7206_v18  ;;  %1593 = vmatpush1.bf16.msra.mxu0 %v7207_v8  ;;  %v7217_v18 = vld [vmem:[#allocation148_spill] sm:$0xff]  ;;  %v7218_v8 = vld [vmem:[#allocation149_spill] sm:$0xff] }
 0x3e8   :  { %1553 = vmatprep.subr.bf16.mxu1 %v7208_v12  ;;  %1594 = vmatprep.subr.bf16.mxu0 %v7209_v13  ;;  %v7219_v12 = vld [vmem:[#allocation151_spill] sm:$0xff]  ;;  %v7220_v13 = vld [vmem:[#allocation150_spill] sm:$0xff] }
 0x3eb   :  { %1554 = vmatpush1.bf16.msra.mxu1 %v7210_v52  ;;  %1595 = vmatpush1.bf16.msra.mxu0 %v7211_v16  ;;  %v7221_v52 = vld [vmem:[#allocation152_spill] sm:$0xff]  ;;  %v7222_v16 = vld [vmem:[#allocation153_spill] sm:$0xff] }
 0x3ec   :  { %1555 = vmatprep.subr.bf16.mxu1 %v7212_v5  ;;  %1596 = vmatprep.subr.bf16.mxu0 %v7213_v17  ;;  %v7223_v5 = vld [vmem:[#allocation155_spill] sm:$0xff]  ;;  %v7224_v17 = vld [vmem:[#allocation154_spill] sm:$0xff] }
 0x3ef   :  { %1556 = vmatpush1.bf16.msra.mxu1 %v7214_v2  ;;  %1597 = vmatpush1.bf16.msra.mxu0 %v7215_v55  ;;  %v7225_v2 = vld [vmem:[#allocation156_spill] sm:$0xff]  ;;  %v7226_v55 = vld [vmem:[#allocation157_spill] sm:$0xff] }
 0x3f0   :  { %1557 = vmatprep.subr.bf16.mxu1 %v7216_v9  ;;  %1598 = vmatprep.subr.bf16.mxu0 %v7217_v18  ;;  %v7227_v9 = vld [vmem:[#allocation159_spill] sm:$0xff]  ;;  %v7228_v18 = vld [vmem:[#allocation158_spill] sm:$0xff] }
 0x3f3   :  { %1558 = vmatpush1.bf16.msra.mxu1 %v7218_v8  ;;  %1599 = vmatpush1.bf16.msra.mxu0 %v7219_v12  ;;  %v7229_v8 = vld [vmem:[#allocation160_spill] sm:$0xff]  ;;  %v7230_v12 = vld [vmem:[#allocation161_spill] sm:$0xff] }
 0x3f4   :  { %1559 = vmatprep.subr.bf16.mxu1 %v7220_v13  ;;  %1600 = vmatprep.subr.bf16.mxu0 %v7221_v52  ;;  %v7231_v13 = vld [vmem:[#allocation163_spill] sm:$0xff]  ;;  %v7232_v52 = vld [vmem:[#allocation162_spill] sm:$0xff] }
 0x3f7   :  { %1560 = vmatpush1.bf16.msra.mxu1 %v7222_v16  ;;  %1601 = vmatpush1.bf16.msra.mxu0 %v7223_v5  ;;  %v7233_v16 = vld [vmem:[#allocation164_spill] sm:$0xff]  ;;  %v7234_v5 = vld [vmem:[#allocation165_spill] sm:$0xff] }
 0x3f8   :  { %1561 = vmatprep.subr.bf16.mxu1 %v7224_v17  ;;  %1602 = vmatprep.subr.bf16.mxu0 %v7225_v2  ;;  %v7235_v17 = vld [vmem:[#allocation167_spill] sm:$0xff]  ;;  %v7236_v2 = vld [vmem:[#allocation166_spill] sm:$0xff] }
 0x3fb   :  { %1562 = vmatpush1.bf16.msra.mxu1 %v7226_v55  ;;  %1603 = vmatpush1.bf16.msra.mxu0 %v7227_v9  ;;  %v7237_v55 = vld [vmem:[#allocation168_spill] sm:$0xff]  ;;  %v7238_v9 = vld [vmem:[#allocation169_spill] sm:$0xff] }
 0x3fc   :  { %1563 = vmatprep.subr.bf16.mxu1 %v7228_v18  ;;  %1604 = vmatprep.subr.bf16.mxu0 %v7229_v8  ;;  %v7239_v18 = vld [vmem:[#allocation171_spill] sm:$0xff]  ;;  %v7240_v8 = vld [vmem:[#allocation170_spill] sm:$0xff] }
 0x3ff   :  { %1564 = vmatpush1.bf16.msra.mxu1 %v7230_v12  ;;  %1605 = vmatpush1.bf16.msra.mxu0 %v7231_v13  ;;  %v7241_v12 = vld [vmem:[#allocation172_spill] sm:$0xff]  ;;  %v7242_v13 = vld [vmem:[#allocation173_spill] sm:$0xff] }
 0x400   :  { %1565 = vmatprep.subr.bf16.mxu1 %v7232_v52  ;;  %1606 = vmatprep.subr.bf16.mxu0 %v7233_v16  ;;  %v7243_v16 = vld [vmem:[#allocation174_spill] sm:$0xff] }
 0x403   :  { %1566 = vmatpush1.bf16.msra.mxu1 %v7234_v5  ;;  %1607 = vmatpush1.bf16.msra.mxu0 %v7235_v17  ;;  %v7244_v5 = vld [vmem:[#allocation175_spill] sm:$0xff]  ;;  %v7245_v17 = vld [vmem:[#allocation176_spill] sm:$0xff] }
 0x404   :  { %1567 = vmatprep.subr.bf16.mxu1 %v7236_v2  ;;  %1608 = vmatprep.subr.bf16.mxu0 %v7237_v55  ;;  %v7246_v55 = vld [vmem:[#allocation177_spill] sm:$0xff] }
 0x407   :  { %1568 = vmatpush1.bf16.msra.mxu1 %v7238_v9  ;;  %1609 = vmatpush1.bf16.msra.mxu0 %v7239_v18 }
 0x408   :  { %1569 = vmatprep.subr.bf16.mxu1 %v7240_v8  ;;  %1610 = vmatprep.subr.bf16.mxu0 %v7241_v12 }
 0x40b   :  { %1570 = vmatpush1.bf16.msra.mxu1 %v7242_v13  ;;  %1611 = vmatpush1.bf16.msra.mxu0 %v4945_v57 }
 0x40c   :  { %1571 = vmatprep.subr.bf16.mxu1 %v7243_v16  ;;  %1612 = vmatprep.subr.bf16.mxu0 %v7244_v5 }
 0x40f   :  { %1572 = vmatpush1.bf16.msra.mxu1 %v7245_v17  ;;  %1613 = vmatpush1.bf16.msra.mxu0 %v4957_v56 }
 0x410   :  { %1573 = vmatprep.subr.bf16.mxu1 %v7246_v55  ;;  %1614 = vmatprep.subr.bf16.mxu0 %v4960_v53 }
 0x413   :  { %1574 = vmatpush1.bf16.msra.mxu1 %v4963_v38  ;;  %1615 = vmatpush1.bf16.msra.mxu0 %v4969_v24 }
 0x414   :  { %1575 = vmatprep.subr.bf16.mxu1 %v4965_v61  ;;  %1616 = vmatprep.subr.bf16.mxu0 %v4972_v60 }
 0x417   :  { %1576 = vmatpush1.bf16.msra.mxu1 %v4975_v0  ;;  %1617 = vmatpush1.bf16.msra.mxu0 %v4979_v63 }
 0x418   :  { %1701 = vmatprep.subr.bf16.mxu1 %v4595_v10  ;;  %1742 = vmatprep.subr.bf16.mxu0 %v4603_v14  ;;  %v7271_v10 = vld [vmem:[#allocation116_spill] sm:$0xff]  ;;  %v7274_v14 = vld [vmem:[#allocation118_spill] sm:$0xff] }
 0x41a   :  { %1578 = vmatmul.mubr.bf16.vlgmr.msra.gmra.mrb[44].mxu1 %v5073_v48  ;;  %1619 = vmatmul.mubr.bf16.vlgmr.msra.gmra.mrb[52].mxu0 %v5073_v48 }
 0x41b   :  { %1702 = vmatpush1.bf16.msra.mxu1 %v4597_v7  ;;  %1743 = vmatpush1.bf16.msra.mxu0 %v4609_v50  ;;  %v7272_v7 = vld [vmem:[#allocation117_spill] sm:$0xff] }
 0x41c   :  { %1703 = vmatprep.subr.bf16.mxu1 %v4599_v11  ;;  %1744 = vmatprep.subr.bf16.mxu0 %v4611_v47  ;;  %v7273_v11 = vld [vmem:[#allocation119_spill] sm:$0xff]  ;;  %v7276_v50 = vld [vmem:[#allocation121_spill] sm:$0xff] }
 0x41d   :  { %v7277_v47 = vld [vmem:[#allocation123_spill] sm:$0xff] }
 0x41f   :  { %1704 = vmatpush1.bf16.msra.mxu1 %v4606_v39  ;;  %1745 = vmatpush1.bf16.msra.mxu0 %v4617_v20  ;;  %v7275_v39 = vld [vmem:[#allocation120_spill] sm:$0xff] }
 0x420   :  { %1705 = vmatprep.subr.bf16.mxu1 %v4613_v41  ;;  %1746 = vmatprep.subr.bf16.mxu0 %v4620_v36  ;;  %v7260_v36 = vld [vmem:[#allocation105_spill] sm:$0xff]  ;;  %v7278_v41 = vld [vmem:[#allocation122_spill] sm:$0xff]  ;;  %v7279_v20 = vld [vmem:[#allocation124_spill] sm:$0xff] }
 0x423   :  { %1706 = vmatpush1.bf16.msra.mxu1 %v4623_v31  ;;  %1747 = vmatpush1.bf16.msra.mxu0 %v4629_v54  ;;  %v7258_v54 = vld [vmem:[#allocation102_spill] sm:$0xff]  ;;  %v7259_v31 = vld [vmem:[#allocation104_spill] sm:$0xff] }
 0x424   :  { %1707 = vmatprep.subr.bf16.mxu1 %v4625_v44  ;;  %1748 = vmatprep.subr.bf16.mxu0 %v4632_v49  ;;  %v7256_v44 = vld [vmem:[#allocation101_spill] sm:$0xff]  ;;  %v7257_v49 = vld [vmem:[#allocation103_spill] sm:$0xff] }
 0x427   :  { %1708 = vmatpush1.bf16.msra.mxu1 %v4635_v43  ;;  %1749 = vmatpush1.bf16.msra.mxu0 %v4641_v59  ;;  %v7251_v43 = vld [vmem:[#allocation96_spill] sm:$0xff]  ;;  %v7264_v59 = vld [vmem:[#allocation109_spill] sm:$0xff] }
 0x428   :  { %1709 = vmatprep.subr.bf16.mxu1 %v4637_v46  ;;  %1750 = vmatprep.subr.bf16.mxu0 %v4644_v58  ;;  %v7262_v46 = vld [vmem:[#allocation106_spill] sm:$0xff]  ;;  %v7263_v58 = vld [vmem:[#allocation108_spill] sm:$0xff] }
 0x42b   :  { %1710 = vmatpush1.bf16.msra.mxu1 %v4647_v45  ;;  %1751 = vmatpush1.bf16.msra.mxu0 %v4653_v40  ;;  %v7250_v40 = vld [vmem:[#allocation94_spill] sm:$0xff]  ;;  %v7261_v45 = vld [vmem:[#allocation107_spill] sm:$0xff] }
 0x42c   :  { %1711 = vmatprep.subr.bf16.mxu1 %v4649_v34  ;;  %1752 = vmatprep.subr.bf16.mxu0 %v4656_v37  ;;  %v7248_v34 = vld [vmem:[#allocation93_spill] sm:$0xff]  ;;  %v7249_v37 = vld [vmem:[#allocation95_spill] sm:$0xff] }
 0x42f   :  { %1712 = vmatpush1.bf16.msra.mxu1 %v4659_v33  ;;  %1753 = vmatpush1.bf16.msra.mxu0 %v4665_v27  ;;  %v7247_v33 = vld [vmem:[#allocation92_spill] sm:$0xff]  ;;  %v7268_v27 = vld [vmem:[#allocation113_spill] sm:$0xff] }
 0x430   :  { %1713 = vmatprep.subr.bf16.mxu1 %v4661_v51  ;;  %1754 = vmatprep.subr.bf16.mxu0 %v4668_v23  ;;  %v7266_v51 = vld [vmem:[#allocation110_spill] sm:$0xff]  ;;  %v7267_v23 = vld [vmem:[#allocation112_spill] sm:$0xff] }
 0x433   :  { %1714 = vmatpush1.bf16.msra.mxu1 %v4671_v6  ;;  %1755 = vmatpush1.bf16.msra.mxu0 %v4677_v30  ;;  %v7252_v30 = vld [vmem:[#allocation97_spill] sm:$0xff]  ;;  %v7265_v6 = vld [vmem:[#allocation111_spill] sm:$0xff] }
 0x434   :  { %1715 = vmatprep.subr.bf16.mxu1 %v4673_v26  ;;  %1756 = vmatprep.subr.bf16.mxu0 %v4680_v29  ;;  %v7253_v26 = vld [vmem:[#allocation99_spill] sm:$0xff]  ;;  %v7254_v29 = vld [vmem:[#allocation98_spill] sm:$0xff] }
 0x437   :  { %1716 = vmatpush1.bf16.msra.mxu1 %v4683_v25  ;;  %1757 = vmatpush1.bf16.msra.mxu0 %v4689_v62  ;;  %v7255_v25 = vld [vmem:[#allocation100_spill] sm:$0xff]  ;;  %v7270_v62 = vld [vmem:[#allocation114_spill] sm:$0xff] }
 0x438   :  { %1717 = vmatprep.subr.bf16.mxu1 %v4685_v42  ;;  %1758 = vmatprep.subr.bf16.mxu0 %v7247_v33  ;;  %v7269_v42 = vld [vmem:[#allocation115_spill] sm:$0xff] }
 0x43b   :  { %1718 = vmatpush1.bf16.msra.mxu1 %v7248_v34  ;;  %1759 = vmatpush1.bf16.msra.mxu0 %v7249_v37  ;;  %v7280_v34 = vld [vmem:[#allocation32_spill] sm:$0xff] }
 0x43c   :  { %1719 = vmatprep.subr.bf16.mxu1 %v7250_v40  ;;  %1760 = vmatprep.subr.bf16.mxu0 %v7251_v43 }
 0x43f   :  { %1720 = vmatpush1.bf16.msra.mxu1 %v7252_v30  ;;  %1761 = vmatpush1.bf16.msra.mxu0 %v7253_v26  ;;  %v7281_v30 = vld [vmem:[#allocation34_spill] sm:$0xff] }
 0x440   :  { %1721 = vmatprep.subr.bf16.mxu1 %v7254_v29  ;;  %1762 = vmatprep.subr.bf16.mxu0 %v7255_v25 }
 0x443   :  { %1722 = vmatpush1.bf16.msra.mxu1 %v7256_v44  ;;  %1763 = vmatpush1.bf16.msra.mxu0 %v7257_v49 }
 0x444   :  { %1723 = vmatprep.subr.bf16.mxu1 %v7258_v54  ;;  %1764 = vmatprep.subr.bf16.mxu0 %v7259_v31 }
 0x447   :  { %1724 = vmatpush1.bf16.msra.mxu1 %v7260_v36  ;;  %1765 = vmatpush1.bf16.msra.mxu0 %v7261_v45  ;;  %v7282_v36 = vld [vmem:[#allocation33_spill] sm:$0xff] }
 0x448   :  { %1725 = vmatprep.subr.bf16.mxu1 %v7262_v46  ;;  %1766 = vmatprep.subr.bf16.mxu0 %v7263_v58 }
 0x44b   :  { %1726 = vmatpush1.bf16.msra.mxu1 %v7264_v59  ;;  %1767 = vmatpush1.bf16.msra.mxu0 %v7265_v6 }
 0x44c   :  { %1727 = vmatprep.subr.bf16.mxu1 %v7266_v51  ;;  %1768 = vmatprep.subr.bf16.mxu0 %v7267_v23 }
 0x44f   :  { %1728 = vmatpush1.bf16.msra.mxu1 %v7268_v27  ;;  %1769 = vmatpush1.bf16.msra.mxu0 %v7269_v42 }
 0x450   :  { %1729 = vmatprep.subr.bf16.mxu1 %v7270_v62  ;;  %1770 = vmatprep.subr.bf16.mxu0 %v7271_v10 }
 0x453   :  { %1730 = vmatpush1.bf16.msra.mxu1 %v7272_v7  ;;  %1771 = vmatpush1.bf16.msra.mxu0 %v7273_v11 }
 0x454   :  { %1731 = vmatprep.subr.bf16.mxu1 %v7274_v14  ;;  %1772 = vmatprep.subr.bf16.mxu0 %v7275_v39  ;;  %v7283_v14 = vld [vmem:[#allocation84_spill] sm:$0xff] }
 0x457   :  { %1732 = vmatpush1.bf16.msra.mxu1 %v7276_v50  ;;  %1773 = vmatpush1.bf16.msra.mxu0 %v7277_v47 }
 0x458   :  { %1783 = vmatprep.subr.bf16.mxu1 %v7278_v41  ;;  %1824 = vmatprep.subr.bf16.mxu0 %v7279_v20  ;;  %v7284_v41 = vld [vmem:[#allocation86_spill] sm:$0xff] }
 0x4ad   :  { %v1497_v48 = vpop.f32.mrb[40].mxu1  ;;  %v1538_v33 = vpop.f32.mrb[48].mxu0 }
 0x4ae   :  { %v1634_v37 = vadd.f32 %v1497_v48, %v7280_v34  ;;  %v1499_v40 = vpop.f32.mrb[41].mxu1  ;;  %v1540_v43 = vpop.f32.mrb[49].mxu0  ;;  %v1636_v45 = vadd.f32 %v1538_v33, %v7282_v36 }
 0x4af   :  { %v1635_v26 = vadd.f32 %v1499_v40, %v7281_v30  ;;  %v1501_v29 = vpop.f32.mrb[42].mxu1  ;;  %v1542_v25 = vpop.f32.mrb[50].mxu0 }
 0x4b0   :  { %v3363_v44 = vmul.f32 -1.442695, %v1634_v37  ;;  %v1502_v49 = vpop.f32.mrb[43].mxu1  ;;  %v1543_v54 = vpop.f32.mrb[51].mxu0  ;;  %v7286_v29 = vld [vmem:[#allocation87_spill] sm:$0xff] }
 0x4b1   :  { %v3364_v31 = vmul.f32 -1.442695, %v1635_v26  ;;  %v7285_v26 = vld [vmem:[#allocation35_spill] sm:$0xff]  ;;  %v7287_v54 = vld [vmem:[#allocation85_spill] sm:$0xff] }
 0x4b2   :  { %3561 = vpow2.f32 %v3363_v44 }
 0x4b3   :  { %3563 = vpow2.f32 %v3364_v31 }
 0x4b4   :  { %3565 = vtanh.f32 %v1636_v45 }
 0x4bc   :  { %v3562_v46 = vpop.eup %3561 }
 0x4bd   :  { %v3564_v58 = vpop.eup %3563  ;;  %v1652_v59 = vadd.f32 1.0, %v3562_v46 }
 0x4be   :  { %v1658_v6 = vadd.f32 1.0, %v3564_v58  ;;  %v3566_v51 = vpop.eup %3565 }
 0x4bf   :  { %3567 = vrcp.f32 %v1652_v59 }
 0x4c0   :  { %3569 = vrcp.f32 %v1658_v6 }
 0x4c9   :  { %v3568_v23 = vpop.eup %3567 }
 0x4ca   :  { %v3570_v27 = vpop.eup %3569  ;;  %v1669_v42 = vmul.f32 %v3568_v23, %v3566_v51 }
 0x4cb   :  { %v1668_v62 = vmul.f32 %v3570_v27, %v5054_v28  ;;  %v1637_v28 = vadd.f32 %v1540_v43, %v7285_v26  ;;  %v7301_v26 = vld [vmem:[#allocation147_spill] sm:$0xff] }
 0x4cd   :  { %v5211_v10 = vadd.f32 %v1669_v42, %v1668_v62  ;;  %v3365_v44 = vmul.f32 -1.442695, %v1637_v28  ;;  %v7302_v28 = vld [vmem:[#allocation146_spill] sm:$0xff] }
 0x4ed   :  { %v1579_v7 = vpop.f32.mrb[44].mxu1  ;;  %v1620_v11 = vpop.f32.mrb[52].mxu0 }
 0x4ee   :  { %v1645_v39 = vadd.f32 %v1579_v7, %v7283_v14  ;;  %v1581_v50 = vpop.f32.mrb[45].mxu1  ;;  %v1622_v47 = vpop.f32.mrb[53].mxu0  ;;  %v1647_v31 = vadd.f32 %v1620_v11, %v7287_v54  ;;  %v7307_v54 = vld [vmem:[#allocation152_spill] sm:$0xff] }
 0x4ef   :  { %v1646_v20 = vadd.f32 %v1581_v50, %v7284_v41  ;;  %v1583_v48 = vpop.f32.mrb[46].mxu1  ;;  %v1624_v33 = vpop.f32.mrb[54].mxu0  ;;  %v1648_v25 = vadd.f32 %v1622_v47, %v7286_v29  ;;  %v7303_v29 = vld [vmem:[#allocation148_spill] sm:$0xff] }
 0x4f0   :  { %v3366_v34 = vmul.f32 -1.442695, %v1645_v39  ;;  %v1584_v37 = vpop.f32.mrb[47].mxu1  ;;  %v1625_v40 = vpop.f32.mrb[55].mxu0  ;;  %v7288_v33 = vld [vmem:[#allocation133_spill] sm:$0xff] }
 0x4f1   :  { %v3367_v30 = vmul.f32 -1.442695, %v1646_v20  ;;  %v3368_v49 = vmul.f32 -1.442695, %v1648_v25  ;;  %v7292_v37 = vld [vmem:[#allocation137_spill] sm:$0xff]  ;;  %v7299_v40 = vld [vmem:[#allocation144_spill] sm:$0xff] }
 0x4f2   :  { %3571 = vpow2.f32 %v3366_v34  ;;  %v7289_v34 = vld [vmem:[#allocation135_spill] sm:$0xff]  ;;  %v7304_v25 = vld [vmem:[#allocation149_spill] sm:$0xff] }
 0x4f3   :  { %3573 = vpow2.f32 %v3367_v30  ;;  %v7300_v30 = vld [vmem:[#allocation145_spill] sm:$0xff] }
 0x4f4   :  { %3575 = vpow2.f32 %v3365_v44  ;;  %v7305_v44 = vld [vmem:[#allocation151_spill] sm:$0xff] }
 0x4f5   :  { %3577 = vpow2.f32 %v3368_v49  ;;  %v7306_v49 = vld [vmem:[#allocation150_spill] sm:$0xff] }
 0x4f6   :  { %3579 = vtanh.f32 %v1647_v31  ;;  %v7308_v31 = vld [vmem:[#allocation153_spill] sm:$0xff] }
 0x4fc   :  { %v3572_v36 = vpop.eup %3571 }
 0x4fd   :  { %v3574_v45 = vpop.eup %3573  ;;  %v1676_v46 = vadd.f32 1.0, %v3572_v36  ;;  %v7309_v36 = vld [vmem:[#allocation155_spill] sm:$0xff] }
 0x4fe   :  { %v1682_v58 = vadd.f32 1.0, %v3574_v45  ;;  %v3576_v59 = vpop.eup %3575  ;;  %v7310_v45 = vld [vmem:[#allocation154_spill] sm:$0xff] }
 0x4ff   :  { %3581 = vrcp.f32 %v1676_v46  ;;  %v3578_v6 = vpop.eup %3577  ;;  %v1665_v43 = vadd.f32 1.0, %v3576_v59  ;;  %v7311_v46 = vld [vmem:[#allocation156_spill] sm:$0xff]  ;;  %v7313_v59 = vld [vmem:[#allocation159_spill] sm:$0xff] }
 0x500   :  { %3583 = vrcp.f32 %v1682_v58  ;;  %v3580_v51 = vpop.eup %3579  ;;  %v1689_v62 = vadd.f32 1.0, %v3578_v6  ;;  %v7312_v58 = vld [vmem:[#allocation157_spill] sm:$0xff]  ;;  %v7314_v6 = vld [vmem:[#allocation158_spill] sm:$0xff] }
 0x501   :  { %3585 = vtanh.f32 %v5211_v10 }
 0x502   :  { %3587 = vrcp.f32 %v1665_v43  ;;  %v7317_v43 = vld [vmem:[#allocation163_spill] sm:$0xff] }
 0x503   :  { %3589 = vrcp.f32 %v1689_v62  ;;  %v7320_v62 = vld [vmem:[#allocation167_spill] sm:$0xff] }
 0x509   :  { %v3582_v23 = vpop.eup %3581 }
 0x50a   :  { %v3584_v27 = vpop.eup %3583  ;;  %v1693_v42 = vmul.f32 %v3582_v23, %v3580_v51  ;;  %v7315_v51 = vld [vmem:[#allocation160_spill] sm:$0xff]  ;;  %v7316_v23 = vld [vmem:[#allocation161_spill] sm:$0xff] }
 0x50b   :  { %v1692_v7 = vmul.f32 %v3584_v27, %v5062_v22  ;;  %v3586_v14 = vpop.eup %3585  ;;  %v7318_v27 = vld [vmem:[#allocation164_spill] sm:$0xff] }
 0x50c   :  { %v3588_v39 = vpop.eup %3587 }
 0x50d   :  { %v5220_v11 = vadd.f32 %v1693_v42, %v1692_v7  ;;  %v3590_v50 = vpop.eup %3589  ;;  %v5223_v41 = vmul.f32 %v3588_v39, %v3586_v14  ;;  %v7319_v42 = vld [vmem:[#allocation165_spill] sm:$0xff]  ;;  %v7321_v7 = vld [vmem:[#allocation168_spill] sm:$0xff]  ;;  %v5362_v39 = vld [vmem:[#allocation3 + $0x158] sm:$0xff] }
 0x50e   :  { %v5359_v14 = vld [vmem:[#allocation3 + $0x148] sm:$0xff]  ;;  %7324 = vst [vmem:[#allocation90_spill] sm:$0xff] %v5362_v39 }
 0x50f   :  { %3591 = vtanh.f32 %v5220_v11  ;;  %v5231_v22 = vpack.c.bf16 %v5223_v41, %v5223_v41  ;;  %7323 = vst [vmem:[#allocation88_spill] sm:$0xff] %v5359_v14 }
 0x519   :  { %v3592_v47 = vpop.eup %3591 }
 0x51a   :  { %v5225_v20 = vmul.f32 %v3592_v47, %v3590_v50  ;;  %v5365_v50 = vld [vmem:[#allocation3 + $0x140] sm:$0xff]  ;;  %v5368_v47 = vld [vmem:[#allocation3 + $0x150] sm:$0xff] }
 0x51b   :  { %7325 = vst [vmem:[#allocation31_spill] sm:$0xff] %v5365_v50  ;;  %7326 = vst [vmem:[#allocation91_spill] sm:$0xff] %v5368_v47 }
 0x51c   :  { %v1700_v48 = vpack.c.bf16 %v5225_v20, %v5225_v20 }
 0x51e   :  { %1733 = vmatprep.mubr.bf16.mxu1 %v1700_v48  ;;  %1774 = vmatprep.mubr.bf16.mxu0 %v1700_v48 }
 0x51f   :  { %1734 = vmatmul.mubr.bf16.vlgmr.msra.gmra.mrb[48].mxu1 %v5231_v22  ;;  %1775 = vmatmul.mubr.bf16.vlgmr.msra.gmra.mrb[56].mxu0 %v5231_v22 }
 0x520   :  { %1784 = vmatpush1.bf16.msra.mxu1 %v7194_v3  ;;  %1825 = vmatpush1.bf16.msra.mxu0 %v7195_v19  ;;  %v7290_v3 = vld [vmem:[#allocation134_spill] sm:$0xff]  ;;  %v7291_v19 = vld [vmem:[#allocation136_spill] sm:$0xff] }
 0x521   :  { %1815 = vmatprep.mubr.bf16.mxu1 %v1700_v48  ;;  %1856 = vmatprep.mubr.bf16.mxu0 %v1700_v48  ;;  %v5371_v48 = vld [vmem:[#allocation3 + $0x188] sm:$0xff] }
 0x522   :  { %1785 = vmatprep.subr.bf16.mxu1 %v7196_v15  ;;  %1826 = vmatprep.subr.bf16.mxu0 %v7197_v1  ;;  %v7293_v15 = vld [vmem:[#allocation139_spill] sm:$0xff]  ;;  %v7294_v1 = vld [vmem:[#allocation138_spill] sm:$0xff]  ;;  %7327 = vst [vmem:[#allocation89_spill] sm:$0xff] %v5371_v48 }
 0x524   :  { %1786 = vmatpush1.bf16.msra.mxu1 %v7198_v35  ;;  %1827 = vmatpush1.bf16.msra.mxu0 %v7199_v32  ;;  %v7295_v35 = vld [vmem:[#allocation140_spill] sm:$0xff]  ;;  %v7296_v32 = vld [vmem:[#allocation141_spill] sm:$0xff] }
 0x525   :  { %1787 = vmatprep.subr.bf16.mxu1 %v7200_v21  ;;  %1828 = vmatprep.subr.bf16.mxu0 %v7201_v4  ;;  %v7297_v21 = vld [vmem:[#allocation143_spill] sm:$0xff]  ;;  %v7298_v4 = vld [vmem:[#allocation142_spill] sm:$0xff] }
 0x528   :  { %1788 = vmatpush1.bf16.msra.mxu1 %v7288_v33  ;;  %1829 = vmatpush1.bf16.msra.mxu0 %v7289_v34  ;;  %v5377_v33 = vld [vmem:[#allocation3 + $0x180] sm:$0xff]  ;;  %v5380_v34 = vld [vmem:[#allocation3 + $0x190] sm:$0xff] }
 0x529   :  { %1789 = vmatprep.subr.bf16.mxu1 %v7290_v3  ;;  %1830 = vmatprep.subr.bf16.mxu0 %v7291_v19  ;;  %7329 = vst [vmem:[#allocation127_spill] sm:$0xff] %v5377_v33  ;;  %7330 = vst [vmem:[#allocation126_spill] sm:$0xff] %v5380_v34  ;;  %v5383_v3 = vld [vmem:[#allocation3 + $0x1c8] sm:$0xff]  ;;  %v5386_v19 = vld [vmem:[#allocation3 + $0x1d8] sm:$0xff] }
 0x52a   :  { %7331 = vst [vmem:[#allocation128_spill] sm:$0xff] %v5383_v3  ;;  %7332 = vst [vmem:[#allocation129_spill] sm:$0xff] %v5386_v19 }
 0x52c   :  { %1790 = vmatpush1.bf16.msra.mxu1 %v7292_v37  ;;  %1831 = vmatpush1.bf16.msra.mxu0 %v7293_v15  ;;  %v5389_v37 = vld [vmem:[#allocation3 + $0x1c0] sm:$0xff]  ;;  %v5392_v15 = vld [vmem:[#allocation3 + $0x1d0] sm:$0xff] }
 0x52d   :  { %1791 = vmatprep.subr.bf16.mxu1 %v7294_v1  ;;  %1832 = vmatprep.subr.bf16.mxu0 %v7295_v35  ;;  %7333 = vst [vmem:[#allocation131_spill] sm:$0xff] %v5389_v37  ;;  %7334 = vst [vmem:[#allocation130_spill] sm:$0xff] %v5392_v15  ;;  %v5395_v1 = vld [vmem:[#allocation3 + $0x208] sm:$0xff]  ;;  %v5398_v35 = vld [vmem:[#allocation3 + $0x218] sm:$0xff] }
 0x52e   :  { %7335 = vst [vmem:[#allocation132_spill] sm:$0xff] %v5395_v1  ;;  %7336 = vst [vmem:[#allocation162_spill] sm:$0xff] %v5398_v35 }
 0x530   :  { %1792 = vmatpush1.bf16.msra.mxu1 %v7296_v32  ;;  %1833 = vmatpush1.bf16.msra.mxu0 %v7297_v21  ;;  %v5401_v32 = vld [vmem:[#allocation3 + $0x200] sm:$0xff]  ;;  %v5404_v21 = vld [vmem:[#allocation3 + $0x210] sm:$0xff] }
 0x531   :  { %1793 = vmatprep.subr.bf16.mxu1 %v7298_v4  ;;  %1834 = vmatprep.subr.bf16.mxu0 %v7299_v40  ;;  %7337 = vst [vmem:[#allocation166_spill] sm:$0xff] %v5401_v32  ;;  %7338 = vst [vmem:[#allocation169_spill] sm:$0xff] %v5404_v21  ;;  %v5407_v4 = vld [vmem:[#allocation3 + $0x248] sm:$0xff]  ;;  %v5410_v40 = vld [vmem:[#allocation3 + $0x258] sm:$0xff] }
 0x532   :  { %7339 = vst [vmem:[#allocation171_spill] sm:$0xff] %v5407_v4  ;;  %7340 = vst [vmem:[#allocation170_spill] sm:$0xff] %v5410_v40 }
 0x534   :  { %1794 = vmatpush1.bf16.msra.mxu1 %v7300_v30  ;;  %1835 = vmatpush1.bf16.msra.mxu0 %v7301_v26  ;;  %v5413_v30 = vld [vmem:[#allocation3 + $0x240] sm:$0xff]  ;;  %v5416_v26 = vld [vmem:[#allocation3 + $0x250] sm:$0xff] }
 0x535   :  { %1795 = vmatprep.subr.bf16.mxu1 %v7302_v28  ;;  %1836 = vmatprep.subr.bf16.mxu0 %v7303_v29  ;;  %7341 = vst [vmem:[#allocation172_spill] sm:$0xff] %v5413_v30  ;;  %7342 = vst [vmem:[#allocation173_spill] sm:$0xff] %v5416_v26  ;;  %v5419_v28 = vld [vmem:[#allocation3 + $0x288] sm:$0xff]  ;;  %v5422_v29 = vld [vmem:[#allocation3 + $0x298] sm:$0xff] }
 0x536   :  { %7343 = vst [vmem:[#allocation174_spill] sm:$0xff] %v5419_v28  ;;  %7344 = vst [vmem:[#allocation175_spill] sm:$0xff] %v5422_v29 }
 0x538   :  { %1796 = vmatpush1.bf16.msra.mxu1 %v7304_v25  ;;  %1837 = vmatpush1.bf16.msra.mxu0 %v7305_v44  ;;  %v5425_v25 = vld [vmem:[#allocation3 + $0x280] sm:$0xff]  ;;  %v5428_v44 = vld [vmem:[#allocation3 + $0x290] sm:$0xff] }
 0x539   :  { %1797 = vmatprep.subr.bf16.mxu1 %v7306_v49  ;;  %1838 = vmatprep.subr.bf16.mxu0 %v7307_v54  ;;  %7345 = vst [vmem:[#allocation176_spill] sm:$0xff] %v5425_v25  ;;  %7346 = vst [vmem:[#allocation177_spill] sm:$0xff] %v5428_v44  ;;  %v5431_v49 = vld [vmem:[#allocation3 + $0x2c8] sm:$0xff]  ;;  %v5434_v54 = vld [vmem:[#allocation3 + $0x2d8] sm:$0xff] }
 0x53a   :  { %7347 = vst [vmem:[#allocation92_spill] sm:$0xff] %v5431_v49  ;;  %7348 = vst [vmem:[#allocation93_spill] sm:$0xff] %v5434_v54 }
 0x53c   :  { %1798 = vmatpush1.bf16.msra.mxu1 %v7308_v31  ;;  %1839 = vmatpush1.bf16.msra.mxu0 %v7309_v36  ;;  %v5437_v31 = vld [vmem:[#allocation3 + $0x2c0] sm:$0xff]  ;;  %v5440_v36 = vld [vmem:[#allocation3 + $0x2d0] sm:$0xff] }
 0x53d   :  { %1799 = vmatprep.subr.bf16.mxu1 %v7310_v45  ;;  %1840 = vmatprep.subr.bf16.mxu0 %v7311_v46  ;;  %7349 = vst [vmem:[#allocation95_spill] sm:$0xff] %v5437_v31  ;;  %7350 = vst [vmem:[#allocation94_spill] sm:$0xff] %v5440_v36  ;;  %v5443_v45 = vld [vmem:[#allocation3 + $0x308] sm:$0xff]  ;;  %v5446_v46 = vld [vmem:[#allocation3 + $0x318] sm:$0xff] }
 0x53e   :  { %7351 = vst [vmem:[#allocation96_spill] sm:$0xff] %v5443_v45  ;;  %7352 = vst [vmem:[#allocation97_spill] sm:$0xff] %v5446_v46 }
 0x540   :  { %1800 = vmatpush1.bf16.msra.mxu1 %v7312_v58  ;;  %1841 = vmatpush1.bf16.msra.mxu0 %v7313_v59  ;;  %v5449_v58 = vld [vmem:[#allocation3 + $0x300] sm:$0xff]  ;;  %v5452_v59 = vld [vmem:[#allocation3 + $0x310] sm:$0xff] }
 0x541   :  { %1801 = vmatprep.subr.bf16.mxu1 %v7314_v6  ;;  %1842 = vmatprep.subr.bf16.mxu0 %v7315_v51  ;;  %7353 = vst [vmem:[#allocation99_spill] sm:$0xff] %v5449_v58  ;;  %7354 = vst [vmem:[#allocation98_spill] sm:$0xff] %v5452_v59  ;;  %v5455_v6 = vld [vmem:[#allocation3 + $0x348] sm:$0xff]  ;;  %v5458_v51 = vld [vmem:[#allocation3 + $0x358] sm:$0xff] }
 0x542   :  { %7355 = vst [vmem:[#allocation100_spill] sm:$0xff] %v5455_v6  ;;  %7356 = vst [vmem:[#allocation101_spill] sm:$0xff] %v5458_v51 }
 0x544   :  { %1802 = vmatpush1.bf16.msra.mxu1 %v7316_v23  ;;  %1843 = vmatpush1.bf16.msra.mxu0 %v7317_v43  ;;  %v5461_v23 = vld [vmem:[#allocation3 + $0x340] sm:$0xff]  ;;  %v5464_v43 = vld [vmem:[#allocation3 + $0x350] sm:$0xff] }
 0x545   :  { %1803 = vmatprep.subr.bf16.mxu1 %v7232_v52  ;;  %1844 = vmatprep.subr.bf16.mxu0 %v7318_v27  ;;  %v5356_v52 = vld [vmem:[#allocation3 + $0x110] sm:$0xff]  ;;  %7357 = vst [vmem:[#allocation103_spill] sm:$0xff] %v5461_v23  ;;  %7358 = vst [vmem:[#allocation102_spill] sm:$0xff] %v5464_v43  ;;  %v5467_v27 = vld [vmem:[#allocation3 + $0x388] sm:$0xff] }
 0x546   :  { %7322 = vst [vmem:[#allocation29_spill] sm:$0xff] %v5356_v52  ;;  %7359 = vst [vmem:[#allocation104_spill] sm:$0xff] %v5467_v27 }
 0x548   :  { %1804 = vmatpush1.bf16.msra.mxu1 %v7319_v42  ;;  %1845 = vmatpush1.bf16.msra.mxu0 %v7320_v62  ;;  %v5470_v42 = vld [vmem:[#allocation3 + $0x398] sm:$0xff]  ;;  %v5473_v62 = vld [vmem:[#allocation3 + $0x380] sm:$0xff] }
 0x549   :  { %1805 = vmatprep.subr.bf16.mxu1 %v7236_v2  ;;  %1846 = vmatprep.subr.bf16.mxu0 %v7321_v7  ;;  %v5335_v2 = vld [vmem:[#allocation3 + $0xc8] sm:$0xff]  ;;  %7360 = vst [vmem:[#allocation105_spill] sm:$0xff] %v5470_v42  ;;  %7361 = vst [vmem:[#allocation107_spill] sm:$0xff] %v5473_v62  ;;  %v5476_v7 = vld [vmem:[#allocation3 + $0x390] sm:$0xff] }
 0x54a   :  { %7362 = vst [vmem:[#allocation106_spill] sm:$0xff] %v5476_v7 }
 0x54c   :  { %1806 = vmatpush1.bf16.msra.mxu1 %v7238_v9  ;;  %1847 = vmatpush1.bf16.msra.mxu0 %v7239_v18  ;;  %v5341_v9 = vld [vmem:[#allocation3 + $0xc0] sm:$0xff]  ;;  %v5344_v18 = vld [vmem:[#allocation3 + $0xd0] sm:$0xff] }
 0x54d   :  { %1807 = vmatprep.subr.bf16.mxu1 %v7240_v8  ;;  %1848 = vmatprep.subr.bf16.mxu0 %v7241_v12  ;;  %v5347_v8 = vld [vmem:[#allocation3 + $0x108] sm:$0xff]  ;;  %v5350_v12 = vld [vmem:[#allocation3 + $0x118] sm:$0xff] }
 0x550   :  { %1808 = vmatpush1.bf16.msra.mxu1 %v7242_v13  ;;  %1849 = vmatpush1.bf16.msra.mxu0 %v4945_v57  ;;  %v5297_v57 = vld [vmem:[#allocation3 + $0x8] sm:$0xff]  ;;  %v5353_v13 = vld [vmem:[#allocation3 + $0x100] sm:$0xff] }
 0x551   :  { %1809 = vmatprep.subr.bf16.mxu1 %v7243_v16  ;;  %1850 = vmatprep.subr.bf16.mxu0 %v7244_v5  ;;  %v5326_v5 = vld [vmem:[#allocation3 + $0x98] sm:$0xff]  ;;  %v5329_v16 = vld [vmem:[#allocation3 + $0x80] sm:$0xff] }
 0x554   :  { %1810 = vmatpush1.bf16.msra.mxu1 %v7245_v17  ;;  %1851 = vmatpush1.bf16.msra.mxu0 %v4957_v56  ;;  %v5300_v56 = vld [vmem:[#allocation3 + $0x18] sm:$0xff]  ;;  %v5332_v17 = vld [vmem:[#allocation3 + $0x90] sm:$0xff] }
 0x555   :  { %1811 = vmatprep.subr.bf16.mxu1 %v7246_v55  ;;  %1852 = vmatprep.subr.bf16.mxu0 %v4960_v53  ;;  %v5320_v53 = vld [vmem:[#allocation3 + $0x50] sm:$0xff]  ;;  %v5338_v55 = vld [vmem:[#allocation3 + $0xd8] sm:$0xff] }
 0x558   :  { %1812 = vmatpush1.bf16.msra.mxu1 %v4963_v38  ;;  %1853 = vmatpush1.bf16.msra.mxu0 %v4969_v24  ;;  %v5305_v24 = vld [vmem:[#allocation3] sm:$0xff]  ;;  %v5323_v38 = vld [vmem:[#allocation3 + $0x88] sm:$0xff] }
 0x559   :  { %1813 = vmatprep.subr.bf16.mxu1 %v4965_v61  ;;  %1854 = vmatprep.subr.bf16.mxu0 %v4972_v60  ;;  %v5308_v60 = vld [vmem:[#allocation3 + $0x10] sm:$0xff]  ;;  %v5311_v61 = vld [vmem:[#allocation3 + $0x48] sm:$0xff] }
 0x55c   :  { %1814 = vmatpush1.bf16.msra.mxu1 %v4975_v0  ;;  %1855 = vmatpush1.bf16.msra.mxu0 %v4979_v63  ;;  %v5314_v0 = vld [vmem:[#allocation3 + $0x58] sm:$0xff]  ;;  %v5317_v63 = vld [vmem:[#allocation3 + $0x40] sm:$0xff] }
 0x55d   :  { %1939 = vmatprep.subr.bf16.mxu1 %v5297_v57  ;;  %1980 = vmatprep.subr.bf16.mxu0 %v5300_v56 }
 0x55f   :  { %1816 = vmatmul.mubr.bf16.vlgmr.msra.gmra.mrb[52].mxu1 %v5231_v22  ;;  %1857 = vmatmul.mubr.bf16.vlgmr.msra.gmra.mrb[60].mxu0 %v5231_v22  ;;  %v5374_v22 = vld [vmem:[#allocation3 + $0x198] sm:$0xff] }
 0x560   :  { %1940 = vmatpush1.bf16.msra.mxu1 %v5305_v24  ;;  %1981 = vmatpush1.bf16.msra.mxu0 %v5308_v60  ;;  %7328 = vst [vmem:[#allocation125_spill] sm:$0xff] %v5374_v22 }
 0x561   :  { %1941 = vmatprep.subr.bf16.mxu1 %v5311_v61  ;;  %1982 = vmatprep.subr.bf16.mxu0 %v5314_v0 }
 0x564   :  { %1942 = vmatpush1.bf16.msra.mxu1 %v5317_v63  ;;  %1983 = vmatpush1.bf16.msra.mxu0 %v5320_v53 }
 0x565   :  { %1943 = vmatprep.subr.bf16.mxu1 %v5323_v38  ;;  %1984 = vmatprep.subr.bf16.mxu0 %v5326_v5 }
 0x568   :  { %1944 = vmatpush1.bf16.msra.mxu1 %v5329_v16  ;;  %1985 = vmatpush1.bf16.msra.mxu0 %v5332_v17 }
 0x569   :  { %1945 = vmatprep.subr.bf16.mxu1 %v5335_v2  ;;  %1986 = vmatprep.subr.bf16.mxu0 %v5338_v55 }
 0x56c   :  { %1946 = vmatpush1.bf16.msra.mxu1 %v5341_v9  ;;  %1987 = vmatpush1.bf16.msra.mxu0 %v5344_v18 }
 0x56d   :  { %1947 = vmatprep.subr.bf16.mxu1 %v5347_v8  ;;  %1988 = vmatprep.subr.bf16.mxu0 %v5350_v12 }
 0x570   :  { %1948 = vmatpush1.bf16.msra.mxu1 %v5353_v13  ;;  %1989 = vmatpush1.bf16.msra.mxu0 %v5356_v52 }
 0x571   :  { %1949 = vmatprep.subr.bf16.mxu1 %v5359_v14  ;;  %1990 = vmatprep.subr.bf16.mxu0 %v5362_v39 }
 0x574   :  { %1950 = vmatpush1.bf16.msra.mxu1 %v5365_v50  ;;  %1991 = vmatpush1.bf16.msra.mxu0 %v5368_v47 }
 0x575   :  { %1951 = vmatprep.subr.bf16.mxu1 %v5371_v48  ;;  %1992 = vmatprep.subr.bf16.mxu0 %v5374_v22 }
 0x578   :  { %1952 = vmatpush1.bf16.msra.mxu1 %v5377_v33  ;;  %1993 = vmatpush1.bf16.msra.mxu0 %v5380_v34 }
 0x579   :  { %1953 = vmatprep.subr.bf16.mxu1 %v5383_v3  ;;  %1994 = vmatprep.subr.bf16.mxu0 %v5386_v19 }
 0x57c   :  { %1954 = vmatpush1.bf16.msra.mxu1 %v5389_v37  ;;  %1995 = vmatpush1.bf16.msra.mxu0 %v5392_v15 }
 0x57d   :  { %1955 = vmatprep.subr.bf16.mxu1 %v5395_v1  ;;  %1996 = vmatprep.subr.bf16.mxu0 %v5398_v35 }
 0x580   :  { %1956 = vmatpush1.bf16.msra.mxu1 %v5401_v32  ;;  %1997 = vmatpush1.bf16.msra.mxu0 %v5404_v21 }
 0x581   :  { %1957 = vmatprep.subr.bf16.mxu1 %v5407_v4  ;;  %1998 = vmatprep.subr.bf16.mxu0 %v5410_v40 }
 0x584   :  { %1958 = vmatpush1.bf16.msra.mxu1 %v5413_v30  ;;  %1999 = vmatpush1.bf16.msra.mxu0 %v5416_v26 }
 0x585   :  { %1959 = vmatprep.subr.bf16.mxu1 %v5419_v28  ;;  %2000 = vmatprep.subr.bf16.mxu0 %v5422_v29 }
 0x588   :  { %1960 = vmatpush1.bf16.msra.mxu1 %v5425_v25  ;;  %2001 = vmatpush1.bf16.msra.mxu0 %v5428_v44 }
 0x589   :  { %1961 = vmatprep.subr.bf16.mxu1 %v5431_v49  ;;  %2002 = vmatprep.subr.bf16.mxu0 %v5434_v54 }
 0x58c   :  { %1962 = vmatpush1.bf16.msra.mxu1 %v5437_v31  ;;  %2003 = vmatpush1.bf16.msra.mxu0 %v5440_v36 }
 0x58d   :  { %1963 = vmatprep.subr.bf16.mxu1 %v5443_v45  ;;  %2004 = vmatprep.subr.bf16.mxu0 %v5446_v46  ;;  %v7370_v46 = vld [vmem:[#allocation38_spill] sm:$0xff] }
 0x590   :  { %1964 = vmatpush1.bf16.msra.mxu1 %v5449_v58  ;;  %2005 = vmatpush1.bf16.msra.mxu0 %v5452_v59 }
 0x591   :  { %1965 = vmatprep.subr.bf16.mxu1 %v5455_v6  ;;  %2006 = vmatprep.subr.bf16.mxu0 %v5458_v51  ;;  %v7369_v6 = vld [vmem:[#allocation36_spill] sm:$0xff] }
 0x594   :  { %1966 = vmatpush1.bf16.msra.mxu1 %v5461_v23  ;;  %2007 = vmatpush1.bf16.msra.mxu0 %v5464_v43  ;;  %v5479_v23 = vld [vmem:[#allocation3 + $0x3c8] sm:$0xff]  ;;  %v5482_v43 = vld [vmem:[#allocation3 + $0x3d8] sm:$0xff] }
 0x595   :  { %1967 = vmatprep.subr.bf16.mxu1 %v5467_v27  ;;  %2008 = vmatprep.subr.bf16.mxu0 %v5470_v42  ;;  %7363 = vst [vmem:[#allocation108_spill] sm:$0xff] %v5479_v23  ;;  %7364 = vst [vmem:[#allocation109_spill] sm:$0xff] %v5482_v43  ;;  %v5485_v27 = vld [vmem:[#allocation3 + $0x3c0] sm:$0xff]  ;;  %v5488_v42 = vld [vmem:[#allocation3 + $0x3d0] sm:$0xff] }
 0x596   :  { %7365 = vst [vmem:[#allocation111_spill] sm:$0xff] %v5485_v27  ;;  %7366 = vst [vmem:[#allocation110_spill] sm:$0xff] %v5488_v42 }
 0x598   :  { %1968 = vmatpush1.bf16.msra.mxu1 %v5473_v62  ;;  %2009 = vmatpush1.bf16.msra.mxu0 %v5476_v7  ;;  %v5491_v62 = vld [vmem:[#allocation3 + $0x28] sm:$0xff]  ;;  %v5494_v7 = vld [vmem:[#allocation3 + $0x38] sm:$0xff] }
 0x599   :  { %1969 = vmatprep.subr.bf16.mxu1 %v5479_v23  ;;  %2010 = vmatprep.subr.bf16.mxu0 %v5482_v43  ;;  %7367 = vst [vmem:[#allocation112_spill] sm:$0xff] %v5491_v62  ;;  %7368 = vst [vmem:[#allocation113_spill] sm:$0xff] %v5494_v7 }
 0x59c   :  { %1970 = vmatpush1.bf16.msra.mxu1 %v5485_v27  ;;  %2011 = vmatpush1.bf16.msra.mxu0 %v5488_v42 }
 0x59d   :  { %2021 = vmatprep.subr.bf16.mxu1 %v5491_v62  ;;  %2062 = vmatprep.subr.bf16.mxu0 %v5494_v7  ;;  %v7371_v62 = vld [vmem:[#allocation39_spill] sm:$0xff]  ;;  %v7372_v7 = vld [vmem:[#allocation37_spill] sm:$0xff] }
 0x5f2   :  { %v1735_v23 = vpop.f32.mrb[48].mxu1  ;;  %v1776_v51 = vpop.f32.mrb[56].mxu0 }
 0x5f3   :  { %v1872_v43 = vadd.f32 %v1735_v23, %v7369_v6  ;;  %v1737_v59 = vpop.f32.mrb[49].mxu1  ;;  %v1778_v58 = vpop.f32.mrb[57].mxu0  ;;  %v1874_v29 = vadd.f32 %v1776_v51, %v7372_v7 }
 0x5f4   :  { %v1873_v27 = vadd.f32 %v1737_v59, %v7370_v46  ;;  %v1739_v45 = vpop.f32.mrb[50].mxu1  ;;  %v1780_v36 = vpop.f32.mrb[58].mxu0  ;;  %v1875_v44 = vadd.f32 %v1778_v58, %v7371_v62 }
 0x5f5   :  { %v3369_v31 = vmul.f32 -1.442695, %v1872_v43  ;;  %v1740_v42 = vpop.f32.mrb[51].mxu1  ;;  %v1781_v54 = vpop.f32.mrb[59].mxu0 }
 0x5f6   :  { %v3370_v49 = vmul.f32 -1.442695, %v1873_v27  ;;  %v3371_v25 = vmul.f32 -1.442695, %v1875_v44  ;;  %v7375_v42 = vld [vmem:[#allocation80_spill] sm:$0xff] }
 0x5f7   :  { %3593 = vpow2.f32 %v3369_v31 }
 0x5f8   :  { %3595 = vpow2.f32 %v3370_v49 }
 0x5f9   :  { %3597 = vpow2.f32 %v3371_v25  ;;  %v7373_v25 = vld [vmem:[#allocation28_spill] sm:$0xff] }
 0x5fa   :  { %3599 = vtanh.f32 %v1874_v29 }
 0x601   :  { %v3594_v28 = vpop.eup %3593 }
 0x602   :  { %v3596_v26 = vpop.eup %3595  ;;  %v1890_v6 = vadd.f32 1.0, %v3594_v28 }
 0x603   :  { %v1896_v23 = vadd.f32 1.0, %v3596_v26  ;;  %v3598_v36 = vpop.eup %3597  ;;  %v1697_v26 = vadd.f32 %v5223_v41, %v7373_v25  ;;  %v7377_v41 = vld [vmem:[#allocation83_spill] sm:$0xff] }
 0x604   :  { %3601 = vrcp.f32 %v1890_v6  ;;  %v3600_v45 = vpop.eup %3599  ;;  %v1903_v31 = vadd.f32 1.0, %v3598_v36 }
 0x605   :  { %3603 = vrcp.f32 %v1896_v23 }
 0x606   :  { %3605 = vrcp.f32 %v1903_v31 }
 0x60e   :  { %v3602_v46 = vpop.eup %3601 }
 0x60f   :  { %v3604_v54 = vpop.eup %3603  ;;  %v1907_v59 = vmul.f32 %v3602_v46, %v3600_v45 }
 0x610   :  { %v1906_v49 = vmul.f32 %v3604_v54, %v5211_v10  ;;  %v3606_v44 = vpop.eup %3605  ;;  %v7376_v10 = vld [vmem:[#allocation82_spill] sm:$0xff] }
 0x612   :  { %v5502_v58 = vadd.f32 %v1907_v59, %v1906_v49 }
 0x614   :  { %3607 = vtanh.f32 %v5502_v58 }
 0x61e   :  { %v3608_v28 = vpop.eup %3607 }
 0x61f   :  { %v1910_v29 = vmul.f32 %v3608_v28, %v3606_v44  ;;  %v7378_v28 = vld [vmem:[#allocation81_spill] sm:$0xff] }
 0x621   :  { %v5507_v51 = vadd.f32 %v1910_v29, %v1697_v26 }
 0x623   :  { %7374 = vst [vmem:[#allocation115_spill] sm:$0xff] %v5507_v51 }
 0x632   :  { %v1817_v43 = vpop.f32.mrb[52].mxu1  ;;  %v1858_v27 = vpop.f32.mrb[60].mxu0 }
 0x633   :  { %v1883_v62 = vadd.f32 %v1817_v43, %v7375_v42  ;;  %v1819_v7 = vpop.f32.mrb[53].mxu1  ;;  %v1860_v6 = vpop.f32.mrb[61].mxu0  ;;  %v1885_v25 = vadd.f32 %v1858_v27, %v7378_v28  ;;  %v5528_v28 = vld [vmem:[#allocation3 + $0x30] sm:$0xff] }
 0x634   :  { %v1884_v23 = vadd.f32 %v1819_v7, %v7376_v10  ;;  %v1821_v36 = vpop.f32.mrb[54].mxu1  ;;  %v1862_v45 = vpop.f32.mrb[62].mxu0  ;;  %v1886_v49 = vadd.f32 %v1860_v6, %v7377_v41 }
 0x635   :  { %v3372_v46 = vmul.f32 -1.442695, %v1883_v62  ;;  %v1822_v54 = vpop.f32.mrb[55].mxu1  ;;  %v1863_v59 = vpop.f32.mrb[63].mxu0 }
 0x636   :  { %v3373_v31 = vmul.f32 -1.442695, %v1884_v23  ;;  %v3374_v44 = vmul.f32 -1.442695, %v1886_v49  ;;  %v7379_v59 = vld [vmem:[#allocation30_spill] sm:$0xff] }
 0x637   :  { %3609 = vpow2.f32 %v3372_v46 }
 0x638   :  { %3611 = vpow2.f32 %v3373_v31 }
 0x639   :  { %3613 = vpow2.f32 %v3374_v44  ;;  %v5521_v44 = vpack.c.bf16 %v1910_v29, %v1910_v29  ;;  %v5534_v29 = vld [vmem:[#allocation3 + $0x78] sm:$0xff] }
 0x63a   :  { %3615 = vtanh.f32 %v1885_v25  ;;  %v5537_v25 = vld [vmem:[#allocation3 + $0x60] sm:$0xff] }
 0x641   :  { %v3610_v26 = vpop.eup %3609 }
 0x642   :  { %v3612_v51 = vpop.eup %3611  ;;  %v1914_v43 = vadd.f32 1.0, %v3610_v26  ;;  %v5540_v26 = vld [vmem:[#allocation3 + $0x70] sm:$0xff] }
 0x643   :  { %v1920_v42 = vadd.f32 1.0, %v3612_v51  ;;  %v3614_v7 = vpop.eup %3613  ;;  %v1698_v51 = vadd.f32 %v5225_v20, %v7379_v59  ;;  %v5531_v20 = vld [vmem:[#allocation3 + $0x68] sm:$0xff]  ;;  %v5576_v59 = vld [vmem:[#allocation3 + $0x130] sm:$0xff] }
 0x644   :  { %3617 = vrcp.f32 %v1914_v43  ;;  %v3616_v62 = vpop.eup %3615  ;;  %v1927_v45 = vadd.f32 1.0, %v3614_v7  ;;  %v5543_v43 = vld [vmem:[#allocation3 + $0xa8] sm:$0xff]  ;;  %v5549_v7 = vld [vmem:[#allocation3 + $0xa0] sm:$0xff]  ;;  %7382 = vst [vmem:[#allocation117_spill] sm:$0xff] %v5576_v59 }
 0x645   :  { %3619 = vrcp.f32 %v1920_v42  ;;  %v5546_v42 = vld [vmem:[#allocation3 + $0xb8] sm:$0xff] }
 0x646   :  { %3621 = vrcp.f32 %v1927_v45  ;;  %v5564_v45 = vld [vmem:[#allocation3 + $0xf0] sm:$0xff] }
 0x64e   :  { %v3618_v10 = vpop.eup %3617 }
 0x64f   :  { %v3620_v36 = vpop.eup %3619  ;;  %v1931_v23 = vmul.f32 %v3618_v10, %v3616_v62  ;;  %v5552_v62 = vld [vmem:[#allocation3 + $0xb0] sm:$0xff]  ;;  %v5555_v10 = vld [vmem:[#allocation3 + $0xe8] sm:$0xff] }
 0x650   :  { %v1930_v46 = vmul.f32 %v3620_v36, %v5220_v11  ;;  %v3622_v27 = vpop.eup %3621  ;;  %v5525_v11 = vld [vmem:[#allocation3 + $0x20] sm:$0xff]  ;;  %v5558_v36 = vld [vmem:[#allocation3 + $0xf8] sm:$0xff] }
 0x652   :  { %v5514_v6 = vadd.f32 %v1931_v23, %v1930_v46  ;;  %v5561_v23 = vld [vmem:[#allocation3 + $0xe0] sm:$0xff]  ;;  %v5567_v46 = vld [vmem:[#allocation3 + $0x128] sm:$0xff] }
 0x654   :  { %3623 = vtanh.f32 %v5514_v6 }
 0x65e   :  { %v3624_v54 = vpop.eup %3623 }
 0x65f   :  { %v1934_v31 = vmul.f32 %v3624_v54, %v3622_v27  ;;  %v5570_v27 = vld [vmem:[#allocation3 + $0x138] sm:$0xff]  ;;  %v5573_v54 = vld [vmem:[#allocation3 + $0x120] sm:$0xff] }
 0x660   :  { %7380 = vst [vmem:[#allocation114_spill] sm:$0xff] %v5570_v27  ;;  %7381 = vst [vmem:[#allocation116_spill] sm:$0xff] %v5573_v54 }
 0x661   :  { %v5519_v41 = vadd.f32 %v1934_v31, %v1698_v51  ;;  %v1938_v49 = vpack.c.bf16 %v1934_v31, %v1934_v31  ;;  %v5579_v51 = vld [vmem:[#allocation3 + $0x168] sm:$0xff]  ;;  %v5582_v31 = vld [vmem:[#allocation3 + $0x178] sm:$0xff] }
 0x662   :  { %7383 = vst [vmem:[#allocation119_spill] sm:$0xff] %v5579_v51  ;;  %7384 = vst [vmem:[#allocation118_spill] sm:$0xff] %v5582_v31 }
 0x663   :  { %1971 = vmatprep.mubr.bf16.mxu1 %v1938_v49  ;;  %2012 = vmatprep.mubr.bf16.mxu0 %v1938_v49 }
 0x664   :  { %1972 = vmatmul.mubr.bf16.vlgmr.msra.gmra.mrb[56].mxu1 %v5521_v44  ;;  %2013 = vmatmul.mubr.bf16.vlgmr.msra.gmra.mrb[64].mxu0 %v5521_v44 }
 0x665   :  { %2022 = vmatpush1.bf16.msra.mxu1 %v5525_v11  ;;  %2063 = vmatpush1.bf16.msra.mxu0 %v5528_v28 }
 0x666   :  { %2053 = vmatprep.mubr.bf16.mxu1 %v1938_v49  ;;  %2094 = vmatprep.mubr.bf16.mxu0 %v1938_v49  ;;  %v5585_v49 = vld [vmem:[#allocation3 + $0x160] sm:$0xff] }
 0x667   :  { %2023 = vmatprep.subr.bf16.mxu1 %v5531_v20  ;;  %2064 = vmatprep.subr.bf16.mxu0 %v5534_v29  ;;  %7385 = vst [vmem:[#allocation120_spill] sm:$0xff] %v5585_v49 }
 0x669   :  { %2024 = vmatpush1.bf16.msra.mxu1 %v5537_v25  ;;  %2065 = vmatpush1.bf16.msra.mxu0 %v5540_v26 }
 0x66a   :  { %2025 = vmatprep.subr.bf16.mxu1 %v5543_v43  ;;  %2066 = vmatprep.subr.bf16.mxu0 %v5546_v42 }
 0x66d   :  { %2026 = vmatpush1.bf16.msra.mxu1 %v5549_v7  ;;  %2067 = vmatpush1.bf16.msra.mxu0 %v5552_v62 }
 0x66e   :  { %2027 = vmatprep.subr.bf16.mxu1 %v5555_v10  ;;  %2068 = vmatprep.subr.bf16.mxu0 %v5558_v36 }
 0x671   :  { %2028 = vmatpush1.bf16.msra.mxu1 %v5561_v23  ;;  %2069 = vmatpush1.bf16.msra.mxu0 %v5564_v45 }
 0x672   :  { %2029 = vmatprep.subr.bf16.mxu1 %v5567_v46  ;;  %2070 = vmatprep.subr.bf16.mxu0 %v5570_v27  ;;  %v5588_v27 = vld [vmem:[#allocation3 + $0x170] sm:$0xff] }
 0x673   :  { %7386 = vst [vmem:[#allocation121_spill] sm:$0xff] %v5588_v27 }
 0x675   :  { %2030 = vmatpush1.bf16.msra.mxu1 %v5573_v54  ;;  %2071 = vmatpush1.bf16.msra.mxu0 %v5576_v59  ;;  %v5591_v54 = vld [vmem:[#allocation3 + $0x1a8] sm:$0xff]  ;;  %v5594_v59 = vld [vmem:[#allocation3 + $0x1b8] sm:$0xff] }
 0x676   :  { %2031 = vmatprep.subr.bf16.mxu1 %v5579_v51  ;;  %2072 = vmatprep.subr.bf16.mxu0 %v5582_v31  ;;  %7387 = vst [vmem:[#allocation123_spill] sm:$0xff] %v5591_v54  ;;  %7388 = vst [vmem:[#allocation122_spill] sm:$0xff] %v5594_v59  ;;  %v5597_v51 = vld [vmem:[#allocation3 + $0x1a0] sm:$0xff]  ;;  %v5600_v31 = vld [vmem:[#allocation3 + $0x1b0] sm:$0xff] }
 0x677   :  { %7389 = vst [vmem:[#allocation124_spill] sm:$0xff] %v5597_v51  ;;  %7390 = vst [vmem:[#allocation32_spill] sm:$0xff] %v5600_v31 }
 0x679   :  { %2032 = vmatpush1.bf16.msra.mxu1 %v5585_v49  ;;  %2073 = vmatpush1.bf16.msra.mxu0 %v5588_v27  ;;  %v5603_v49 = vld [vmem:[#allocation3 + $0x1e8] sm:$0xff]  ;;  %v5606_v27 = vld [vmem:[#allocation3 + $0x1f8] sm:$0xff] }
 0x67a   :  { %2033 = vmatprep.subr.bf16.mxu1 %v5591_v54  ;;  %2074 = vmatprep.subr.bf16.mxu0 %v5594_v59  ;;  %7391 = vst [vmem:[#allocation34_spill] sm:$0xff] %v5603_v49  ;;  %7392 = vst [vmem:[#allocation33_spill] sm:$0xff] %v5606_v27  ;;  %v5609_v54 = vld [vmem:[#allocation3 + $0x1e0] sm:$0xff]  ;;  %v5612_v59 = vld [vmem:[#allocation3 + $0x1f0] sm:$0xff] }
 0x67b   :  { %7393 = vst [vmem:[#allocation84_spill] sm:$0xff] %v5609_v54  ;;  %7394 = vst [vmem:[#allocation86_spill] sm:$0xff] %v5612_v59 }
 0x67d   :  { %2034 = vmatpush1.bf16.msra.mxu1 %v5597_v51  ;;  %2075 = vmatpush1.bf16.msra.mxu0 %v5600_v31  ;;  %v5615_v51 = vld [vmem:[#allocation3 + $0x228] sm:$0xff]  ;;  %v5618_v31 = vld [vmem:[#allocation3 + $0x238] sm:$0xff] }
 0x67e   :  { %2035 = vmatprep.subr.bf16.mxu1 %v5603_v49  ;;  %2076 = vmatprep.subr.bf16.mxu0 %v5606_v27  ;;  %7395 = vst [vmem:[#allocation35_spill] sm:$0xff] %v5615_v51  ;;  %7396 = vst [vmem:[#allocation87_spill] sm:$0xff] %v5618_v31  ;;  %v5621_v49 = vld [vmem:[#allocation3 + $0x220] sm:$0xff]  ;;  %v5624_v27 = vld [vmem:[#allocation3 + $0x230] sm:$0xff] }
 0x67f   :  { %7397 = vst [vmem:[#allocation85_spill] sm:$0xff] %v5621_v49  ;;  %7398 = vst [vmem:[#allocation133_spill] sm:$0xff] %v5624_v27 }
 0x681   :  { %2036 = vmatpush1.bf16.msra.mxu1 %v5609_v54  ;;  %2077 = vmatpush1.bf16.msra.mxu0 %v5612_v59  ;;  %v5627_v54 = vld [vmem:[#allocation3 + $0x268] sm:$0xff]  ;;  %v5630_v59 = vld [vmem:[#allocation3 + $0x278] sm:$0xff] }
 0x682   :  { %2037 = vmatprep.subr.bf16.mxu1 %v5615_v51  ;;  %2078 = vmatprep.subr.bf16.mxu0 %v5618_v31  ;;  %7399 = vst [vmem:[#allocation135_spill] sm:$0xff] %v5627_v54  ;;  %7400 = vst [vmem:[#allocation134_spill] sm:$0xff] %v5630_v59  ;;  %v5633_v51 = vld [vmem:[#allocation3 + $0x260] sm:$0xff]  ;;  %v5636_v31 = vld [vmem:[#allocation3 + $0x270] sm:$0xff] }
 0x683   :  { %7401 = vst [vmem:[#allocation136_spill] sm:$0xff] %v5633_v51  ;;  %7402 = vst [vmem:[#allocation137_spill] sm:$0xff] %v5636_v31 }
 0x685   :  { %2038 = vmatpush1.bf16.msra.mxu1 %v5621_v49  ;;  %2079 = vmatpush1.bf16.msra.mxu0 %v5624_v27  ;;  %v5639_v49 = vld [vmem:[#allocation3 + $0x2a8] sm:$0xff]  ;;  %v5642_v27 = vld [vmem:[#allocation3 + $0x2b8] sm:$0xff] }
 0x686   :  { %2039 = vmatprep.subr.bf16.mxu1 %v5627_v54  ;;  %2080 = vmatprep.subr.bf16.mxu0 %v5630_v59  ;;  %7403 = vst [vmem:[#allocation139_spill] sm:$0xff] %v5639_v49  ;;  %7404 = vst [vmem:[#allocation138_spill] sm:$0xff] %v5642_v27  ;;  %v5645_v54 = vld [vmem:[#allocation3 + $0x2a0] sm:$0xff]  ;;  %v5648_v59 = vld [vmem:[#allocation3 + $0x2b0] sm:$0xff] }
 0x687   :  { %7405 = vst [vmem:[#allocation140_spill] sm:$0xff] %v5645_v54  ;;  %7406 = vst [vmem:[#allocation141_spill] sm:$0xff] %v5648_v59 }
 0x689   :  { %2040 = vmatpush1.bf16.msra.mxu1 %v5633_v51  ;;  %2081 = vmatpush1.bf16.msra.mxu0 %v5636_v31  ;;  %v5651_v51 = vld [vmem:[#allocation3 + $0x2e8] sm:$0xff]  ;;  %v5654_v31 = vld [vmem:[#allocation3 + $0x2f8] sm:$0xff] }
 0x68a   :  { %2041 = vmatprep.subr.bf16.mxu1 %v5639_v49  ;;  %2082 = vmatprep.subr.bf16.mxu0 %v5642_v27  ;;  %7407 = vst [vmem:[#allocation143_spill] sm:$0xff] %v5651_v51  ;;  %7408 = vst [vmem:[#allocation142_spill] sm:$0xff] %v5654_v31  ;;  %v5657_v49 = vld [vmem:[#allocation3 + $0x2e0] sm:$0xff]  ;;  %v5660_v27 = vld [vmem:[#allocation3 + $0x2f0] sm:$0xff] }
 0x68b   :  { %7409 = vst [vmem:[#allocation144_spill] sm:$0xff] %v5657_v49  ;;  %7410 = vst [vmem:[#allocation145_spill] sm:$0xff] %v5660_v27 }
 0x68d   :  { %2042 = vmatpush1.bf16.msra.mxu1 %v5645_v54  ;;  %2083 = vmatpush1.bf16.msra.mxu0 %v5648_v59  ;;  %v5663_v54 = vld [vmem:[#allocation3 + $0x328] sm:$0xff]  ;;  %v5666_v59 = vld [vmem:[#allocation3 + $0x338] sm:$0xff] }
 0x68e   :  { %2043 = vmatprep.subr.bf16.mxu1 %v5651_v51  ;;  %2084 = vmatprep.subr.bf16.mxu0 %v5654_v31  ;;  %7411 = vst [vmem:[#allocation147_spill] sm:$0xff] %v5663_v54  ;;  %7412 = vst [vmem:[#allocation146_spill] sm:$0xff] %v5666_v59  ;;  %v5669_v51 = vld [vmem:[#allocation3 + $0x320] sm:$0xff]  ;;  %v5672_v31 = vld [vmem:[#allocation3 + $0x330] sm:$0xff] }
 0x68f   :  { %7413 = vst [vmem:[#allocation148_spill] sm:$0xff] %v5669_v51  ;;  %7414 = vst [vmem:[#allocation149_spill] sm:$0xff] %v5672_v31 }
 0x691   :  { %2044 = vmatpush1.bf16.msra.mxu1 %v5657_v49  ;;  %2085 = vmatpush1.bf16.msra.mxu0 %v5660_v27  ;;  %v5675_v49 = vld [vmem:[#allocation3 + $0x368] sm:$0xff]  ;;  %v5678_v27 = vld [vmem:[#allocation3 + $0x378] sm:$0xff] }
 0x692   :  { %2045 = vmatprep.subr.bf16.mxu1 %v5663_v54  ;;  %2086 = vmatprep.subr.bf16.mxu0 %v5666_v59  ;;  %7415 = vst [vmem:[#allocation151_spill] sm:$0xff] %v5675_v49  ;;  %7416 = vst [vmem:[#allocation150_spill] sm:$0xff] %v5678_v27  ;;  %v5681_v54 = vld [vmem:[#allocation3 + $0x360] sm:$0xff]  ;;  %v5684_v59 = vld [vmem:[#allocation3 + $0x370] sm:$0xff] }
 0x693   :  { %7417 = vst [vmem:[#allocation152_spill] sm:$0xff] %v5681_v54  ;;  %7418 = vst [vmem:[#allocation153_spill] sm:$0xff] %v5684_v59 }
 0x695   :  { %2046 = vmatpush1.bf16.msra.mxu1 %v5669_v51  ;;  %2087 = vmatpush1.bf16.msra.mxu0 %v5672_v31  ;;  %v5687_v51 = vld [vmem:[#allocation3 + $0x3a8] sm:$0xff]  ;;  %v5690_v31 = vld [vmem:[#allocation3 + $0x3b8] sm:$0xff] }
 0x696   :  { %2047 = vmatprep.subr.bf16.mxu1 %v5675_v49  ;;  %2088 = vmatprep.subr.bf16.mxu0 %v5678_v27  ;;  %7419 = vst [vmem:[#allocation155_spill] sm:$0xff] %v5687_v51  ;;  %7420 = vst [vmem:[#allocation154_spill] sm:$0xff] %v5690_v31  ;;  %v5693_v49 = vld [vmem:[#allocation3 + $0x3a0] sm:$0xff]  ;;  %v5696_v27 = vld [vmem:[#allocation3 + $0x3b0] sm:$0xff] }
 0x699   :  { %2048 = vmatpush1.bf16.msra.mxu1 %v5681_v54  ;;  %2089 = vmatpush1.bf16.msra.mxu0 %v5684_v59  ;;  %v5699_v54 = vld [vmem:[#allocation3 + $0x3e8] sm:$0xff]  ;;  %v5702_v59 = vld [vmem:[#allocation3 + $0x3f8] sm:$0xff] }
 0x69a   :  { %2049 = vmatprep.subr.bf16.mxu1 %v5687_v51  ;;  %2090 = vmatprep.subr.bf16.mxu0 %v5690_v31  ;;  %v5705_v51 = vld [vmem:[#allocation3 + $0x3e0] sm:$0xff]  ;;  %v5708_v31 = vld [vmem:[#allocation3 + $0x3f0] sm:$0xff] }
 0x69b   :  { %7421 = vst [vmem:[#allocation156_spill] sm:$0xff] %v5705_v51  ;;  %7422 = vst [vmem:[#allocation157_spill] sm:$0xff] %v5708_v31 }
 0x69d   :  { %2050 = vmatpush1.bf16.msra.mxu1 %v5693_v49  ;;  %2091 = vmatpush1.bf16.msra.mxu0 %v5696_v27 }
 0x69e   :  { %2051 = vmatprep.subr.bf16.mxu1 %v5699_v54  ;;  %2092 = vmatprep.subr.bf16.mxu0 %v5702_v59 }
 0x6a1   :  { %2052 = vmatpush1.bf16.msra.mxu1 %v5705_v51  ;;  %2093 = vmatpush1.bf16.msra.mxu0 %v5708_v31 }
 0x6a2   :  { %2177 = vmatprep.subr.bf16.mxu1 %v5297_v57  ;;  %2218 = vmatprep.subr.bf16.mxu0 %v5300_v56 }
 0x6a4   :  { %2054 = vmatmul.mubr.bf16.vlgmr.msra.gmra.mrb[60].mxu1 %v5521_v44  ;;  %2095 = vmatmul.mubr.bf16.vlgmr.msra.gmra.mrb[68].mxu0 %v5521_v44  ;;  %v7423_v44 = vld [vmem:[#allocation173_spill] sm:$0xff] }
 0x6a5   :  { %2178 = vmatpush1.bf16.msra.mxu1 %v5305_v24  ;;  %2219 = vmatpush1.bf16.msra.mxu0 %v5308_v60 }
 0x6a6   :  { %2179 = vmatprep.subr.bf16.mxu1 %v5311_v61  ;;  %2220 = vmatprep.subr.bf16.mxu0 %v5314_v0 }
 0x6a9   :  { %2180 = vmatpush1.bf16.msra.mxu1 %v5317_v63  ;;  %2221 = vmatpush1.bf16.msra.mxu0 %v5320_v53 }
 0x6aa   :  { %2181 = vmatprep.subr.bf16.mxu1 %v5323_v38  ;;  %2222 = vmatprep.subr.bf16.mxu0 %v5326_v5 }
 0x6ad   :  { %2182 = vmatpush1.bf16.msra.mxu1 %v5329_v16  ;;  %2223 = vmatpush1.bf16.msra.mxu0 %v5332_v17 }
 0x6ae   :  { %2183 = vmatprep.subr.bf16.mxu1 %v5335_v2  ;;  %2224 = vmatprep.subr.bf16.mxu0 %v5338_v55 }
 0x6b1   :  { %2184 = vmatpush1.bf16.msra.mxu1 %v5341_v9  ;;  %2225 = vmatpush1.bf16.msra.mxu0 %v5344_v18 }
 0x6b2   :  { %2185 = vmatprep.subr.bf16.mxu1 %v5347_v8  ;;  %2226 = vmatprep.subr.bf16.mxu0 %v5350_v12 }
 0x6b5   :  { %2186 = vmatpush1.bf16.msra.mxu1 %v5353_v13  ;;  %2227 = vmatpush1.bf16.msra.mxu0 %v5356_v52 }
 0x6b6   :  { %2187 = vmatprep.subr.bf16.mxu1 %v5359_v14  ;;  %2228 = vmatprep.subr.bf16.mxu0 %v5362_v39 }
 0x6b9   :  { %2188 = vmatpush1.bf16.msra.mxu1 %v5365_v50  ;;  %2229 = vmatpush1.bf16.msra.mxu0 %v5368_v47 }
 0x6ba   :  { %2189 = vmatprep.subr.bf16.mxu1 %v5371_v48  ;;  %2230 = vmatprep.subr.bf16.mxu0 %v5374_v22 }
 0x6bd   :  { %2190 = vmatpush1.bf16.msra.mxu1 %v5377_v33  ;;  %2231 = vmatpush1.bf16.msra.mxu0 %v5380_v34  ;;  %v7451_v33 = vld [vmem:[#allocation42_spill] sm:$0xff] }
 0x6be   :  { %2191 = vmatprep.subr.bf16.mxu1 %v5383_v3  ;;  %2232 = vmatprep.subr.bf16.mxu0 %v5386_v19  ;;  %v7424_v19 = vld [vmem:[#allocation174_spill] sm:$0xff]  ;;  %v7450_v3 = vld [vmem:[#allocation40_spill] sm:$0xff] }
 0x6c1   :  { %2192 = vmatpush1.bf16.msra.mxu1 %v5389_v37  ;;  %2233 = vmatpush1.bf16.msra.mxu0 %v5392_v15  ;;  %v7425_v37 = vld [vmem:[#allocation175_spill] sm:$0xff]  ;;  %v7426_v15 = vld [vmem:[#allocation176_spill] sm:$0xff] }
 0x6c2   :  { %2193 = vmatprep.subr.bf16.mxu1 %v5395_v1  ;;  %2234 = vmatprep.subr.bf16.mxu0 %v5398_v35  ;;  %v7427_v1 = vld [vmem:[#allocation177_spill] sm:$0xff]  ;;  %v7428_v35 = vld [vmem:[#allocation92_spill] sm:$0xff] }
 0x6c5   :  { %2194 = vmatpush1.bf16.msra.mxu1 %v5401_v32  ;;  %2235 = vmatpush1.bf16.msra.mxu0 %v5404_v21  ;;  %v7429_v32 = vld [vmem:[#allocation93_spill] sm:$0xff]  ;;  %v7430_v21 = vld [vmem:[#allocation95_spill] sm:$0xff] }
 0x6c6   :  { %2195 = vmatprep.subr.bf16.mxu1 %v5407_v4  ;;  %2236 = vmatprep.subr.bf16.mxu0 %v5410_v40  ;;  %v7431_v4 = vld [vmem:[#allocation94_spill] sm:$0xff]  ;;  %v7432_v40 = vld [vmem:[#allocation96_spill] sm:$0xff] }
 0x6c9   :  { %2196 = vmatpush1.bf16.msra.mxu1 %v5413_v30  ;;  %2237 = vmatpush1.bf16.msra.mxu0 %v7423_v44  ;;  %v7433_v30 = vld [vmem:[#allocation97_spill] sm:$0xff]  ;;  %v7434_v44 = vld [vmem:[#allocation99_spill] sm:$0xff] }
 0x6ca   :  { %2197 = vmatprep.subr.bf16.mxu1 %v7424_v19  ;;  %2238 = vmatprep.subr.bf16.mxu0 %v7425_v37  ;;  %v7435_v19 = vld [vmem:[#allocation98_spill] sm:$0xff]  ;;  %v7436_v37 = vld [vmem:[#allocation100_spill] sm:$0xff] }
 0x6cd   :  { %2198 = vmatpush1.bf16.msra.mxu1 %v7426_v15  ;;  %2239 = vmatpush1.bf16.msra.mxu0 %v7427_v1  ;;  %v7437_v15 = vld [vmem:[#allocation101_spill] sm:$0xff]  ;;  %v7438_v1 = vld [vmem:[#allocation103_spill] sm:$0xff] }
 0x6ce   :  { %2199 = vmatprep.subr.bf16.mxu1 %v7428_v35  ;;  %2240 = vmatprep.subr.bf16.mxu0 %v7429_v32  ;;  %v7439_v35 = vld [vmem:[#allocation102_spill] sm:$0xff]  ;;  %v7440_v32 = vld [vmem:[#allocation104_spill] sm:$0xff] }
 0x6d1   :  { %2200 = vmatpush1.bf16.msra.mxu1 %v7430_v21  ;;  %2241 = vmatpush1.bf16.msra.mxu0 %v7431_v4  ;;  %v7441_v21 = vld [vmem:[#allocation105_spill] sm:$0xff]  ;;  %v7442_v4 = vld [vmem:[#allocation107_spill] sm:$0xff] }
 0x6d2   :  { %2201 = vmatprep.subr.bf16.mxu1 %v7432_v40  ;;  %2242 = vmatprep.subr.bf16.mxu0 %v7433_v30  ;;  %v7443_v40 = vld [vmem:[#allocation106_spill] sm:$0xff]  ;;  %v7444_v30 = vld [vmem:[#allocation108_spill] sm:$0xff] }
 0x6d5   :  { %2202 = vmatpush1.bf16.msra.mxu1 %v7434_v44  ;;  %2243 = vmatpush1.bf16.msra.mxu0 %v7435_v19  ;;  %v7445_v44 = vld [vmem:[#allocation109_spill] sm:$0xff]  ;;  %v7446_v19 = vld [vmem:[#allocation111_spill] sm:$0xff] }
 0x6d6   :  { %2203 = vmatprep.subr.bf16.mxu1 %v7436_v37  ;;  %2244 = vmatprep.subr.bf16.mxu0 %v7437_v15  ;;  %v7447_v37 = vld [vmem:[#allocation110_spill] sm:$0xff]  ;;  %v7448_v15 = vld [vmem:[#allocation112_spill] sm:$0xff] }
 0x6d9   :  { %2204 = vmatpush1.bf16.msra.mxu1 %v7438_v1  ;;  %2245 = vmatpush1.bf16.msra.mxu0 %v7439_v35  ;;  %v7449_v1 = vld [vmem:[#allocation113_spill] sm:$0xff] }
 0x6da   :  { %2205 = vmatprep.subr.bf16.mxu1 %v7440_v32  ;;  %2246 = vmatprep.subr.bf16.mxu0 %v7441_v21 }
 0x6dd   :  { %2206 = vmatpush1.bf16.msra.mxu1 %v7442_v4  ;;  %2247 = vmatpush1.bf16.msra.mxu0 %v7443_v40 }
 0x6de   :  { %2207 = vmatprep.subr.bf16.mxu1 %v7444_v30  ;;  %2248 = vmatprep.subr.bf16.mxu0 %v7445_v44 }
 0x6e1   :  { %2208 = vmatpush1.bf16.msra.mxu1 %v7446_v19  ;;  %2249 = vmatpush1.bf16.msra.mxu0 %v7447_v37  ;;  %v7452_v37 = vld [vmem:[#allocation43_spill] sm:$0xff] }
 0x6e2   :  { %2259 = vmatprep.subr.bf16.mxu1 %v7448_v15  ;;  %2300 = vmatprep.subr.bf16.mxu0 %v7449_v1  ;;  %v7453_v1 = vld [vmem:[#allocation41_spill] sm:$0xff] }
 0x737   :  { %v1973_v35 = vpop.f32.mrb[56].mxu1  ;;  %v2014_v32 = vpop.f32.mrb[64].mxu0 }
 0x738   :  { %v2110_v21 = vadd.f32 %v1973_v35, %v7450_v3  ;;  %v1975_v34 = vpop.f32.mrb[57].mxu1  ;;  %v2016_v4 = vpop.f32.mrb[65].mxu0  ;;  %v2112_v39 = vadd.f32 %v2014_v32, %v7453_v1 }
 0x739   :  { %v2111_v40 = vadd.f32 %v1975_v34, %v7451_v33  ;;  %v1977_v22 = vpop.f32.mrb[58].mxu1  ;;  %v2018_v30 = vpop.f32.mrb[66].mxu0  ;;  %v2113_v15 = vadd.f32 %v2016_v4, %v7452_v37  ;;  %v7457_v4 = vld [vmem:[#allocation76_spill] sm:$0xff] }
 0x73a   :  { %v3375_v48 = vmul.f32 -1.442695, %v2110_v21  ;;  %v1978_v44 = vpop.f32.mrb[59].mxu1  ;;  %v2019_v47 = vpop.f32.mrb[67].mxu0 }
 0x73b   :  { %v3376_v19 = vmul.f32 -1.442695, %v2111_v40  ;;  %v3377_v50 = vmul.f32 -1.442695, %v2113_v15 }
 0x73c   :  { %3625 = vpow2.f32 %v3375_v48 }
 0x73d   :  { %3627 = vpow2.f32 %v3376_v19 }
 0x73e   :  { %3629 = vpow2.f32 %v3377_v50 }
 0x73f   :  { %3631 = vtanh.f32 %v2112_v39  ;;  %v7455_v39 = vld [vmem:[#allocation115_spill] sm:$0xff] }
 0x746   :  { %v3626_v14 = vpop.eup %3625 }
 0x747   :  { %v3628_v52 = vpop.eup %3627  ;;  %v2128_v3 = vadd.f32 1.0, %v3626_v14 }
 0x748   :  { %v2134_v35 = vadd.f32 1.0, %v3628_v52  ;;  %v3630_v22 = vpop.eup %3629 }
 0x749   :  { %3633 = vrcp.f32 %v2128_v3  ;;  %v3632_v33 = vpop.eup %3631  ;;  %v2141_v48 = vadd.f32 1.0, %v3630_v22  ;;  %v7458_v3 = vld [vmem:[#allocation78_spill] sm:$0xff] }
 0x74a   :  { %3635 = vrcp.f32 %v2134_v35 }
 0x74b   :  { %3637 = vrcp.f32 %v2141_v48  ;;  %v7459_v48 = vld [vmem:[#allocation79_spill] sm:$0xff] }
 0x753   :  { %v3634_v34 = vpop.eup %3633 }
 0x754   :  { %v3636_v47 = vpop.eup %3635  ;;  %v2145_v21 = vmul.f32 %v3634_v34, %v3632_v33 }
 0x755   :  { %v2144_v19 = vmul.f32 %v3636_v47, %v5502_v58  ;;  %v3638_v15 = vpop.eup %3637 }
 0x757   :  { %v5784_v37 = vadd.f32 %v2145_v21, %v2144_v19 }
 0x759   :  { %7454 = vst [vmem:[#allocation159_spill] sm:$0xff] %v5784_v37  ;;  %3639 = vtanh.f32 %v5784_v37 }
 0x763   :  { %v3640_v14 = vpop.eup %3639 }
 0x764   :  { %v2148_v50 = vmul.f32 %v3640_v14, %v3638_v15  ;;  %v7460_v14 = vld [vmem:[#allocation77_spill] sm:$0xff] }
 0x766   :  { %v5788_v52 = vadd.f32 %v2148_v50, %v7455_v39 }
 0x768   :  { %7456 = vst [vmem:[#allocation158_spill] sm:$0xff] %v5788_v52 }
 0x777   :  { %v2055_v1 = vpop.f32.mrb[60].mxu1  ;;  %v2096_v32 = vpop.f32.mrb[68].mxu0 }
 0x778   :  { %v2121_v40 = vadd.f32 %v2055_v1, %v7457_v4  ;;  %v2057_v30 = vpop.f32.mrb[61].mxu1  ;;  %v2098_v44 = vpop.f32.mrb[69].mxu0  ;;  %v2123_v39 = vadd.f32 %v2096_v32, %v7460_v14  ;;  %v7467_v14 = vld [vmem:[#allocation121_spill] sm:$0xff] }
 0x779   :  { %v2122_v35 = vadd.f32 %v2057_v30, %v7458_v3  ;;  %v2059_v58 = vpop.f32.mrb[62].mxu1  ;;  %v2100_v22 = vpop.f32.mrb[70].mxu0  ;;  %v2124_v19 = vadd.f32 %v2098_v44, %v7459_v48  ;;  %v7464_v48 = vld [vmem:[#allocation119_spill] sm:$0xff] }
 0x77a   :  { %v3378_v33 = vmul.f32 -1.442695, %v2121_v40  ;;  %v2060_v34 = vpop.f32.mrb[63].mxu1  ;;  %v2101_v47 = vpop.f32.mrb[71].mxu0 }
 0x77b   :  { %v3379_v21 = vmul.f32 -1.442695, %v2122_v35  ;;  %v3380_v15 = vmul.f32 -1.442695, %v2124_v19  ;;  %v7465_v19 = vld [vmem:[#allocation118_spill] sm:$0xff] }
 0x77c   :  { %3641 = vpow2.f32 %v3378_v33 }
 0x77d   :  { %3643 = vpow2.f32 %v3379_v21  ;;  %v5801_v21 = vpack.c.bf16 %v2148_v50, %v2148_v50  ;;  %v7463_v50 = vld [vmem:[#allocation117_spill] sm:$0xff] }
 0x77e   :  { %3645 = vpow2.f32 %v3380_v15  ;;  %v7466_v15 = vld [vmem:[#allocation120_spill] sm:$0xff] }
 0x77f   :  { %3647 = vtanh.f32 %v2123_v39  ;;  %v7468_v39 = vld [vmem:[#allocation123_spill] sm:$0xff] }
 0x786   :  { %v3642_v52 = vpop.eup %3641 }
 0x787   :  { %v3644_v37 = vpop.eup %3643  ;;  %v2152_v1 = vadd.f32 1.0, %v3642_v52 }
 0x788   :  { %v2158_v4 = vadd.f32 1.0, %v3644_v37  ;;  %v3646_v30 = vpop.eup %3645 }
 0x789   :  { %3649 = vrcp.f32 %v2152_v1  ;;  %v3648_v40 = vpop.eup %3647  ;;  %v2165_v22 = vadd.f32 1.0, %v3646_v30  ;;  %v7469_v1 = vld [vmem:[#allocation122_spill] sm:$0xff]  ;;  %v7471_v30 = vld [vmem:[#allocation32_spill] sm:$0xff] }
 0x78a   :  { %3651 = vrcp.f32 %v2158_v4  ;;  %v7470_v4 = vld [vmem:[#allocation124_spill] sm:$0xff] }
 0x78b   :  { %3653 = vrcp.f32 %v2165_v22  ;;  %v7476_v22 = vld [vmem:[#allocation35_spill] sm:$0xff] }
 0x793   :  { %v3650_v3 = vpop.eup %3649 }
 0x794   :  { %v3652_v58 = vpop.eup %3651  ;;  %v2169_v35 = vmul.f32 %v3650_v3, %v3648_v40  ;;  %v7472_v40 = vld [vmem:[#allocation34_spill] sm:$0xff]  ;;  %v7473_v3 = vld [vmem:[#allocation33_spill] sm:$0xff] }
 0x795   :  { %v2168_v33 = vmul.f32 %v3652_v58, %v5514_v6  ;;  %v3654_v32 = vpop.eup %3653  ;;  %v7461_v6 = vld [vmem:[#allocation114_spill] sm:$0xff]  ;;  %v7474_v58 = vld [vmem:[#allocation84_spill] sm:$0xff] }
 0x797   :  { %v5795_v44 = vadd.f32 %v2169_v35, %v2168_v33  ;;  %v7475_v35 = vld [vmem:[#allocation86_spill] sm:$0xff]  ;;  %v7477_v33 = vld [vmem:[#allocation87_spill] sm:$0xff] }
 0x799   :  { %3655 = vtanh.f32 %v5795_v44 }
 0x7a3   :  { %v3656_v52 = vpop.eup %3655 }
 0x7a4   :  { %v2172_v34 = vmul.f32 %v3656_v52, %v3654_v32  ;;  %v7478_v32 = vld [vmem:[#allocation85_spill] sm:$0xff] }
 0x7a5   :  { %v7479_v52 = vld [vmem:[#allocation133_spill] sm:$0xff] }
 0x7a6   :  { %v5799_v37 = vadd.f32 %v2172_v34, %v5519_v41  ;;  %v2176_v47 = vpack.c.bf16 %v2172_v34, %v2172_v34  ;;  %v7462_v41 = vld [vmem:[#allocation116_spill] sm:$0xff]  ;;  %v7480_v34 = vld [vmem:[#allocation135_spill] sm:$0xff] }
 0x7a8   :  { %2209 = vmatprep.mubr.bf16.mxu1 %v2176_v47  ;;  %2250 = vmatprep.mubr.bf16.mxu0 %v2176_v47 }
 0x7a9   :  { %2210 = vmatmul.mubr.bf16.vlgmr.msra.gmra.mrb[64].mxu1 %v5801_v21  ;;  %2251 = vmatmul.mubr.bf16.vlgmr.msra.gmra.mrb[72].mxu0 %v5801_v21 }
 0x7aa   :  { %2260 = vmatpush1.bf16.msra.mxu1 %v5525_v11  ;;  %2301 = vmatpush1.bf16.msra.mxu0 %v5528_v28 }
 0x7ab   :  { %2291 = vmatprep.mubr.bf16.mxu1 %v2176_v47  ;;  %2332 = vmatprep.mubr.bf16.mxu0 %v2176_v47  ;;  %v7481_v47 = vld [vmem:[#allocation134_spill] sm:$0xff] }
 0x7ac   :  { %2261 = vmatprep.subr.bf16.mxu1 %v5531_v20  ;;  %2302 = vmatprep.subr.bf16.mxu0 %v5534_v29 }
 0x7ae   :  { %2262 = vmatpush1.bf16.msra.mxu1 %v5537_v25  ;;  %2303 = vmatpush1.bf16.msra.mxu0 %v5540_v26 }
 0x7af   :  { %2263 = vmatprep.subr.bf16.mxu1 %v5543_v43  ;;  %2304 = vmatprep.subr.bf16.mxu0 %v5546_v42 }
 0x7b2   :  { %2264 = vmatpush1.bf16.msra.mxu1 %v5549_v7  ;;  %2305 = vmatpush1.bf16.msra.mxu0 %v5552_v62 }
 0x7b3   :  { %2265 = vmatprep.subr.bf16.mxu1 %v5555_v10  ;;  %2306 = vmatprep.subr.bf16.mxu0 %v5558_v36 }
 0x7b6   :  { %2266 = vmatpush1.bf16.msra.mxu1 %v5561_v23  ;;  %2307 = vmatpush1.bf16.msra.mxu0 %v5564_v45 }
 0x7b7   :  { %2267 = vmatprep.subr.bf16.mxu1 %v5567_v46  ;;  %2308 = vmatprep.subr.bf16.mxu0 %v7461_v6 }
 0x7ba   :  { %2268 = vmatpush1.bf16.msra.mxu1 %v7462_v41  ;;  %2309 = vmatpush1.bf16.msra.mxu0 %v7463_v50 }
 0x7bb   :  { %2269 = vmatprep.subr.bf16.mxu1 %v7464_v48  ;;  %2310 = vmatprep.subr.bf16.mxu0 %v7465_v19 }
 0x7be   :  { %2270 = vmatpush1.bf16.msra.mxu1 %v7466_v15  ;;  %2311 = vmatpush1.bf16.msra.mxu0 %v7467_v14 }
 0x7bf   :  { %2271 = vmatprep.subr.bf16.mxu1 %v7468_v39  ;;  %2312 = vmatprep.subr.bf16.mxu0 %v7469_v1 }
 0x7c2   :  { %2272 = vmatpush1.bf16.msra.mxu1 %v7470_v4  ;;  %2313 = vmatpush1.bf16.msra.mxu0 %v7471_v30  ;;  %v7482_v30 = vld [vmem:[#allocation136_spill] sm:$0xff] }
 0x7c3   :  { %2273 = vmatprep.subr.bf16.mxu1 %v7472_v40  ;;  %2314 = vmatprep.subr.bf16.mxu0 %v7473_v3  ;;  %v7483_v40 = vld [vmem:[#allocation137_spill] sm:$0xff]  ;;  %v7484_v3 = vld [vmem:[#allocation139_spill] sm:$0xff] }
 0x7c6   :  { %2274 = vmatpush1.bf16.msra.mxu1 %v7474_v58  ;;  %2315 = vmatpush1.bf16.msra.mxu0 %v7475_v35  ;;  %v7485_v58 = vld [vmem:[#allocation138_spill] sm:$0xff]  ;;  %v7486_v35 = vld [vmem:[#allocation140_spill] sm:$0xff] }
 0x7c7   :  { %2275 = vmatprep.subr.bf16.mxu1 %v7476_v22  ;;  %2316 = vmatprep.subr.bf16.mxu0 %v7477_v33  ;;  %v7487_v22 = vld [vmem:[#allocation141_spill] sm:$0xff]  ;;  %v7488_v33 = vld [vmem:[#allocation143_spill] sm:$0xff] }
 0x7ca   :  { %2276 = vmatpush1.bf16.msra.mxu1 %v7478_v32  ;;  %2317 = vmatpush1.bf16.msra.mxu0 %v7479_v52  ;;  %v7489_v32 = vld [vmem:[#allocation142_spill] sm:$0xff]  ;;  %v7490_v52 = vld [vmem:[#allocation144_spill] sm:$0xff] }
 0x7cb   :  { %2277 = vmatprep.subr.bf16.mxu1 %v7480_v34  ;;  %2318 = vmatprep.subr.bf16.mxu0 %v7481_v47  ;;  %v7491_v34 = vld [vmem:[#allocation145_spill] sm:$0xff]  ;;  %v7492_v47 = vld [vmem:[#allocation147_spill] sm:$0xff] }
 0x7ce   :  { %2278 = vmatpush1.bf16.msra.mxu1 %v7482_v30  ;;  %2319 = vmatpush1.bf16.msra.mxu0 %v7483_v40  ;;  %v7493_v30 = vld [vmem:[#allocation146_spill] sm:$0xff]  ;;  %v7494_v40 = vld [vmem:[#allocation148_spill] sm:$0xff] }
 0x7cf   :  { %2279 = vmatprep.subr.bf16.mxu1 %v7484_v3  ;;  %2320 = vmatprep.subr.bf16.mxu0 %v7485_v58  ;;  %v7495_v3 = vld [vmem:[#allocation149_spill] sm:$0xff]  ;;  %v7496_v58 = vld [vmem:[#allocation151_spill] sm:$0xff] }
 0x7d2   :  { %2280 = vmatpush1.bf16.msra.mxu1 %v7486_v35  ;;  %2321 = vmatpush1.bf16.msra.mxu0 %v7487_v22  ;;  %v7497_v35 = vld [vmem:[#allocation150_spill] sm:$0xff]  ;;  %v7498_v22 = vld [vmem:[#allocation152_spill] sm:$0xff] }
 0x7d3   :  { %2281 = vmatprep.subr.bf16.mxu1 %v7488_v33  ;;  %2322 = vmatprep.subr.bf16.mxu0 %v7489_v32  ;;  %v7499_v33 = vld [vmem:[#allocation153_spill] sm:$0xff]  ;;  %v7500_v32 = vld [vmem:[#allocation155_spill] sm:$0xff] }
 0x7d6   :  { %2282 = vmatpush1.bf16.msra.mxu1 %v7490_v52  ;;  %2323 = vmatpush1.bf16.msra.mxu0 %v7491_v34  ;;  %v7501_v52 = vld [vmem:[#allocation154_spill] sm:$0xff] }
 0x7d7   :  { %2283 = vmatprep.subr.bf16.mxu1 %v7492_v47  ;;  %2324 = vmatprep.subr.bf16.mxu0 %v7493_v30 }
 0x7da   :  { %2284 = vmatpush1.bf16.msra.mxu1 %v7494_v40  ;;  %2325 = vmatpush1.bf16.msra.mxu0 %v7495_v3 }
 0x7db   :  { %2285 = vmatprep.subr.bf16.mxu1 %v7496_v58  ;;  %2326 = vmatprep.subr.bf16.mxu0 %v7497_v35 }
 0x7de   :  { %2286 = vmatpush1.bf16.msra.mxu1 %v7498_v22  ;;  %2327 = vmatpush1.bf16.msra.mxu0 %v7499_v33 }
 0x7df   :  { %2287 = vmatprep.subr.bf16.mxu1 %v7500_v32  ;;  %2328 = vmatprep.subr.bf16.mxu0 %v7501_v52 }
 0x7e2   :  { %2288 = vmatpush1.bf16.msra.mxu1 %v5693_v49  ;;  %2329 = vmatpush1.bf16.msra.mxu0 %v5696_v27 }
 0x7e3   :  { %2289 = vmatprep.subr.bf16.mxu1 %v5699_v54  ;;  %2330 = vmatprep.subr.bf16.mxu0 %v5702_v59 }
 0x7e6   :  { %2290 = vmatpush1.bf16.msra.mxu1 %v5705_v51  ;;  %2331 = vmatpush1.bf16.msra.mxu0 %v5708_v31 }
 0x7e7   :  { %2409 = vmatprep.subr.bf16.mxu1 %v5297_v57  ;;  %2450 = vmatprep.subr.bf16.mxu0 %v5300_v56  ;;  %v7502_v57 = vld [vmem:[#allocation29_spill] sm:$0xff]  ;;  %v7503_v56 = vld [vmem:[#allocation88_spill] sm:$0xff] }
 0x7e9   :  { %2292 = vmatmul.mubr.bf16.vlgmr.msra.gmra.mrb[68].mxu1 %v5801_v21  ;;  %2333 = vmatmul.mubr.bf16.vlgmr.msra.gmra.mrb[76].mxu0 %v5801_v21  ;;  %v7521_v21 = vld [vmem:[#allocation172_spill] sm:$0xff] }
 0x7ea   :  { %2410 = vmatpush1.bf16.msra.mxu1 %v5305_v24  ;;  %2451 = vmatpush1.bf16.msra.mxu0 %v5308_v60  ;;  %v7504_v24 = vld [vmem:[#allocation90_spill] sm:$0xff]  ;;  %v7505_v60 = vld [vmem:[#allocation31_spill] sm:$0xff] }
 0x7eb   :  { %2411 = vmatprep.subr.bf16.mxu1 %v5311_v61  ;;  %2452 = vmatprep.subr.bf16.mxu0 %v5314_v0  ;;  %v7506_v61 = vld [vmem:[#allocation91_spill] sm:$0xff]  ;;  %v7507_v0 = vld [vmem:[#allocation89_spill] sm:$0xff] }
 0x7ee   :  { %2412 = vmatpush1.bf16.msra.mxu1 %v5317_v63  ;;  %2453 = vmatpush1.bf16.msra.mxu0 %v5320_v53  ;;  %v7508_v63 = vld [vmem:[#allocation125_spill] sm:$0xff]  ;;  %v7509_v53 = vld [vmem:[#allocation127_spill] sm:$0xff] }
 0x7ef   :  { %2413 = vmatprep.subr.bf16.mxu1 %v5323_v38  ;;  %2454 = vmatprep.subr.bf16.mxu0 %v5326_v5  ;;  %v7510_v38 = vld [vmem:[#allocation126_spill] sm:$0xff]  ;;  %v7511_v5 = vld [vmem:[#allocation128_spill] sm:$0xff] }
 0x7f2   :  { %2414 = vmatpush1.bf16.msra.mxu1 %v5329_v16  ;;  %2455 = vmatpush1.bf16.msra.mxu0 %v5332_v17  ;;  %v7512_v16 = vld [vmem:[#allocation129_spill] sm:$0xff]  ;;  %v7513_v17 = vld [vmem:[#allocation131_spill] sm:$0xff] }
 0x7f3   :  { %2415 = vmatprep.subr.bf16.mxu1 %v5335_v2  ;;  %2456 = vmatprep.subr.bf16.mxu0 %v5338_v55  ;;  %v7514_v2 = vld [vmem:[#allocation130_spill] sm:$0xff]  ;;  %v7515_v55 = vld [vmem:[#allocation132_spill] sm:$0xff] }
 0x7f6   :  { %2416 = vmatpush1.bf16.msra.mxu1 %v5341_v9  ;;  %2457 = vmatpush1.bf16.msra.mxu0 %v5344_v18  ;;  %v7516_v9 = vld [vmem:[#allocation162_spill] sm:$0xff] }
 0x7f7   :  { %2417 = vmatprep.subr.bf16.mxu1 %v5347_v8  ;;  %2458 = vmatprep.subr.bf16.mxu0 %v5350_v12  ;;  %v7517_v18 = vld [vmem:[#allocation166_spill] sm:$0xff]  ;;  %v7518_v8 = vld [vmem:[#allocation169_spill] sm:$0xff]  ;;  %v7519_v12 = vld [vmem:[#allocation171_spill] sm:$0xff] }
 0x7fa   :  { %2418 = vmatpush1.bf16.msra.mxu1 %v5353_v13  ;;  %2459 = vmatpush1.bf16.msra.mxu0 %v7502_v57  ;;  %v7520_v13 = vld [vmem:[#allocation170_spill] sm:$0xff]  ;;  %v7522_v57 = vld [vmem:[#allocation173_spill] sm:$0xff] }
 0x7fb   :  { %2419 = vmatprep.subr.bf16.mxu1 %v7503_v56  ;;  %2460 = vmatprep.subr.bf16.mxu0 %v7504_v24  ;;  %v7523_v56 = vld [vmem:[#allocation174_spill] sm:$0xff]  ;;  %v7524_v24 = vld [vmem:[#allocation175_spill] sm:$0xff] }
 0x7fe   :  { %2420 = vmatpush1.bf16.msra.mxu1 %v7505_v60  ;;  %2461 = vmatpush1.bf16.msra.mxu0 %v7506_v61  ;;  %v7525_v60 = vld [vmem:[#allocation176_spill] sm:$0xff]  ;;  %v7526_v61 = vld [vmem:[#allocation177_spill] sm:$0xff] }
 0x7ff   :  { %2421 = vmatprep.subr.bf16.mxu1 %v7507_v0  ;;  %2462 = vmatprep.subr.bf16.mxu0 %v7508_v63  ;;  %v7527_v0 = vld [vmem:[#allocation92_spill] sm:$0xff]  ;;  %v7528_v63 = vld [vmem:[#allocation93_spill] sm:$0xff] }
 0x802   :  { %2422 = vmatpush1.bf16.msra.mxu1 %v7509_v53  ;;  %2463 = vmatpush1.bf16.msra.mxu0 %v7510_v38  ;;  %v7529_v53 = vld [vmem:[#allocation95_spill] sm:$0xff]  ;;  %v7530_v38 = vld [vmem:[#allocation94_spill] sm:$0xff] }
 0x803   :  { %2423 = vmatprep.subr.bf16.mxu1 %v7511_v5  ;;  %2464 = vmatprep.subr.bf16.mxu0 %v7512_v16  ;;  %v7531_v5 = vld [vmem:[#allocation96_spill] sm:$0xff]  ;;  %v7532_v16 = vld [vmem:[#allocation97_spill] sm:$0xff] }
 0x806   :  { %2424 = vmatpush1.bf16.msra.mxu1 %v7513_v17  ;;  %2465 = vmatpush1.bf16.msra.mxu0 %v7514_v2  ;;  %v7533_v17 = vld [vmem:[#allocation99_spill] sm:$0xff]  ;;  %v7534_v2 = vld [vmem:[#allocation98_spill] sm:$0xff] }
 0x807   :  { %2425 = vmatprep.subr.bf16.mxu1 %v7515_v55  ;;  %2466 = vmatprep.subr.bf16.mxu0 %v7516_v9  ;;  %v7535_v55 = vld [vmem:[#allocation100_spill] sm:$0xff]  ;;  %v7536_v9 = vld [vmem:[#allocation101_spill] sm:$0xff] }
 0x80a   :  { %2426 = vmatpush1.bf16.msra.mxu1 %v7517_v18  ;;  %2467 = vmatpush1.bf16.msra.mxu0 %v7518_v8  ;;  %v7537_v18 = vld [vmem:[#allocation103_spill] sm:$0xff]  ;;  %v7538_v8 = vld [vmem:[#allocation102_spill] sm:$0xff] }
 0x80b   :  { %2427 = vmatprep.subr.bf16.mxu1 %v7519_v12  ;;  %2468 = vmatprep.subr.bf16.mxu0 %v7520_v13  ;;  %v7539_v12 = vld [vmem:[#allocation104_spill] sm:$0xff]  ;;  %v7540_v13 = vld [vmem:[#allocation105_spill] sm:$0xff] }
 0x80e   :  { %2428 = vmatpush1.bf16.msra.mxu1 %v7521_v21  ;;  %2469 = vmatpush1.bf16.msra.mxu0 %v7522_v57  ;;  %v7541_v21 = vld [vmem:[#allocation107_spill] sm:$0xff]  ;;  %v7542_v57 = vld [vmem:[#allocation106_spill] sm:$0xff] }
 0x80f   :  { %2429 = vmatprep.subr.bf16.mxu1 %v7523_v56  ;;  %2470 = vmatprep.subr.bf16.mxu0 %v7524_v24  ;;  %v7543_v56 = vld [vmem:[#allocation108_spill] sm:$0xff]  ;;  %v7544_v24 = vld [vmem:[#allocation109_spill] sm:$0xff] }
 0x812   :  { %2430 = vmatpush1.bf16.msra.mxu1 %v7525_v60  ;;  %2471 = vmatpush1.bf16.msra.mxu0 %v7526_v61  ;;  %v7545_v60 = vld [vmem:[#allocation111_spill] sm:$0xff]  ;;  %v7546_v61 = vld [vmem:[#allocation110_spill] sm:$0xff] }
 0x813   :  { %2431 = vmatprep.subr.bf16.mxu1 %v7527_v0  ;;  %2472 = vmatprep.subr.bf16.mxu0 %v7528_v63  ;;  %v7547_v0 = vld [vmem:[#allocation112_spill] sm:$0xff]  ;;  %v7548_v63 = vld [vmem:[#allocation113_spill] sm:$0xff] }
 0x816   :  { %2432 = vmatpush1.bf16.msra.mxu1 %v7529_v53  ;;  %2473 = vmatpush1.bf16.msra.mxu0 %v7530_v38 }
 0x817   :  { %2433 = vmatprep.subr.bf16.mxu1 %v7531_v5  ;;  %2474 = vmatprep.subr.bf16.mxu0 %v7532_v16  ;;  %v7549_v5 = vld [vmem:[#allocation44_spill] sm:$0xff] }
 0x81a   :  { %2434 = vmatpush1.bf16.msra.mxu1 %v7533_v17  ;;  %2475 = vmatpush1.bf16.msra.mxu0 %v7534_v2 }
 0x81b   :  { %2435 = vmatprep.subr.bf16.mxu1 %v7535_v55  ;;  %2476 = vmatprep.subr.bf16.mxu0 %v7536_v9  ;;  %v7550_v55 = vld [vmem:[#allocation46_spill] sm:$0xff] }
 0x81e   :  { %2436 = vmatpush1.bf16.msra.mxu1 %v7537_v18  ;;  %2477 = vmatpush1.bf16.msra.mxu0 %v7538_v8 }
 0x81f   :  { %2437 = vmatprep.subr.bf16.mxu1 %v7539_v12  ;;  %2478 = vmatprep.subr.bf16.mxu0 %v7540_v13 }
 0x822   :  { %2438 = vmatpush1.bf16.msra.mxu1 %v7541_v21  ;;  %2479 = vmatpush1.bf16.msra.mxu0 %v7542_v57 }
 0x823   :  { %2439 = vmatprep.subr.bf16.mxu1 %v7543_v56  ;;  %2480 = vmatprep.subr.bf16.mxu0 %v7544_v24  ;;  %v7551_v56 = vld [vmem:[#allocation47_spill] sm:$0xff] }
 0x826   :  { %2440 = vmatpush1.bf16.msra.mxu1 %v7545_v60  ;;  %2481 = vmatpush1.bf16.msra.mxu0 %v7546_v61  ;;  %v7552_v61 = vld [vmem:[#allocation45_spill] sm:$0xff] }
 0x827   :  { %2491 = vmatprep.subr.bf16.mxu1 %v7547_v0  ;;  %2532 = vmatprep.subr.bf16.mxu0 %v7548_v63 }
 0x87c   :  { %v2211_v53 = vpop.f32.mrb[64].mxu1  ;;  %v2252_v38 = vpop.f32.mrb[72].mxu0 }
 0x87d   :  { %v2345_v16 = vadd.f32 %v2211_v53, %v7549_v5  ;;  %v2213_v17 = vpop.f32.mrb[65].mxu1  ;;  %v2254_v2 = vpop.f32.mrb[73].mxu0  ;;  %v2347_v0 = vadd.f32 %v2252_v38, %v7552_v61  ;;  %v7557_v61 = vld [vmem:[#allocation72_spill] sm:$0xff] }
 0x87e   :  { %v2346_v9 = vadd.f32 %v2213_v17, %v7550_v55  ;;  %v2215_v18 = vpop.f32.mrb[66].mxu1  ;;  %v2256_v8 = vpop.f32.mrb[74].mxu0  ;;  %v2348_v24 = vadd.f32 %v2254_v2, %v7551_v56  ;;  %v7555_v56 = vld [vmem:[#allocation158_spill] sm:$0xff] }
 0x87f   :  { %v3381_v12 = vmul.f32 -1.442695, %v2345_v16  ;;  %v2216_v13 = vpop.f32.mrb[67].mxu1  ;;  %v2257_v21 = vpop.f32.mrb[75].mxu0 }
 0x880   :  { %v3382_v57 = vmul.f32 -1.442695, %v2346_v9  ;;  %v3383_v60 = vmul.f32 -1.442695, %v2348_v24 }
 0x881   :  { %3657 = vpow2.f32 %v3381_v12  ;;  %v7553_v12 = vld [vmem:[#allocation159_spill] sm:$0xff] }
 0x882   :  { %3659 = vpow2.f32 %v3382_v57 }
 0x883   :  { %3661 = vpow2.f32 %v3383_v60 }
 0x884   :  { %3663 = vtanh.f32 %v2347_v0 }
 0x88b   :  { %v3658_v63 = vpop.eup %3657 }
 0x88c   :  { %v3660_v31 = vpop.eup %3659  ;;  %v2360_v53 = vadd.f32 1.0, %v3658_v63 }
 0x88d   :  { %v2366_v5 = vadd.f32 1.0, %v3660_v31  ;;  %v3662_v17 = vpop.eup %3661 }
 0x88e   :  { %3665 = vrcp.f32 %v2360_v53  ;;  %v3664_v16 = vpop.eup %3663  ;;  %v2373_v8 = vadd.f32 1.0, %v3662_v17 }
 0x88f   :  { %3667 = vrcp.f32 %v2366_v5  ;;  %v7558_v5 = vld [vmem:[#allocation74_spill] sm:$0xff] }
 0x890   :  { %3669 = vrcp.f32 %v2373_v8 }
 0x898   :  { %v3666_v55 = vpop.eup %3665 }
 0x899   :  { %v3668_v18 = vpop.eup %3667  ;;  %v2377_v9 = vmul.f32 %v3666_v55, %v3664_v16 }
 0x89a   :  { %v2376_v13 = vmul.f32 %v3668_v18, %v7553_v12  ;;  %v3670_v38 = vpop.eup %3669 }
 0x89c   :  { %v5940_v2 = vadd.f32 %v2377_v9, %v2376_v13  ;;  %v7559_v13 = vld [vmem:[#allocation75_spill] sm:$0xff] }
 0x89e   :  { %7554 = vst [vmem:[#allocation160_spill] sm:$0xff] %v5940_v2  ;;  %3671 = vtanh.f32 %v5940_v2 }
 0x8a8   :  { %v3672_v21 = vpop.eup %3671 }
 0x8a9   :  { %v2380_v57 = vmul.f32 %v3672_v21, %v3670_v38 }
 0x8ab   :  { %v5944_v31 = vadd.f32 %v2380_v57, %v7555_v56  ;;  %v7560_v56 = vld [vmem:[#allocation73_spill] sm:$0xff] }
 0x8ad   :  { %7556 = vst [vmem:[#allocation161_spill] sm:$0xff] %v5944_v31 }
 0x8bc   :  { %v2293_v24 = vpop.f32.mrb[68].mxu1  ;;  %v2334_v60 = vpop.f32.mrb[76].mxu0 }
 0x8bd   :  { %v2353_v0 = vadd.f32 %v2293_v24, %v7557_v61  ;;  %v2295_v63 = vpop.f32.mrb[69].mxu1  ;;  %v2336_v53 = vpop.f32.mrb[77].mxu0  ;;  %v2355_v31 = vadd.f32 %v2334_v60, %v7560_v56  ;;  %v6100_v56 = vld [vmem:[#allocation3 + $0x198] sm:$0xff] }
 0x8be   :  { %v2354_v17 = vadd.f32 %v2295_v63, %v7558_v5  ;;  %v2297_v16 = vpop.f32.mrb[70].mxu1  ;;  %v2338_v55 = vpop.f32.mrb[78].mxu0  ;;  %v2356_v38 = vadd.f32 %v2336_v53, %v7559_v13  ;;  %v6091_v13 = vld [vmem:[#allocation3 + $0x140] sm:$0xff] }
 0x8bf   :  { %v3384_v18 = vmul.f32 -1.442695, %v2353_v0  ;;  %v2298_v9 = vpop.f32.mrb[71].mxu1  ;;  %v2339_v8 = vpop.f32.mrb[79].mxu0 }
 0x8c0   :  { %v3385_v12 = vmul.f32 -1.442695, %v2354_v17  ;;  %v3386_v21 = vmul.f32 -1.442695, %v2356_v38  ;;  %v5957_v8 = vpack.c.bf16 %v2380_v57, %v2380_v57  ;;  %v6085_v57 = vld [vmem:[#allocation3 + $0x148] sm:$0xff]  ;;  %v6094_v38 = vld [vmem:[#allocation3 + $0x150] sm:$0xff] }
 0x8c1   :  { %3673 = vpow2.f32 %v3384_v18 }
 0x8c2   :  { %3675 = vpow2.f32 %v3385_v12  ;;  %v6088_v12 = vld [vmem:[#allocation3 + $0x158] sm:$0xff] }
 0x8c3   :  { %3677 = vpow2.f32 %v3386_v21  ;;  %v6097_v21 = vld [vmem:[#allocation3 + $0x188] sm:$0xff] }
 0x8c4   :  { %3679 = vtanh.f32 %v2355_v31 }
 0x8cb   :  { %v3674_v2 = vpop.eup %3673 }
 0x8cc   :  { %v3676_v51 = vpop.eup %3675  ;;  %v2384_v24 = vadd.f32 1.0, %v3674_v2 }
 0x8cd   :  { %v2390_v61 = vadd.f32 1.0, %v3676_v51  ;;  %v3678_v63 = vpop.eup %3677 }
 0x8ce   :  { %3681 = vrcp.f32 %v2384_v24  ;;  %v3680_v0 = vpop.eup %3679  ;;  %v2397_v55 = vadd.f32 1.0, %v3678_v63  ;;  %v6103_v24 = vld [vmem:[#allocation3 + $0x180] sm:$0xff]  ;;  %v6109_v63 = vld [vmem:[#allocation3 + $0x1c8] sm:$0xff] }
 0x8cf   :  { %3683 = vrcp.f32 %v2390_v61  ;;  %v6106_v61 = vld [vmem:[#allocation3 + $0x190] sm:$0xff] }
 0x8d0   :  { %3685 = vrcp.f32 %v2397_v55  ;;  %v6124_v55 = vld [vmem:[#allocation3 + $0x218] sm:$0xff] }
 0x8d8   :  { %v3682_v5 = vpop.eup %3681 }
 0x8d9   :  { %v3684_v16 = vpop.eup %3683  ;;  %v2401_v17 = vmul.f32 %v3682_v5, %v3680_v0  ;;  %v6112_v0 = vld [vmem:[#allocation3 + $0x1d8] sm:$0xff]  ;;  %v6115_v5 = vld [vmem:[#allocation3 + $0x1c0] sm:$0xff] }
 0x8da   :  { %v2400_v18 = vmul.f32 %v3684_v16, %v5795_v44  ;;  %v3686_v60 = vpop.eup %3685  ;;  %v7576_v44 = vld [vmem:[#allocation140_spill] sm:$0xff]  ;;  %v6118_v16 = vld [vmem:[#allocation3 + $0x1d0] sm:$0xff] }
 0x8dc   :  { %v5951_v53 = vadd.f32 %v2401_v17, %v2400_v18  ;;  %v6121_v17 = vld [vmem:[#allocation3 + $0x208] sm:$0xff]  ;;  %v6127_v18 = vld [vmem:[#allocation3 + $0x200] sm:$0xff] }
 0x8de   :  { %3687 = vtanh.f32 %v5951_v53 }
 0x8e8   :  { %v3688_v2 = vpop.eup %3687 }
 0x8e9   :  { %v2404_v9 = vmul.f32 %v3688_v2, %v3686_v60  ;;  %v6130_v60 = vld [vmem:[#allocation3 + $0x210] sm:$0xff]  ;;  %v6133_v2 = vld [vmem:[#allocation3 + $0x248] sm:$0xff] }
 0x8eb   :  { %v5955_v51 = vadd.f32 %v2404_v9, %v5799_v37  ;;  %v2408_v31 = vpack.c.bf16 %v2404_v9, %v2404_v9  ;;  %v7577_v37 = vld [vmem:[#allocation141_spill] sm:$0xff]  ;;  %v6136_v9 = vld [vmem:[#allocation3 + $0x258] sm:$0xff] }
 0x8ed   :  { %2441 = vmatprep.mubr.bf16.mxu1 %v2408_v31  ;;  %2482 = vmatprep.mubr.bf16.mxu0 %v2408_v31 }
 0x8ee   :  { %2442 = vmatmul.mubr.bf16.vlgmr.msra.gmra.mrb[72].mxu1 %v5957_v8  ;;  %2483 = vmatmul.mubr.bf16.vlgmr.msra.gmra.mrb[80].mxu0 %v5957_v8 }
 0x8ef   :  { %2492 = vmatpush1.bf16.msra.mxu1 %v5525_v11  ;;  %2533 = vmatpush1.bf16.msra.mxu0 %v5528_v28  ;;  %v7561_v11 = vld [vmem:[#allocation32_spill] sm:$0xff]  ;;  %v7562_v28 = vld [vmem:[#allocation34_spill] sm:$0xff] }
 0x8f0   :  { %2523 = vmatprep.mubr.bf16.mxu1 %v2408_v31  ;;  %2564 = vmatprep.mubr.bf16.mxu0 %v2408_v31  ;;  %v6139_v31 = vld [vmem:[#allocation3 + $0x240] sm:$0xff] }
 0x8f1   :  { %2493 = vmatprep.subr.bf16.mxu1 %v5531_v20  ;;  %2534 = vmatprep.subr.bf16.mxu0 %v5534_v29  ;;  %v7563_v20 = vld [vmem:[#allocation33_spill] sm:$0xff]  ;;  %v7564_v29 = vld [vmem:[#allocation84_spill] sm:$0xff] }
 0x8f3   :  { %2494 = vmatpush1.bf16.msra.mxu1 %v5537_v25  ;;  %2535 = vmatpush1.bf16.msra.mxu0 %v5540_v26  ;;  %v7565_v25 = vld [vmem:[#allocation86_spill] sm:$0xff]  ;;  %v7566_v26 = vld [vmem:[#allocation35_spill] sm:$0xff] }
 0x8f4   :  { %2495 = vmatprep.subr.bf16.mxu1 %v5543_v43  ;;  %2536 = vmatprep.subr.bf16.mxu0 %v5546_v42  ;;  %v7567_v43 = vld [vmem:[#allocation87_spill] sm:$0xff]  ;;  %v7568_v42 = vld [vmem:[#allocation85_spill] sm:$0xff] }
 0x8f7   :  { %2496 = vmatpush1.bf16.msra.mxu1 %v5549_v7  ;;  %2537 = vmatpush1.bf16.msra.mxu0 %v5552_v62  ;;  %v7569_v7 = vld [vmem:[#allocation133_spill] sm:$0xff]  ;;  %v7570_v62 = vld [vmem:[#allocation135_spill] sm:$0xff] }
 0x8f8   :  { %2497 = vmatprep.subr.bf16.mxu1 %v5555_v10  ;;  %2538 = vmatprep.subr.bf16.mxu0 %v5558_v36  ;;  %v7571_v10 = vld [vmem:[#allocation134_spill] sm:$0xff]  ;;  %v7572_v36 = vld [vmem:[#allocation136_spill] sm:$0xff] }
 0x8fb   :  { %2498 = vmatpush1.bf16.msra.mxu1 %v5561_v23  ;;  %2539 = vmatpush1.bf16.msra.mxu0 %v5564_v45  ;;  %v7573_v23 = vld [vmem:[#allocation137_spill] sm:$0xff]  ;;  %v7574_v45 = vld [vmem:[#allocation139_spill] sm:$0xff] }
 0x8fc   :  { %2499 = vmatprep.subr.bf16.mxu1 %v5567_v46  ;;  %2540 = vmatprep.subr.bf16.mxu0 %v7461_v6  ;;  %v7575_v46 = vld [vmem:[#allocation138_spill] sm:$0xff]  ;;  %v7578_v6 = vld [vmem:[#allocation143_spill] sm:$0xff] }
 0x8ff   :  { %2500 = vmatpush1.bf16.msra.mxu1 %v7462_v41  ;;  %2541 = vmatpush1.bf16.msra.mxu0 %v7463_v50  ;;  %v7579_v41 = vld [vmem:[#allocation142_spill] sm:$0xff]  ;;  %v7580_v50 = vld [vmem:[#allocation144_spill] sm:$0xff] }
 0x900   :  { %2501 = vmatprep.subr.bf16.mxu1 %v7464_v48  ;;  %2542 = vmatprep.subr.bf16.mxu0 %v7465_v19  ;;  %v7581_v48 = vld [vmem:[#allocation156_spill] sm:$0xff]  ;;  %v7582_v19 = vld [vmem:[#allocation157_spill] sm:$0xff] }
 0x903   :  { %2502 = vmatpush1.bf16.msra.mxu1 %v7466_v15  ;;  %2543 = vmatpush1.bf16.msra.mxu0 %v7467_v14  ;;  %v6023_v15 = vld [vmem:[#allocation3 + $0x8] sm:$0xff]  ;;  %v6026_v14 = vld [vmem:[#allocation3 + $0x18] sm:$0xff] }
 0x904   :  { %2503 = vmatprep.subr.bf16.mxu1 %v7468_v39  ;;  %2544 = vmatprep.subr.bf16.mxu0 %v7469_v1  ;;  %v6043_v39 = vld [vmem:[#allocation3 + $0x40] sm:$0xff]  ;;  %v6046_v1 = vld [vmem:[#allocation3 + $0x50] sm:$0xff] }
 0x907   :  { %2504 = vmatpush1.bf16.msra.mxu1 %v7470_v4  ;;  %2545 = vmatpush1.bf16.msra.mxu0 %v7561_v11  ;;  %v6049_v4 = vld [vmem:[#allocation3 + $0x88] sm:$0xff] }
 0x908   :  { %2505 = vmatprep.subr.bf16.mxu1 %v7562_v28  ;;  %2546 = vmatprep.subr.bf16.mxu0 %v7563_v20  ;;  %v6145_v11 = vld [vmem:[#allocation3 + $0x288] sm:$0xff]  ;;  %v6148_v28 = vld [vmem:[#allocation3 + $0x298] sm:$0xff]  ;;  %v6151_v20 = vld [vmem:[#allocation3 + $0x280] sm:$0xff] }
 0x909   :  { %7583 = vst [vmem:[#allocation163_spill] sm:$0xff] %v6145_v11  ;;  %7584 = vst [vmem:[#allocation164_spill] sm:$0xff] %v6148_v28 }
 0x90a   :  { %7585 = vst [vmem:[#allocation165_spill] sm:$0xff] %v6151_v20 }
 0x90b   :  { %2506 = vmatpush1.bf16.msra.mxu1 %v7564_v29  ;;  %2547 = vmatpush1.bf16.msra.mxu0 %v7565_v25  ;;  %v6154_v29 = vld [vmem:[#allocation3 + $0x290] sm:$0xff]  ;;  %v6157_v25 = vld [vmem:[#allocation3 + $0x2c8] sm:$0xff] }
 0x90c   :  { %2507 = vmatprep.subr.bf16.mxu1 %v7566_v26  ;;  %2548 = vmatprep.subr.bf16.mxu0 %v7567_v43  ;;  %7586 = vst [vmem:[#allocation167_spill] sm:$0xff] %v6154_v29  ;;  %7587 = vst [vmem:[#allocation168_spill] sm:$0xff] %v6157_v25  ;;  %v6160_v26 = vld [vmem:[#allocation3 + $0x2d8] sm:$0xff]  ;;  %v6163_v43 = vld [vmem:[#allocation3 + $0x2c0] sm:$0xff] }
 0x90d   :  { %7588 = vst [vmem:[#allocation36_spill] sm:$0xff] %v6160_v26  ;;  %7589 = vst [vmem:[#allocation38_spill] sm:$0xff] %v6163_v43 }
 0x90f   :  { %2508 = vmatpush1.bf16.msra.mxu1 %v7568_v42  ;;  %2549 = vmatpush1.bf16.msra.mxu0 %v7569_v7  ;;  %v6166_v42 = vld [vmem:[#allocation3 + $0x2d0] sm:$0xff]  ;;  %v6169_v7 = vld [vmem:[#allocation3 + $0x308] sm:$0xff] }
 0x910   :  { %2509 = vmatprep.subr.bf16.mxu1 %v7570_v62  ;;  %2550 = vmatprep.subr.bf16.mxu0 %v7571_v10  ;;  %7590 = vst [vmem:[#allocation39_spill] sm:$0xff] %v6166_v42  ;;  %7591 = vst [vmem:[#allocation37_spill] sm:$0xff] %v6169_v7  ;;  %v6172_v62 = vld [vmem:[#allocation3 + $0x318] sm:$0xff]  ;;  %v6175_v10 = vld [vmem:[#allocation3 + $0x300] sm:$0xff] }
 0x911   :  { %7592 = vst [vmem:[#allocation28_spill] sm:$0xff] %v6172_v62  ;;  %7593 = vst [vmem:[#allocation80_spill] sm:$0xff] %v6175_v10 }
 0x913   :  { %2510 = vmatpush1.bf16.msra.mxu1 %v7572_v36  ;;  %2551 = vmatpush1.bf16.msra.mxu0 %v7573_v23  ;;  %v6178_v36 = vld [vmem:[#allocation3 + $0x310] sm:$0xff]  ;;  %v6181_v23 = vld [vmem:[#allocation3 + $0x348] sm:$0xff] }
 0x914   :  { %2511 = vmatprep.subr.bf16.mxu1 %v7574_v45  ;;  %2552 = vmatprep.subr.bf16.mxu0 %v7575_v46  ;;  %7594 = vst [vmem:[#allocation82_spill] sm:$0xff] %v6178_v36  ;;  %7595 = vst [vmem:[#allocation83_spill] sm:$0xff] %v6181_v23  ;;  %v6184_v45 = vld [vmem:[#allocation3 + $0x358] sm:$0xff]  ;;  %v6187_v46 = vld [vmem:[#allocation3 + $0x340] sm:$0xff] }
 0x915   :  { %7596 = vst [vmem:[#allocation81_spill] sm:$0xff] %v6184_v45  ;;  %7597 = vst [vmem:[#allocation30_spill] sm:$0xff] %v6187_v46 }
 0x917   :  { %2512 = vmatpush1.bf16.msra.mxu1 %v7576_v44  ;;  %2553 = vmatpush1.bf16.msra.mxu0 %v7577_v37  ;;  %v6190_v44 = vld [vmem:[#allocation3 + $0x350] sm:$0xff]  ;;  %v6193_v37 = vld [vmem:[#allocation3 + $0x388] sm:$0xff] }
 0x918   :  { %2513 = vmatprep.subr.bf16.mxu1 %v7578_v6  ;;  %2554 = vmatprep.subr.bf16.mxu0 %v7579_v41  ;;  %7598 = vst [vmem:[#allocation40_spill] sm:$0xff] %v6190_v44  ;;  %7599 = vst [vmem:[#allocation42_spill] sm:$0xff] %v6193_v37  ;;  %v6196_v6 = vld [vmem:[#allocation3 + $0x398] sm:$0xff]  ;;  %v6199_v41 = vld [vmem:[#allocation3 + $0x380] sm:$0xff] }
 0x919   :  { %7600 = vst [vmem:[#allocation43_spill] sm:$0xff] %v6196_v6  ;;  %7601 = vst [vmem:[#allocation41_spill] sm:$0xff] %v6199_v41 }
 0x91b   :  { %2514 = vmatpush1.bf16.msra.mxu1 %v7580_v50  ;;  %2555 = vmatpush1.bf16.msra.mxu0 %v7491_v34  ;;  %v6079_v34 = vld [vmem:[#allocation3 + $0x100] sm:$0xff]  ;;  %v6202_v50 = vld [vmem:[#allocation3 + $0x390] sm:$0xff] }
 0x91c   :  { %2515 = vmatprep.subr.bf16.mxu1 %v7492_v47  ;;  %2556 = vmatprep.subr.bf16.mxu0 %v7493_v30  ;;  %v6052_v30 = vld [vmem:[#allocation3 + $0x98] sm:$0xff]  ;;  %v6082_v47 = vld [vmem:[#allocation3 + $0x110] sm:$0xff]  ;;  %7602 = vst [vmem:[#allocation115_spill] sm:$0xff] %v6202_v50 }
 0x91f   :  { %2516 = vmatpush1.bf16.msra.mxu1 %v7494_v40  ;;  %2557 = vmatpush1.bf16.msra.mxu0 %v7495_v3  ;;  %v6055_v40 = vld [vmem:[#allocation3 + $0x80] sm:$0xff]  ;;  %v6058_v3 = vld [vmem:[#allocation3 + $0x90] sm:$0xff] }
 0x920   :  { %2517 = vmatprep.subr.bf16.mxu1 %v7496_v58  ;;  %2558 = vmatprep.subr.bf16.mxu0 %v7497_v35  ;;  %v6061_v58 = vld [vmem:[#allocation3 + $0xc8] sm:$0xff]  ;;  %v6064_v35 = vld [vmem:[#allocation3 + $0xd8] sm:$0xff] }
 0x923   :  { %2518 = vmatpush1.bf16.msra.mxu1 %v7498_v22  ;;  %2559 = vmatpush1.bf16.msra.mxu0 %v7499_v33  ;;  %v6067_v22 = vld [vmem:[#allocation3 + $0xc0] sm:$0xff]  ;;  %v6070_v33 = vld [vmem:[#allocation3 + $0xd0] sm:$0xff] }
 0x924   :  { %2519 = vmatprep.subr.bf16.mxu1 %v7500_v32  ;;  %2560 = vmatprep.subr.bf16.mxu0 %v7501_v52  ;;  %v6073_v32 = vld [vmem:[#allocation3 + $0x108] sm:$0xff]  ;;  %v6076_v52 = vld [vmem:[#allocation3 + $0x118] sm:$0xff] }
 0x927   :  { %2520 = vmatpush1.bf16.msra.mxu1 %v5693_v49  ;;  %2561 = vmatpush1.bf16.msra.mxu0 %v5696_v27  ;;  %v6031_v27 = vld [vmem:[#allocation3] sm:$0xff]  ;;  %v6040_v49 = vld [vmem:[#allocation3 + $0x58] sm:$0xff] }
 0x928   :  { %2521 = vmatprep.subr.bf16.mxu1 %v5699_v54  ;;  %2562 = vmatprep.subr.bf16.mxu0 %v5702_v59  ;;  %v6034_v54 = vld [vmem:[#allocation3 + $0x10] sm:$0xff]  ;;  %v6037_v59 = vld [vmem:[#allocation3 + $0x48] sm:$0xff] }
 0x92b   :  { %2522 = vmatpush1.bf16.msra.mxu1 %v7581_v48  ;;  %2563 = vmatpush1.bf16.msra.mxu0 %v7582_v19  ;;  %v6205_v48 = vld [vmem:[#allocation3 + $0x3c8] sm:$0xff]  ;;  %v6208_v19 = vld [vmem:[#allocation3 + $0x3d8] sm:$0xff] }
 0x92c   :  { %2641 = vmatprep.subr.bf16.mxu1 %v6023_v15  ;;  %2682 = vmatprep.subr.bf16.mxu0 %v6026_v14  ;;  %7603 = vst [vmem:[#allocation76_spill] sm:$0xff] %v6205_v48  ;;  %7604 = vst [vmem:[#allocation78_spill] sm:$0xff] %v6208_v19 }
 0x92e   :  { %2524 = vmatmul.mubr.bf16.vlgmr.msra.gmra.mrb[76].mxu1 %v5957_v8  ;;  %2565 = vmatmul.mubr.bf16.vlgmr.msra.gmra.mrb[84].mxu0 %v5957_v8  ;;  %v6142_v8 = vld [vmem:[#allocation3 + $0x250] sm:$0xff] }
 0x92f   :  { %2642 = vmatpush1.bf16.msra.mxu1 %v6031_v27  ;;  %2683 = vmatpush1.bf16.msra.mxu0 %v6034_v54 }
 0x930   :  { %2643 = vmatprep.subr.bf16.mxu1 %v6037_v59  ;;  %2684 = vmatprep.subr.bf16.mxu0 %v6040_v49 }
 0x933   :  { %2644 = vmatpush1.bf16.msra.mxu1 %v6043_v39  ;;  %2685 = vmatpush1.bf16.msra.mxu0 %v6046_v1 }
 0x934   :  { %2645 = vmatprep.subr.bf16.mxu1 %v6049_v4  ;;  %2686 = vmatprep.subr.bf16.mxu0 %v6052_v30 }
 0x937   :  { %2646 = vmatpush1.bf16.msra.mxu1 %v6055_v40  ;;  %2687 = vmatpush1.bf16.msra.mxu0 %v6058_v3 }
 0x938   :  { %2647 = vmatprep.subr.bf16.mxu1 %v6061_v58  ;;  %2688 = vmatprep.subr.bf16.mxu0 %v6064_v35 }
 0x93b   :  { %2648 = vmatpush1.bf16.msra.mxu1 %v6067_v22  ;;  %2689 = vmatpush1.bf16.msra.mxu0 %v6070_v33 }
 0x93c   :  { %2649 = vmatprep.subr.bf16.mxu1 %v6073_v32  ;;  %2690 = vmatprep.subr.bf16.mxu0 %v6076_v52 }
 0x93f   :  { %2650 = vmatpush1.bf16.msra.mxu1 %v6079_v34  ;;  %2691 = vmatpush1.bf16.msra.mxu0 %v6082_v47 }
 0x940   :  { %2651 = vmatprep.subr.bf16.mxu1 %v6085_v57  ;;  %2692 = vmatprep.subr.bf16.mxu0 %v6088_v12 }
 0x943   :  { %2652 = vmatpush1.bf16.msra.mxu1 %v6091_v13  ;;  %2693 = vmatpush1.bf16.msra.mxu0 %v6094_v38 }
 0x944   :  { %2653 = vmatprep.subr.bf16.mxu1 %v6097_v21  ;;  %2694 = vmatprep.subr.bf16.mxu0 %v6100_v56 }
 0x947   :  { %2654 = vmatpush1.bf16.msra.mxu1 %v6103_v24  ;;  %2695 = vmatpush1.bf16.msra.mxu0 %v6106_v61 }
 0x948   :  { %2655 = vmatprep.subr.bf16.mxu1 %v6109_v63  ;;  %2696 = vmatprep.subr.bf16.mxu0 %v6112_v0 }
 0x94b   :  { %2656 = vmatpush1.bf16.msra.mxu1 %v6115_v5  ;;  %2697 = vmatpush1.bf16.msra.mxu0 %v6118_v16 }
 0x94c   :  { %2657 = vmatprep.subr.bf16.mxu1 %v6121_v17  ;;  %2698 = vmatprep.subr.bf16.mxu0 %v6124_v55 }
 0x94f   :  { %2658 = vmatpush1.bf16.msra.mxu1 %v6127_v18  ;;  %2699 = vmatpush1.bf16.msra.mxu0 %v6130_v60 }
 0x950   :  { %2659 = vmatprep.subr.bf16.mxu1 %v6133_v2  ;;  %2700 = vmatprep.subr.bf16.mxu0 %v6136_v9 }
 0x953   :  { %2660 = vmatpush1.bf16.msra.mxu1 %v6139_v31  ;;  %2701 = vmatpush1.bf16.msra.mxu0 %v6142_v8 }
 0x954   :  { %2661 = vmatprep.subr.bf16.mxu1 %v6145_v11  ;;  %2702 = vmatprep.subr.bf16.mxu0 %v6148_v28 }
 0x957   :  { %2662 = vmatpush1.bf16.msra.mxu1 %v6151_v20  ;;  %2703 = vmatpush1.bf16.msra.mxu0 %v6154_v29 }
 0x958   :  { %2663 = vmatprep.subr.bf16.mxu1 %v6157_v25  ;;  %2704 = vmatprep.subr.bf16.mxu0 %v6160_v26 }
 0x95b   :  { %2664 = vmatpush1.bf16.msra.mxu1 %v6163_v43  ;;  %2705 = vmatpush1.bf16.msra.mxu0 %v6166_v42 }
 0x95c   :  { %2665 = vmatprep.subr.bf16.mxu1 %v6169_v7  ;;  %2706 = vmatprep.subr.bf16.mxu0 %v6172_v62 }
 0x95f   :  { %2666 = vmatpush1.bf16.msra.mxu1 %v6175_v10  ;;  %2707 = vmatpush1.bf16.msra.mxu0 %v6178_v36  ;;  %v7610_v36 = vld [vmem:[#allocation50_spill] sm:$0xff] }
 0x960   :  { %2667 = vmatprep.subr.bf16.mxu1 %v6181_v23  ;;  %2708 = vmatprep.subr.bf16.mxu0 %v6184_v45 }
 0x963   :  { %2668 = vmatpush1.bf16.msra.mxu1 %v6187_v46  ;;  %2709 = vmatpush1.bf16.msra.mxu0 %v6190_v44  ;;  %v7609_v46 = vld [vmem:[#allocation48_spill] sm:$0xff] }
 0x964   :  { %2669 = vmatprep.subr.bf16.mxu1 %v6193_v37  ;;  %2710 = vmatprep.subr.bf16.mxu0 %v6196_v6  ;;  %v6211_v37 = vld [vmem:[#allocation3 + $0x3c0] sm:$0xff]  ;;  %v6214_v6 = vld [vmem:[#allocation3 + $0x3d0] sm:$0xff] }
 0x965   :  { %7605 = vst [vmem:[#allocation79_spill] sm:$0xff] %v6211_v37  ;;  %7606 = vst [vmem:[#allocation77_spill] sm:$0xff] %v6214_v6 }
 0x967   :  { %2670 = vmatpush1.bf16.msra.mxu1 %v6199_v41  ;;  %2711 = vmatpush1.bf16.msra.mxu0 %v6202_v50  ;;  %v6217_v41 = vld [vmem:[#allocation3 + $0x28] sm:$0xff]  ;;  %v6220_v50 = vld [vmem:[#allocation3 + $0x38] sm:$0xff] }
 0x968   :  { %2671 = vmatprep.subr.bf16.mxu1 %v6205_v48  ;;  %2712 = vmatprep.subr.bf16.mxu0 %v6208_v19  ;;  %7607 = vst [vmem:[#allocation114_spill] sm:$0xff] %v6217_v41  ;;  %7608 = vst [vmem:[#allocation116_spill] sm:$0xff] %v6220_v50 }
 0x96b   :  { %2672 = vmatpush1.bf16.msra.mxu1 %v6211_v37  ;;  %2713 = vmatpush1.bf16.msra.mxu0 %v6214_v6 }
 0x96c   :  { %2723 = vmatprep.subr.bf16.mxu1 %v6217_v41  ;;  %2764 = vmatprep.subr.bf16.mxu0 %v6220_v50  ;;  %v7611_v41 = vld [vmem:[#allocation51_spill] sm:$0xff]  ;;  %v7612_v50 = vld [vmem:[#allocation49_spill] sm:$0xff] }
 0x9c1   :  { %v2443_v48 = vpop.f32.mrb[72].mxu1  ;;  %v2484_v44 = vpop.f32.mrb[80].mxu0 }
 0x9c2   :  { %v2577_v19 = vadd.f32 %v2443_v48, %v7609_v46  ;;  %v2445_v45 = vpop.f32.mrb[73].mxu1  ;;  %v2486_v23 = vpop.f32.mrb[81].mxu0  ;;  %v2579_v29 = vadd.f32 %v2484_v44, %v7612_v50 }
 0x9c3   :  { %v2578_v37 = vadd.f32 %v2445_v45, %v7610_v36  ;;  %v2447_v10 = vpop.f32.mrb[74].mxu1  ;;  %v2488_v62 = vpop.f32.mrb[82].mxu0  ;;  %v2580_v26 = vadd.f32 %v2486_v23, %v7611_v41  ;;  %v7617_v41 = vld [vmem:[#allocation68_spill] sm:$0xff] }
 0x9c4   :  { %v3387_v7 = vmul.f32 -1.442695, %v2577_v19  ;;  %v2448_v6 = vpop.f32.mrb[75].mxu1  ;;  %v2489_v42 = vpop.f32.mrb[83].mxu0 }
 0x9c5   :  { %v3388_v43 = vmul.f32 -1.442695, %v2578_v37  ;;  %v3389_v25 = vmul.f32 -1.442695, %v2580_v26 }
 0x9c6   :  { %3689 = vpow2.f32 %v3387_v7 }
 0x9c7   :  { %3691 = vpow2.f32 %v3388_v43  ;;  %v7613_v43 = vld [vmem:[#allocation160_spill] sm:$0xff] }
 0x9c8   :  { %3693 = vpow2.f32 %v3389_v25 }
 0x9c9   :  { %3695 = vtanh.f32 %v2579_v29  ;;  %v7615_v29 = vld [vmem:[#allocation161_spill] sm:$0xff] }
 0x9d0   :  { %v3690_v20 = vpop.eup %3689 }
 0x9d1   :  { %v3692_v28 = vpop.eup %3691  ;;  %v2592_v46 = vadd.f32 1.0, %v3690_v20 }
 0x9d2   :  { %v2598_v48 = vadd.f32 1.0, %v3692_v28  ;;  %v3694_v62 = vpop.eup %3693 }
 0x9d3   :  { %3697 = vrcp.f32 %v2592_v46  ;;  %v3696_v10 = vpop.eup %3695  ;;  %v2605_v7 = vadd.f32 1.0, %v3694_v62 }
 0x9d4   :  { %3699 = vrcp.f32 %v2598_v48  ;;  %v7618_v48 = vld [vmem:[#allocation70_spill] sm:$0xff] }
 0x9d5   :  { %3701 = vrcp.f32 %v2605_v7 }
 0x9dd   :  { %v3698_v36 = vpop.eup %3697 }
 0x9de   :  { %v3700_v42 = vpop.eup %3699  ;;  %v2609_v45 = vmul.f32 %v3698_v36, %v3696_v10 }
 0x9df   :  { %v2608_v37 = vmul.f32 %v3700_v42, %v7613_v43  ;;  %v3702_v26 = vpop.eup %3701 }
 0x9e1   :  { %v6228_v23 = vadd.f32 %v2609_v45, %v2608_v37  ;;  %v7619_v37 = vld [vmem:[#allocation71_spill] sm:$0xff] }
 0x9e3   :  { %7614 = vst [vmem:[#allocation117_spill] sm:$0xff] %v6228_v23  ;;  %3703 = vtanh.f32 %v6228_v23 }
 0x9ed   :  { %v3704_v20 = vpop.eup %3703 }
 0x9ee   :  { %v2612_v25 = vmul.f32 %v3704_v20, %v3702_v26 }
 0x9f0   :  { %v6232_v28 = vadd.f32 %v2612_v25, %v7615_v29  ;;  %v7620_v29 = vld [vmem:[#allocation69_spill] sm:$0xff] }
 0x9f2   :  { %7616 = vst [vmem:[#allocation119_spill] sm:$0xff] %v6232_v28 }
 0xa01   :  { %v2525_v44 = vpop.f32.mrb[76].mxu1  ;;  %v2566_v6 = vpop.f32.mrb[84].mxu0 }
 0xa02   :  { %v2585_v50 = vadd.f32 %v2525_v44, %v7617_v41  ;;  %v2527_v19 = vpop.f32.mrb[77].mxu1  ;;  %v2568_v46 = vpop.f32.mrb[85].mxu0  ;;  %v2587_v28 = vadd.f32 %v2566_v6, %v7620_v29  ;;  %v6270_v29 = vld [vmem:[#allocation3 + $0xb8] sm:$0xff] }
 0xa03   :  { %v2586_v62 = vadd.f32 %v2527_v19, %v7618_v48  ;;  %v2529_v10 = vpop.f32.mrb[78].mxu1  ;;  %v2570_v36 = vpop.f32.mrb[86].mxu0  ;;  %v2588_v26 = vadd.f32 %v2568_v46, %v7619_v37  ;;  %v6261_v37 = vld [vmem:[#allocation3 + $0x60] sm:$0xff] }
 0xa04   :  { %v3390_v42 = vmul.f32 -1.442695, %v2585_v50  ;;  %v2530_v45 = vpop.f32.mrb[79].mxu1  ;;  %v2571_v7 = vpop.f32.mrb[87].mxu0 }
 0xa05   :  { %v3391_v43 = vmul.f32 -1.442695, %v2586_v62  ;;  %v3392_v20 = vmul.f32 -1.442695, %v2588_v26  ;;  %v6245_v7 = vpack.c.bf16 %v2612_v25, %v2612_v25  ;;  %v6258_v25 = vld [vmem:[#allocation3 + $0x78] sm:$0xff]  ;;  %v6264_v26 = vld [vmem:[#allocation3 + $0x70] sm:$0xff] }
 0xa06   :  { %3705 = vpow2.f32 %v3390_v42 }
 0xa07   :  { %3707 = vpow2.f32 %v3391_v43  ;;  %v6252_v43 = vld [vmem:[#allocation3 + $0x30] sm:$0xff] }
 0xa08   :  { %3709 = vpow2.f32 %v3392_v20  ;;  %v6267_v20 = vld [vmem:[#allocation3 + $0xa8] sm:$0xff] }
 0xa09   :  { %3711 = vtanh.f32 %v2587_v28 }
 0xa10   :  { %v3706_v23 = vpop.eup %3705 }
 0xa11   :  { %v3708_v11 = vpop.eup %3707  ;;  %v2616_v44 = vadd.f32 1.0, %v3706_v23 }
 0xa12   :  { %v2622_v41 = vadd.f32 1.0, %v3708_v11  ;;  %v3710_v19 = vpop.eup %3709 }
 0xa13   :  { %3713 = vrcp.f32 %v2616_v44  ;;  %v3712_v50 = vpop.eup %3711  ;;  %v2629_v36 = vadd.f32 1.0, %v3710_v19  ;;  %v6273_v44 = vld [vmem:[#allocation3 + $0xa0] sm:$0xff]  ;;  %v6279_v19 = vld [vmem:[#allocation3 + $0xe8] sm:$0xff] }
 0xa14   :  { %3715 = vrcp.f32 %v2622_v41  ;;  %v6276_v41 = vld [vmem:[#allocation3 + $0xb0] sm:$0xff] }
 0xa15   :  { %3717 = vrcp.f32 %v2629_v36  ;;  %v6294_v36 = vld [vmem:[#allocation3 + $0x138] sm:$0xff] }
 0xa16   :  { %7621 = vst [vmem:[#allocation118_spill] sm:$0xff] %v6294_v36 }
 0xa1d   :  { %v3714_v48 = vpop.eup %3713 }
 0xa1e   :  { %v3716_v10 = vpop.eup %3715  ;;  %v2633_v62 = vmul.f32 %v3714_v48, %v3712_v50  ;;  %v6282_v50 = vld [vmem:[#allocation3 + $0xf8] sm:$0xff]  ;;  %v6285_v48 = vld [vmem:[#allocation3 + $0xe0] sm:$0xff] }
 0xa1f   :  { %v2632_v42 = vmul.f32 %v3716_v10, %v5951_v53  ;;  %v3718_v6 = vpop.eup %3717  ;;  %v6249_v53 = vld [vmem:[#allocation3 + $0x20] sm:$0xff]  ;;  %v6288_v10 = vld [vmem:[#allocation3 + $0xf0] sm:$0xff] }
 0xa21   :  { %v6239_v46 = vadd.f32 %v2633_v62, %v2632_v42  ;;  %v6291_v62 = vld [vmem:[#allocation3 + $0x128] sm:$0xff]  ;;  %v6297_v42 = vld [vmem:[#allocation3 + $0x120] sm:$0xff] }
 0xa22   :  { %7622 = vst [vmem:[#allocation120_spill] sm:$0xff] %v6297_v42 }
 0xa23   :  { %3719 = vtanh.f32 %v6239_v46 }
 0xa2d   :  { %v3720_v23 = vpop.eup %3719 }
 0xa2e   :  { %v2636_v45 = vmul.f32 %v3720_v23, %v3718_v6  ;;  %v6300_v6 = vld [vmem:[#allocation3 + $0x130] sm:$0xff]  ;;  %v6303_v23 = vld [vmem:[#allocation3 + $0x168] sm:$0xff] }
 0xa2f   :  { %7623 = vst [vmem:[#allocation121_spill] sm:$0xff] %v6300_v6  ;;  %7624 = vst [vmem:[#allocation123_spill] sm:$0xff] %v6303_v23 }
 0xa30   :  { %v6243_v11 = vadd.f32 %v2636_v45, %v5955_v51  ;;  %v2640_v28 = vpack.c.bf16 %v2636_v45, %v2636_v45  ;;  %v6255_v51 = vld [vmem:[#allocation3 + $0x68] sm:$0xff]  ;;  %v6306_v45 = vld [vmem:[#allocation3 + $0x178] sm:$0xff] }
 0xa31   :  { %7625 = vst [vmem:[#allocation122_spill] sm:$0xff] %v6306_v45 }
 0xa32   :  { %2673 = vmatprep.mubr.bf16.mxu1 %v2640_v28  ;;  %2714 = vmatprep.mubr.bf16.mxu0 %v2640_v28 }
 0xa33   :  { %2674 = vmatmul.mubr.bf16.vlgmr.msra.gmra.mrb[80].mxu1 %v6245_v7  ;;  %2715 = vmatmul.mubr.bf16.vlgmr.msra.gmra.mrb[88].mxu0 %v6245_v7 }
 0xa34   :  { %2724 = vmatpush1.bf16.msra.mxu1 %v6249_v53  ;;  %2765 = vmatpush1.bf16.msra.mxu0 %v6252_v43 }
 0xa35   :  { %2755 = vmatprep.mubr.bf16.mxu1 %v2640_v28  ;;  %2796 = vmatprep.mubr.bf16.mxu0 %v2640_v28  ;;  %v6309_v28 = vld [vmem:[#allocation3 + $0x160] sm:$0xff] }
 0xa36   :  { %2725 = vmatprep.subr.bf16.mxu1 %v6255_v51  ;;  %2766 = vmatprep.subr.bf16.mxu0 %v6258_v25  ;;  %7626 = vst [vmem:[#allocation124_spill] sm:$0xff] %v6309_v28 }
 0xa38   :  { %2726 = vmatpush1.bf16.msra.mxu1 %v6261_v37  ;;  %2767 = vmatpush1.bf16.msra.mxu0 %v6264_v26 }
 0xa39   :  { %2727 = vmatprep.subr.bf16.mxu1 %v6267_v20  ;;  %2768 = vmatprep.subr.bf16.mxu0 %v6270_v29 }
 0xa3c   :  { %2728 = vmatpush1.bf16.msra.mxu1 %v6273_v44  ;;  %2769 = vmatpush1.bf16.msra.mxu0 %v6276_v41 }
 0xa3d   :  { %2729 = vmatprep.subr.bf16.mxu1 %v6279_v19  ;;  %2770 = vmatprep.subr.bf16.mxu0 %v6282_v50 }
 0xa40   :  { %2730 = vmatpush1.bf16.msra.mxu1 %v6285_v48  ;;  %2771 = vmatpush1.bf16.msra.mxu0 %v6288_v10 }
 0xa41   :  { %2731 = vmatprep.subr.bf16.mxu1 %v6291_v62  ;;  %2772 = vmatprep.subr.bf16.mxu0 %v6294_v36  ;;  %v6312_v36 = vld [vmem:[#allocation3 + $0x170] sm:$0xff] }
 0xa42   :  { %7627 = vst [vmem:[#allocation145_spill] sm:$0xff] %v6312_v36 }
 0xa44   :  { %2732 = vmatpush1.bf16.msra.mxu1 %v6297_v42  ;;  %2773 = vmatpush1.bf16.msra.mxu0 %v6300_v6  ;;  %v6315_v42 = vld [vmem:[#allocation3 + $0x1a8] sm:$0xff]  ;;  %v6318_v6 = vld [vmem:[#allocation3 + $0x1b8] sm:$0xff] }
 0xa45   :  { %2733 = vmatprep.subr.bf16.mxu1 %v6303_v23  ;;  %2774 = vmatprep.subr.bf16.mxu0 %v6306_v45  ;;  %7628 = vst [vmem:[#allocation147_spill] sm:$0xff] %v6315_v42  ;;  %7629 = vst [vmem:[#allocation146_spill] sm:$0xff] %v6318_v6  ;;  %v6321_v23 = vld [vmem:[#allocation3 + $0x1a0] sm:$0xff]  ;;  %v6324_v45 = vld [vmem:[#allocation3 + $0x1b0] sm:$0xff] }
 0xa46   :  { %7630 = vst [vmem:[#allocation148_spill] sm:$0xff] %v6321_v23  ;;  %7631 = vst [vmem:[#allocation149_spill] sm:$0xff] %v6324_v45 }
 0xa48   :  { %2734 = vmatpush1.bf16.msra.mxu1 %v6309_v28  ;;  %2775 = vmatpush1.bf16.msra.mxu0 %v6312_v36  ;;  %v6327_v28 = vld [vmem:[#allocation3 + $0x1e8] sm:$0xff]  ;;  %v6330_v36 = vld [vmem:[#allocation3 + $0x1f8] sm:$0xff] }
 0xa49   :  { %2735 = vmatprep.subr.bf16.mxu1 %v6315_v42  ;;  %2776 = vmatprep.subr.bf16.mxu0 %v6318_v6  ;;  %7632 = vst [vmem:[#allocation151_spill] sm:$0xff] %v6327_v28  ;;  %7633 = vst [vmem:[#allocation150_spill] sm:$0xff] %v6330_v36  ;;  %v6333_v42 = vld [vmem:[#allocation3 + $0x1e0] sm:$0xff]  ;;  %v6336_v6 = vld [vmem:[#allocation3 + $0x1f0] sm:$0xff] }
 0xa4a   :  { %7634 = vst [vmem:[#allocation152_spill] sm:$0xff] %v6333_v42  ;;  %7635 = vst [vmem:[#allocation153_spill] sm:$0xff] %v6336_v6 }
 0xa4c   :  { %2736 = vmatpush1.bf16.msra.mxu1 %v6321_v23  ;;  %2777 = vmatpush1.bf16.msra.mxu0 %v6324_v45  ;;  %v6339_v23 = vld [vmem:[#allocation3 + $0x228] sm:$0xff]  ;;  %v6342_v45 = vld [vmem:[#allocation3 + $0x238] sm:$0xff] }
 0xa4d   :  { %2737 = vmatprep.subr.bf16.mxu1 %v6327_v28  ;;  %2778 = vmatprep.subr.bf16.mxu0 %v6330_v36  ;;  %7636 = vst [vmem:[#allocation155_spill] sm:$0xff] %v6339_v23  ;;  %7637 = vst [vmem:[#allocation154_spill] sm:$0xff] %v6342_v45  ;;  %v6345_v28 = vld [vmem:[#allocation3 + $0x220] sm:$0xff]  ;;  %v6348_v36 = vld [vmem:[#allocation3 + $0x230] sm:$0xff] }
 0xa4e   :  { %7638 = vst [vmem:[#allocation29_spill] sm:$0xff] %v6345_v28  ;;  %7639 = vst [vmem:[#allocation88_spill] sm:$0xff] %v6348_v36 }
 0xa50   :  { %2738 = vmatpush1.bf16.msra.mxu1 %v6333_v42  ;;  %2779 = vmatpush1.bf16.msra.mxu0 %v6336_v6  ;;  %v6351_v42 = vld [vmem:[#allocation3 + $0x268] sm:$0xff]  ;;  %v6354_v6 = vld [vmem:[#allocation3 + $0x278] sm:$0xff] }
 0xa51   :  { %2739 = vmatprep.subr.bf16.mxu1 %v6339_v23  ;;  %2780 = vmatprep.subr.bf16.mxu0 %v6342_v45  ;;  %7640 = vst [vmem:[#allocation90_spill] sm:$0xff] %v6351_v42  ;;  %7641 = vst [vmem:[#allocation31_spill] sm:$0xff] %v6354_v6  ;;  %v6357_v23 = vld [vmem:[#allocation3 + $0x260] sm:$0xff]  ;;  %v6360_v45 = vld [vmem:[#allocation3 + $0x270] sm:$0xff] }
 0xa52   :  { %7642 = vst [vmem:[#allocation91_spill] sm:$0xff] %v6357_v23  ;;  %7643 = vst [vmem:[#allocation89_spill] sm:$0xff] %v6360_v45 }
 0xa54   :  { %2740 = vmatpush1.bf16.msra.mxu1 %v6345_v28  ;;  %2781 = vmatpush1.bf16.msra.mxu0 %v6348_v36  ;;  %v6363_v28 = vld [vmem:[#allocation3 + $0x2a8] sm:$0xff]  ;;  %v6366_v36 = vld [vmem:[#allocation3 + $0x2b8] sm:$0xff] }
 0xa55   :  { %2741 = vmatprep.subr.bf16.mxu1 %v6351_v42  ;;  %2782 = vmatprep.subr.bf16.mxu0 %v6354_v6  ;;  %7644 = vst [vmem:[#allocation125_spill] sm:$0xff] %v6363_v28  ;;  %7645 = vst [vmem:[#allocation127_spill] sm:$0xff] %v6366_v36  ;;  %v6369_v42 = vld [vmem:[#allocation3 + $0x2a0] sm:$0xff]  ;;  %v6372_v6 = vld [vmem:[#allocation3 + $0x2b0] sm:$0xff] }
 0xa56   :  { %7646 = vst [vmem:[#allocation126_spill] sm:$0xff] %v6369_v42  ;;  %7647 = vst [vmem:[#allocation128_spill] sm:$0xff] %v6372_v6 }
 0xa58   :  { %2742 = vmatpush1.bf16.msra.mxu1 %v6357_v23  ;;  %2783 = vmatpush1.bf16.msra.mxu0 %v6360_v45  ;;  %v6375_v23 = vld [vmem:[#allocation3 + $0x2e8] sm:$0xff]  ;;  %v6378_v45 = vld [vmem:[#allocation3 + $0x2f8] sm:$0xff] }
 0xa59   :  { %2743 = vmatprep.subr.bf16.mxu1 %v6363_v28  ;;  %2784 = vmatprep.subr.bf16.mxu0 %v6366_v36  ;;  %7648 = vst [vmem:[#allocation129_spill] sm:$0xff] %v6375_v23  ;;  %7649 = vst [vmem:[#allocation131_spill] sm:$0xff] %v6378_v45  ;;  %v6381_v28 = vld [vmem:[#allocation3 + $0x2e0] sm:$0xff]  ;;  %v6384_v36 = vld [vmem:[#allocation3 + $0x2f0] sm:$0xff] }
 0xa5a   :  { %7650 = vst [vmem:[#allocation130_spill] sm:$0xff] %v6381_v28  ;;  %7651 = vst [vmem:[#allocation132_spill] sm:$0xff] %v6384_v36 }
 0xa5c   :  { %2744 = vmatpush1.bf16.msra.mxu1 %v6369_v42  ;;  %2785 = vmatpush1.bf16.msra.mxu0 %v6372_v6  ;;  %v6387_v42 = vld [vmem:[#allocation3 + $0x328] sm:$0xff]  ;;  %v6390_v6 = vld [vmem:[#allocation3 + $0x338] sm:$0xff] }
 0xa5d   :  { %2745 = vmatprep.subr.bf16.mxu1 %v6375_v23  ;;  %2786 = vmatprep.subr.bf16.mxu0 %v6378_v45  ;;  %7652 = vst [vmem:[#allocation162_spill] sm:$0xff] %v6387_v42  ;;  %7653 = vst [vmem:[#allocation166_spill] sm:$0xff] %v6390_v6  ;;  %v6393_v23 = vld [vmem:[#allocation3 + $0x320] sm:$0xff]  ;;  %v6396_v45 = vld [vmem:[#allocation3 + $0x330] sm:$0xff] }
 0xa5e   :  { %7654 = vst [vmem:[#allocation169_spill] sm:$0xff] %v6393_v23  ;;  %7655 = vst [vmem:[#allocation171_spill] sm:$0xff] %v6396_v45 }
 0xa60   :  { %2746 = vmatpush1.bf16.msra.mxu1 %v6381_v28  ;;  %2787 = vmatpush1.bf16.msra.mxu0 %v6384_v36  ;;  %v6399_v28 = vld [vmem:[#allocation3 + $0x368] sm:$0xff]  ;;  %v6402_v36 = vld [vmem:[#allocation3 + $0x378] sm:$0xff] }
 0xa61   :  { %2747 = vmatprep.subr.bf16.mxu1 %v6387_v42  ;;  %2788 = vmatprep.subr.bf16.mxu0 %v6390_v6  ;;  %7656 = vst [vmem:[#allocation170_spill] sm:$0xff] %v6399_v28  ;;  %7657 = vst [vmem:[#allocation172_spill] sm:$0xff] %v6402_v36  ;;  %v6405_v42 = vld [vmem:[#allocation3 + $0x360] sm:$0xff]  ;;  %v6408_v6 = vld [vmem:[#allocation3 + $0x370] sm:$0xff] }
 0xa62   :  { %7658 = vst [vmem:[#allocation173_spill] sm:$0xff] %v6405_v42  ;;  %7659 = vst [vmem:[#allocation174_spill] sm:$0xff] %v6408_v6 }
 0xa64   :  { %2748 = vmatpush1.bf16.msra.mxu1 %v6393_v23  ;;  %2789 = vmatpush1.bf16.msra.mxu0 %v6396_v45  ;;  %v6411_v23 = vld [vmem:[#allocation3 + $0x3a8] sm:$0xff]  ;;  %v6414_v45 = vld [vmem:[#allocation3 + $0x3b8] sm:$0xff] }
 0xa65   :  { %2749 = vmatprep.subr.bf16.mxu1 %v6399_v28  ;;  %2790 = vmatprep.subr.bf16.mxu0 %v6402_v36  ;;  %7660 = vst [vmem:[#allocation175_spill] sm:$0xff] %v6411_v23  ;;  %7661 = vst [vmem:[#allocation176_spill] sm:$0xff] %v6414_v45  ;;  %v6417_v28 = vld [vmem:[#allocation3 + $0x3a0] sm:$0xff]  ;;  %v6420_v36 = vld [vmem:[#allocation3 + $0x3b0] sm:$0xff] }
 0xa68   :  { %2750 = vmatpush1.bf16.msra.mxu1 %v6405_v42  ;;  %2791 = vmatpush1.bf16.msra.mxu0 %v6408_v6  ;;  %v6423_v42 = vld [vmem:[#allocation3 + $0x3e8] sm:$0xff]  ;;  %v6426_v6 = vld [vmem:[#allocation3 + $0x3f8] sm:$0xff] }
 0xa69   :  { %2751 = vmatprep.subr.bf16.mxu1 %v6411_v23  ;;  %2792 = vmatprep.subr.bf16.mxu0 %v6414_v45  ;;  %v6429_v23 = vld [vmem:[#allocation3 + $0x3e0] sm:$0xff]  ;;  %v6432_v45 = vld [vmem:[#allocation3 + $0x3f0] sm:$0xff] }
 0xa6c   :  { %2752 = vmatpush1.bf16.msra.mxu1 %v6417_v28  ;;  %2793 = vmatpush1.bf16.msra.mxu0 %v6420_v36 }
 0xa6d   :  { %2753 = vmatprep.subr.bf16.mxu1 %v6423_v42  ;;  %2794 = vmatprep.subr.bf16.mxu0 %v6426_v6 }
 0xa70   :  { %2754 = vmatpush1.bf16.msra.mxu1 %v6429_v23  ;;  %2795 = vmatpush1.bf16.msra.mxu0 %v6432_v45 }
 0xa71   :  { %2873 = vmatprep.subr.bf16.mxu1 %v6023_v15  ;;  %2914 = vmatprep.subr.bf16.mxu0 %v6026_v14  ;;  %v7662_v15 = vld [vmem:[#allocation163_spill] sm:$0xff]  ;;  %v7663_v14 = vld [vmem:[#allocation164_spill] sm:$0xff] }
 0xa73   :  { %2756 = vmatmul.mubr.bf16.vlgmr.msra.gmra.mrb[84].mxu1 %v6245_v7  ;;  %2797 = vmatmul.mubr.bf16.vlgmr.msra.gmra.mrb[92].mxu0 %v6245_v7  ;;  %v7690_v7 = vld [vmem:[#allocation55_spill] sm:$0xff] }
 0xa74   :  { %2874 = vmatpush1.bf16.msra.mxu1 %v6031_v27  ;;  %2915 = vmatpush1.bf16.msra.mxu0 %v6034_v54  ;;  %v7664_v27 = vld [vmem:[#allocation165_spill] sm:$0xff]  ;;  %v7665_v54 = vld [vmem:[#allocation167_spill] sm:$0xff] }
 0xa75   :  { %2875 = vmatprep.subr.bf16.mxu1 %v6037_v59  ;;  %2916 = vmatprep.subr.bf16.mxu0 %v6040_v49  ;;  %v7666_v59 = vld [vmem:[#allocation168_spill] sm:$0xff] }
 0xa76   :  { %v7667_v49 = vld [vmem:[#allocation36_spill] sm:$0xff] }
 0xa78   :  { %2876 = vmatpush1.bf16.msra.mxu1 %v6043_v39  ;;  %2917 = vmatpush1.bf16.msra.mxu0 %v6046_v1  ;;  %v7668_v39 = vld [vmem:[#allocation38_spill] sm:$0xff]  ;;  %v7669_v1 = vld [vmem:[#allocation39_spill] sm:$0xff] }
 0xa79   :  { %2877 = vmatprep.subr.bf16.mxu1 %v6049_v4  ;;  %2918 = vmatprep.subr.bf16.mxu0 %v6052_v30  ;;  %v7670_v4 = vld [vmem:[#allocation37_spill] sm:$0xff]  ;;  %v7671_v30 = vld [vmem:[#allocation28_spill] sm:$0xff] }
 0xa7c   :  { %2878 = vmatpush1.bf16.msra.mxu1 %v6055_v40  ;;  %2919 = vmatpush1.bf16.msra.mxu0 %v6058_v3  ;;  %v7672_v40 = vld [vmem:[#allocation80_spill] sm:$0xff]  ;;  %v7673_v3 = vld [vmem:[#allocation82_spill] sm:$0xff] }
 0xa7d   :  { %2879 = vmatprep.subr.bf16.mxu1 %v6061_v58  ;;  %2920 = vmatprep.subr.bf16.mxu0 %v6064_v35  ;;  %v7674_v58 = vld [vmem:[#allocation83_spill] sm:$0xff]  ;;  %v7675_v35 = vld [vmem:[#allocation81_spill] sm:$0xff] }
 0xa80   :  { %2880 = vmatpush1.bf16.msra.mxu1 %v6067_v22  ;;  %2921 = vmatpush1.bf16.msra.mxu0 %v6070_v33  ;;  %v7676_v22 = vld [vmem:[#allocation30_spill] sm:$0xff]  ;;  %v7677_v33 = vld [vmem:[#allocation40_spill] sm:$0xff] }
 0xa81   :  { %2881 = vmatprep.subr.bf16.mxu1 %v6073_v32  ;;  %2922 = vmatprep.subr.bf16.mxu0 %v6076_v52  ;;  %v7678_v32 = vld [vmem:[#allocation42_spill] sm:$0xff]  ;;  %v7679_v52 = vld [vmem:[#allocation43_spill] sm:$0xff] }
 0xa84   :  { %2882 = vmatpush1.bf16.msra.mxu1 %v6079_v34  ;;  %2923 = vmatpush1.bf16.msra.mxu0 %v6082_v47  ;;  %v7680_v34 = vld [vmem:[#allocation41_spill] sm:$0xff]  ;;  %v7681_v47 = vld [vmem:[#allocation115_spill] sm:$0xff] }
 0xa85   :  { %2883 = vmatprep.subr.bf16.mxu1 %v6085_v57  ;;  %2924 = vmatprep.subr.bf16.mxu0 %v6088_v12  ;;  %v7682_v57 = vld [vmem:[#allocation76_spill] sm:$0xff]  ;;  %v7683_v12 = vld [vmem:[#allocation78_spill] sm:$0xff] }
 0xa88   :  { %2884 = vmatpush1.bf16.msra.mxu1 %v6091_v13  ;;  %2925 = vmatpush1.bf16.msra.mxu0 %v6094_v38  ;;  %v7684_v13 = vld [vmem:[#allocation79_spill] sm:$0xff]  ;;  %v7685_v38 = vld [vmem:[#allocation77_spill] sm:$0xff] }
 0xa89   :  { %2885 = vmatprep.subr.bf16.mxu1 %v6097_v21  ;;  %2926 = vmatprep.subr.bf16.mxu0 %v6100_v56  ;;  %v7686_v21 = vld [vmem:[#allocation114_spill] sm:$0xff]  ;;  %v7687_v56 = vld [vmem:[#allocation116_spill] sm:$0xff] }
 0xa8c   :  { %2886 = vmatpush1.bf16.msra.mxu1 %v6103_v24  ;;  %2927 = vmatpush1.bf16.msra.mxu0 %v6106_v61 }
 0xa8d   :  { %2887 = vmatprep.subr.bf16.mxu1 %v6109_v63  ;;  %2928 = vmatprep.subr.bf16.mxu0 %v6112_v0  ;;  %v7688_v63 = vld [vmem:[#allocation52_spill] sm:$0xff] }
 0xa90   :  { %2888 = vmatpush1.bf16.msra.mxu1 %v6115_v5  ;;  %2929 = vmatpush1.bf16.msra.mxu0 %v6118_v16 }
 0xa91   :  { %2889 = vmatprep.subr.bf16.mxu1 %v6121_v17  ;;  %2930 = vmatprep.subr.bf16.mxu0 %v6124_v55  ;;  %v7689_v17 = vld [vmem:[#allocation54_spill] sm:$0xff] }
 0xa94   :  { %2890 = vmatpush1.bf16.msra.mxu1 %v6127_v18  ;;  %2931 = vmatpush1.bf16.msra.mxu0 %v6130_v60 }
 0xa95   :  { %2891 = vmatprep.subr.bf16.mxu1 %v6133_v2  ;;  %2932 = vmatprep.subr.bf16.mxu0 %v6136_v9 }
 0xa98   :  { %2892 = vmatpush1.bf16.msra.mxu1 %v6139_v31  ;;  %2933 = vmatpush1.bf16.msra.mxu0 %v6142_v8 }
 0xa99   :  { %2893 = vmatprep.subr.bf16.mxu1 %v7662_v15  ;;  %2934 = vmatprep.subr.bf16.mxu0 %v7663_v14 }
 0xa9c   :  { %2894 = vmatpush1.bf16.msra.mxu1 %v7664_v27  ;;  %2935 = vmatpush1.bf16.msra.mxu0 %v7665_v54  ;;  %v7691_v27 = vld [vmem:[#allocation53_spill] sm:$0xff] }
 0xa9d   :  { %2895 = vmatprep.subr.bf16.mxu1 %v7666_v59  ;;  %2936 = vmatprep.subr.bf16.mxu0 %v7667_v49 }
 0xaa0   :  { %2896 = vmatpush1.bf16.msra.mxu1 %v7668_v39  ;;  %2937 = vmatpush1.bf16.msra.mxu0 %v7669_v1 }
 0xaa1   :  { %2897 = vmatprep.subr.bf16.mxu1 %v7670_v4  ;;  %2938 = vmatprep.subr.bf16.mxu0 %v7671_v30 }
 0xaa4   :  { %2898 = vmatpush1.bf16.msra.mxu1 %v7672_v40  ;;  %2939 = vmatpush1.bf16.msra.mxu0 %v7673_v3 }
 0xaa5   :  { %2899 = vmatprep.subr.bf16.mxu1 %v7674_v58  ;;  %2940 = vmatprep.subr.bf16.mxu0 %v7675_v35 }
 0xaa8   :  { %2900 = vmatpush1.bf16.msra.mxu1 %v7676_v22  ;;  %2941 = vmatpush1.bf16.msra.mxu0 %v7677_v33  ;;  %v7692_v22 = vld [vmem:[#allocation117_spill] sm:$0xff] }
 0xaa9   :  { %2901 = vmatprep.subr.bf16.mxu1 %v7678_v32  ;;  %2942 = vmatprep.subr.bf16.mxu0 %v7679_v52 }
 0xaac   :  { %2902 = vmatpush1.bf16.msra.mxu1 %v7680_v34  ;;  %2943 = vmatpush1.bf16.msra.mxu0 %v7681_v47 }
 0xaad   :  { %2903 = vmatprep.subr.bf16.mxu1 %v7682_v57  ;;  %2944 = vmatprep.subr.bf16.mxu0 %v7683_v12  ;;  %v7693_v57 = vld [vmem:[#allocation119_spill] sm:$0xff] }
 0xab0   :  { %2904 = vmatpush1.bf16.msra.mxu1 %v7684_v13  ;;  %2945 = vmatpush1.bf16.msra.mxu0 %v7685_v38 }
 0xab1   :  { %2955 = vmatprep.subr.bf16.mxu1 %v7686_v21  ;;  %2996 = vmatprep.subr.bf16.mxu0 %v7687_v56  ;;  %v7694_v21 = vld [vmem:[#allocation64_spill] sm:$0xff] }
 0xb06   :  { %v2675_v24 = vpop.f32.mrb[80].mxu1  ;;  %v2716_v61 = vpop.f32.mrb[88].mxu0 }
 0xb07   :  { %v2809_v0 = vadd.f32 %v2675_v24, %v7688_v63  ;;  %v2677_v5 = vpop.f32.mrb[81].mxu1  ;;  %v2718_v16 = vpop.f32.mrb[89].mxu0  ;;  %v2811_v54 = vadd.f32 %v2716_v61, %v7691_v27  ;;  %v7695_v63 = vld [vmem:[#allocation66_spill] sm:$0xff] }
 0xb08   :  { %v2810_v55 = vadd.f32 %v2677_v5, %v7689_v17  ;;  %v2679_v18 = vpop.f32.mrb[82].mxu1  ;;  %v2720_v60 = vpop.f32.mrb[90].mxu0  ;;  %v2812_v15 = vadd.f32 %v2718_v16, %v7690_v7 }
 0xb09   :  { %v3393_v2 = vmul.f32 -1.442695, %v2809_v0  ;;  %v2680_v9 = vpop.f32.mrb[83].mxu1  ;;  %v2721_v31 = vpop.f32.mrb[91].mxu0 }
 0xb0a   :  { %v3394_v8 = vmul.f32 -1.442695, %v2810_v55  ;;  %v3395_v14 = vmul.f32 -1.442695, %v2812_v15 }
 0xb0b   :  { %3721 = vpow2.f32 %v3393_v2  ;;  %v7696_v2 = vld [vmem:[#allocation67_spill] sm:$0xff] }
 0xb0c   :  { %3723 = vpow2.f32 %v3394_v8  ;;  %v7697_v8 = vld [vmem:[#allocation65_spill] sm:$0xff] }
 0xb0d   :  { %3725 = vpow2.f32 %v3395_v14 }
 0xb0e   :  { %3727 = vtanh.f32 %v2811_v54 }
 0xb15   :  { %v3722_v59 = vpop.eup %3721 }
 0xb16   :  { %v3724_v49 = vpop.eup %3723  ;;  %v2824_v39 = vadd.f32 1.0, %v3722_v59 }
 0xb17   :  { %v2830_v1 = vadd.f32 1.0, %v3724_v49  ;;  %v3726_v4 = vpop.eup %3725 }
 0xb18   :  { %3729 = vrcp.f32 %v2824_v39  ;;  %v3728_v30 = vpop.eup %3727  ;;  %v2837_v35 = vadd.f32 1.0, %v3726_v4 }
 0xb19   :  { %3731 = vrcp.f32 %v2830_v1 }
 0xb1a   :  { %3733 = vrcp.f32 %v2837_v35 }
 0xb22   :  { %v3730_v40 = vpop.eup %3729 }
 0xb23   :  { %v3732_v3 = vpop.eup %3731  ;;  %v2841_v58 = vmul.f32 %v3730_v40, %v3728_v30 }
 0xb24   :  { %v2840_v33 = vmul.f32 %v3732_v3, %v7692_v22  ;;  %v3734_v52 = vpop.eup %3733 }
 0xb26   :  { %v6508_v32 = vadd.f32 %v2841_v58, %v2840_v33 }
 0xb28   :  { %3735 = vtanh.f32 %v6508_v32 }
 0xb32   :  { %v3736_v34 = vpop.eup %3735 }
 0xb33   :  { %v2844_v47 = vmul.f32 %v3736_v34, %v3734_v52 }
 0xb35   :  { %v6512_v12 = vadd.f32 %v2844_v47, %v7693_v57  ;;  %v6525_v34 = vpack.c.bf16 %v2844_v47, %v2844_v47  ;;  %v7715_v47 = vld [vmem:[#allocation29_spill] sm:$0xff]  ;;  %v7716_v57 = vld [vmem:[#allocation88_spill] sm:$0xff] }
 0xb46   :  { %v2757_v13 = vpop.f32.mrb[84].mxu1  ;;  %v2798_v38 = vpop.f32.mrb[92].mxu0 }
 0xb47   :  { %v2817_v56 = vadd.f32 %v2757_v13, %v7694_v21  ;;  %v2759_v24 = vpop.f32.mrb[85].mxu1  ;;  %v2800_v61 = vpop.f32.mrb[93].mxu0  ;;  %v2819_v7 = vadd.f32 %v2798_v38, %v7697_v8  ;;  %v7717_v13 = vld [vmem:[#allocation90_spill] sm:$0xff]  ;;  %v7718_v38 = vld [vmem:[#allocation31_spill] sm:$0xff]  ;;  %v7734_v8 = vld [vmem:[#allocation172_spill] sm:$0xff] }
 0xb48   :  { %v2818_v0 = vadd.f32 %v2759_v24, %v7695_v63  ;;  %v2761_v5 = vpop.f32.mrb[86].mxu1  ;;  %v2802_v16 = vpop.f32.mrb[94].mxu0  ;;  %v2820_v9 = vadd.f32 %v2800_v61, %v7696_v2  ;;  %v7719_v21 = vld [vmem:[#allocation91_spill] sm:$0xff]  ;;  %v7721_v24 = vld [vmem:[#allocation125_spill] sm:$0xff]  ;;  %v7723_v63 = vld [vmem:[#allocation126_spill] sm:$0xff] }
 0xb49   :  { %v3396_v17 = vmul.f32 -1.442695, %v2817_v56  ;;  %v2762_v55 = vpop.f32.mrb[87].mxu1  ;;  %v2803_v18 = vpop.f32.mrb[95].mxu0  ;;  %v7720_v56 = vld [vmem:[#allocation89_spill] sm:$0xff]  ;;  %v7722_v61 = vld [vmem:[#allocation127_spill] sm:$0xff] }
 0xb4a   :  { %v3397_v60 = vmul.f32 -1.442695, %v2818_v0  ;;  %v3398_v31 = vmul.f32 -1.442695, %v2820_v9  ;;  %v7724_v0 = vld [vmem:[#allocation128_spill] sm:$0xff]  ;;  %v7725_v5 = vld [vmem:[#allocation129_spill] sm:$0xff] }
 0xb4b   :  { %3737 = vpow2.f32 %v3396_v17  ;;  %v7726_v16 = vld [vmem:[#allocation131_spill] sm:$0xff]  ;;  %v7727_v17 = vld [vmem:[#allocation130_spill] sm:$0xff]  ;;  %v7728_v55 = vld [vmem:[#allocation132_spill] sm:$0xff] }
 0xb4c   :  { %3739 = vpow2.f32 %v3397_v60  ;;  %v7729_v18 = vld [vmem:[#allocation162_spill] sm:$0xff]  ;;  %v7731_v2 = vld [vmem:[#allocation169_spill] sm:$0xff]  ;;  %v7732_v9 = vld [vmem:[#allocation171_spill] sm:$0xff] }
 0xb4d   :  { %3741 = vpow2.f32 %v3398_v31  ;;  %v7730_v60 = vld [vmem:[#allocation166_spill] sm:$0xff] }
 0xb4e   :  { %3743 = vtanh.f32 %v2819_v7  ;;  %v7733_v31 = vld [vmem:[#allocation170_spill] sm:$0xff]  ;;  %v7735_v7 = vld [vmem:[#allocation173_spill] sm:$0xff] }
 0xb55   :  { %v3738_v15 = vpop.eup %3737 }
 0xb56   :  { %v3740_v14 = vpop.eup %3739  ;;  %v2848_v27 = vadd.f32 1.0, %v3738_v15  ;;  %v7736_v15 = vld [vmem:[#allocation174_spill] sm:$0xff] }
 0xb57   :  { %v2854_v54 = vadd.f32 1.0, %v3740_v14  ;;  %v3742_v59 = vpop.eup %3741  ;;  %v7737_v14 = vld [vmem:[#allocation175_spill] sm:$0xff] }
 0xb58   :  { %3745 = vrcp.f32 %v2848_v27  ;;  %v3744_v49 = vpop.eup %3743  ;;  %v2861_v30 = vadd.f32 1.0, %v3742_v59  ;;  %v7738_v27 = vld [vmem:[#allocation176_spill] sm:$0xff] }
 0xb59   :  { %3747 = vrcp.f32 %v2854_v54 }
 0xb5a   :  { %3749 = vrcp.f32 %v2861_v30 }
 0xb62   :  { %v3746_v39 = vpop.eup %3745 }
 0xb63   :  { %v3748_v1 = vpop.eup %3747  ;;  %v2865_v4 = vmul.f32 %v3746_v39, %v3744_v49  ;;  %v7739_v49 = vld [vmem:[#allocation56_spill] sm:$0xff] }
 0xb64   :  { %v2864_v40 = vmul.f32 %v3748_v1, %v6239_v46  ;;  %v3750_v58 = vpop.eup %3749  ;;  %v7698_v46 = vld [vmem:[#allocation118_spill] sm:$0xff] }
 0xb66   :  { %v6519_v3 = vadd.f32 %v2865_v4, %v2864_v40  ;;  %v7740_v4 = vld [vmem:[#allocation58_spill] sm:$0xff] }
 0xb68   :  { %3751 = vtanh.f32 %v6519_v3 }
 0xb72   :  { %v3752_v35 = vpop.eup %3751 }
 0xb73   :  { %v2868_v22 = vmul.f32 %v3752_v35, %v3750_v58 }
 0xb75   :  { %v6523_v33 = vadd.f32 %v2868_v22, %v6243_v11  ;;  %v2872_v52 = vpack.c.bf16 %v2868_v22, %v2868_v22  ;;  %v7699_v11 = vld [vmem:[#allocation120_spill] sm:$0xff] }
 0xb77   :  { %2905 = vmatprep.mubr.bf16.mxu1 %v2872_v52  ;;  %2946 = vmatprep.mubr.bf16.mxu0 %v2872_v52 }
 0xb78   :  { %2906 = vmatmul.mubr.bf16.vlgmr.msra.gmra.mrb[88].mxu1 %v6525_v34  ;;  %2947 = vmatmul.mubr.bf16.vlgmr.msra.gmra.mrb[96].mxu0 %v6525_v34 }
 0xb79   :  { %2956 = vmatpush1.bf16.msra.mxu1 %v6249_v53  ;;  %2997 = vmatpush1.bf16.msra.mxu0 %v6252_v43  ;;  %v7700_v53 = vld [vmem:[#allocation121_spill] sm:$0xff]  ;;  %v7701_v43 = vld [vmem:[#allocation123_spill] sm:$0xff] }
 0xb7a   :  { %2987 = vmatprep.mubr.bf16.mxu1 %v2872_v52  ;;  %3028 = vmatprep.mubr.bf16.mxu0 %v2872_v52  ;;  %v7742_v52 = vld [vmem:[#allocation57_spill] sm:$0xff] }
 0xb7b   :  { %2957 = vmatprep.subr.bf16.mxu1 %v6255_v51  ;;  %2998 = vmatprep.subr.bf16.mxu0 %v6258_v25  ;;  %v7702_v51 = vld [vmem:[#allocation122_spill] sm:$0xff]  ;;  %v7703_v25 = vld [vmem:[#allocation124_spill] sm:$0xff] }
 0xb7d   :  { %2958 = vmatpush1.bf16.msra.mxu1 %v6261_v37  ;;  %2999 = vmatpush1.bf16.msra.mxu0 %v6264_v26  ;;  %v7704_v37 = vld [vmem:[#allocation145_spill] sm:$0xff]  ;;  %v7705_v26 = vld [vmem:[#allocation147_spill] sm:$0xff] }
 0xb7e   :  { %2959 = vmatprep.subr.bf16.mxu1 %v6267_v20  ;;  %3000 = vmatprep.subr.bf16.mxu0 %v6270_v29  ;;  %v7706_v20 = vld [vmem:[#allocation146_spill] sm:$0xff]  ;;  %v7707_v29 = vld [vmem:[#allocation148_spill] sm:$0xff] }
 0xb81   :  { %2960 = vmatpush1.bf16.msra.mxu1 %v6273_v44  ;;  %3001 = vmatpush1.bf16.msra.mxu0 %v6276_v41  ;;  %v7708_v44 = vld [vmem:[#allocation149_spill] sm:$0xff]  ;;  %v7709_v41 = vld [vmem:[#allocation151_spill] sm:$0xff] }
 0xb82   :  { %2961 = vmatprep.subr.bf16.mxu1 %v6279_v19  ;;  %3002 = vmatprep.subr.bf16.mxu0 %v6282_v50  ;;  %v7710_v19 = vld [vmem:[#allocation150_spill] sm:$0xff]  ;;  %v7711_v50 = vld [vmem:[#allocation152_spill] sm:$0xff] }
 0xb85   :  { %2962 = vmatpush1.bf16.msra.mxu1 %v6285_v48  ;;  %3003 = vmatpush1.bf16.msra.mxu0 %v6288_v10  ;;  %v7712_v48 = vld [vmem:[#allocation153_spill] sm:$0xff]  ;;  %v7713_v10 = vld [vmem:[#allocation155_spill] sm:$0xff] }
 0xb86   :  { %2963 = vmatprep.subr.bf16.mxu1 %v6291_v62  ;;  %3004 = vmatprep.subr.bf16.mxu0 %v7698_v46  ;;  %v7714_v62 = vld [vmem:[#allocation154_spill] sm:$0xff] }
 0xb89   :  { %2964 = vmatpush1.bf16.msra.mxu1 %v7699_v11  ;;  %3005 = vmatpush1.bf16.msra.mxu0 %v7700_v53 }
 0xb8a   :  { %2965 = vmatprep.subr.bf16.mxu1 %v7701_v43  ;;  %3006 = vmatprep.subr.bf16.mxu0 %v7702_v51 }
 0xb8d   :  { %2966 = vmatpush1.bf16.msra.mxu1 %v7703_v25  ;;  %3007 = vmatpush1.bf16.msra.mxu0 %v7704_v37 }
 0xb8e   :  { %2967 = vmatprep.subr.bf16.mxu1 %v7705_v26  ;;  %3008 = vmatprep.subr.bf16.mxu0 %v7706_v20 }
 0xb91   :  { %2968 = vmatpush1.bf16.msra.mxu1 %v7707_v29  ;;  %3009 = vmatpush1.bf16.msra.mxu0 %v7708_v44 }
 0xb92   :  { %2969 = vmatprep.subr.bf16.mxu1 %v7709_v41  ;;  %3010 = vmatprep.subr.bf16.mxu0 %v7710_v19 }
 0xb95   :  { %2970 = vmatpush1.bf16.msra.mxu1 %v7711_v50  ;;  %3011 = vmatpush1.bf16.msra.mxu0 %v7712_v48 }
 0xb96   :  { %2971 = vmatprep.subr.bf16.mxu1 %v7713_v10  ;;  %3012 = vmatprep.subr.bf16.mxu0 %v7714_v62 }
 0xb99   :  { %2972 = vmatpush1.bf16.msra.mxu1 %v7715_v47  ;;  %3013 = vmatpush1.bf16.msra.mxu0 %v7716_v57 }
 0xb9a   :  { %2973 = vmatprep.subr.bf16.mxu1 %v7717_v13  ;;  %3014 = vmatprep.subr.bf16.mxu0 %v7718_v38  ;;  %v7743_v13 = vld [vmem:[#allocation60_spill] sm:$0xff] }
 0xb9d   :  { %2974 = vmatpush1.bf16.msra.mxu1 %v7719_v21  ;;  %3015 = vmatpush1.bf16.msra.mxu0 %v7720_v56 }
 0xb9e   :  { %2975 = vmatprep.subr.bf16.mxu1 %v7721_v24  ;;  %3016 = vmatprep.subr.bf16.mxu0 %v7722_v61  ;;  %v7744_v24 = vld [vmem:[#allocation62_spill] sm:$0xff] }
 0xba1   :  { %2976 = vmatpush1.bf16.msra.mxu1 %v7723_v63  ;;  %3017 = vmatpush1.bf16.msra.mxu0 %v7724_v0 }
 0xba2   :  { %2977 = vmatprep.subr.bf16.mxu1 %v7725_v5  ;;  %3018 = vmatprep.subr.bf16.mxu0 %v7726_v16 }
 0xba5   :  { %2978 = vmatpush1.bf16.msra.mxu1 %v7727_v17  ;;  %3019 = vmatpush1.bf16.msra.mxu0 %v7728_v55  ;;  %v7745_v55 = vld [vmem:[#allocation63_spill] sm:$0xff] }
 0xba6   :  { %2979 = vmatprep.subr.bf16.mxu1 %v7729_v18  ;;  %3020 = vmatprep.subr.bf16.mxu0 %v7730_v60  ;;  %v7746_v60 = vld [vmem:[#allocation61_spill] sm:$0xff] }
 0xba9   :  { %2980 = vmatpush1.bf16.msra.mxu1 %v7731_v2  ;;  %3021 = vmatpush1.bf16.msra.mxu0 %v7732_v9 }
 0xbaa   :  { %2981 = vmatprep.subr.bf16.mxu1 %v7733_v31  ;;  %3022 = vmatprep.subr.bf16.mxu0 %v7734_v8 }
 0xbad   :  { %2982 = vmatpush1.bf16.msra.mxu1 %v7735_v7  ;;  %3023 = vmatpush1.bf16.msra.mxu0 %v7736_v15 }
 0xbae   :  { %2983 = vmatprep.subr.bf16.mxu1 %v7737_v14  ;;  %3024 = vmatprep.subr.bf16.mxu0 %v7738_v27 }
 0xbb1   :  { %2984 = vmatpush1.bf16.msra.mxu1 %v6417_v28  ;;  %3025 = vmatpush1.bf16.msra.mxu0 %v6420_v36 }
 0xbb2   :  { %2985 = vmatprep.subr.bf16.mxu1 %v6423_v42  ;;  %3026 = vmatprep.subr.bf16.mxu0 %v6426_v6 }
 0xbb5   :  { %2986 = vmatpush1.bf16.msra.mxu1 %v6429_v23  ;;  %3027 = vmatpush1.bf16.msra.mxu0 %v6432_v45  ;;  %v7741_v45 = vld [vmem:[#allocation59_spill] sm:$0xff] }
 0xbb8   :  { %2988 = vmatmul.mubr.bf16.vlgmr.msra.gmra.mrb[92].mxu1 %v6525_v34  ;;  %3029 = vmatmul.mubr.bf16.vlgmr.msra.gmra.mrb[100].mxu0 %v6525_v34 }
 0xc4b   :  { %v2907_v54 = vpop.f32.mrb[88].mxu1  ;;  %v2948_v59 = vpop.f32.mrb[96].mxu0 }
 0xc4c   :  { %v3041_v39 = vadd.f32 %v2907_v54, %v7739_v49  ;;  %v2909_v1 = vpop.f32.mrb[89].mxu1  ;;  %v2950_v28 = vpop.f32.mrb[97].mxu0  ;;  %v3043_v34 = vadd.f32 %v2948_v59, %v7742_v52 }
 0xc4d   :  { %v3042_v36 = vadd.f32 %v2909_v1, %v7740_v4  ;;  %v2911_v30 = vpop.f32.mrb[90].mxu1  ;;  %v2952_v42 = vpop.f32.mrb[98].mxu0  ;;  %v3044_v35 = vadd.f32 %v2950_v28, %v7741_v45 }
 0xc4e   :  { %v3399_v40 = vmul.f32 -1.442695, %v3041_v39  ;;  %v2912_v6 = vpop.f32.mrb[91].mxu1  ;;  %v2953_v58 = vpop.f32.mrb[99].mxu0 }
 0xc4f   :  { %v3400_v23 = vmul.f32 -1.442695, %v3042_v36  ;;  %v3401_v22 = vmul.f32 -1.442695, %v3044_v35 }
 0xc50   :  { %3753 = vpow2.f32 %v3399_v40 }
 0xc51   :  { %3755 = vpow2.f32 %v3400_v23 }
 0xc52   :  { %3757 = vpow2.f32 %v3401_v22 }
 0xc53   :  { %3759 = vtanh.f32 %v3043_v34 }
 0xc5a   :  { %v3754_v46 = vpop.eup %3753 }
 0xc5b   :  { %v3756_v11 = vpop.eup %3755  ;;  %v3056_v53 = vadd.f32 1.0, %v3754_v46 }
 0xc5c   :  { %v3062_v43 = vadd.f32 1.0, %v3756_v11  ;;  %v3758_v51 = vpop.eup %3757 }
 0xc5d   :  { %3761 = vrcp.f32 %v3056_v53  ;;  %v3760_v25 = vpop.eup %3759  ;;  %v3069_v29 = vadd.f32 1.0, %v3758_v51 }
 0xc5e   :  { %3763 = vrcp.f32 %v3062_v43 }
 0xc5f   :  { %3765 = vrcp.f32 %v3069_v29 }
 0xc67   :  { %v3762_v37 = vpop.eup %3761 }
 0xc68   :  { %v3764_v26 = vpop.eup %3763  ;;  %v3073_v20 = vmul.f32 %v3762_v37, %v3760_v25 }
 0xc69   :  { %v3072_v44 = vmul.f32 %v3764_v26, %v6508_v32  ;;  %v3766_v19 = vpop.eup %3765 }
 0xc6b   :  { %v3074_v41 = vadd.f32 %v3073_v20, %v3072_v44 }
 0xc6d   :  { %3767 = vtanh.f32 %v3074_v41 }
 0xc77   :  { %v3768_v50 = vpop.eup %3767 }
 0xc78   :  { %v3076_v48 = vmul.f32 %v3768_v50, %v3766_v19 }
 0xc7a   :  { %v3101_v10 = vadd.f32 %v3076_v48, %v6512_v12 }
 0xc7c   :  { %v6599_v62 = vmul.f32 0.125, %v3101_v10 }
 0xc8b   :  { %v2989_v47 = vpop.f32.mrb[92].mxu1  ;;  %v3030_v57 = vpop.f32.mrb[100].mxu0 }
 0xc8c   :  { %v3049_v38 = vadd.f32 %v2989_v47, %v7743_v13  ;;  %v2991_v21 = vpop.f32.mrb[93].mxu1  ;;  %v3032_v56 = vpop.f32.mrb[101].mxu0  ;;  %v3051_v2 = vadd.f32 %v3030_v57, %v7746_v60 }
 0xc8d   :  { %v3050_v61 = vadd.f32 %v2991_v21, %v7744_v24  ;;  %v2993_v63 = vpop.f32.mrb[94].mxu1  ;;  %v3034_v32 = vpop.f32.mrb[102].mxu0  ;;  %v3052_v12 = vadd.f32 %v3032_v56, %v7745_v55 }
 0xc8e   :  { %v3402_v0 = vmul.f32 -1.442695, %v3049_v38  ;;  %v2994_v5 = vpop.f32.mrb[95].mxu1  ;;  %v3035_v16 = vpop.f32.mrb[103].mxu0 }
 0xc8f   :  { %v3403_v17 = vmul.f32 -1.442695, %v3050_v61  ;;  %v3404_v18 = vmul.f32 -1.442695, %v3052_v12 }
 0xc90   :  { %3769 = vpow2.f32 %v3402_v0 }
 0xc91   :  { %3771 = vpow2.f32 %v3403_v17 }
 0xc92   :  { %3773 = vpow2.f32 %v3404_v18 }
 0xc93   :  { %3775 = vtanh.f32 %v3051_v2 }
 0xc9a   :  { %v3770_v9 = vpop.eup %3769 }
 0xc9b   :  { %v3772_v31 = vpop.eup %3771  ;;  %v3080_v8 = vadd.f32 1.0, %v3770_v9 }
 0xc9c   :  { %v3086_v7 = vadd.f32 1.0, %v3772_v31  ;;  %v3774_v15 = vpop.eup %3773 }
 0xc9d   :  { %3777 = vrcp.f32 %v3080_v8  ;;  %v3776_v14 = vpop.eup %3775  ;;  %v3093_v49 = vadd.f32 1.0, %v3774_v15 }
 0xc9e   :  { %3779 = vrcp.f32 %v3086_v7 }
 0xc9f   :  { %3781 = vrcp.f32 %v3093_v49 }
 0xca7   :  { %v3778_v27 = vpop.eup %3777 }
 0xca8   :  { %v3780_v54 = vpop.eup %3779  ;;  %v3097_v59 = vmul.f32 %v3778_v27, %v3776_v14 }
 0xca9   :  { %v3096_v39 = vmul.f32 %v3780_v54, %v6519_v3  ;;  %v3782_v28 = vpop.eup %3781 }
 0xcab   :  { %v3098_v1 = vadd.f32 %v3097_v59, %v3096_v39 }
 0xcad   :  { %3783 = vtanh.f32 %v3098_v1 }
 0xcb7   :  { %v3784_v4 = vpop.eup %3783 }
 0xcb8   :  { %v3100_v36 = vmul.f32 %v3784_v4, %v3782_v28 }
 0xcba   :  { %v3102_v30 = vadd.f32 %v3100_v36, %v6523_v33 }
 0xcbc   :  { %v3104_v42 = vmul.f32 0.125, %v3102_v30 }
 0xcbd   :  { %4179 = dma.done.wait [#allocation6 + $0x1], 2048 }
 0xcbe   :  { %4180 = vsyncadd [#allocation6 + $0x1], 4294965248 }
 0xcbf   :  { %4181 = dma.done.wait [#allocation6 + $0x2], 1024 }
 0xcc0   :  { %4182 = vsyncadd [#allocation6 + $0x2], 4294966272  ;;  %v3113_v40 = vpack.c.bf16 %v3104_v42, %v3104_v42  ;;  %v4202_v6 = vmov 0.0   ;;  %v3122_v58 = vld [vmem:[#allocation4 + $0x40] sm:$0xff]  ;;  %v3123_v3 = vld [vmem:[#allocation4 + $0x48] sm:$0xff]  ;;  %v3112_v50 = vpack.c.bf16 %v6599_v62, %v6599_v62  ;;  %vm4203_vm0 = vmmov 0  }
 0xcc1   :  { %3477 = vmatprep.subr.bf16.mxu0 %v4202_v6  ;;  %v3114_v23 = vld [vmem:[#allocation4] sm:$0xff]  ;;  %3422 = vmatprep.subr.bf16.mxu1 %v3122_v58  ;;  %v3115_v45 = vld [vmem:[#allocation4 + $0x8] sm:$0xff]  ;;  %v3124_v35 = vld [vmem:[#allocation4 + $0x50] sm:$0xff]  ;;  %s4204_s27 = smov [#allocation13]  }
 0xcc2   :  { %3169 = vmatprep.mubr.bf16.mxu1 %v3113_v40  ;;  %3423 = vmatpush3.bf16.msra.mxu1 %v3114_v23  ;;  %v3179_v22 = vld [vmem:[#allocation5] sm:$0xff]  ;;  %v3116_v33 = vld [vmem:[#allocation4 + $0x10] sm:$0xff]  ;;  %v3180_v52 = vld [vmem:[#allocation5 + $0x8] sm:$0xff]  ;;  %s3241_s28 = sshll.u32 %s4204_s27, 4  ;;  %s3242_s28 = int_to_ptr.vmem [resolvable:$true] %s3241_s28 }
 0xcc3   :  { %3424 = vmatprep.subr.bf16.mxu1 %v3123_v3  ;;  %3478 = vmatpush3.bf16.msra.mxu0 %v3179_v22  ;;  %v3125_v34 = vld [vmem:[#allocation4 + $0x58] sm:$0xff]  ;;  %v3181_v11 = vld [vmem:[#allocation5 + $0x10] sm:$0xff]  ;;  %v3126_v53 = vld [vmem:[#allocation4 + $0x60] sm:$0xff]  ;;  %p4156_p13 = scmp.lt.s32.totalorder %s3242_s28, %s3242_s28 }
 0xcc4   :  { %3479 = vmatprep.subr.bf16.mxu0 %v4202_v6  ;;  %v3117_v46 = vld [vmem:[#allocation4 + $0x18] sm:$0xff]  ;;  %v3118_v43 = vld [vmem:[#allocation4 + $0x20] sm:$0xff]  ;;  %v3127_v25 = vld [vmem:[#allocation4 + $0x68] sm:$0xff]  ;;  %3493 = vmatprep.mubr.msk.bf16.mxu0 %vm4203_vm0, %v4202_v6 }
 0xcc5   :  { %v3182_v51 = vld [vmem:[#allocation5 + $0x18] sm:$0xff]  ;;  %v3119_v37 = vld [vmem:[#allocation4 + $0x28] sm:$0xff]  ;;  %v3183_v26 = vld [vmem:[#allocation5 + $0x20] sm:$0xff] }
 0xcc6   :  { %3425 = vmatpush3.bf16.msra.mxu1 %v3115_v45  ;;  %v3128_v20 = vld [vmem:[#allocation4 + $0x70] sm:$0xff]  ;;  %v3184_v44 = vld [vmem:[#allocation5 + $0x28] sm:$0xff]  ;;  %v3129_v41 = vld [vmem:[#allocation4 + $0x78] sm:$0xff] }
 0xcc7   :  { %3426 = vmatprep.subr.bf16.mxu1 %v3124_v35  ;;  %3480 = vmatpush3.bf16.msra.mxu0 %v3180_v52  ;;  %v3120_v29 = vld [vmem:[#allocation4 + $0x30] sm:$0xff]  ;;  %v3121_v19 = vld [vmem:[#allocation4 + $0x38] sm:$0xff]  ;;  %v3405_v57 = vld [vmem:[%s6635_s8] ss:$0 sm:$0xff]  ;;  %s4151_s8 = scalar_lea.vmem %s3242_s28, 128 }
 0xcc8   :  { %3481 = vmatprep.subr.bf16.mxu0 %v4202_v6  ;;  %v3185_v48 = vld [vmem:[#allocation5 + $0x30] sm:$0xff]  ;;  %v3186_v10 = vld [vmem:[#allocation5 + $0x38] sm:$0xff]  ;;  %v3406_v63 = vld [vmem:[%s6636_s9] ss:$0 sm:$0xff]  ;;  %p4152_p12 = scmp.ne.s32.totalorder %s3242_s28, %s4151_s8  ;;  %p4157_p0 = scmp.lt.s32.totalorder %s4151_s8, %s4151_s8 }
 0xcca   :  { %3427 = vmatpush3.bf16.msra.mxu1 %v3116_v33  ;;  %p4158_p1 = por %p4157_p0, %p4156_p13 }
 0xccb   :  { %3428 = vmatprep.subr.bf16.mxu1 %v3125_v34  ;;  %3482 = vmatpush3.bf16.msra.mxu0 %v3181_v11 }
 0xccc   :  { %3483 = vmatprep.subr.bf16.mxu0 %v4202_v6  ;;  %p4159_p2 = pnand %p4158_p1, %p4152_p12 }
 0xcce   :  { %3429 = vmatpush3.bf16.msra.mxu1 %v3117_v46 }
 0xccf   :  { %3430 = vmatprep.subr.bf16.mxu1 %v3126_v53  ;;  %3484 = vmatpush3.bf16.msra.mxu0 %v3182_v51 }
 0xcd0   :  { %3485 = vmatprep.subr.bf16.mxu0 %v4202_v6 }
 0xcd2   :  { %3431 = vmatpush3.bf16.msra.mxu1 %v3118_v43 }
 0xcd3   :  { %3432 = vmatprep.subr.bf16.mxu1 %v3127_v25  ;;  %3486 = vmatpush3.bf16.msra.mxu0 %v3183_v26 }
 0xcd4   :  { %3487 = vmatprep.subr.bf16.mxu0 %v4202_v6 }
 0xcd6   :  { %3433 = vmatpush3.bf16.msra.mxu1 %v3119_v37 }
 0xcd7   :  { %3434 = vmatprep.subr.bf16.mxu1 %v3128_v20  ;;  %3488 = vmatpush3.bf16.msra.mxu0 %v3184_v44 }
 0xcd8   :  { %3489 = vmatprep.subr.bf16.mxu0 %v4202_v6 }
 0xcda   :  { %3435 = vmatpush3.bf16.msra.mxu1 %v3120_v29 }
 0xcdb   :  { %3436 = vmatprep.subr.bf16.mxu1 %v3129_v41  ;;  %3490 = vmatpush3.bf16.msra.mxu0 %v3185_v48 }
 0xcdc   :  { %3491 = vmatprep.subr.bf16.mxu0 %v4202_v6 }
 0xcde   :  { %3437 = vmatpush3.bf16.msra.mxu1 %v3121_v19 }
 0xcdf   :  { %3492 = vmatpush3.bf16.msra.mxu0 %v3186_v10 }
 0xce1   :  { %3170 = vmatmul.mubr.bf16.vlgmr.msra.gmra.mrb[96].mxu1 %v3112_v50 }
 0xdb4   :  { %v3438_v47 = vpop.f32.mrb[96].mxu1 }
 0xdb5   :  { %v3439_v13 = vpop.f32.mrb[97].mxu1 }
 0xdb6   :  { %v3440_v38 = vadd.f32 %v3439_v13, %v3438_v47  ;;  %v3441_v21 = vpop.f32.mrb[98].mxu1 }
 0xdb7   :  { %v3442_v56 = vpop.f32.mrb[99].mxu1 }
 0xdb8   :  { %v3172_v24 = vadd.f32 %v3440_v38, %v3405_v57 }
 0xdba   :  { %v3177_v62 = vmax.f32 %v3172_v24, 0.0 }
 0xdbc   :  { %v3178_v61 = vpack.c.bf16 %v3177_v62, %v3177_v62 }
 0xdbe   :  { %3494 = vmatmul.mubr.bf16.vlgmr.msra.gmra.mrb[104].mxu0 %v3178_v61 }
 0xe91   :  { %v3228_v32 = vpop.f32.mrb[104].mxu0 }
 0xe92   :  { %v3229_v0 = vadd.f32 %v3406_v63, %v3228_v32  ;;  %v3495_v5 = vpop.f32.mrb[105].mxu0 }
 0xe93   :  { %v3231_v16 = vpop.f32.mrb[106].mxu0 }
 0xe94   :  { %3234 = vst [vmem:[#allocation13] sm:$0xff] %v3229_v0  ;;  %v3496_v17 = vpop.f32.mrb[107].mxu0 }
 0xe95   :  { %4162 = shalt.err (!%p4159_p2)
}
 0xe96   :  { %s4163_s9 = scalar_lea.hbm %s6637_s10, 128 }
 0xe97   :  { %p4164_p3 = scmp.ne.s32.totalorder %s6637_s10, %s4163_s9  ;;  %p4167_p4 = scmp.lt.u32.totalorder %s4163_s9, %s6637_s10 }
 0xe99   :  { %p4169_p5 = pnand %p4167_p4, %p4164_p3 }
 0xe9b   :  { %4172 = shalt.err (!%p4169_p5)
}
 0xe9c   :  { %3244 = dma.vmem_to_hbm [thread:$0]  %s3242_s28, 128, %s6637_s10, [#allocation9]  }
 0xe9d   :  { %4183 = dma.done.wait [#allocation9], 128  }
 0xe9e   :  { %4184 = vsyncadd [#allocation9], 4294967168 }
 0xe9f   :  { %3248 = vsyncpa [#allocation8], 1 }
 0xea0   :  { %3249 = vsyncpa [#allocation11], 1 }
 0xea1   :  { %3250 = vsyncpa [#allocation9], 1 }
 0xea2   :  { %3251 = vsyncmov [#allocation6] }
 0xea5   :  { %s3252_s17 = vpop.sfrf %3251 }
 0xea6   :  { %p3407_p6 = scmp.ne.s32.totalorder %s3252_s17, 0 }
 0xea8   :  { %3256 = shalt.err (%p3407_p6)  }
 0xea9   :  { %3258 = vsyncmov [#allocation6 + $0x1] }
 0xeac   :  { %s3259_s18 = vpop.sfrf %3258 }
 0xead   :  { %p3408_p7 = scmp.ne.s32.totalorder %s3259_s18, 0 }
 0xeaf   :  { %3263 = shalt.err (%p3408_p7)  }
 0xeb0   :  { %3265 = vsyncmov [#allocation6 + $0x2] }
 0xeb3   :  { %s3266_s1 = vpop.sfrf %3265 }
 0xeb4   :  { %p3409_p8 = scmp.ne.s32.totalorder %s3266_s1, 0 }
 0xeb6   :  { %3270 = shalt.err (%p3409_p8)  }

</bundles_post_ra>
